<compile_context>
chip_gen: v6e
topology: v6e:2x2x1
jax: 0.10.0
libtpu: 0.0.40
codegen_flags: <defaults>
</compile_context>

<pallas_src>
import jax
import jax.numpy as jnp
import numpy as np
from jax import lax
from jax.experimental import pallas as pl
from jax.experimental.pallas import tpu as pltpu

EMB = 128      # embedding_dim
HID = 128      # hidden_dim
D_MLP = 64     # d
P_STEPS = 3    # p


def _gates_to_hc(gates, c_prev):
    """PyTorch-gate-order LSTM nonlinearity: gates (B,4H) f32, c_prev (B,H) f32."""
    i = jax.nn.sigmoid(gates[:, 0:HID])
    f = jax.nn.sigmoid(gates[:, HID:2 * HID])
    g = jnp.tanh(gates[:, 2 * HID:3 * HID])
    o = jax.nn.sigmoid(gates[:, 3 * HID:4 * HID])
    c_new = f * c_prev + i * g
    h_new = o * jnp.tanh(c_new)
    return h_new, c_new


def critic_kernel(emb_ref, masks_ref,
                  enc_h0_ref, enc_c0_ref,
                  enc_wih_ref, enc_whh_ref, enc_b_ref,
                  dec_in0_ref, pb_w_ref, pb_b_ref,
                  att_wref_ref, att_wq_ref, att_b_ref, att_v_ref,
                  mlp_w1_ref, mlp_b1_ref, mlp_w2_ref, mlp_b2_ref,
                  out_ref,
                  gates_scr, enc_scr):
    S, Bt, _ = emb_ref.shape
    H = HID
    bf16 = jnp.bfloat16

    masks = masks_ref[...]                                    # (S, Bt, 2) f32
    # channel 0: step-validity (t < len) mask, channel 1: attention mask (inputs>0)

    # ---- hoisted input-side encoder matmul: one bf16 (S*Bt, EMB) @ (EMB, 4H) ----
    emb2 = emb_ref[...].reshape(S * Bt, EMB)                  # bf16
    gates_x = (jnp.dot(emb2, enc_wih_ref[...], preferred_element_type=jnp.float32)
               + enc_b_ref[...])                              # (S*Bt, 4H) f32
    gates_scr[...] = gates_x.reshape(S, Bt, 4 * H)

    # ---- encoder LSTM recurrence (unrolled): only h @ W_hh per step ----
    h = jnp.broadcast_to(enc_h0_ref[...], (Bt, H))            # f32 state
    c = jnp.broadcast_to(enc_c0_ref[...], (Bt, H))
    whh = enc_whh_ref[...]                                    # bf16
    for t in range(S):                                        # S static & small
        gates = gates_scr[t] + jnp.dot(h.astype(bf16), whh,
                                       preferred_element_type=jnp.float32)
        h_new, c_new = _gates_to_hc(gates, c)
        sv = masks[t, :, 0:1]                                 # (Bt,1) f32 in {0,1}
        enc_scr[t] = (sv * h_new).astype(bf16)                # zero past length
        h = h + sv * (h_new - h)                              # freeze state (mul, no select)
        c = c + sv * (c_new - c)

    enc_all = enc_scr[...]                                    # (S, Bt, H) bf16
    v = att_v_ref[...]                                        # (1, H) f32
    score_bias = (masks[:, :, 1:2] - 1.0) * 1e30              # 0 valid / -1e30 masked (f32)

    # attention ref-side projection is loop-invariant -> compute once (ref bias folded
    # into the query-side bias att_b in the wrapper)
    ref_proj = jnp.dot(enc_all.reshape(S * Bt, H), att_wref_ref[...],
                       preferred_element_type=jnp.float32).reshape(S, Bt, H)

    # ---- process block (fused-weight single-step LSTM) + glimpse loop ----
    pb_w = pb_w_ref[...]                                      # (2H, 4H) bf16
    pb_b = pb_b_ref[...]                                      # (1, 4H) f32
    att_wq = att_wq_ref[...]                                  # bf16
    att_b = att_b_ref[...]                                    # f32
    dec_in = jnp.broadcast_to(dec_in0_ref[...], (Bt, H))      # f32
    dec_h, dec_c = h, c
    h_final = dec_h
    for step in range(P_STEPS + 1):
        xc = jnp.concatenate([dec_in, dec_h], axis=-1).astype(bf16)     # (Bt, 2H)
        gates = jnp.dot(xc, pb_w, preferred_element_type=jnp.float32) + pb_b
        h_new, c_new = _gates_to_hc(gates, dec_c)
        if step == P_STEPS:
            h_final = h_new
        else:
            q_proj = (jnp.dot(h_new.astype(bf16), att_wq,
                              preferred_element_type=jnp.float32) + att_b)
            e = jnp.tanh(ref_proj + q_proj[None, :, :])       # (S, Bt, H) f32
            scores = jnp.sum(e * v, axis=-1, keepdims=True) + score_bias
            scores = scores - jnp.max(scores, axis=0, keepdims=True)
            p = jnp.exp(scores)                               # (S, Bt, 1) f32
            denom = jnp.sum(p, axis=0)                        # (Bt, 1)
            glimpse = jnp.sum(p * enc_all, axis=0)            # (Bt, H) f32
            dec_in = glimpse * pl.reciprocal(denom, approx=True)
            dec_h, dec_c = h_new, c_new

    # ---- decoder MLP: Linear(H, d) -> ReLU -> Linear(d, 1) ----
    h1 = jnp.maximum(jnp.dot(h_final.astype(bf16), mlp_w1_ref[...],
                             preferred_element_type=jnp.float32)
                     + mlp_b1_ref[...], 0.0)                  # (Bt, d) f32
    # final contraction done as (1,d)x(Bt,d)^T -> (1,Bt): lane-major result directly,
    # no 1-lane MXU output and no reduce+transpose relayout before the store.
    out_row = lax.dot_general(mlp_w2_ref[...], h1,
                              dimension_numbers=(((1,), (1,)), ((), ())),
                              preferred_element_type=jnp.float32)       # (1, Bt)
    out_ref[...] = out_row + mlp_b2_ref[...]                  # lane-dense store


def critic_net_forward(params, inputs, sequence_lengths, max_sequence_length,
                       batch_tile=None):
    """inputs: (B, S, 2) float32, sequence_lengths: (B,) int32."""
    B, S, _ = inputs.shape
    assert S == max_sequence_length
    if batch_tile is None:
        batch_tile = B            # tiny/demo B: single grid step, no per-step overhead
    assert B % batch_tile == 0
    # batch_tile==B keeps every block legal; otherwise require a lane-dense multiple of
    # 128 (satisfies both the (8,128) sublane rule and the (1,Bt) lane-major out block).
    assert batch_tile == B or batch_tile % 128 == 0
    Bt = batch_tile
    n_b = B // Bt
    bf16 = jnp.bfloat16

    x = inputs.astype(jnp.float32)
    lens = sequence_lengths.astype(jnp.int32)

    # --- wrapper-side glue (tiny XLA ops, done once per call) ---
    # embedding Linear(2, EMB) + transpose to time-major; bf16 halves its DMA traffic.
    emb = jnp.transpose(x @ params['w_emb'] + params['b_emb'], (1, 0, 2)).astype(bf16)
    # masks merged into one (S, B, 2) f32 array:
    #   ch0: packed-sequence validity t < len, ch1: attention mask (inputs > 0)[:, :, 0]
    stepv = (jnp.arange(S, dtype=jnp.int32)[:, None] < lens[None, :]).astype(jnp.float32)
    amask = jnp.transpose((x[:, :, 0] > 0.0).astype(jnp.float32))
    masks = jnp.stack([stepv, amask], axis=-1)                               # (S, B, 2)

    # --- parameter folding / dtype prep (bf16 for MXU operands, f32 elsewhere) ---
    enc_wih = params['enc_wih'].astype(bf16)
    enc_whh = params['enc_whh'].astype(bf16)
    enc_b = (params['enc_bih'] + params['enc_bhh'])                          # (1,4H) f32
    pb_w = jnp.concatenate([params['pb_wih'], params['pb_whh']], axis=0).astype(bf16)
    pb_b = (params['pb_bih'] + params['pb_bhh'])                             # (1,4H) f32
    att_wref = params['att_wref'].astype(bf16)
    att_wq = params['att_wq'].astype(bf16)
    att_b = (params['att_bref'] + params['att_bq'])                          # (1,H) f32
    mlp_w1 = params['mlp_w1'].astype(bf16)
    mlp_w2t = params['mlp_w2'].T                                             # (1,d) f32

    full = lambda b: (0, 0)            # weights: same block every grid step (resident)
    bmap3 = lambda b: (0, b, 0)        # batch-blocked time-major activations

    in_specs = [
        pl.BlockSpec((S, Bt, EMB), bmap3),          # emb (bf16)
        pl.BlockSpec((S, Bt, 2), bmap3),            # merged masks (f32)
        pl.BlockSpec((1, HID), full),               # enc_h0
        pl.BlockSpec((1, HID), full),               # enc_c0
        pl.BlockSpec((EMB, 4 * HID), full),         # enc_wih (bf16)
        pl.BlockSpec((HID, 4 * HID), full),         # enc_whh (bf16)
        pl.BlockSpec((1, 4 * HID), full),           # enc_b
        pl.BlockSpec((1, HID), full),               # dec_in0
        pl.BlockSpec((2 * HID, 4 * HID), full),     # pb_w (bf16)
        pl.BlockSpec((1, 4 * HID), full),           # pb_b
        pl.BlockSpec((HID, HID), full),             # att_wref (bf16)
        pl.BlockSpec((HID, HID), full),             # att_wq (bf16)
        pl.BlockSpec((1, HID), full),               # att_b
        pl.BlockSpec((1, HID), full),               # att_v
        pl.BlockSpec((HID, D_MLP), full),           # mlp_w1 (bf16)
        pl.BlockSpec((1, D_MLP), full),             # mlp_b1
        pl.BlockSpec((1, D_MLP), full),             # mlp_w2^T (f32)
        pl.BlockSpec((1, 1), full),                 # mlp_b2
    ]

    args = (emb, masks,
            params['enc_h0'], params['enc_c0'],
            enc_wih, enc_whh, enc_b,
            params['dec_in0'], pb_w, pb_b,
            att_wref, att_wq, att_b, params['att_v'],
            mlp_w1, params['mlp_b1'], mlp_w2t, params['mlp_b2'])

    # --- cost estimate (whole call) ---
    H4 = 4 * HID
    flops = (2 * S * B * EMB * H4                      # hoisted input-side gates
             + 2 * S * B * HID * H4                    # recurrent gates
             + 2 * S * B * HID * HID                   # ref_proj
             + (P_STEPS + 1) * 2 * B * 2 * HID * H4    # process-block steps
             + P_STEPS * (2 * B * HID * HID            # q_proj
                          + 6 * S * B * HID)           # attn elementwise + glimpse
             + 2 * B * HID * D_MLP + 2 * B * D_MLP)    # decoder MLP
    transc = ((S + P_STEPS + 1) * B * (4 * HID + HID)  # LSTM sigmoids/tanhs
              + P_STEPS * S * B * HID                  # attention tanh
              + P_STEPS * S * B + P_STEPS * B)         # exp + reciprocal
    bytes_acc = sum(int(np.prod(a.shape)) * a.dtype.itemsize for a in args) + B * 4
    cost = pl.CostEstimate(flops=int(flops), transcendentals=int(transc),
                           bytes_accessed=int(bytes_acc))

    # --- VMEM budget (explicit so scaling Bt stays inside v7x's 64 MiB physical) ---
    blk_bytes = S * Bt * EMB * 2 + S * Bt * 2 * 4                  # emb + masks per block
    wt_bytes = sum(int(np.prod(a.shape)) * a.dtype.itemsize for a in args[2:])
    scr_bytes = S * Bt * 4 * HID * 4 + S * Bt * HID * 2            # gates f32 + enc bf16
    needed = 2 * (blk_bytes + wt_bytes) + 2 * Bt * 4 + scr_bytes
    vmem_limit = int(min(110 * 2**20, max(32 * 2**20, 2 * needed + (4 << 20))))
    # TODO(synk): for very large Bt on v7x also store gates_scr in bf16 to halve scratch.

    sem = ("parallel",) if n_b > 1 else ("arbitrary",)

    out = pl.pallas_call(
        critic_kernel,
        out_shape=jax.ShapeDtypeStruct((1, B), jnp.float32),       # lane-major output row
        grid_spec=pltpu.PrefetchScalarGridSpec(
            num_scalar_prefetch=0,
            grid=(n_b,),
            in_specs=in_specs,
            out_specs=pl.BlockSpec((1, Bt), lambda b: (0, b)),
            scratch_shapes=[pltpu.VMEM((S, Bt, 4 * HID), jnp.float32),   # precomputed gates
                            pltpu.VMEM((S, Bt, HID), jnp.bfloat16)]),    # encoder outputs
        compiler_params=pltpu.CompilerParams(
            dimension_semantics=sem,
            vmem_limit_bytes=vmem_limit),
        cost_estimate=cost,
    )(*args)
    return out.reshape(B)


def init_params(key):
    ks = jax.random.split(key, 22)
    u = lambda k, shape, a: jax.random.uniform(k, shape, jnp.float32, -a, a)
    s_h = 1.0 / np.sqrt(HID)
    s_in = 1.0 / np.sqrt(2.0)
    return dict(
        w_emb=u(ks[0], (2, EMB), s_in), b_emb=u(ks[1], (1, EMB), s_in),
        enc_h0=u(ks[2], (1, HID), 0.08), enc_c0=u(ks[3], (1, HID), 0.08),
        enc_wih=u(ks[4], (EMB, 4 * HID), s_h), enc_whh=u(ks[5], (HID, 4 * HID), s_h),
        enc_bih=u(ks[6], (1, 4 * HID), s_h), enc_bhh=u(ks[7], (1, 4 * HID), s_h),
        dec_in0=u(ks[8], (1, HID), 0.08),
        pb_wih=u(ks[9], (HID, 4 * HID), s_h), pb_whh=u(ks[10], (HID, 4 * HID), s_h),
        pb_bih=u(ks[11], (1, 4 * HID), s_h), pb_bhh=u(ks[12], (1, 4 * HID), s_h),
        att_wref=u(ks[13], (HID, HID), s_h), att_bref=u(ks[14], (1, HID), s_h),
        att_wq=u(ks[15], (HID, HID), s_h), att_bq=u(ks[16], (1, HID), s_h),
        att_v=u(ks[17], (1, HID), s_h),
        mlp_w1=u(ks[18], (HID, D_MLP), s_h), mlp_b1=u(ks[19], (1, D_MLP), s_h),
        mlp_w2=u(ks[20], (D_MLP, 1), 1.0 / np.sqrt(D_MLP)),
        mlp_b2=u(ks[21], (1, 1), 1.0 / np.sqrt(D_MLP)),
    )


def reference_forward(params, inputs, seq_lens):
    """Pure-JAX f32 reference (same math, unfused parameters) for correctness checking."""
    B, S, _ = inputs.shape
    x = inputs.astype(jnp.float32)
    emb = x @ params['w_emb'] + params['b_emb']                       # (B, S, EMB)

    def cell(x_t, h, c, wih, whh, bih, bhh):
        g = x_t @ wih + h @ whh + bih + bhh
        i = jax.nn.sigmoid(g[:, :HID]); f = jax.nn.sigmoid(g[:, HID:2 * HID])
        gg = jnp.tanh(g[:, 2 * HID:3 * HID]); o = jax.nn.sigmoid(g[:, 3 * HID:])
        c_n = f * c + i * gg
        return o * jnp.tanh(c_n), c_n

    h = jnp.broadcast_to(params['enc_h0'], (B, HID))
    c = jnp.broadcast_to(params['enc_c0'], (B, HID))
    outs = []
    for t in range(S):
        h_n, c_n = cell(emb[:, t, :], h, c, params['enc_wih'], params['enc_whh'],
                        params['enc_bih'], params['enc_bhh'])
        valid = (t < seq_lens)[:, None]
        outs.append(jnp.where(valid, h_n, 0.0))
        h = jnp.where(valid, h_n, h); c = jnp.where(valid, c_n, c)
    enc = jnp.stack(outs, axis=1)                                     # (B, S, H)
    mask = x[:, :, 0] > 0

    dec_in = jnp.broadcast_to(params['dec_in0'], (B, HID))
    dec_h, dec_c = h, c
    h_final = dec_h
    for step in range(P_STEPS + 1):
        h_n, c_n = cell(dec_in, dec_h, dec_c, params['pb_wih'], params['pb_whh'],
                        params['pb_bih'], params['pb_bhh'])
        if step == P_STEPS:
            h_final = h_n
        else:
            ref_p = enc @ params['att_wref'] + params['att_bref']
            q_p = h_n @ params['att_wq'] + params['att_bq']
            e = jnp.tanh(ref_p + q_p[:, None, :])
            scores = jnp.sum(e * params['att_v'], axis=-1)            # (B, S)
            scores = jnp.where(mask, scores, -1e30)
            probs = jax.nn.softmax(scores, axis=-1)
            dec_in = jnp.sum(probs[:, :, None] * enc, axis=1)
            dec_h, dec_c = h_n, c_n
    h1 = jnp.maximum(h_final @ params['mlp_w1'] + params['mlp_b1'], 0.0)
    return (h1 @ params['mlp_w2'] + params['mlp_b2']).reshape(B)


if __name__ == "__main__":
    key = jax.random.PRNGKey(0)
    pkey, xkey = jax.random.split(key)
    params = init_params(pkey)

    B, S = 16, 8
    x = jax.random.normal(xkey, (B, S, 2), jnp.float32)
    seq_lens = jnp.array([8, 5, 3, 6, 8, 2, 4, 7, 8, 8, 1, 6, 5, 3, 7, 2],
                         dtype=jnp.int32)

    # default batch_tile -> B: single grid step (no per-step overhead at tiny B).
    # For production batches use batch_tile>=128 (v5e) / >=256 (v6e/v7x).
    out = critic_net_forward(params, x, seq_lens, S)
    out = jax.block_until_ready(out)

    ref = jax.block_until_ready(reference_forward(params, x, seq_lens))
    assert out.shape == (B,)
    err = float(jnp.max(jnp.abs(out - ref)))
    assert err < 5e-2, f"mismatch vs reference: {err}"
    print("KERNEL_OK")
</pallas_src>

<mosaic_0001>
module attributes {stable_mosaic.version = 11 : i64} {
  func.func @critic_kernel(%arg0: i32, %arg1: memref<8x16x128xbf16, #tpu.memory_space<vmem>>, %arg2: memref<8x16x2xf32, #tpu.memory_space<vmem>>, %arg3: memref<1x128xf32, #tpu.memory_space<vmem>>, %arg4: memref<1x128xf32, #tpu.memory_space<vmem>>, %arg5: memref<128x512xbf16, #tpu.memory_space<vmem>>, %arg6: memref<128x512xbf16, #tpu.memory_space<vmem>>, %arg7: memref<1x512xf32, #tpu.memory_space<vmem>>, %arg8: memref<1x128xf32, #tpu.memory_space<vmem>>, %arg9: memref<256x512xbf16, #tpu.memory_space<vmem>>, %arg10: memref<1x512xf32, #tpu.memory_space<vmem>>, %arg11: memref<128x128xbf16, #tpu.memory_space<vmem>>, %arg12: memref<128x128xbf16, #tpu.memory_space<vmem>>, %arg13: memref<1x128xf32, #tpu.memory_space<vmem>>, %arg14: memref<1x128xf32, #tpu.memory_space<vmem>>, %arg15: memref<128x64xbf16, #tpu.memory_space<vmem>>, %arg16: memref<1x64xf32, #tpu.memory_space<vmem>>, %arg17: memref<1x64xf32, #tpu.memory_space<vmem>>, %arg18: memref<1x1xf32, #tpu.memory_space<vmem>>, %arg19: memref<1x16xf32, #tpu.memory_space<vmem>>, %arg20: memref<8x16x512xf32, #tpu.memory_space<vmem>>, %arg21: memref<8x16x128xbf16, #tpu.memory_space<vmem>>) attributes {dimension_semantics = [#tpu.dimension_semantics<arbitrary>], iteration_bounds = array<i64: 1>, scalar_prefetch = 0 : i64, scratch_operands = 2 : i64, tpu.core_type = #tpu.core_type<tc>, window_params = [{transform_indices = @transform_0, window_bounds = array<i64: 8, 16, 128>}, {transform_indices = @transform_1, window_bounds = array<i64: 8, 16, 2>}, {pipeline_mode = #tpu.pipeline_mode<synchronous>, transform_indices = @transform_2, window_bounds = array<i64: 1, 128>}, {pipeline_mode = #tpu.pipeline_mode<synchronous>, transform_indices = @transform_3, window_bounds = array<i64: 1, 128>}, {pipeline_mode = #tpu.pipeline_mode<synchronous>, transform_indices = @transform_4, window_bounds = array<i64: 128, 512>}, {pipeline_mode = #tpu.pipeline_mode<synchronous>, transform_indices = @transform_5, window_bounds = array<i64: 128, 512>}, {pipeline_mode = #tpu.pipeline_mode<synchronous>, transform_indices = @transform_6, window_bounds = array<i64: 1, 512>}, {pipeline_mode = #tpu.pipeline_mode<synchronous>, transform_indices = @transform_7, window_bounds = array<i64: 1, 128>}, {pipeline_mode = #tpu.pipeline_mode<synchronous>, transform_indices = @transform_8, window_bounds = array<i64: 256, 512>}, {pipeline_mode = #tpu.pipeline_mode<synchronous>, transform_indices = @transform_9, window_bounds = array<i64: 1, 512>}, {pipeline_mode = #tpu.pipeline_mode<synchronous>, transform_indices = @transform_10, window_bounds = array<i64: 128, 128>}, {pipeline_mode = #tpu.pipeline_mode<synchronous>, transform_indices = @transform_11, window_bounds = array<i64: 128, 128>}, {pipeline_mode = #tpu.pipeline_mode<synchronous>, transform_indices = @transform_12, window_bounds = array<i64: 1, 128>}, {pipeline_mode = #tpu.pipeline_mode<synchronous>, transform_indices = @transform_13, window_bounds = array<i64: 1, 128>}, {pipeline_mode = #tpu.pipeline_mode<synchronous>, transform_indices = @transform_14, window_bounds = array<i64: 128, 64>}, {pipeline_mode = #tpu.pipeline_mode<synchronous>, transform_indices = @transform_15, window_bounds = array<i64: 1, 64>}, {pipeline_mode = #tpu.pipeline_mode<synchronous>, transform_indices = @transform_16, window_bounds = array<i64: 1, 64>}, {pipeline_mode = #tpu.pipeline_mode<synchronous>, transform_indices = @transform_17, window_bounds = array<i64: 1, 1>}, {transform_indices = @transform_18, window_bounds = array<i64: 1, 16>}]} {
    %c0 = arith.constant 0 : index
    %c0_0 = arith.constant 0 : index
    %c0_1 = arith.constant 0 : index
    %0 = vector.load %arg2[%c0, %c0_0, %c0_1] : memref<8x16x2xf32, #tpu.memory_space<vmem>>, vector<8x16x2xf32>
    %c0_2 = arith.constant 0 : index
    %c0_3 = arith.constant 0 : index
    %c0_4 = arith.constant 0 : index
    %1 = vector.load %arg1[%c0_2, %c0_3, %c0_4] : memref<8x16x128xbf16, #tpu.memory_space<vmem>>, vector<8x16x128xbf16>
    %2 = vector.shape_cast %1 : vector<8x16x128xbf16> to vector<128x128xbf16>
    %c0_5 = arith.constant 0 : index
    %c0_6 = arith.constant 0 : index
    %3 = vector.load %arg5[%c0_5, %c0_6] : memref<128x512xbf16, #tpu.memory_space<vmem>>, vector<128x512xbf16>
    %cst = arith.constant dense<0.000000e+00> : vector<128x512xf32>
    %4 = tpu.matmul %2, %3, %cst {dimension_numbers = #tpu.dot_dimension_numbers<[1], [0], [0], [1], [0, 0, 1, 1], [], []>} : vector<128x128xbf16>, vector<128x512xbf16>, vector<128x512xf32> -> vector<128x512xf32>
    %c0_7 = arith.constant 0 : index
    %c0_8 = arith.constant 0 : index
    %5 = vector.load %arg7[%c0_7, %c0_8] : memref<1x512xf32, #tpu.memory_space<vmem>>, vector<1x512xf32>
    %6 = vector.broadcast %5 : vector<1x512xf32> to vector<128x512xf32>
    %7 = arith.addf %4, %6 : vector<128x512xf32>
    %8 = vector.shape_cast %7 : vector<128x512xf32> to vector<8x16x512xf32>
    %c0_9 = arith.constant 0 : index
    %c0_10 = arith.constant 0 : index
    %c0_11 = arith.constant 0 : index
    %9 = vector.load %arg20[%c0_9, %c0_10, %c0_11] : memref<8x16x512xf32, #tpu.memory_space<vmem>>, vector<8x16x512xf32>
    tpu.vector_store %arg20[%c0_9, %c0_10, %c0_11], %8 {strides = array<i32>} : memref<8x16x512xf32, #tpu.memory_space<vmem>>, vector<8x16x512xf32>,
    %c0_12 = arith.constant 0 : index
    %c0_13 = arith.constant 0 : index
    %10 = vector.load %arg3[%c0_12, %c0_13] : memref<1x128xf32, #tpu.memory_space<vmem>>, vector<1x128xf32>
    %11 = vector.shape_cast %10 : vector<1x128xf32> to vector<1x128xf32>
    %12 = vector.broadcast %11 : vector<1x128xf32> to vector<16x128xf32>
    %c0_14 = arith.constant 0 : index
    %c0_15 = arith.constant 0 : index
    %13 = vector.load %arg4[%c0_14, %c0_15] : memref<1x128xf32, #tpu.memory_space<vmem>>, vector<1x128xf32>
    %14 = vector.shape_cast %13 : vector<1x128xf32> to vector<1x128xf32>
    %15 = vector.broadcast %14 : vector<1x128xf32> to vector<16x128xf32>
    %c0_16 = arith.constant 0 : index
    %c0_17 = arith.constant 0 : index
    %16 = vector.load %arg6[%c0_16, %c0_17] : memref<128x512xbf16, #tpu.memory_space<vmem>>, vector<128x512xbf16>
    %c0_18 = arith.constant 0 : index
    %c0_19 = arith.constant 0 : index
    %c0_20 = arith.constant 0 : index
    %17 = vector.load %arg20[%c0_18, %c0_19, %c0_20] : memref<8x16x512xf32, #tpu.memory_space<vmem>>, vector<1x16x512xf32>
    %18 = vector.shape_cast %17 : vector<1x16x512xf32> to vector<16x512xf32>
    %19 = arith.truncf %12 : vector<16x128xf32> to vector<16x128xbf16>
    %cst_21 = arith.constant dense<0.000000e+00> : vector<16x512xf32>
    %20 = tpu.matmul %19, %16, %cst_21 {dimension_numbers = #tpu.dot_dimension_numbers<[1], [0], [0], [1], [0, 0, 1, 1], [], []>} : vector<16x128xbf16>, vector<128x512xbf16>, vector<16x512xf32> -> vector<16x512xf32>
    %21 = arith.addf %18, %20 : vector<16x512xf32>
    %22 = vector.extract_strided_slice %21 {offsets = [0, 0], sizes = [16, 128], strides = [1, 1]} : vector<16x512xf32> to vector<16x128xf32>
    %23 = arith.negf %22 : vector<16x128xf32>
    %24 = math.exp %23 : vector<16x128xf32>
    %cst_22 = arith.constant 1.000000e+00 : f32
    %25 = vector.broadcast %cst_22 : f32 to vector<16x128xf32>
    %26 = arith.addf %25, %24 : vector<16x128xf32>
    %27 = arith.divf %25, %26 : vector<16x128xf32>
    %28 = vector.extract_strided_slice %21 {offsets = [0, 128], sizes = [16, 128], strides = [1, 1]} : vector<16x512xf32> to vector<16x128xf32>
    %29 = arith.negf %28 : vector<16x128xf32>
    %30 = math.exp %29 : vector<16x128xf32>
    %cst_23 = arith.constant 1.000000e+00 : f32
    %31 = vector.broadcast %cst_23 : f32 to vector<16x128xf32>
    %32 = arith.addf %31, %30 : vector<16x128xf32>
    %33 = arith.divf %31, %32 : vector<16x128xf32>
    %34 = vector.extract_strided_slice %21 {offsets = [0, 256], sizes = [16, 128], strides = [1, 1]} : vector<16x512xf32> to vector<16x128xf32>
    %35 = math.tanh %34 : vector<16x128xf32>
    %36 = vector.extract_strided_slice %21 {offsets = [0, 384], sizes = [16, 128], strides = [1, 1]} : vector<16x512xf32> to vector<16x128xf32>
    %37 = arith.negf %36 : vector<16x128xf32>
    %38 = math.exp %37 : vector<16x128xf32>
    %cst_24 = arith.constant 1.000000e+00 : f32
    %39 = vector.broadcast %cst_24 : f32 to vector<16x128xf32>
    %40 = arith.addf %39, %38 : vector<16x128xf32>
    %41 = arith.divf %39, %40 : vector<16x128xf32>
    %42 = arith.mulf %33, %15 : vector<16x128xf32>
    %43 = arith.mulf %27, %35 : vector<16x128xf32>
    %44 = arith.addf %42, %43 : vector<16x128xf32>
    %45 = math.tanh %44 : vector<16x128xf32>
    %46 = arith.mulf %41, %45 : vector<16x128xf32>
    %47 = vector.extract_strided_slice %0 {offsets = [0, 0, 0], sizes = [1, 16, 1], strides = [1, 1, 1]} : vector<8x16x2xf32> to vector<1x16x1xf32>
    %48 = vector.shape_cast %47 : vector<1x16x1xf32> to vector<16x1xf32>
    %49 = vector.broadcast %48 : vector<16x1xf32> to vector<16x128xf32>
    %50 = arith.mulf %49, %46 : vector<16x128xf32>
    %51 = arith.truncf %50 : vector<16x128xf32> to vector<16x128xbf16>
    %c0_25 = arith.constant 0 : index
    %c0_26 = arith.constant 0 : index
    %c0_27 = arith.constant 0 : index
    %52 = vector.load %arg21[%c0_25, %c0_26, %c0_27] : memref<8x16x128xbf16, #tpu.memory_space<vmem>>, vector<1x16x128xbf16>
    %53 = vector.shape_cast %52 : vector<1x16x128xbf16> to vector<16x128xbf16>
    %54 = vector.shape_cast %51 : vector<16x128xbf16> to vector<1x16x128xbf16>
    tpu.vector_store %arg21[%c0_25, %c0_26, %c0_27], %54 {strides = array<i32>} : memref<8x16x128xbf16, #tpu.memory_space<vmem>>, vector<1x16x128xbf16>,
    %55 = arith.subf %46, %12 : vector<16x128xf32>
    %56 = vector.broadcast %48 : vector<16x1xf32> to vector<16x128xf32>
    %57 = arith.mulf %56, %55 : vector<16x128xf32>
    %58 = arith.addf %12, %57 : vector<16x128xf32>
    %59 = arith.subf %44, %15 : vector<16x128xf32>
    %60 = vector.broadcast %48 : vector<16x1xf32> to vector<16x128xf32>
    %61 = arith.mulf %60, %59 : vector<16x128xf32>
    %62 = arith.addf %15, %61 : vector<16x128xf32>
    %c1 = arith.constant 1 : index
    %c0_28 = arith.constant 0 : index
    %c0_29 = arith.constant 0 : index
    %63 = vector.load %arg20[%c1, %c0_28, %c0_29] : memref<8x16x512xf32, #tpu.memory_space<vmem>>, vector<1x16x512xf32>
    %64 = vector.shape_cast %63 : vector<1x16x512xf32> to vector<16x512xf32>
    %65 = arith.truncf %58 : vector<16x128xf32> to vector<16x128xbf16>
    %cst_30 = arith.constant dense<0.000000e+00> : vector<16x512xf32>
    %66 = tpu.matmul %65, %16, %cst_30 {dimension_numbers = #tpu.dot_dimension_numbers<[1], [0], [0], [1], [0, 0, 1, 1], [], []>} : vector<16x128xbf16>, vector<128x512xbf16>, vector<16x512xf32> -> vector<16x512xf32>
    %67 = arith.addf %64, %66 : vector<16x512xf32>
    %68 = vector.extract_strided_slice %67 {offsets = [0, 0], sizes = [16, 128], strides = [1, 1]} : vector<16x512xf32> to vector<16x128xf32>
    %69 = arith.negf %68 : vector<16x128xf32>
    %70 = math.exp %69 : vector<16x128xf32>
    %cst_31 = arith.constant 1.000000e+00 : f32
    %71 = vector.broadcast %cst_31 : f32 to vector<16x128xf32>
    %72 = arith.addf %71, %70 : vector<16x128xf32>
    %73 = arith.divf %71, %72 : vector<16x128xf32>
    %74 = vector.extract_strided_slice %67 {offsets = [0, 128], sizes = [16, 128], strides = [1, 1]} : vector<16x512xf32> to vector<16x128xf32>
    %75 = arith.negf %74 : vector<16x128xf32>
    %76 = math.exp %75 : vector<16x128xf32>
    %cst_32 = arith.constant 1.000000e+00 : f32
    %77 = vector.broadcast %cst_32 : f32 to vector<16x128xf32>
    %78 = arith.addf %77, %76 : vector<16x128xf32>
    %79 = arith.divf %77, %78 : vector<16x128xf32>
    %80 = vector.extract_strided_slice %67 {offsets = [0, 256], sizes = [16, 128], strides = [1, 1]} : vector<16x512xf32> to vector<16x128xf32>
    %81 = math.tanh %80 : vector<16x128xf32>
    %82 = vector.extract_strided_slice %67 {offsets = [0, 384], sizes = [16, 128], strides = [1, 1]} : vector<16x512xf32> to vector<16x128xf32>
    %83 = arith.negf %82 : vector<16x128xf32>
    %84 = math.exp %83 : vector<16x128xf32>
    %cst_33 = arith.constant 1.000000e+00 : f32
    %85 = vector.broadcast %cst_33 : f32 to vector<16x128xf32>
    %86 = arith.addf %85, %84 : vector<16x128xf32>
    %87 = arith.divf %85, %86 : vector<16x128xf32>
    %88 = arith.mulf %79, %62 : vector<16x128xf32>
    %89 = arith.mulf %73, %81 : vector<16x128xf32>
    %90 = arith.addf %88, %89 : vector<16x128xf32>
    %91 = math.tanh %90 : vector<16x128xf32>
    %92 = arith.mulf %87, %91 : vector<16x128xf32>
    %93 = vector.extract_strided_slice %0 {offsets = [1, 0, 0], sizes = [1, 16, 1], strides = [1, 1, 1]} : vector<8x16x2xf32> to vector<1x16x1xf32>
    %94 = vector.shape_cast %93 : vector<1x16x1xf32> to vector<16x1xf32>
    %95 = vector.broadcast %94 : vector<16x1xf32> to vector<16x128xf32>
    %96 = arith.mulf %95, %92 : vector<16x128xf32>
    %97 = arith.truncf %96 : vector<16x128xf32> to vector<16x128xbf16>
    %c1_34 = arith.constant 1 : index
    %c0_35 = arith.constant 0 : index
    %c0_36 = arith.constant 0 : index
    %98 = vector.load %arg21[%c1_34, %c0_35, %c0_36] : memref<8x16x128xbf16, #tpu.memory_space<vmem>>, vector<1x16x128xbf16>
    %99 = vector.shape_cast %98 : vector<1x16x128xbf16> to vector<16x128xbf16>
    %100 = vector.shape_cast %97 : vector<16x128xbf16> to vector<1x16x128xbf16>
    tpu.vector_store %arg21[%c1_34, %c0_35, %c0_36], %100 {strides = array<i32>} : memref<8x16x128xbf16, #tpu.memory_space<vmem>>, vector<1x16x128xbf16>,
    %101 = arith.subf %92, %58 : vector<16x128xf32>
    %102 = vector.broadcast %94 : vector<16x1xf32> to vector<16x128xf32>
    %103 = arith.mulf %102, %101 : vector<16x128xf32>
    %104 = arith.addf %58, %103 : vector<16x128xf32>
    %105 = arith.subf %90, %62 : vector<16x128xf32>
    %106 = vector.broadcast %94 : vector<16x1xf32> to vector<16x128xf32>
    %107 = arith.mulf %106, %105 : vector<16x128xf32>
    %108 = arith.addf %62, %107 : vector<16x128xf32>
    %c2 = arith.constant 2 : index
    %c0_37 = arith.constant 0 : index
    %c0_38 = arith.constant 0 : index
    %109 = vector.load %arg20[%c2, %c0_37, %c0_38] : memref<8x16x512xf32, #tpu.memory_space<vmem>>, vector<1x16x512xf32>
    %110 = vector.shape_cast %109 : vector<1x16x512xf32> to vector<16x512xf32>
    %111 = arith.truncf %104 : vector<16x128xf32> to vector<16x128xbf16>
    %cst_39 = arith.constant dense<0.000000e+00> : vector<16x512xf32>
    %112 = tpu.matmul %111, %16, %cst_39 {dimension_numbers = #tpu.dot_dimension_numbers<[1], [0], [0], [1], [0, 0, 1, 1], [], []>} : vector<16x128xbf16>, vector<128x512xbf16>, vector<16x512xf32> -> vector<16x512xf32>
    %113 = arith.addf %110, %112 : vector<16x512xf32>
    %114 = vector.extract_strided_slice %113 {offsets = [0, 0], sizes = [16, 128], strides = [1, 1]} : vector<16x512xf32> to vector<16x128xf32>
    %115 = arith.negf %114 : vector<16x128xf32>
    %116 = math.exp %115 : vector<16x128xf32>
    %cst_40 = arith.constant 1.000000e+00 : f32
    %117 = vector.broadcast %cst_40 : f32 to vector<16x128xf32>
    %118 = arith.addf %117, %116 : vector<16x128xf32>
    %119 = arith.divf %117, %118 : vector<16x128xf32>
    %120 = vector.extract_strided_slice %113 {offsets = [0, 128], sizes = [16, 128], strides = [1, 1]} : vector<16x512xf32> to vector<16x128xf32>
    %121 = arith.negf %120 : vector<16x128xf32>
    %122 = math.exp %121 : vector<16x128xf32>
    %cst_41 = arith.constant 1.000000e+00 : f32
    %123 = vector.broadcast %cst_41 : f32 to vector<16x128xf32>
    %124 = arith.addf %123, %122 : vector<16x128xf32>
    %125 = arith.divf %123, %124 : vector<16x128xf32>
    %126 = vector.extract_strided_slice %113 {offsets = [0, 256], sizes = [16, 128], strides = [1, 1]} : vector<16x512xf32> to vector<16x128xf32>
    %127 = math.tanh %126 : vector<16x128xf32>
    %128 = vector.extract_strided_slice %113 {offsets = [0, 384], sizes = [16, 128], strides = [1, 1]} : vector<16x512xf32> to vector<16x128xf32>
    %129 = arith.negf %128 : vector<16x128xf32>
    %130 = math.exp %129 : vector<16x128xf32>
    %cst_42 = arith.constant 1.000000e+00 : f32
    %131 = vector.broadcast %cst_42 : f32 to vector<16x128xf32>
    %132 = arith.addf %131, %130 : vector<16x128xf32>
    %133 = arith.divf %131, %132 : vector<16x128xf32>
    %134 = arith.mulf %125, %108 : vector<16x128xf32>
    %135 = arith.mulf %119, %127 : vector<16x128xf32>
    %136 = arith.addf %134, %135 : vector<16x128xf32>
    %137 = math.tanh %136 : vector<16x128xf32>
    %138 = arith.mulf %133, %137 : vector<16x128xf32>
    %139 = vector.extract_strided_slice %0 {offsets = [2, 0, 0], sizes = [1, 16, 1], strides = [1, 1, 1]} : vector<8x16x2xf32> to vector<1x16x1xf32>
    %140 = vector.shape_cast %139 : vector<1x16x1xf32> to vector<16x1xf32>
    %141 = vector.broadcast %140 : vector<16x1xf32> to vector<16x128xf32>
    %142 = arith.mulf %141, %138 : vector<16x128xf32>
    %143 = arith.truncf %142 : vector<16x128xf32> to vector<16x128xbf16>
    %c2_43 = arith.constant 2 : index
    %c0_44 = arith.constant 0 : index
    %c0_45 = arith.constant 0 : index
    %144 = vector.load %arg21[%c2_43, %c0_44, %c0_45] : memref<8x16x128xbf16, #tpu.memory_space<vmem>>, vector<1x16x128xbf16>
    %145 = vector.shape_cast %144 : vector<1x16x128xbf16> to vector<16x128xbf16>
    %146 = vector.shape_cast %143 : vector<16x128xbf16> to vector<1x16x128xbf16>
    tpu.vector_store %arg21[%c2_43, %c0_44, %c0_45], %146 {strides = array<i32>} : memref<8x16x128xbf16, #tpu.memory_space<vmem>>, vector<1x16x128xbf16>,
    %147 = arith.subf %138, %104 : vector<16x128xf32>
    %148 = vector.broadcast %140 : vector<16x1xf32> to vector<16x128xf32>
    %149 = arith.mulf %148, %147 : vector<16x128xf32>
    %150 = arith.addf %104, %149 : vector<16x128xf32>
    %151 = arith.subf %136, %108 : vector<16x128xf32>
    %152 = vector.broadcast %140 : vector<16x1xf32> to vector<16x128xf32>
    %153 = arith.mulf %152, %151 : vector<16x128xf32>
    %154 = arith.addf %108, %153 : vector<16x128xf32>
    %c3 = arith.constant 3 : index
    %c0_46 = arith.constant 0 : index
    %c0_47 = arith.constant 0 : index
    %155 = vector.load %arg20[%c3, %c0_46, %c0_47] : memref<8x16x512xf32, #tpu.memory_space<vmem>>, vector<1x16x512xf32>
    %156 = vector.shape_cast %155 : vector<1x16x512xf32> to vector<16x512xf32>
    %157 = arith.truncf %150 : vector<16x128xf32> to vector<16x128xbf16>
    %cst_48 = arith.constant dense<0.000000e+00> : vector<16x512xf32>
    %158 = tpu.matmul %157, %16, %cst_48 {dimension_numbers = #tpu.dot_dimension_numbers<[1], [0], [0], [1], [0, 0, 1, 1], [], []>} : vector<16x128xbf16>, vector<128x512xbf16>, vector<16x512xf32> -> vector<16x512xf32>
    %159 = arith.addf %156, %158 : vector<16x512xf32>
    %160 = vector.extract_strided_slice %159 {offsets = [0, 0], sizes = [16, 128], strides = [1, 1]} : vector<16x512xf32> to vector<16x128xf32>
    %161 = arith.negf %160 : vector<16x128xf32>
    %162 = math.exp %161 : vector<16x128xf32>
    %cst_49 = arith.constant 1.000000e+00 : f32
    %163 = vector.broadcast %cst_49 : f32 to vector<16x128xf32>
    %164 = arith.addf %163, %162 : vector<16x128xf32>
    %165 = arith.divf %163, %164 : vector<16x128xf32>
    %166 = vector.extract_strided_slice %159 {offsets = [0, 128], sizes = [16, 128], strides = [1, 1]} : vector<16x512xf32> to vector<16x128xf32>
    %167 = arith.negf %166 : vector<16x128xf32>
    %168 = math.exp %167 : vector<16x128xf32>
    %cst_50 = arith.constant 1.000000e+00 : f32
    %169 = vector.broadcast %cst_50 : f32 to vector<16x128xf32>
    %170 = arith.addf %169, %168 : vector<16x128xf32>
    %171 = arith.divf %169, %170 : vector<16x128xf32>
    %172 = vector.extract_strided_slice %159 {offsets = [0, 256], sizes = [16, 128], strides = [1, 1]} : vector<16x512xf32> to vector<16x128xf32>
    %173 = math.tanh %172 : vector<16x128xf32>
    %174 = vector.extract_strided_slice %159 {offsets = [0, 384], sizes = [16, 128], strides = [1, 1]} : vector<16x512xf32> to vector<16x128xf32>
    %175 = arith.negf %174 : vector<16x128xf32>
    %176 = math.exp %175 : vector<16x128xf32>
    %cst_51 = arith.constant 1.000000e+00 : f32
    %177 = vector.broadcast %cst_51 : f32 to vector<16x128xf32>
    %178 = arith.addf %177, %176 : vector<16x128xf32>
    %179 = arith.divf %177, %178 : vector<16x128xf32>
    %180 = arith.mulf %171, %154 : vector<16x128xf32>
    %181 = arith.mulf %165, %173 : vector<16x128xf32>
    %182 = arith.addf %180, %181 : vector<16x128xf32>
    %183 = math.tanh %182 : vector<16x128xf32>
    %184 = arith.mulf %179, %183 : vector<16x128xf32>
    %185 = vector.extract_strided_slice %0 {offsets = [3, 0, 0], sizes = [1, 16, 1], strides = [1, 1, 1]} : vector<8x16x2xf32> to vector<1x16x1xf32>
    %186 = vector.shape_cast %185 : vector<1x16x1xf32> to vector<16x1xf32>
    %187 = vector.broadcast %186 : vector<16x1xf32> to vector<16x128xf32>
    %188 = arith.mulf %187, %184 : vector<16x128xf32>
    %189 = arith.truncf %188 : vector<16x128xf32> to vector<16x128xbf16>
    %c3_52 = arith.constant 3 : index
    %c0_53 = arith.constant 0 : index
    %c0_54 = arith.constant 0 : index
    %190 = vector.load %arg21[%c3_52, %c0_53, %c0_54] : memref<8x16x128xbf16, #tpu.memory_space<vmem>>, vector<1x16x128xbf16>
    %191 = vector.shape_cast %190 : vector<1x16x128xbf16> to vector<16x128xbf16>
    %192 = vector.shape_cast %189 : vector<16x128xbf16> to vector<1x16x128xbf16>
    tpu.vector_store %arg21[%c3_52, %c0_53, %c0_54], %192 {strides = array<i32>} : memref<8x16x128xbf16, #tpu.memory_space<vmem>>, vector<1x16x128xbf16>,
    %193 = arith.subf %184, %150 : vector<16x128xf32>
    %194 = vector.broadcast %186 : vector<16x1xf32> to vector<16x128xf32>
    %195 = arith.mulf %194, %193 : vector<16x128xf32>
    %196 = arith.addf %150, %195 : vector<16x128xf32>
    %197 = arith.subf %182, %154 : vector<16x128xf32>
    %198 = vector.broadcast %186 : vector<16x1xf32> to vector<16x128xf32>
    %199 = arith.mulf %198, %197 : vector<16x128xf32>
    %200 = arith.addf %154, %199 : vector<16x128xf32>
    %c4 = arith.constant 4 : index
    %c0_55 = arith.constant 0 : index
    %c0_56 = arith.constant 0 : index
    %201 = vector.load %arg20[%c4, %c0_55, %c0_56] : memref<8x16x512xf32, #tpu.memory_space<vmem>>, vector<1x16x512xf32>
    %202 = vector.shape_cast %201 : vector<1x16x512xf32> to vector<16x512xf32>
    %203 = arith.truncf %196 : vector<16x128xf32> to vector<16x128xbf16>
    %cst_57 = arith.constant dense<0.000000e+00> : vector<16x512xf32>
    %204 = tpu.matmul %203, %16, %cst_57 {dimension_numbers = #tpu.dot_dimension_numbers<[1], [0], [0], [1], [0, 0, 1, 1], [], []>} : vector<16x128xbf16>, vector<128x512xbf16>, vector<16x512xf32> -> vector<16x512xf32>
    %205 = arith.addf %202, %204 : vector<16x512xf32>
    %206 = vector.extract_strided_slice %205 {offsets = [0, 0], sizes = [16, 128], strides = [1, 1]} : vector<16x512xf32> to vector<16x128xf32>
    %207 = arith.negf %206 : vector<16x128xf32>
    %208 = math.exp %207 : vector<16x128xf32>
    %cst_58 = arith.constant 1.000000e+00 : f32
    %209 = vector.broadcast %cst_58 : f32 to vector<16x128xf32>
    %210 = arith.addf %209, %208 : vector<16x128xf32>
    %211 = arith.divf %209, %210 : vector<16x128xf32>
    %212 = vector.extract_strided_slice %205 {offsets = [0, 128], sizes = [16, 128], strides = [1, 1]} : vector<16x512xf32> to vector<16x128xf32>
    %213 = arith.negf %212 : vector<16x128xf32>
    %214 = math.exp %213 : vector<16x128xf32>
    %cst_59 = arith.constant 1.000000e+00 : f32
    %215 = vector.broadcast %cst_59 : f32 to vector<16x128xf32>
    %216 = arith.addf %215, %214 : vector<16x128xf32>
    %217 = arith.divf %215, %216 : vector<16x128xf32>
    %218 = vector.extract_strided_slice %205 {offsets = [0, 256], sizes = [16, 128], strides = [1, 1]} : vector<16x512xf32> to vector<16x128xf32>
    %219 = math.tanh %218 : vector<16x128xf32>
    %220 = vector.extract_strided_slice %205 {offsets = [0, 384], sizes = [16, 128], strides = [1, 1]} : vector<16x512xf32> to vector<16x128xf32>
    %221 = arith.negf %220 : vector<16x128xf32>
    %222 = math.exp %221 : vector<16x128xf32>
    %cst_60 = arith.constant 1.000000e+00 : f32
    %223 = vector.broadcast %cst_60 : f32 to vector<16x128xf32>
    %224 = arith.addf %223, %222 : vector<16x128xf32>
    %225 = arith.divf %223, %224 : vector<16x128xf32>
    %226 = arith.mulf %217, %200 : vector<16x128xf32>
    %227 = arith.mulf %211, %219 : vector<16x128xf32>
    %228 = arith.addf %226, %227 : vector<16x128xf32>
    %229 = math.tanh %228 : vector<16x128xf32>
    %230 = arith.mulf %225, %229 : vector<16x128xf32>
    %231 = vector.extract_strided_slice %0 {offsets = [4, 0, 0], sizes = [1, 16, 1], strides = [1, 1, 1]} : vector<8x16x2xf32> to vector<1x16x1xf32>
    %232 = vector.shape_cast %231 : vector<1x16x1xf32> to vector<16x1xf32>
    %233 = vector.broadcast %232 : vector<16x1xf32> to vector<16x128xf32>
    %234 = arith.mulf %233, %230 : vector<16x128xf32>
    %235 = arith.truncf %234 : vector<16x128xf32> to vector<16x128xbf16>
    %c4_61 = arith.constant 4 : index
    %c0_62 = arith.constant 0 : index
    %c0_63 = arith.constant 0 : index
    %236 = vector.load %arg21[%c4_61, %c0_62, %c0_63] : memref<8x16x128xbf16, #tpu.memory_space<vmem>>, vector<1x16x128xbf16>
    %237 = vector.shape_cast %236 : vector<1x16x128xbf16> to vector<16x128xbf16>
    %238 = vector.shape_cast %235 : vector<16x128xbf16> to vector<1x16x128xbf16>
    tpu.vector_store %arg21[%c4_61, %c0_62, %c0_63], %238 {strides = array<i32>} : memref<8x16x128xbf16, #tpu.memory_space<vmem>>, vector<1x16x128xbf16>,
    %239 = arith.subf %230, %196 : vector<16x128xf32>
    %240 = vector.broadcast %232 : vector<16x1xf32> to vector<16x128xf32>
    %241 = arith.mulf %240, %239 : vector<16x128xf32>
    %242 = arith.addf %196, %241 : vector<16x128xf32>
    %243 = arith.subf %228, %200 : vector<16x128xf32>
    %244 = vector.broadcast %232 : vector<16x1xf32> to vector<16x128xf32>
    %245 = arith.mulf %244, %243 : vector<16x128xf32>
    %246 = arith.addf %200, %245 : vector<16x128xf32>
    %c5 = arith.constant 5 : index
    %c0_64 = arith.constant 0 : index
    %c0_65 = arith.constant 0 : index
    %247 = vector.load %arg20[%c5, %c0_64, %c0_65] : memref<8x16x512xf32, #tpu.memory_space<vmem>>, vector<1x16x512xf32>
    %248 = vector.shape_cast %247 : vector<1x16x512xf32> to vector<16x512xf32>
    %249 = arith.truncf %242 : vector<16x128xf32> to vector<16x128xbf16>
    %cst_66 = arith.constant dense<0.000000e+00> : vector<16x512xf32>
    %250 = tpu.matmul %249, %16, %cst_66 {dimension_numbers = #tpu.dot_dimension_numbers<[1], [0], [0], [1], [0, 0, 1, 1], [], []>} : vector<16x128xbf16>, vector<128x512xbf16>, vector<16x512xf32> -> vector<16x512xf32>
    %251 = arith.addf %248, %250 : vector<16x512xf32>
    %252 = vector.extract_strided_slice %251 {offsets = [0, 0], sizes = [16, 128], strides = [1, 1]} : vector<16x512xf32> to vector<16x128xf32>
    %253 = arith.negf %252 : vector<16x128xf32>
    %254 = math.exp %253 : vector<16x128xf32>
    %cst_67 = arith.constant 1.000000e+00 : f32
    %255 = vector.broadcast %cst_67 : f32 to vector<16x128xf32>
    %256 = arith.addf %255, %254 : vector<16x128xf32>
    %257 = arith.divf %255, %256 : vector<16x128xf32>
    %258 = vector.extract_strided_slice %251 {offsets = [0, 128], sizes = [16, 128], strides = [1, 1]} : vector<16x512xf32> to vector<16x128xf32>
    %259 = arith.negf %258 : vector<16x128xf32>
    %260 = math.exp %259 : vector<16x128xf32>
    %cst_68 = arith.constant 1.000000e+00 : f32
    %261 = vector.broadcast %cst_68 : f32 to vector<16x128xf32>
    %262 = arith.addf %261, %260 : vector<16x128xf32>
    %263 = arith.divf %261, %262 : vector<16x128xf32>
    %264 = vector.extract_strided_slice %251 {offsets = [0, 256], sizes = [16, 128], strides = [1, 1]} : vector<16x512xf32> to vector<16x128xf32>
    %265 = math.tanh %264 : vector<16x128xf32>
    %266 = vector.extract_strided_slice %251 {offsets = [0, 384], sizes = [16, 128], strides = [1, 1]} : vector<16x512xf32> to vector<16x128xf32>
    %267 = arith.negf %266 : vector<16x128xf32>
    %268 = math.exp %267 : vector<16x128xf32>
    %cst_69 = arith.constant 1.000000e+00 : f32
    %269 = vector.broadcast %cst_69 : f32 to vector<16x128xf32>
    %270 = arith.addf %269, %268 : vector<16x128xf32>
    %271 = arith.divf %269, %270 : vector<16x128xf32>
    %272 = arith.mulf %263, %246 : vector<16x128xf32>
    %273 = arith.mulf %257, %265 : vector<16x128xf32>
    %274 = arith.addf %272, %273 : vector<16x128xf32>
    %275 = math.tanh %274 : vector<16x128xf32>
    %276 = arith.mulf %271, %275 : vector<16x128xf32>
    %277 = vector.extract_strided_slice %0 {offsets = [5, 0, 0], sizes = [1, 16, 1], strides = [1, 1, 1]} : vector<8x16x2xf32> to vector<1x16x1xf32>
    %278 = vector.shape_cast %277 : vector<1x16x1xf32> to vector<16x1xf32>
    %279 = vector.broadcast %278 : vector<16x1xf32> to vector<16x128xf32>
    %280 = arith.mulf %279, %276 : vector<16x128xf32>
    %281 = arith.truncf %280 : vector<16x128xf32> to vector<16x128xbf16>
    %c5_70 = arith.constant 5 : index
    %c0_71 = arith.constant 0 : index
    %c0_72 = arith.constant 0 : index
    %282 = vector.load %arg21[%c5_70, %c0_71, %c0_72] : memref<8x16x128xbf16, #tpu.memory_space<vmem>>, vector<1x16x128xbf16>
    %283 = vector.shape_cast %282 : vector<1x16x128xbf16> to vector<16x128xbf16>
    %284 = vector.shape_cast %281 : vector<16x128xbf16> to vector<1x16x128xbf16>
    tpu.vector_store %arg21[%c5_70, %c0_71, %c0_72], %284 {strides = array<i32>} : memref<8x16x128xbf16, #tpu.memory_space<vmem>>, vector<1x16x128xbf16>,
    %285 = arith.subf %276, %242 : vector<16x128xf32>
    %286 = vector.broadcast %278 : vector<16x1xf32> to vector<16x128xf32>
    %287 = arith.mulf %286, %285 : vector<16x128xf32>
    %288 = arith.addf %242, %287 : vector<16x128xf32>
    %289 = arith.subf %274, %246 : vector<16x128xf32>
    %290 = vector.broadcast %278 : vector<16x1xf32> to vector<16x128xf32>
    %291 = arith.mulf %290, %289 : vector<16x128xf32>
    %292 = arith.addf %246, %291 : vector<16x128xf32>
    %c6 = arith.constant 6 : index
    %c0_73 = arith.constant 0 : index
    %c0_74 = arith.constant 0 : index
    %293 = vector.load %arg20[%c6, %c0_73, %c0_74] : memref<8x16x512xf32, #tpu.memory_space<vmem>>, vector<1x16x512xf32>
    %294 = vector.shape_cast %293 : vector<1x16x512xf32> to vector<16x512xf32>
    %295 = arith.truncf %288 : vector<16x128xf32> to vector<16x128xbf16>
    %cst_75 = arith.constant dense<0.000000e+00> : vector<16x512xf32>
    %296 = tpu.matmul %295, %16, %cst_75 {dimension_numbers = #tpu.dot_dimension_numbers<[1], [0], [0], [1], [0, 0, 1, 1], [], []>} : vector<16x128xbf16>, vector<128x512xbf16>, vector<16x512xf32> -> vector<16x512xf32>
    %297 = arith.addf %294, %296 : vector<16x512xf32>
    %298 = vector.extract_strided_slice %297 {offsets = [0, 0], sizes = [16, 128], strides = [1, 1]} : vector<16x512xf32> to vector<16x128xf32>
    %299 = arith.negf %298 : vector<16x128xf32>
    %300 = math.exp %299 : vector<16x128xf32>
    %cst_76 = arith.constant 1.000000e+00 : f32
    %301 = vector.broadcast %cst_76 : f32 to vector<16x128xf32>
    %302 = arith.addf %301, %300 : vector<16x128xf32>
    %303 = arith.divf %301, %302 : vector<16x128xf32>
    %304 = vector.extract_strided_slice %297 {offsets = [0, 128], sizes = [16, 128], strides = [1, 1]} : vector<16x512xf32> to vector<16x128xf32>
    %305 = arith.negf %304 : vector<16x128xf32>
    %306 = math.exp %305 : vector<16x128xf32>
    %cst_77 = arith.constant 1.000000e+00 : f32
    %307 = vector.broadcast %cst_77 : f32 to vector<16x128xf32>
    %308 = arith.addf %307, %306 : vector<16x128xf32>
    %309 = arith.divf %307, %308 : vector<16x128xf32>
    %310 = vector.extract_strided_slice %297 {offsets = [0, 256], sizes = [16, 128], strides = [1, 1]} : vector<16x512xf32> to vector<16x128xf32>
    %311 = math.tanh %310 : vector<16x128xf32>
    %312 = vector.extract_strided_slice %297 {offsets = [0, 384], sizes = [16, 128], strides = [1, 1]} : vector<16x512xf32> to vector<16x128xf32>
    %313 = arith.negf %312 : vector<16x128xf32>
    %314 = math.exp %313 : vector<16x128xf32>
    %cst_78 = arith.constant 1.000000e+00 : f32
    %315 = vector.broadcast %cst_78 : f32 to vector<16x128xf32>
    %316 = arith.addf %315, %314 : vector<16x128xf32>
    %317 = arith.divf %315, %316 : vector<16x128xf32>
    %318 = arith.mulf %309, %292 : vector<16x128xf32>
    %319 = arith.mulf %303, %311 : vector<16x128xf32>
    %320 = arith.addf %318, %319 : vector<16x128xf32>
    %321 = math.tanh %320 : vector<16x128xf32>
    %322 = arith.mulf %317, %321 : vector<16x128xf32>
    %323 = vector.extract_strided_slice %0 {offsets = [6, 0, 0], sizes = [1, 16, 1], strides = [1, 1, 1]} : vector<8x16x2xf32> to vector<1x16x1xf32>
    %324 = vector.shape_cast %323 : vector<1x16x1xf32> to vector<16x1xf32>
    %325 = vector.broadcast %324 : vector<16x1xf32> to vector<16x128xf32>
    %326 = arith.mulf %325, %322 : vector<16x128xf32>
    %327 = arith.truncf %326 : vector<16x128xf32> to vector<16x128xbf16>
    %c6_79 = arith.constant 6 : index
    %c0_80 = arith.constant 0 : index
    %c0_81 = arith.constant 0 : index
    %328 = vector.load %arg21[%c6_79, %c0_80, %c0_81] : memref<8x16x128xbf16, #tpu.memory_space<vmem>>, vector<1x16x128xbf16>
    %329 = vector.shape_cast %328 : vector<1x16x128xbf16> to vector<16x128xbf16>
    %330 = vector.shape_cast %327 : vector<16x128xbf16> to vector<1x16x128xbf16>
    tpu.vector_store %arg21[%c6_79, %c0_80, %c0_81], %330 {strides = array<i32>} : memref<8x16x128xbf16, #tpu.memory_space<vmem>>, vector<1x16x128xbf16>,
    %331 = arith.subf %322, %288 : vector<16x128xf32>
    %332 = vector.broadcast %324 : vector<16x1xf32> to vector<16x128xf32>
    %333 = arith.mulf %332, %331 : vector<16x128xf32>
    %334 = arith.addf %288, %333 : vector<16x128xf32>
    %335 = arith.subf %320, %292 : vector<16x128xf32>
    %336 = vector.broadcast %324 : vector<16x1xf32> to vector<16x128xf32>
    %337 = arith.mulf %336, %335 : vector<16x128xf32>
    %338 = arith.addf %292, %337 : vector<16x128xf32>
    %c7 = arith.constant 7 : index
    %c0_82 = arith.constant 0 : index
    %c0_83 = arith.constant 0 : index
    %339 = vector.load %arg20[%c7, %c0_82, %c0_83] : memref<8x16x512xf32, #tpu.memory_space<vmem>>, vector<1x16x512xf32>
    %340 = vector.shape_cast %339 : vector<1x16x512xf32> to vector<16x512xf32>
    %341 = arith.truncf %334 : vector<16x128xf32> to vector<16x128xbf16>
    %cst_84 = arith.constant dense<0.000000e+00> : vector<16x512xf32>
    %342 = tpu.matmul %341, %16, %cst_84 {dimension_numbers = #tpu.dot_dimension_numbers<[1], [0], [0], [1], [0, 0, 1, 1], [], []>} : vector<16x128xbf16>, vector<128x512xbf16>, vector<16x512xf32> -> vector<16x512xf32>
    %343 = arith.addf %340, %342 : vector<16x512xf32>
    %344 = vector.extract_strided_slice %343 {offsets = [0, 0], sizes = [16, 128], strides = [1, 1]} : vector<16x512xf32> to vector<16x128xf32>
    %345 = arith.negf %344 : vector<16x128xf32>
    %346 = math.exp %345 : vector<16x128xf32>
    %cst_85 = arith.constant 1.000000e+00 : f32
    %347 = vector.broadcast %cst_85 : f32 to vector<16x128xf32>
    %348 = arith.addf %347, %346 : vector<16x128xf32>
    %349 = arith.divf %347, %348 : vector<16x128xf32>
    %350 = vector.extract_strided_slice %343 {offsets = [0, 128], sizes = [16, 128], strides = [1, 1]} : vector<16x512xf32> to vector<16x128xf32>
    %351 = arith.negf %350 : vector<16x128xf32>
    %352 = math.exp %351 : vector<16x128xf32>
    %cst_86 = arith.constant 1.000000e+00 : f32
    %353 = vector.broadcast %cst_86 : f32 to vector<16x128xf32>
    %354 = arith.addf %353, %352 : vector<16x128xf32>
    %355 = arith.divf %353, %354 : vector<16x128xf32>
    %356 = vector.extract_strided_slice %343 {offsets = [0, 256], sizes = [16, 128], strides = [1, 1]} : vector<16x512xf32> to vector<16x128xf32>
    %357 = math.tanh %356 : vector<16x128xf32>
    %358 = vector.extract_strided_slice %343 {offsets = [0, 384], sizes = [16, 128], strides = [1, 1]} : vector<16x512xf32> to vector<16x128xf32>
    %359 = arith.negf %358 : vector<16x128xf32>
    %360 = math.exp %359 : vector<16x128xf32>
    %cst_87 = arith.constant 1.000000e+00 : f32
    %361 = vector.broadcast %cst_87 : f32 to vector<16x128xf32>
    %362 = arith.addf %361, %360 : vector<16x128xf32>
    %363 = arith.divf %361, %362 : vector<16x128xf32>
    %364 = arith.mulf %355, %338 : vector<16x128xf32>
    %365 = arith.mulf %349, %357 : vector<16x128xf32>
    %366 = arith.addf %364, %365 : vector<16x128xf32>
    %367 = math.tanh %366 : vector<16x128xf32>
    %368 = arith.mulf %363, %367 : vector<16x128xf32>
    %369 = vector.extract_strided_slice %0 {offsets = [7, 0, 0], sizes = [1, 16, 1], strides = [1, 1, 1]} : vector<8x16x2xf32> to vector<1x16x1xf32>
    %370 = vector.shape_cast %369 : vector<1x16x1xf32> to vector<16x1xf32>
    %371 = vector.broadcast %370 : vector<16x1xf32> to vector<16x128xf32>
    %372 = arith.mulf %371, %368 : vector<16x128xf32>
    %373 = arith.truncf %372 : vector<16x128xf32> to vector<16x128xbf16>
    %c7_88 = arith.constant 7 : index
    %c0_89 = arith.constant 0 : index
    %c0_90 = arith.constant 0 : index
    %374 = vector.load %arg21[%c7_88, %c0_89, %c0_90] : memref<8x16x128xbf16, #tpu.memory_space<vmem>>, vector<1x16x128xbf16>
    %375 = vector.shape_cast %374 : vector<1x16x128xbf16> to vector<16x128xbf16>
    %376 = vector.shape_cast %373 : vector<16x128xbf16> to vector<1x16x128xbf16>
    tpu.vector_store %arg21[%c7_88, %c0_89, %c0_90], %376 {strides = array<i32>} : memref<8x16x128xbf16, #tpu.memory_space<vmem>>, vector<1x16x128xbf16>,
    %377 = arith.subf %368, %334 : vector<16x128xf32>
    %378 = vector.broadcast %370 : vector<16x1xf32> to vector<16x128xf32>
    %379 = arith.mulf %378, %377 : vector<16x128xf32>
    %380 = arith.addf %334, %379 : vector<16x128xf32>
    %381 = arith.subf %366, %338 : vector<16x128xf32>
    %382 = vector.broadcast %370 : vector<16x1xf32> to vector<16x128xf32>
    %383 = arith.mulf %382, %381 : vector<16x128xf32>
    %384 = arith.addf %338, %383 : vector<16x128xf32>
    %c0_91 = arith.constant 0 : index
    %c0_92 = arith.constant 0 : index
    %c0_93 = arith.constant 0 : index
    %385 = vector.load %arg21[%c0_91, %c0_92, %c0_93] : memref<8x16x128xbf16, #tpu.memory_space<vmem>>, vector<8x16x128xbf16>
    %c0_94 = arith.constant 0 : index
    %c0_95 = arith.constant 0 : index
    %386 = vector.load %arg14[%c0_94, %c0_95] : memref<1x128xf32, #tpu.memory_space<vmem>>, vector<1x128xf32>
    %387 = vector.extract_strided_slice %0 {offsets = [0, 0, 1], sizes = [8, 16, 1], strides = [1, 1, 1]} : vector<8x16x2xf32> to vector<8x16x1xf32>
    %cst_96 = arith.constant 1.000000e+00 : f32
    %388 = vector.broadcast %cst_96 : f32 to vector<8x16x1xf32>
    %389 = arith.subf %387, %388 : vector<8x16x1xf32>
    %cst_97 = arith.constant 1.000000e+30 : f32
    %390 = vector.broadcast %cst_97 : f32 to vector<8x16x1xf32>
    %391 = arith.mulf %389, %390 : vector<8x16x1xf32>
    %392 = vector.shape_cast %385 : vector<8x16x128xbf16> to vector<128x128xbf16>
    %c0_98 = arith.constant 0 : index
    %c0_99 = arith.constant 0 : index
    %393 = vector.load %arg11[%c0_98, %c0_99] : memref<128x128xbf16, #tpu.memory_space<vmem>>, vector<128x128xbf16>
    %cst_100 = arith.constant dense<0.000000e+00> : vector<128x128xf32>
    %394 = tpu.matmul %392, %393, %cst_100 {dimension_numbers = #tpu.dot_dimension_numbers<[1], [0], [0], [1], [0, 0, 1, 1], [], []>} : vector<128x128xbf16>, vector<128x128xbf16>, vector<128x128xf32> -> vector<128x128xf32>
    %395 = vector.shape_cast %394 : vector<128x128xf32> to vector<8x16x128xf32>
    %c0_101 = arith.constant 0 : index
    %c0_102 = arith.constant 0 : index
    %396 = vector.load %arg9[%c0_101, %c0_102] : memref<256x512xbf16, #tpu.memory_space<vmem>>, vector<256x512xbf16>
    %c0_103 = arith.constant 0 : index
    %c0_104 = arith.constant 0 : index
    %397 = vector.load %arg10[%c0_103, %c0_104] : memref<1x512xf32, #tpu.memory_space<vmem>>, vector<1x512xf32>
    %c0_105 = arith.constant 0 : index
    %c0_106 = arith.constant 0 : index
    %398 = vector.load %arg12[%c0_105, %c0_106] : memref<128x128xbf16, #tpu.memory_space<vmem>>, vector<128x128xbf16>
    %c0_107 = arith.constant 0 : index
    %c0_108 = arith.constant 0 : index
    %399 = vector.load %arg13[%c0_107, %c0_108] : memref<1x128xf32, #tpu.memory_space<vmem>>, vector<1x128xf32>
    %c0_109 = arith.constant 0 : index
    %c0_110 = arith.constant 0 : index
    %400 = vector.load %arg8[%c0_109, %c0_110] : memref<1x128xf32, #tpu.memory_space<vmem>>, vector<1x128xf32>
    %401 = vector.shape_cast %400 : vector<1x128xf32> to vector<1x128xf32>
    %402 = vector.broadcast %401 : vector<1x128xf32> to vector<16x128xf32>
    %403 = tpu.concatenate %402, %380 in 1 : vector<16x128xf32>, vector<16x128xf32> -> vector<16x256xf32>
    %404 = arith.truncf %403 : vector<16x256xf32> to vector<16x256xbf16>
    %cst_111 = arith.constant dense<0.000000e+00> : vector<16x512xf32>
    %405 = tpu.matmul %404, %396, %cst_111 {dimension_numbers = #tpu.dot_dimension_numbers<[1], [0], [0], [1], [0, 0, 1, 1], [], []>} : vector<16x256xbf16>, vector<256x512xbf16>, vector<16x512xf32> -> vector<16x512xf32>
    %406 = vector.broadcast %397 : vector<1x512xf32> to vector<16x512xf32>
    %407 = arith.addf %405, %406 : vector<16x512xf32>
    %408 = vector.extract_strided_slice %407 {offsets = [0, 0], sizes = [16, 128], strides = [1, 1]} : vector<16x512xf32> to vector<16x128xf32>
    %409 = arith.negf %408 : vector<16x128xf32>
    %410 = math.exp %409 : vector<16x128xf32>
    %cst_112 = arith.constant 1.000000e+00 : f32
    %411 = vector.broadcast %cst_112 : f32 to vector<16x128xf32>
    %412 = arith.addf %411, %410 : vector<16x128xf32>
    %413 = arith.divf %411, %412 : vector<16x128xf32>
    %414 = vector.extract_strided_slice %407 {offsets = [0, 128], sizes = [16, 128], strides = [1, 1]} : vector<16x512xf32> to vector<16x128xf32>
    %415 = arith.negf %414 : vector<16x128xf32>
    %416 = math.exp %415 : vector<16x128xf32>
    %cst_113 = arith.constant 1.000000e+00 : f32
    %417 = vector.broadcast %cst_113 : f32 to vector<16x128xf32>
    %418 = arith.addf %417, %416 : vector<16x128xf32>
    %419 = arith.divf %417, %418 : vector<16x128xf32>
    %420 = vector.extract_strided_slice %407 {offsets = [0, 256], sizes = [16, 128], strides = [1, 1]} : vector<16x512xf32> to vector<16x128xf32>
    %421 = math.tanh %420 : vector<16x128xf32>
    %422 = vector.extract_strided_slice %407 {offsets = [0, 384], sizes = [16, 128], strides = [1, 1]} : vector<16x512xf32> to vector<16x128xf32>
    %423 = arith.negf %422 : vector<16x128xf32>
    %424 = math.exp %423 : vector<16x128xf32>
    %cst_114 = arith.constant 1.000000e+00 : f32
    %425 = vector.broadcast %cst_114 : f32 to vector<16x128xf32>
    %426 = arith.addf %425, %424 : vector<16x128xf32>
    %427 = arith.divf %425, %426 : vector<16x128xf32>
    %428 = arith.mulf %419, %384 : vector<16x128xf32>
    %429 = arith.mulf %413, %421 : vector<16x128xf32>
    %430 = arith.addf %428, %429 : vector<16x128xf32>
    %431 = math.tanh %430 : vector<16x128xf32>
    %432 = arith.mulf %427, %431 : vector<16x128xf32>
    %433 = arith.truncf %432 : vector<16x128xf32> to vector<16x128xbf16>
    %cst_115 = arith.constant dense<0.000000e+00> : vector<16x128xf32>
    %434 = tpu.matmul %433, %398, %cst_115 {dimension_numbers = #tpu.dot_dimension_numbers<[1], [0], [0], [1], [0, 0, 1, 1], [], []>} : vector<16x128xbf16>, vector<128x128xbf16>, vector<16x128xf32> -> vector<16x128xf32>
    %435 = vector.broadcast %399 : vector<1x128xf32> to vector<16x128xf32>
    %436 = arith.addf %434, %435 : vector<16x128xf32>
    %437 = vector.shape_cast %436 : vector<16x128xf32> to vector<1x16x128xf32>
    %438 = vector.broadcast %437 : vector<1x16x128xf32> to vector<8x16x128xf32>
    %439 = arith.addf %395, %438 : vector<8x16x128xf32>
    %440 = math.tanh %439 : vector<8x16x128xf32>
    %441 = vector.shape_cast %386 : vector<1x128xf32> to vector<1x1x128xf32>
    %442 = vector.broadcast %441 : vector<1x1x128xf32> to vector<8x16x128xf32>
    %443 = arith.mulf %440, %442 : vector<8x16x128xf32>
    %cst_116 = arith.constant dense<0.000000e+00> : vector<8x16xf32>
    %444 = vector.multi_reduction <add>, %443, %cst_116 [2] : vector<8x16x128xf32> to vector<8x16xf32>
    %445 = vector.shape_cast %444 : vector<8x16xf32> to vector<8x16x1xf32>
    %446 = arith.addf %445, %391 : vector<8x16x1xf32>
    %cst_117 = arith.constant dense<0xFF800000> : vector<16x1xf32>
    %447 = vector.multi_reduction <maximumf>, %446, %cst_117 [0] : vector<8x16x1xf32> to vector<16x1xf32>
    %448 = vector.shape_cast %447 : vector<16x1xf32> to vector<1x16x1xf32>
    %449 = vector.broadcast %448 : vector<1x16x1xf32> to vector<8x16x1xf32>
    %450 = arith.subf %446, %449 : vector<8x16x1xf32>
    %451 = math.exp %450 : vector<8x16x1xf32>
    %cst_118 = arith.constant dense<0.000000e+00> : vector<16x1xf32>
    %452 = vector.multi_reduction <add>, %451, %cst_118 [0] : vector<8x16x1xf32> to vector<16x1xf32>
    %453 = arith.extf %385 : vector<8x16x128xbf16> to vector<8x16x128xf32>
    %454 = vector.broadcast %451 : vector<8x16x1xf32> to vector<8x16x128xf32>
    %455 = arith.mulf %454, %453 : vector<8x16x128xf32>
    %cst_119 = arith.constant dense<0.000000e+00> : vector<16x128xf32>
    %456 = vector.multi_reduction <add>, %455, %cst_119 [0] : vector<8x16x128xf32> to vector<16x128xf32>
    %457 = tpu.reciprocal %452 {approx = true} : vector<16x1xf32> -> vector<16x1xf32>
    %458 = vector.broadcast %457 : vector<16x1xf32> to vector<16x128xf32>
    %459 = arith.mulf %456, %458 : vector<16x128xf32>
    %460 = tpu.concatenate %459, %432 in 1 : vector<16x128xf32>, vector<16x128xf32> -> vector<16x256xf32>
    %461 = arith.truncf %460 : vector<16x256xf32> to vector<16x256xbf16>
    %cst_120 = arith.constant dense<0.000000e+00> : vector<16x512xf32>
    %462 = tpu.matmul %461, %396, %cst_120 {dimension_numbers = #tpu.dot_dimension_numbers<[1], [0], [0], [1], [0, 0, 1, 1], [], []>} : vector<16x256xbf16>, vector<256x512xbf16>, vector<16x512xf32> -> vector<16x512xf32>
    %463 = vector.broadcast %397 : vector<1x512xf32> to vector<16x512xf32>
    %464 = arith.addf %462, %463 : vector<16x512xf32>
    %465 = vector.extract_strided_slice %464 {offsets = [0, 0], sizes = [16, 128], strides = [1, 1]} : vector<16x512xf32> to vector<16x128xf32>
    %466 = arith.negf %465 : vector<16x128xf32>
    %467 = math.exp %466 : vector<16x128xf32>
    %cst_121 = arith.constant 1.000000e+00 : f32
    %468 = vector.broadcast %cst_121 : f32 to vector<16x128xf32>
    %469 = arith.addf %468, %467 : vector<16x128xf32>
    %470 = arith.divf %468, %469 : vector<16x128xf32>
    %471 = vector.extract_strided_slice %464 {offsets = [0, 128], sizes = [16, 128], strides = [1, 1]} : vector<16x512xf32> to vector<16x128xf32>
    %472 = arith.negf %471 : vector<16x128xf32>
    %473 = math.exp %472 : vector<16x128xf32>
    %cst_122 = arith.constant 1.000000e+00 : f32
    %474 = vector.broadcast %cst_122 : f32 to vector<16x128xf32>
    %475 = arith.addf %474, %473 : vector<16x128xf32>
    %476 = arith.divf %474, %475 : vector<16x128xf32>
    %477 = vector.extract_strided_slice %464 {offsets = [0, 256], sizes = [16, 128], strides = [1, 1]} : vector<16x512xf32> to vector<16x128xf32>
    %478 = math.tanh %477 : vector<16x128xf32>
    %479 = vector.extract_strided_slice %464 {offsets = [0, 384], sizes = [16, 128], strides = [1, 1]} : vector<16x512xf32> to vector<16x128xf32>
    %480 = arith.negf %479 : vector<16x128xf32>
    %481 = math.exp %480 : vector<16x128xf32>
    %cst_123 = arith.constant 1.000000e+00 : f32
    %482 = vector.broadcast %cst_123 : f32 to vector<16x128xf32>
    %483 = arith.addf %482, %481 : vector<16x128xf32>
    %484 = arith.divf %482, %483 : vector<16x128xf32>
    %485 = arith.mulf %476, %430 : vector<16x128xf32>
    %486 = arith.mulf %470, %478 : vector<16x128xf32>
    %487 = arith.addf %485, %486 : vector<16x128xf32>
    %488 = math.tanh %487 : vector<16x128xf32>
    %489 = arith.mulf %484, %488 : vector<16x128xf32>
    %490 = arith.truncf %489 : vector<16x128xf32> to vector<16x128xbf16>
    %cst_124 = arith.constant dense<0.000000e+00> : vector<16x128xf32>
    %491 = tpu.matmul %490, %398, %cst_124 {dimension_numbers = #tpu.dot_dimension_numbers<[1], [0], [0], [1], [0, 0, 1, 1], [], []>} : vector<16x128xbf16>, vector<128x128xbf16>, vector<16x128xf32> -> vector<16x128xf32>
    %492 = vector.broadcast %399 : vector<1x128xf32> to vector<16x128xf32>
    %493 = arith.addf %491, %492 : vector<16x128xf32>
    %494 = vector.shape_cast %493 : vector<16x128xf32> to vector<1x16x128xf32>
    %495 = vector.broadcast %494 : vector<1x16x128xf32> to vector<8x16x128xf32>
    %496 = arith.addf %395, %495 : vector<8x16x128xf32>
    %497 = math.tanh %496 : vector<8x16x128xf32>
    %498 = vector.shape_cast %386 : vector<1x128xf32> to vector<1x1x128xf32>
    %499 = vector.broadcast %498 : vector<1x1x128xf32> to vector<8x16x128xf32>
    %500 = arith.mulf %497, %499 : vector<8x16x128xf32>
    %cst_125 = arith.constant dense<0.000000e+00> : vector<8x16xf32>
    %501 = vector.multi_reduction <add>, %500, %cst_125 [2] : vector<8x16x128xf32> to vector<8x16xf32>
    %502 = vector.shape_cast %501 : vector<8x16xf32> to vector<8x16x1xf32>
    %503 = arith.addf %502, %391 : vector<8x16x1xf32>
    %cst_126 = arith.constant dense<0xFF800000> : vector<16x1xf32>
    %504 = vector.multi_reduction <maximumf>, %503, %cst_126 [0] : vector<8x16x1xf32> to vector<16x1xf32>
    %505 = vector.shape_cast %504 : vector<16x1xf32> to vector<1x16x1xf32>
    %506 = vector.broadcast %505 : vector<1x16x1xf32> to vector<8x16x1xf32>
    %507 = arith.subf %503, %506 : vector<8x16x1xf32>
    %508 = math.exp %507 : vector<8x16x1xf32>
    %cst_127 = arith.constant dense<0.000000e+00> : vector<16x1xf32>
    %509 = vector.multi_reduction <add>, %508, %cst_127 [0] : vector<8x16x1xf32> to vector<16x1xf32>
    %510 = arith.extf %385 : vector<8x16x128xbf16> to vector<8x16x128xf32>
    %511 = vector.broadcast %508 : vector<8x16x1xf32> to vector<8x16x128xf32>
    %512 = arith.mulf %511, %510 : vector<8x16x128xf32>
    %cst_128 = arith.constant dense<0.000000e+00> : vector<16x128xf32>
    %513 = vector.multi_reduction <add>, %512, %cst_128 [0] : vector<8x16x128xf32> to vector<16x128xf32>
    %514 = tpu.reciprocal %509 {approx = true} : vector<16x1xf32> -> vector<16x1xf32>
    %515 = vector.broadcast %514 : vector<16x1xf32> to vector<16x128xf32>
    %516 = arith.mulf %513, %515 : vector<16x128xf32>
    %517 = tpu.concatenate %516, %489 in 1 : vector<16x128xf32>, vector<16x128xf32> -> vector<16x256xf32>
    %518 = arith.truncf %517 : vector<16x256xf32> to vector<16x256xbf16>
    %cst_129 = arith.constant dense<0.000000e+00> : vector<16x512xf32>
    %519 = tpu.matmul %518, %396, %cst_129 {dimension_numbers = #tpu.dot_dimension_numbers<[1], [0], [0], [1], [0, 0, 1, 1], [], []>} : vector<16x256xbf16>, vector<256x512xbf16>, vector<16x512xf32> -> vector<16x512xf32>
    %520 = vector.broadcast %397 : vector<1x512xf32> to vector<16x512xf32>
    %521 = arith.addf %519, %520 : vector<16x512xf32>
    %522 = vector.extract_strided_slice %521 {offsets = [0, 0], sizes = [16, 128], strides = [1, 1]} : vector<16x512xf32> to vector<16x128xf32>
    %523 = arith.negf %522 : vector<16x128xf32>
    %524 = math.exp %523 : vector<16x128xf32>
    %cst_130 = arith.constant 1.000000e+00 : f32
    %525 = vector.broadcast %cst_130 : f32 to vector<16x128xf32>
    %526 = arith.addf %525, %524 : vector<16x128xf32>
    %527 = arith.divf %525, %526 : vector<16x128xf32>
    %528 = vector.extract_strided_slice %521 {offsets = [0, 128], sizes = [16, 128], strides = [1, 1]} : vector<16x512xf32> to vector<16x128xf32>
    %529 = arith.negf %528 : vector<16x128xf32>
    %530 = math.exp %529 : vector<16x128xf32>
    %cst_131 = arith.constant 1.000000e+00 : f32
    %531 = vector.broadcast %cst_131 : f32 to vector<16x128xf32>
    %532 = arith.addf %531, %530 : vector<16x128xf32>
    %533 = arith.divf %531, %532 : vector<16x128xf32>
    %534 = vector.extract_strided_slice %521 {offsets = [0, 256], sizes = [16, 128], strides = [1, 1]} : vector<16x512xf32> to vector<16x128xf32>
    %535 = math.tanh %534 : vector<16x128xf32>
    %536 = vector.extract_strided_slice %521 {offsets = [0, 384], sizes = [16, 128], strides = [1, 1]} : vector<16x512xf32> to vector<16x128xf32>
    %537 = arith.negf %536 : vector<16x128xf32>
    %538 = math.exp %537 : vector<16x128xf32>
    %cst_132 = arith.constant 1.000000e+00 : f32
    %539 = vector.broadcast %cst_132 : f32 to vector<16x128xf32>
    %540 = arith.addf %539, %538 : vector<16x128xf32>
    %541 = arith.divf %539, %540 : vector<16x128xf32>
    %542 = arith.mulf %533, %487 : vector<16x128xf32>
    %543 = arith.mulf %527, %535 : vector<16x128xf32>
    %544 = arith.addf %542, %543 : vector<16x128xf32>
    %545 = math.tanh %544 : vector<16x128xf32>
    %546 = arith.mulf %541, %545 : vector<16x128xf32>
    %547 = arith.truncf %546 : vector<16x128xf32> to vector<16x128xbf16>
    %cst_133 = arith.constant dense<0.000000e+00> : vector<16x128xf32>
    %548 = tpu.matmul %547, %398, %cst_133 {dimension_numbers = #tpu.dot_dimension_numbers<[1], [0], [0], [1], [0, 0, 1, 1], [], []>} : vector<16x128xbf16>, vector<128x128xbf16>, vector<16x128xf32> -> vector<16x128xf32>
    %549 = vector.broadcast %399 : vector<1x128xf32> to vector<16x128xf32>
    %550 = arith.addf %548, %549 : vector<16x128xf32>
    %551 = vector.shape_cast %550 : vector<16x128xf32> to vector<1x16x128xf32>
    %552 = vector.broadcast %551 : vector<1x16x128xf32> to vector<8x16x128xf32>
    %553 = arith.addf %395, %552 : vector<8x16x128xf32>
    %554 = math.tanh %553 : vector<8x16x128xf32>
    %555 = vector.shape_cast %386 : vector<1x128xf32> to vector<1x1x128xf32>
    %556 = vector.broadcast %555 : vector<1x1x128xf32> to vector<8x16x128xf32>
    %557 = arith.mulf %554, %556 : vector<8x16x128xf32>
    %cst_134 = arith.constant dense<0.000000e+00> : vector<8x16xf32>
    %558 = vector.multi_reduction <add>, %557, %cst_134 [2] : vector<8x16x128xf32> to vector<8x16xf32>
    %559 = vector.shape_cast %558 : vector<8x16xf32> to vector<8x16x1xf32>
    %560 = arith.addf %559, %391 : vector<8x16x1xf32>
    %cst_135 = arith.constant dense<0xFF800000> : vector<16x1xf32>
    %561 = vector.multi_reduction <maximumf>, %560, %cst_135 [0] : vector<8x16x1xf32> to vector<16x1xf32>
    %562 = vector.shape_cast %561 : vector<16x1xf32> to vector<1x16x1xf32>
    %563 = vector.broadcast %562 : vector<1x16x1xf32> to vector<8x16x1xf32>
    %564 = arith.subf %560, %563 : vector<8x16x1xf32>
    %565 = math.exp %564 : vector<8x16x1xf32>
    %cst_136 = arith.constant dense<0.000000e+00> : vector<16x1xf32>
    %566 = vector.multi_reduction <add>, %565, %cst_136 [0] : vector<8x16x1xf32> to vector<16x1xf32>
    %567 = arith.extf %385 : vector<8x16x128xbf16> to vector<8x16x128xf32>
    %568 = vector.broadcast %565 : vector<8x16x1xf32> to vector<8x16x128xf32>
    %569 = arith.mulf %568, %567 : vector<8x16x128xf32>
    %cst_137 = arith.constant dense<0.000000e+00> : vector<16x128xf32>
    %570 = vector.multi_reduction <add>, %569, %cst_137 [0] : vector<8x16x128xf32> to vector<16x128xf32>
    %571 = tpu.reciprocal %566 {approx = true} : vector<16x1xf32> -> vector<16x1xf32>
    %572 = vector.broadcast %571 : vector<16x1xf32> to vector<16x128xf32>
    %573 = arith.mulf %570, %572 : vector<16x128xf32>
    %574 = tpu.concatenate %573, %546 in 1 : vector<16x128xf32>, vector<16x128xf32> -> vector<16x256xf32>
    %575 = arith.truncf %574 : vector<16x256xf32> to vector<16x256xbf16>
    %cst_138 = arith.constant dense<0.000000e+00> : vector<16x512xf32>
    %576 = tpu.matmul %575, %396, %cst_138 {dimension_numbers = #tpu.dot_dimension_numbers<[1], [0], [0], [1], [0, 0, 1, 1], [], []>} : vector<16x256xbf16>, vector<256x512xbf16>, vector<16x512xf32> -> vector<16x512xf32>
    %577 = vector.broadcast %397 : vector<1x512xf32> to vector<16x512xf32>
    %578 = arith.addf %576, %577 : vector<16x512xf32>
    %579 = vector.extract_strided_slice %578 {offsets = [0, 0], sizes = [16, 128], strides = [1, 1]} : vector<16x512xf32> to vector<16x128xf32>
    %580 = arith.negf %579 : vector<16x128xf32>
    %581 = math.exp %580 : vector<16x128xf32>
    %cst_139 = arith.constant 1.000000e+00 : f32
    %582 = vector.broadcast %cst_139 : f32 to vector<16x128xf32>
    %583 = arith.addf %582, %581 : vector<16x128xf32>
    %584 = arith.divf %582, %583 : vector<16x128xf32>
    %585 = vector.extract_strided_slice %578 {offsets = [0, 128], sizes = [16, 128], strides = [1, 1]} : vector<16x512xf32> to vector<16x128xf32>
    %586 = arith.negf %585 : vector<16x128xf32>
    %587 = math.exp %586 : vector<16x128xf32>
    %cst_140 = arith.constant 1.000000e+00 : f32
    %588 = vector.broadcast %cst_140 : f32 to vector<16x128xf32>
    %589 = arith.addf %588, %587 : vector<16x128xf32>
    %590 = arith.divf %588, %589 : vector<16x128xf32>
    %591 = vector.extract_strided_slice %578 {offsets = [0, 256], sizes = [16, 128], strides = [1, 1]} : vector<16x512xf32> to vector<16x128xf32>
    %592 = math.tanh %591 : vector<16x128xf32>
    %593 = vector.extract_strided_slice %578 {offsets = [0, 384], sizes = [16, 128], strides = [1, 1]} : vector<16x512xf32> to vector<16x128xf32>
    %594 = arith.negf %593 : vector<16x128xf32>
    %595 = math.exp %594 : vector<16x128xf32>
    %cst_141 = arith.constant 1.000000e+00 : f32
    %596 = vector.broadcast %cst_141 : f32 to vector<16x128xf32>
    %597 = arith.addf %596, %595 : vector<16x128xf32>
    %598 = arith.divf %596, %597 : vector<16x128xf32>
    %599 = arith.mulf %590, %544 : vector<16x128xf32>
    %600 = arith.mulf %584, %592 : vector<16x128xf32>
    %601 = arith.addf %599, %600 : vector<16x128xf32>
    %602 = math.tanh %601 : vector<16x128xf32>
    %603 = arith.mulf %598, %602 : vector<16x128xf32>
    %604 = arith.truncf %603 : vector<16x128xf32> to vector<16x128xbf16>
    %c0_142 = arith.constant 0 : index
    %c0_143 = arith.constant 0 : index
    %605 = vector.load %arg15[%c0_142, %c0_143] : memref<128x64xbf16, #tpu.memory_space<vmem>>, vector<128x64xbf16>
    %cst_144 = arith.constant dense<0.000000e+00> : vector<16x64xf32>
    %606 = tpu.matmul %604, %605, %cst_144 {dimension_numbers = #tpu.dot_dimension_numbers<[1], [0], [0], [1], [0, 0, 1, 1], [], []>} : vector<16x128xbf16>, vector<128x64xbf16>, vector<16x64xf32> -> vector<16x64xf32>
    %c0_145 = arith.constant 0 : index
    %c0_146 = arith.constant 0 : index
    %607 = vector.load %arg16[%c0_145, %c0_146] : memref<1x64xf32, #tpu.memory_space<vmem>>, vector<1x64xf32>
    %608 = vector.broadcast %607 : vector<1x64xf32> to vector<16x64xf32>
    %609 = arith.addf %606, %608 : vector<16x64xf32>
    %cst_147 = arith.constant 0.000000e+00 : f32
    %610 = vector.broadcast %cst_147 : f32 to vector<16x64xf32>
    %611 = arith.maximumf %609, %610 : vector<16x64xf32>
    %c0_148 = arith.constant 0 : index
    %c0_149 = arith.constant 0 : index
    %612 = vector.load %arg17[%c0_148, %c0_149] : memref<1x64xf32, #tpu.memory_space<vmem>>, vector<1x64xf32>
    %cst_150 = arith.constant dense<0.000000e+00> : vector<1x16xf32>
    %613 = tpu.matmul %612, %611, %cst_150 {dimension_numbers = #tpu.dot_dimension_numbers<[1], [1], [0], [0], [0, 0, 1, 0], [], []>} : vector<1x64xf32>, vector<16x64xf32>, vector<1x16xf32> -> vector<1x16xf32>
    %c0_151 = arith.constant 0 : index
    %c0_152 = arith.constant 0 : index
    %614 = vector.load %arg18[%c0_151, %c0_152] : memref<1x1xf32, #tpu.memory_space<vmem>>, vector<1x1xf32>
    %615 = vector.broadcast %614 : vector<1x1xf32> to vector<1x16xf32>
    %616 = arith.addf %613, %615 : vector<1x16xf32>
    %c0_153 = arith.constant 0 : index
    %c0_154 = arith.constant 0 : index
    %617 = vector.load %arg19[%c0_153, %c0_154] : memref<1x16xf32, #tpu.memory_space<vmem>>, vector<1x16xf32>
    tpu.vector_store %arg19[%c0_153, %c0_154], %616 {strides = array<i32>} : memref<1x16xf32, #tpu.memory_space<vmem>>, vector<1x16xf32>,
    return
  }
  func.func @transform_0(%arg0: i32) -> (i32, i32, i32) {
    %c0_i32 = arith.constant 0 : i32
    %c0_i32_0 = arith.constant 0 : i32
    %c0_i32_1 = arith.constant 0 : i32
    return %c0_i32, %arg0, %c0_i32_0 : i32, i32, i32
  }
  func.func @transform_1(%arg0: i32) -> (i32, i32, i32) {
    %c0_i32 = arith.constant 0 : i32
    %c0_i32_0 = arith.constant 0 : i32
    %c0_i32_1 = arith.constant 0 : i32
    return %c0_i32, %arg0, %c0_i32_0 : i32, i32, i32
  }
  func.func @transform_2(%arg0: i32) -> (i32, i32) {
    %c0_i32 = arith.constant 0 : i32
    %c0_i32_0 = arith.constant 0 : i32
    %c0_i32_1 = arith.constant 0 : i32
    return %c0_i32, %c0_i32_0 : i32, i32
  }
  func.func @transform_3(%arg0: i32) -> (i32, i32) {
    %c0_i32 = arith.constant 0 : i32
    %c0_i32_0 = arith.constant 0 : i32
    %c0_i32_1 = arith.constant 0 : i32
    return %c0_i32, %c0_i32_0 : i32, i32
  }
  func.func @transform_4(%arg0: i32) -> (i32, i32) {
    %c0_i32 = arith.constant 0 : i32
    %c0_i32_0 = arith.constant 0 : i32
    %c0_i32_1 = arith.constant 0 : i32
    return %c0_i32, %c0_i32_0 : i32, i32
  }
  func.func @transform_5(%arg0: i32) -> (i32, i32) {
    %c0_i32 = arith.constant 0 : i32
    %c0_i32_0 = arith.constant 0 : i32
    %c0_i32_1 = arith.constant 0 : i32
    return %c0_i32, %c0_i32_0 : i32, i32
  }
  func.func @transform_6(%arg0: i32) -> (i32, i32) {
    %c0_i32 = arith.constant 0 : i32
    %c0_i32_0 = arith.constant 0 : i32
    %c0_i32_1 = arith.constant 0 : i32
    return %c0_i32, %c0_i32_0 : i32, i32
  }
  func.func @transform_7(%arg0: i32) -> (i32, i32) {
    %c0_i32 = arith.constant 0 : i32
    %c0_i32_0 = arith.constant 0 : i32
    %c0_i32_1 = arith.constant 0 : i32
    return %c0_i32, %c0_i32_0 : i32, i32
  }
  func.func @transform_8(%arg0: i32) -> (i32, i32) {
    %c0_i32 = arith.constant 0 : i32
    %c0_i32_0 = arith.constant 0 : i32
    %c0_i32_1 = arith.constant 0 : i32
    return %c0_i32, %c0_i32_0 : i32, i32
  }
  func.func @transform_9(%arg0: i32) -> (i32, i32) {
    %c0_i32 = arith.constant 0 : i32
    %c0_i32_0 = arith.constant 0 : i32
    %c0_i32_1 = arith.constant 0 : i32
    return %c0_i32, %c0_i32_0 : i32, i32
  }
  func.func @transform_10(%arg0: i32) -> (i32, i32) {
    %c0_i32 = arith.constant 0 : i32
    %c0_i32_0 = arith.constant 0 : i32
    %c0_i32_1 = arith.constant 0 : i32
    return %c0_i32, %c0_i32_0 : i32, i32
  }
  func.func @transform_11(%arg0: i32) -> (i32, i32) {
    %c0_i32 = arith.constant 0 : i32
    %c0_i32_0 = arith.constant 0 : i32
    %c0_i32_1 = arith.constant 0 : i32
    return %c0_i32, %c0_i32_0 : i32, i32
  }
  func.func @transform_12(%arg0: i32) -> (i32, i32) {
    %c0_i32 = arith.constant 0 : i32
    %c0_i32_0 = arith.constant 0 : i32
    %c0_i32_1 = arith.constant 0 : i32
    return %c0_i32, %c0_i32_0 : i32, i32
  }
  func.func @transform_13(%arg0: i32) -> (i32, i32) {
    %c0_i32 = arith.constant 0 : i32
    %c0_i32_0 = arith.constant 0 : i32
    %c0_i32_1 = arith.constant 0 : i32
    return %c0_i32, %c0_i32_0 : i32, i32
  }
  func.func @transform_14(%arg0: i32) -> (i32, i32) {
    %c0_i32 = arith.constant 0 : i32
    %c0_i32_0 = arith.constant 0 : i32
    %c0_i32_1 = arith.constant 0 : i32
    return %c0_i32, %c0_i32_0 : i32, i32
  }
  func.func @transform_15(%arg0: i32) -> (i32, i32) {
    %c0_i32 = arith.constant 0 : i32
    %c0_i32_0 = arith.constant 0 : i32
    %c0_i32_1 = arith.constant 0 : i32
    return %c0_i32, %c0_i32_0 : i32, i32
  }
  func.func @transform_16(%arg0: i32) -> (i32, i32) {
    %c0_i32 = arith.constant 0 : i32
    %c0_i32_0 = arith.constant 0 : i32
    %c0_i32_1 = arith.constant 0 : i32
    return %c0_i32, %c0_i32_0 : i32, i32
  }
  func.func @transform_17(%arg0: i32) -> (i32, i32) {
    %c0_i32 = arith.constant 0 : i32
    %c0_i32_0 = arith.constant 0 : i32
    %c0_i32_1 = arith.constant 0 : i32
    return %c0_i32, %c0_i32_0 : i32, i32
  }
  func.func @transform_18(%arg0: i32) -> (i32, i32) {
    %c0_i32 = arith.constant 0 : i32
    %c0_i32_0 = arith.constant 0 : i32
    return %c0_i32, %arg0 : i32, i32
  }
}

</mosaic_0001>

<bundles_post_ra>
// kernel: tpu_custom_call.1
= control target key start
LH: loop header
LB: loop body
LE: loop exit
PB: predicated region body
PF: predicated region fallthrough
CT: control target
= control target key end

     0   :  { %s8935_s0 = inlined_call_operand.vmem [shape: bf16[8,16,128], index: 0, kind: input, shape index: {}]   ;;  %s8936_s1 = inlined_call_operand.vmem [shape: f32[8,16,2], index: 1, kind: input, shape index: {}]   ;;  %s8937_s2 = inlined_call_operand.vmem [shape: f32[1,128], index: 2, kind: input, shape index: {}]   ;;  %s8938_s3 = inlined_call_operand.vmem [shape: f32[1,128], index: 3, kind: input, shape index: {}]   ;;  %s8939_s4 = inlined_call_operand.hbm [shape: bf16[128,512], index: 4, kind: input, shape index: {}]   ;;  %s8940_s5 = inlined_call_operand.hbm [shape: bf16[128,512], index: 5, kind: input, shape index: {}]   ;;  %s8941_s6 = inlined_call_operand.vmem [shape: f32[1,512], index: 6, kind: input, shape index: {}]   ;;  %s8942_s7 = inlined_call_operand.vmem [shape: f32[1,128], index: 7, kind: input, shape index: {}]   ;;  %s8943_s8 = inlined_call_operand.hbm [shape: bf16[256,512], index: 8, kind: input, shape index: {}]   ;;  %s8944_s9 = inlined_call_operand.vmem [shape: f32[1,512], index: 9, kind: input, shape index: {}]   ;;  %s8945_s10 = inlined_call_operand.vmem [shape: bf16[128,128], index: 10, kind: input, shape index: {}]   ;;  %s8946_s11 = inlined_call_operand.vmem [shape: bf16[128,128], index: 11, kind: input, shape index: {}]   ;;  %s8947_s12 = inlined_call_operand.vmem [shape: f32[1,128], index: 12, kind: input, shape index: {}]   ;;  %s8948_s13 = inlined_call_operand.vmem [shape: f32[1,128], index: 13, kind: input, shape index: {}]   ;;  %s8949_s14 = inlined_call_operand.vmem [shape: bf16[128,64], index: 14, kind: input, shape index: {}]   ;;  %s8950_s15 = inlined_call_operand.vmem [shape: f32[1,64], index: 15, kind: input, shape index: {}]   ;;  %s8951_s16 = inlined_call_operand.vmem [shape: f32[1,64], index: 16, kind: input, shape index: {}]   ;;  %s8952_s17 = inlined_call_operand.<no memory space> [shape: f32[1,1], index: 17, kind: input, shape index: {}]   ;;  %s8953_s18 = inlined_call_operand.hbm [shape: f32[1,16], index: 18, kind: output, shape index: {}]  }
   0x1   :  { %9108 = sst [smem:[#allocation117_spill]] %s8935_s0  ;;  %v23_v0 = vstv %s8952_s17 }
   0x2   :  { %9109 = sst [smem:[#allocation118_spill]] %s8936_s1  ;;  %24 = vst [vmem:[#allocation4] sm:$0x1] %v23_v0 }
   0x3   :  { %9110 = sst [smem:[#allocation119_spill]] %s8937_s2 }
   0x4   :  { %25 = vsyncpa [#allocation6], 0 }
   0x5   :  { %26 = vsyncpa [#allocation9], 0 }
   0x6   :  { %27 = vsyncpa [#allocation7], 0  ;;  %s6610_s29 = smov [#allocation8]   ;;  %s6611_s0 = smov [#allocation5]  }
   0x7   :  { %s53_s30 = sshll.u32 %s6610_s29, 4  ;;  %s41_s19 = sshll.u32 %s6611_s0, 4  ;;  %s54_s30 = int_to_ptr.vmem [resolvable:$true] %s53_s30  ;;  %s42_s19 = int_to_ptr.vmem [resolvable:$true] %s41_s19 }
   0x8   :  { %s6532_s1 = scalar_lea.vmem %s54_s30, 4096  ;;  %p6537_p1 = scmp.lt.s32.totalorder %s54_s30, %s54_s30 }
   0x9   :  { %p6533_p0 = scmp.ne.s32.totalorder %s54_s30, %s6532_s1  ;;  %p6538_p2 = scmp.lt.s32.totalorder %s6532_s1, %s6532_s1 }
   0xb   :  { %p6539_p3 = por %p6538_p2, %p6537_p1 }
   0xd   :  { %p6540_p4 = pnand %p6539_p3, %p6533_p0 }
   0xf   :  { %6543 = shalt.err (!%p6540_p4)
}
  0x10   :  { %s6612_s20 = smov 256   ;;  %s6613_s21 = smov 16  }
  0x11   :  { %59 = dma.hbm_to_vmem [thread:$0]  %s8940_s5, 4096, %s54_s30, [#allocation9], %s6612_s20, %s6612_s20, %s6613_s21  }
  0x12   :  { %s6552_s2 = scalar_lea.vmem %s42_s19, 4096  ;;  %p6557_p6 = scmp.lt.s32.totalorder %s42_s19, %s42_s19 }
  0x13   :  { %p6553_p5 = scmp.ne.s32.totalorder %s42_s19, %s6552_s2  ;;  %p6558_p7 = scmp.lt.s32.totalorder %s6552_s2, %s6552_s2 }
  0x15   :  { %p6559_p8 = por %p6558_p7, %p6557_p6 }
  0x17   :  { %p6560_p9 = pnand %p6559_p8, %p6553_p5 }
  0x19   :  { %6563 = shalt.err (!%p6560_p9)
}
  0x1a   :  { %47 = dma.hbm_to_vmem [thread:$0]  %s8939_s4, 4096, %s42_s19, [#allocation6], %s6612_s20, %s6612_s20, %s6613_s21  }
  0x1b   :  { %s6614_s25 = smov [#allocation10]  }
  0x1c   :  { %s69_s26 = sshll.u32 %s6614_s25, 4  ;;  %s70_s26 = int_to_ptr.vmem [resolvable:$true] %s69_s26 }
  0x1d   :  { %s6572_s27 = scalar_lea.vmem %s70_s26, 8192  ;;  %p6577_p11 = scmp.lt.s32.totalorder %s70_s26, %s70_s26 }
  0x1e   :  { %p6573_p10 = scmp.ne.s32.totalorder %s70_s26, %s6572_s27  ;;  %p6578_p12 = scmp.lt.s32.totalorder %s6572_s27, %s6572_s27 }
  0x20   :  { %p6579_p13 = por %p6578_p12, %p6577_p11 }
  0x22   :  { %p6580_p0 = pnand %p6579_p13, %p6573_p10 }
  0x24   :  { %6583 = shalt.err (!%p6580_p0)
}
  0x25   :  { %75 = dma.hbm_to_vmem [thread:$0]  %s8943_s8, 8192, %s70_s26, [#allocation9], %s6612_s20, %s6612_s20, %s6613_s21  }
  0x26   :  { %6604 = dma.done.wait [#allocation6], 4096  }
  0x27   :  { %6605 = vsyncadd [#allocation6], 4294963200 }
  0x28   :  { %6606 = dma.done.wait [#allocation9], 12288  }
  0x29   :  { %6607 = vsyncadd [#allocation9], 4294955008  ;;  %v8959_v1 = vmov 0   ;;  %v5554_v2 = vld [vmem:[#allocation5 + $0xe4] ss:$16 sps:$4 sm:$0xff]   ;;  %s9111_s29 = sld [smem:[#allocation117_spill]] }
  0x2a   :  { %430 = vmatprep.mubr.bf16.mxu0 %v8959_v1  ;;  %543 = vmatprep.mubr.bf16.mxu1 %v8959_v1  ;;  %v5556_v3 = vld [vmem:[#allocation5 + $0xec] ss:$16 sps:$4 sm:$0xff]   ;;  %v5558_v4 = vld [vmem:[#allocation5 + $0xe0] ss:$16 sps:$4 sm:$0xff]   ;;  %v5559_v5 = vld [vmem:[#allocation5 + $0xe8] ss:$16 sps:$4 sm:$0xff]  }
  0x2b   :  { %5549 = vset.pattern.permute.xlu0 %v8959_v1  ;;  %5550 = vset.pattern.permute.xlu1 %v8959_v1  ;;  %v5560_v6 = vld [vmem:[#allocation5 + $0xc4] ss:$16 sps:$4 sm:$0xff]   ;;  %v5562_v7 = vld [vmem:[#allocation5 + $0xcc] ss:$16 sps:$4 sm:$0xff]   ;;  %v5564_v8 = vld [vmem:[#allocation5 + $0xc0] ss:$16 sps:$4 sm:$0xff]  }
  0x2c   :  { %398 = vmatprep.subr.bf16.mxu0 %v5554_v2  ;;  %511 = vmatprep.subr.bf16.mxu1 %v5556_v3  ;;  %v5565_v9 = vld [vmem:[#allocation5 + $0xc8] ss:$16 sps:$4 sm:$0xff]   ;;  %v5566_v10 = vld [vmem:[#allocation5 + $0xa4] ss:$16 sps:$4 sm:$0xff]   ;;  %v5568_v11 = vld [vmem:[#allocation5 + $0xac] ss:$16 sps:$4 sm:$0xff]  }
  0x2d   :  { %399 = vmatpush1.bf16.msra.mxu0 %v5558_v4  ;;  %512 = vmatpush1.bf16.msra.mxu1 %v5559_v5  ;;  %v5570_v12 = vld [vmem:[#allocation5 + $0xa0] ss:$16 sps:$4 sm:$0xff]   ;;  %v5571_v13 = vld [vmem:[#allocation5 + $0xa8] ss:$16 sps:$4 sm:$0xff]   ;;  %v5572_v14 = vld [vmem:[#allocation5 + $0x84] ss:$16 sps:$4 sm:$0xff]  }
  0x2e   :  { %400 = vmatprep.subr.bf16.mxu0 %v5560_v6  ;;  %513 = vmatprep.subr.bf16.mxu1 %v5562_v7  ;;  %v5574_v15 = vld [vmem:[#allocation5 + $0x8c] ss:$16 sps:$4 sm:$0xff]   ;;  %v5576_v16 = vld [vmem:[#allocation5 + $0x80] ss:$16 sps:$4 sm:$0xff]   ;;  %v5577_v17 = vld [vmem:[#allocation5 + $0x88] ss:$16 sps:$4 sm:$0xff]  }
  0x2f   :  { %v5578_v18 = vld [vmem:[#allocation5 + $0x64] ss:$16 sps:$4 sm:$0xff]   ;;  %v5580_v19 = vld [vmem:[#allocation5 + $0x6c] ss:$16 sps:$4 sm:$0xff]   ;;  %v5582_v20 = vld [vmem:[#allocation5 + $0x60] ss:$16 sps:$4 sm:$0xff]  }
  0x30   :  { %v5583_v21 = vld [vmem:[#allocation5 + $0x68] ss:$16 sps:$4 sm:$0xff]   ;;  %v5584_v22 = vld [vmem:[#allocation5 + $0x44] ss:$16 sps:$4 sm:$0xff]   ;;  %v5586_v23 = vld [vmem:[#allocation5 + $0x4c] ss:$16 sps:$4 sm:$0xff]  }
  0x31   :  { %401 = vmatpush1.bf16.msra.mxu0 %v5564_v8  ;;  %514 = vmatpush1.bf16.msra.mxu1 %v5565_v9  ;;  %v5588_v24 = vld [vmem:[#allocation5 + $0x40] ss:$16 sps:$4 sm:$0xff]   ;;  %v5589_v25 = vld [vmem:[#allocation5 + $0x48] ss:$16 sps:$4 sm:$0xff]   ;;  %v5590_v26 = vld [vmem:[#allocation5 + $0x24] ss:$16 sps:$4 sm:$0xff]  }
  0x32   :  { %402 = vmatprep.subr.bf16.mxu0 %v5566_v10  ;;  %515 = vmatprep.subr.bf16.mxu1 %v5568_v11  ;;  %v5592_v27 = vld [vmem:[#allocation5 + $0x2c] ss:$16 sps:$4 sm:$0xff]   ;;  %v5594_v28 = vld [vmem:[#allocation5 + $0x20] ss:$16 sps:$4 sm:$0xff]   ;;  %v5595_v29 = vld [vmem:[#allocation5 + $0x28] ss:$16 sps:$4 sm:$0xff]  }
  0x33   :  { %v5596_v30 = vld [vmem:[#allocation5 + $0x4] ss:$16 sps:$4 sm:$0xff]   ;;  %v5598_v31 = vld [vmem:[#allocation5 + $0xc] ss:$16 sps:$4 sm:$0xff]   ;;  %v5600_v32 = vld [vmem:[#allocation5] ss:$16 sps:$4 sm:$0xff]  }
  0x34   :  { %v5601_v33 = vld [vmem:[#allocation5 + $0x8] ss:$16 sps:$4 sm:$0xff]   ;;  %v6731_v34 = vld [vmem:[#allocation8 + $0xe4] ss:$16 sps:$4 sm:$0xff]   ;;  %v6733_v35 = vld [vmem:[#allocation8 + $0xec] ss:$16 sps:$4 sm:$0xff]  }
  0x35   :  { %403 = vmatpush1.bf16.msra.mxu0 %v5570_v12  ;;  %516 = vmatpush1.bf16.msra.mxu1 %v5571_v13  ;;  %v5602_v36 = vld [vmem:[%s9111_s29] sm:$0xff]   ;;  %v6744_v39 = vld [vmem:[#allocation8 + $0xe8] ss:$16 sps:$4 sm:$0xff]   ;;  %v5610_v53 = vld [vmem:[%s9111_s29 + $0x10] sm:$0xff]   ;;  %s9112_s17 = sld [smem:[#allocation118_spill]]  ;;  %vm6617_vm0 = vmmov 0  }
  0x36   :  { %404 = vmatprep.subr.bf16.mxu0 %v5572_v14  ;;  %517 = vmatprep.subr.bf16.mxu1 %v5574_v15  ;;  %v6738_v37 = vld [vmem:[#allocation8 + $0xe0] ss:$16 sps:$4 sm:$0xff]   ;;  %v6741_v38 = vld [vmem:[#allocation8 + $0xc4] ss:$16 sps:$4 sm:$0xff]   ;;  %v6746_v40 = vld [vmem:[#allocation8 + $0xcc] ss:$16 sps:$4 sm:$0xff]  }
  0x37   :  { %v6750_v41 = vld [vmem:[#allocation8 + $0xc0] ss:$16 sps:$4 sm:$0xff]   ;;  %v6754_v42 = vld [vmem:[#allocation8 + $0xa4] ss:$16 sps:$4 sm:$0xff]   ;;  %v6757_v43 = vld [vmem:[#allocation8 + $0xc8] ss:$16 sps:$4 sm:$0xff]  }
  0x38   :  { %v5606_v44 = vld [vmem:[%s9111_s29 + $0x8] sm:$0xff]   ;;  %v6764_v45 = vld [vmem:[#allocation8 + $0xa0] ss:$16 sps:$4 sm:$0xff]   ;;  %v5617_v63 = vld [vmem:[%s9111_s29 + $0x18] sm:$0xff]   ;;  %s9113_s4 = sld [smem:[#allocation119_spill]]  ;;  %vm3410_vm1 = vcmask 15368  }
  0x39   :  { %405 = vmatpush1.bf16.msra.mxu0 %v5576_v16  ;;  %518 = vmatpush1.bf16.msra.mxu1 %v5577_v17  ;;  %v6766_v46 = vld [vmem:[#allocation8 + $0x84] ss:$16 sps:$4 sm:$0xff]   ;;  %v6769_v47 = vld [vmem:[#allocation8 + $0xac] ss:$16 sps:$4 sm:$0xff]   ;;  %v6772_v48 = vld [vmem:[#allocation8 + $0xa8] ss:$16 sps:$4 sm:$0xff]  }
  0x3a   :  { %406 = vmatprep.subr.bf16.mxu0 %v5578_v18  ;;  %519 = vmatprep.subr.bf16.mxu1 %v5580_v19  ;;  %v6774_v49 = vld [vmem:[#allocation8 + $0x8c] ss:$16 sps:$4 sm:$0xff]   ;;  %v6779_v50 = vld [vmem:[#allocation8 + $0x80] ss:$16 sps:$4 sm:$0xff]   ;;  %v6781_v51 = vld [vmem:[#allocation8 + $0x64] ss:$16 sps:$4 sm:$0xff]  }
  0x3b   :  { %v6786_v52 = vld [vmem:[#allocation8 + $0x88] ss:$16 sps:$4 sm:$0xff]   ;;  %v6792_v54 = vld [vmem:[#allocation8 + $0x60] ss:$16 sps:$4 sm:$0xff]   ;;  %v6795_v55 = vld [vmem:[#allocation8 + $0x6c] ss:$16 sps:$4 sm:$0xff]  }
  0x3c   :  { %v6798_v56 = vld [vmem:[#allocation8 + $0x44] ss:$16 sps:$4 sm:$0xff]   ;;  %v6801_v57 = vld [vmem:[#allocation8 + $0x68] ss:$16 sps:$4 sm:$0xff]   ;;  %v6803_v58 = vld [vmem:[#allocation8 + $0x4c] ss:$16 sps:$4 sm:$0xff]  }
  0x3d   :  { %407 = vmatpush1.bf16.msra.mxu0 %v5582_v20  ;;  %520 = vmatpush1.bf16.msra.mxu1 %v5583_v21  ;;  %v104_v59 = vld [vmem:[%s9112_s17] sm:$0xff]  ;;  %v6818_v62 = vld [vmem:[#allocation8 + $0x48] ss:$16 sps:$4 sm:$0xff]   ;;  %v110_v11 = vld [vmem:[%s9112_s17 + $0x30] sm:$0xff]  ;;  %v170_v21 = vlaneseq  ;;  %vm4930_vm2 = vcmask 523264   ;;  %vm5010_vm3 = vcmask 122880  }
  0x3e   :  { %408 = vmatprep.subr.bf16.mxu0 %v5584_v22  ;;  %521 = vmatprep.subr.bf16.mxu1 %v5586_v23  ;;  %v6811_v60 = vld [vmem:[#allocation8 + $0x40] ss:$16 sps:$4 sm:$0xff]   ;;  %v6815_v61 = vld [vmem:[#allocation8 + $0x24] ss:$16 sps:$4 sm:$0xff]   ;;  %v6828_v3 = vld [vmem:[#allocation8 + $0x2c] ss:$16 sps:$4 sm:$0xff]  }
  0x3f   :  { %v6823_v0 = vld [vmem:[#allocation8 + $0x20] ss:$16 sps:$4 sm:$0xff]   ;;  %1047 = vperm.xlu0 %5549, %v104_v59   ;;  %v6826_v2 = vld [vmem:[#allocation8 + $0x4] ss:$16 sps:$4 sm:$0xff]   ;;  %v6830_v4 = vld [vmem:[#allocation8 + $0x28] ss:$16 sps:$4 sm:$0xff]  }
  0x40   :  { %v6835_v5 = vld [vmem:[#allocation8 + $0xc] ss:$16 sps:$4 sm:$0xff]   ;;  %v6840_v7 = vld [vmem:[#allocation8] ss:$16 sps:$4 sm:$0xff]   ;;  %v6844_v8 = vld [vmem:[#allocation8 + $0x8] ss:$16 sps:$4 sm:$0xff]  }
  0x41   :  { %409 = vmatpush1.bf16.msra.mxu0 %v5588_v24  ;;  %522 = vmatpush1.bf16.msra.mxu1 %v5589_v25  ;;  %v105_v6 = vld [vmem:[%s9112_s17 + $0x8] sm:$0xff]  ;;  %v5624_v9 = vld [vmem:[%s9111_s29 + $0x20] sm:$0xff]   ;;  %v114_v14 = vld [vmem:[%s9112_s17 + $0x50] sm:$0xff]  ;;  %v6934_v22 = vshrl.u32 %v170_v21, 7 }
  0x42   :  { %410 = vmatprep.subr.bf16.mxu0 %v5590_v26  ;;  %523 = vmatprep.subr.bf16.mxu1 %v5592_v27  ;;  %v108_v10 = vld [vmem:[%s9112_s17 + $0x20] sm:$0xff]  ;;  %v5631_v12 = vld [vmem:[%s9111_s29 + $0x28] sm:$0xff]   ;;  %v5638_v15 = vld [vmem:[%s9111_s29 + $0x30] sm:$0xff]  }
  0x43   :  { %1052 = vperm.xlu0 %5549, %v105_v6   ;;  %v112_v13 = vld [vmem:[%s9112_s17 + $0x40] sm:$0xff]  ;;  %v118_v17 = vld [vmem:[%s9112_s17 + $0x70] sm:$0xff]  ;;  %v5648_v18 = vld [vmem:[%s9111_s29 + $0x38] sm:$0xff]   ;;  %9114 = vst [vmem:[#allocation15_spill] sm:$0xff] %v6934_v22  ;;  %v6945_v27 = vsub.s32 0, %v6934_v22 }
  0x44   :  { %v116_v16 = vld [vmem:[%s9112_s17 + $0x60] sm:$0xff]  ;;  %v109_v59 = vld [vmem:[%s9112_s17 + $0x28] sm:$0xff] }
  0x45   :  { %411 = vmatpush1.bf16.msra.mxu0 %v5594_v28  ;;  %524 = vmatpush1.bf16.msra.mxu1 %v5595_v29  ;;  %v6894_v19 = vld [vmem:[%s9113_s4] ss:$0 sm:$0xff]  ;;  %9115 = vst [vmem:[#allocation16_spill] sm:$0xff] %v6945_v27  ;;  %v8957_v28 = vsub.s32 2, %v6934_v22 }
  0x46   :  { %412 = vmatprep.subr.bf16.mxu0 %v5596_v30  ;;  %525 = vmatprep.subr.bf16.mxu1 %v5598_v31  ;;  %v742_v20 = vpack.c.bf16 %v6894_v19, %v6894_v19  ;;  %v168_v29 = vld [vmem:[%s8941_s6] sm:$0xf] }
  0x47   :  { %1420 = vperm.xlu0 %5549, %v108_v10  }
  0x49   :  { %413 = vmatpush1.bf16.msra.mxu0 %v5600_v32  ;;  %526 = vmatpush1.bf16.msra.mxu1 %v5601_v33  ;;  %v8958_v32 = vsub.s32 1, %v6934_v22  ;;  %v8956_v33 = vsub.s32 3, %v6934_v22 }
  0x4a   :  { %903 = vmatprep.subr.bf16.mxu0 %v6731_v34  ;;  %946 = vmatprep.subr.bf16.mxu1 %v6733_v35 }
  0x4b   :  { %1607 = vperm.xlu0 %5549, %v110_v11  }
  0x4c   :  { %431 = vmatmul.mubr.bf16.vlgmr.msra.gmra.mxu0 %v5602_v36  ;;  %544 = vmatmul.mubr.bf16.vlgmr.msra.gmra.mxu1 %v5602_v36 }
  0x4d   :  { %904 = vmatpush1.bf16.msra.mxu0 %v6738_v37  ;;  %440 = vmatprep.mubr.bf16.mxu0 %v8959_v1 }
  0x4e   :  { %553 = vmatprep.mubr.bf16.mxu1 %v8959_v1  ;;  %905 = vmatprep.subr.bf16.mxu0 %v6741_v38 }
  0x4f   :  { %947 = vmatpush1.bf16.msra.mxu1 %v6744_v39  ;;  %1794 = vperm.xlu0 %5549, %v112_v13  }
  0x50   :  { %948 = vmatprep.subr.bf16.mxu1 %v6746_v40 }
  0x51   :  { %906 = vmatpush1.bf16.msra.mxu0 %v6750_v41 }
  0x52   :  { %907 = vmatprep.subr.bf16.mxu0 %v6754_v42 }
  0x53   :  { %949 = vmatpush1.bf16.msra.mxu1 %v6757_v43  ;;  %1981 = vperm.xlu0 %5549, %v114_v14  }
  0x54   :  { %441 = vmatmul.mubr.bf16.gmra.mxu0 %v5606_v44  ;;  %554 = vmatmul.mubr.bf16.gmra.mxu1 %v5606_v44 }
  0x55   :  { %450 = vmatprep.mubr.bf16.mxu0 %v8959_v1  ;;  %563 = vmatprep.mubr.bf16.mxu1 %v8959_v1 }
  0x56   :  { %908 = vmatpush1.bf16.msra.mxu0 %v6764_v45  ;;  %950 = vmatprep.subr.bf16.mxu1 %v6769_v47 }
  0x57   :  { %909 = vmatprep.subr.bf16.mxu0 %v6766_v46  ;;  %951 = vmatpush1.bf16.msra.mxu1 %v6772_v48 }
  0x58   :  { %952 = vmatprep.subr.bf16.mxu1 %v6774_v49  ;;  %2168 = vperm.xlu0 %5549, %v116_v16  }
  0x5a   :  { %910 = vmatpush1.bf16.msra.mxu0 %v6779_v50 }
  0x5b   :  { %911 = vmatprep.subr.bf16.mxu0 %v6781_v51  ;;  %953 = vmatpush1.bf16.msra.mxu1 %v6786_v52 }
  0x5c   :  { %451 = vmatmul.mubr.bf16.gmra.mxu0 %v5610_v53  ;;  %564 = vmatmul.mubr.bf16.gmra.mxu1 %v5610_v53 }
  0x5d   :  { %460 = vmatprep.mubr.bf16.mxu0 %v8959_v1  ;;  %573 = vmatprep.mubr.bf16.mxu1 %v8959_v1 }
  0x5e   :  { %912 = vmatpush1.bf16.msra.mxu0 %v6792_v54  ;;  %954 = vmatprep.subr.bf16.mxu1 %v6795_v55 }
  0x5f   :  { %913 = vmatprep.subr.bf16.mxu0 %v6798_v56  ;;  %955 = vmatpush1.bf16.msra.mxu1 %v6801_v57 }
  0x60   :  { %956 = vmatprep.subr.bf16.mxu1 %v6803_v58  ;;  %2355 = vperm.xlu0 %5549, %v118_v17  }
  0x62   :  { %914 = vmatpush1.bf16.msra.mxu0 %v6811_v60 }
  0x63   :  { %915 = vmatprep.subr.bf16.mxu0 %v6815_v61  ;;  %957 = vmatpush1.bf16.msra.mxu1 %v6818_v62 }
  0x64   :  { %461 = vmatmul.mubr.bf16.gmra.mxu0 %v5617_v63  ;;  %574 = vmatmul.mubr.bf16.gmra.mxu1 %v5617_v63 }
  0x65   :  { %470 = vmatprep.mubr.bf16.mxu0 %v8959_v1  ;;  %583 = vmatprep.mubr.bf16.mxu1 %v8959_v1 }
  0x66   :  { %916 = vmatpush1.bf16.msra.mxu0 %v6823_v0  ;;  %958 = vmatprep.subr.bf16.mxu1 %v6828_v3 }
  0x67   :  { %917 = vmatprep.subr.bf16.mxu0 %v6826_v2  ;;  %959 = vmatpush1.bf16.msra.mxu1 %v6830_v4 }
  0x68   :  { %960 = vmatprep.subr.bf16.mxu1 %v6835_v5 }
  0x6a   :  { %918 = vmatpush1.bf16.msra.mxu0 %v6840_v7 }
  0x6b   :  { %961 = vmatpush1.bf16.msra.mxu1 %v6844_v8  ;;  %1089 = vmatprep.subr.bf16.mxu0 %v6731_v34 }
  0x6c   :  { %471 = vmatmul.mubr.bf16.gmra.mxu0 %v5624_v9  ;;  %584 = vmatmul.mubr.bf16.gmra.mxu1 %v5624_v9 }
  0x6d   :  { %480 = vmatprep.mubr.bf16.mxu0 %v8959_v1  ;;  %593 = vmatprep.mubr.bf16.mxu1 %v8959_v1 }
  0x6e   :  { %1132 = vmatprep.subr.bf16.mxu1 %v6733_v35 }
  0x74   :  { %481 = vmatmul.mubr.bf16.gmra.mxu0 %v5631_v12  ;;  %594 = vmatmul.mubr.bf16.gmra.mxu1 %v5631_v12 }
  0x75   :  { %490 = vmatprep.mubr.bf16.mxu0 %v8959_v1  ;;  %603 = vmatprep.mubr.bf16.mxu1 %v8959_v1 }
  0x7c   :  { %491 = vmatmul.mubr.bf16.gmra.mxu0 %v5638_v15  ;;  %604 = vmatmul.mubr.bf16.gmra.mxu1 %v5638_v15  ;;  %v111_v15 = vld [vmem:[%s9112_s17 + $0x38] sm:$0xff] }
  0x7d   :  { %500 = vmatprep.mubr.bf16.mxu0 %v8959_v1  ;;  %613 = vmatprep.mubr.bf16.mxu1 %v8959_v1 }
  0x84   :  { %501 = vmatmul.mubr.bf16.gmra.mxu0 %v5648_v18  ;;  %614 = vmatmul.mubr.bf16.gmra.mxu1 %v5648_v18 }
  0x85   :  { %935 = vmatprep.mubr.bf16.mxu0 %v8959_v1  ;;  %978 = vmatprep.mubr.bf16.mxu1 %v8959_v1 }
  0x8c   :  { %936 = vmatmul.mubr.bf16.vlgmr.msra.gmra.mxu0 %v742_v20  ;;  %979 = vmatmul.mubr.bf16.vlgmr.msra.gmra.mxu1 %v742_v20 }
  0x8d   :  { %1090 = vmatpush1.bf16.msra.mxu0 %v6738_v37  ;;  %1133 = vmatpush1.bf16.msra.mxu1 %v6744_v39  ;;  %v6965_v37 = vrot.slane %v168_v29, %v6945_v27  ;;  %v107_v39 = vld [vmem:[%s9112_s17 + $0x18] sm:$0xff] }
  0x8e   :  { %1091 = vmatprep.subr.bf16.mxu0 %v6741_v38  ;;  %1134 = vmatprep.subr.bf16.mxu1 %v6746_v40  ;;  %v6969_v38 = vrot.slane %v168_v29, %v8957_v28 }
  0x8f   :  { %1121 = vmatprep.mubr.bf16.mxu0 %v8959_v1  ;;  %1164 = vmatprep.mubr.bf16.mxu1 %v8959_v1  ;;  %v119_v1 = vld [vmem:[%s9112_s17 + $0x78] sm:$0xff] }
  0x91   :  { %1092 = vmatpush1.bf16.msra.mxu0 %v6750_v41  ;;  %1135 = vmatpush1.bf16.msra.mxu1 %v6757_v43  ;;  %v6980_v43 = vrot.slane %v168_v29, %v8956_v33 }
  0x92   :  { %1093 = vmatprep.subr.bf16.mxu0 %v6754_v42  ;;  %1136 = vmatprep.subr.bf16.mxu1 %v6769_v47  ;;  %v6976_v42 = vrot.slane %v168_v29, %v8958_v32 }
  0x95   :  { %1094 = vmatpush1.bf16.msra.mxu0 %v6764_v45  ;;  %1137 = vmatpush1.bf16.msra.mxu1 %v6772_v48 }
  0x96   :  { %1095 = vmatprep.subr.bf16.mxu0 %v6766_v46  ;;  %1138 = vmatprep.subr.bf16.mxu1 %v6774_v49 }
  0x99   :  { %1096 = vmatpush1.bf16.msra.mxu0 %v6779_v50  ;;  %1139 = vmatpush1.bf16.msra.mxu1 %v6786_v52 }
  0x9a   :  { %1097 = vmatprep.subr.bf16.mxu0 %v6781_v51  ;;  %1140 = vmatprep.subr.bf16.mxu1 %v6795_v55 }
  0x9d   :  { %1098 = vmatpush1.bf16.msra.mxu0 %v6792_v54  ;;  %1141 = vmatpush1.bf16.msra.mxu1 %v6801_v57 }
  0x9e   :  { %1099 = vmatprep.subr.bf16.mxu0 %v6798_v56  ;;  %1142 = vmatprep.subr.bf16.mxu1 %v6803_v58 }
  0xa1   :  { %1100 = vmatpush1.bf16.msra.mxu0 %v6811_v60  ;;  %1143 = vmatpush1.bf16.msra.mxu1 %v6818_v62 }
  0xa2   :  { %1101 = vmatprep.subr.bf16.mxu0 %v6815_v61  ;;  %1144 = vmatprep.subr.bf16.mxu1 %v6828_v3 }
  0xa5   :  { %1102 = vmatpush1.bf16.msra.mxu0 %v6823_v0  ;;  %1145 = vmatpush1.bf16.msra.mxu1 %v6830_v4 }
  0xa6   :  { %1103 = vmatprep.subr.bf16.mxu0 %v6826_v2  ;;  %1146 = vmatprep.subr.bf16.mxu1 %v6835_v5 }
  0xa9   :  { %1104 = vmatpush1.bf16.msra.mxu0 %v6840_v7  ;;  %1147 = vmatpush1.bf16.msra.mxu1 %v6844_v8 }
  0xaa   :  { %1276 = vmatprep.subr.bf16.mxu0 %v6731_v34  ;;  %1319 = vmatprep.subr.bf16.mxu1 %v6733_v35  ;;  %v106_v34 = vld [vmem:[%s9112_s17 + $0x10] sm:$0xff] }
  0xab   :  { %1233 = vperm.xlu1 %5550, %v106_v34  }
  0xaf   :  { %1238 = vperm.xlu1 %5550, %v107_v39  }
  0xb3   :  { %1425 = vperm.xlu1 %5550, %v109_v59  }
  0xb7   :  { %1612 = vperm.xlu1 %5550, %v111_v15   ;;  %v115_v15 = vld [vmem:[%s9112_s17 + $0x58] sm:$0xff] }
 0x10c   :  { %v6936_v23 = vpop.f32.mrf.mxu0  ;;  %v6938_v24 = vpop.f32.mrf.mxu1 }
 0x10e   :  { %v6940_v25 = vpop.f32.mrf.mxu0  ;;  %v6942_v26 = vpop.f32.mrf.mxu1 }
 0x110   :  { %v6951_v30 = vpop.f32.mrf.mxu0  ;;  %v6953_v31 = vpop.f32.mrf.mxu1 }
 0x112   :  { %v6960_v35 = vpop.f32.mrf.mxu0  ;;  %v6962_v36 = vpop.f32.mrf.mxu1 }
 0x114   :  { %v442_v40 = vpop.f32.mrf.mxu0  ;;  %v555_v41 = vpop.f32.mrf.mxu1 }
 0x115   :  { %v6983_v44 = vadd.f32 %v442_v40, %v6965_v37  ;;  %v6986_v45 = vadd.f32 %v555_v41, %v6969_v38  ;;  %v113_v40 = vld [vmem:[%s9112_s17 + $0x48] sm:$0xff] }
 0x116   :  { %v444_v46 = vpop.f32.mrf.mxu0  ;;  %v557_v47 = vpop.f32.mrf.mxu1  ;;  %1799 = vperm.xlu1 %5550, %v113_v40  }
 0x117   :  { %v6989_v48 = vadd.f32 %v444_v46, %v6976_v42  ;;  %v6992_v53 = vadd.f32 %v557_v47, %v6980_v43 }
 0x118   :  { %v446_v63 = vpop.f32.mrf.mxu0  ;;  %v559_v6 = vpop.f32.mrf.mxu1 }
 0x119   :  { %v6998_v9 = vadd.f32 %v446_v63, %v6965_v37  ;;  %v7001_v10 = vadd.f32 %v559_v6, %v6969_v38 }
 0x11a   :  { %v448_v11 = vpop.f32.mrf.mxu0  ;;  %v561_v12 = vpop.f32.mrf.mxu1  ;;  %1986 = vperm.xlu1 %5550, %v115_v15  }
 0x11b   :  { %v7004_v13 = vadd.f32 %v448_v11, %v6976_v42  ;;  %v7007_v14 = vadd.f32 %v561_v12, %v6980_v43 }
 0x11c   :  { %v452_v16 = vpop.f32.mrf.mxu0  ;;  %v565_v17 = vpop.f32.mrf.mxu1 }
 0x11d   :  { %v7013_v18 = vadd.f32 %v452_v16, %v6965_v37  ;;  %v7016_v20 = vadd.f32 %v565_v17, %v6969_v38 }
 0x11e   :  { %v454_v21 = vpop.f32.mrf.mxu0  ;;  %v567_v29 = vpop.f32.mrf.mxu1 }
 0x11f   :  { %v7019_v34 = vadd.f32 %v454_v21, %v6976_v42  ;;  %v7022_v39 = vadd.f32 %v567_v29, %v6980_v43 }
 0x120   :  { %v456_v41 = vpop.f32.mrf.mxu0  ;;  %v569_v46 = vpop.f32.mrf.mxu1 }
 0x121   :  { %v7028_v47 = vadd.f32 %v456_v41, %v6965_v37  ;;  %v7031_v59 = vadd.f32 %v569_v46, %v6969_v38 }
 0x122   :  { %v458_v63 = vpop.f32.mrf.mxu0  ;;  %v571_v6 = vpop.f32.mrf.mxu1 }
 0x123   :  { %v7034_v11 = vadd.f32 %v458_v63, %v6976_v42  ;;  %v7037_v12 = vadd.f32 %v571_v6, %v6980_v43  ;;  %v117_v6 = vld [vmem:[%s9112_s17 + $0x68] sm:$0xff] }
 0x124   :  { %v462_v16 = vpop.f32.mrf.mxu0  ;;  %v575_v17 = vpop.f32.mrf.mxu1  ;;  %2173 = vperm.xlu1 %5550, %v117_v6  }
 0x125   :  { %v7043_v21 = vadd.f32 %v462_v16, %v6965_v37  ;;  %v7046_v29 = vadd.f32 %v575_v17, %v6969_v38 }
 0x126   :  { %v464_v41 = vpop.f32.mrf.mxu0  ;;  %v577_v40 = vpop.f32.mrf.mxu1 }
 0x127   :  { %9116 = vst [vmem:[#allocation17_spill] sm:$0xff] %v7046_v29  ;;  %v7049_v46 = vadd.f32 %v464_v41, %v6976_v42  ;;  %v7052_v63 = vadd.f32 %v577_v40, %v6980_v43 }
 0x128   :  { %v466_v33 = vpop.f32.mrf.mxu0  ;;  %v579_v28 = vpop.f32.mrf.mxu1  ;;  %2360 = vperm.xlu1 %5550, %v119_v1  }
 0x129   :  { %9117 = vst [vmem:[#allocation18_spill] sm:$0xff] %v7049_v46  ;;  %9118 = vst [vmem:[#allocation19_spill] sm:$0xff] %v7052_v63  ;;  %v7058_v16 = vadd.f32 %v466_v33, %v6965_v37  ;;  %v7061_v17 = vadd.f32 %v579_v28, %v6969_v38 }
 0x12a   :  { %v468_v32 = vpop.f32.mrf.mxu0  ;;  %v581_v15 = vpop.f32.mrf.mxu1 }
 0x12b   :  { %9119 = vst [vmem:[#allocation20_spill] sm:$0xff] %v7058_v16  ;;  %9120 = vst [vmem:[#allocation21_spill] sm:$0xff] %v7061_v17  ;;  %v7064_v41 = vadd.f32 %v468_v32, %v6976_v42  ;;  %v7067_v40 = vadd.f32 %v581_v15, %v6980_v43 }
 0x12c   :  { %v472_v22 = vpop.f32.mrf.mxu0  ;;  %v585_v27 = vpop.f32.mrf.mxu1 }
 0x12d   :  { %9121 = vst [vmem:[#allocation22_spill] sm:$0xff] %v7064_v41  ;;  %9122 = vst [vmem:[#allocation23_spill] sm:$0xff] %v7067_v40  ;;  %v7073_v33 = vadd.f32 %v472_v22, %v6965_v37  ;;  %v7076_v28 = vadd.f32 %v585_v27, %v6969_v38 }
 0x12e   :  { %v474_v17 = vpop.f32.mrf.mxu0  ;;  %v587_v6 = vpop.f32.mrf.mxu1 }
 0x12f   :  { %9123 = vst [vmem:[#allocation24_spill] sm:$0xff] %v7073_v33  ;;  %9124 = vst [vmem:[#allocation25_spill] sm:$0xff] %v7076_v28  ;;  %v7079_v32 = vadd.f32 %v474_v17, %v6976_v42  ;;  %v7082_v15 = vadd.f32 %v587_v6, %v6980_v43 }
 0x130   :  { %v476_v40 = vpop.f32.mrf.mxu0  ;;  %v589_v29 = vpop.f32.mrf.mxu1 }
 0x131   :  { %9125 = vst [vmem:[#allocation26_spill] sm:$0xff] %v7079_v32  ;;  %9126 = vst [vmem:[#allocation27_spill] sm:$0xff] %v7082_v15  ;;  %v7085_v63 = vadd.f32 %v476_v40, %v6965_v37  ;;  %v7088_v22 = vadd.f32 %v589_v29, %v6969_v38 }
 0x132   :  { %v478_v33 = vpop.f32.mrf.mxu0  ;;  %v591_v27 = vpop.f32.mrf.mxu1 }
 0x133   :  { %9127 = vst [vmem:[#allocation28_spill] sm:$0xff] %v7085_v63  ;;  %9128 = vst [vmem:[#allocation29_spill] sm:$0xff] %v7088_v22  ;;  %v7091_v28 = vadd.f32 %v478_v33, %v6976_v42  ;;  %v7094_v1 = vadd.f32 %v591_v27, %v6980_v43 }
 0x134   :  { %v482_v17 = vpop.f32.mrf.mxu0  ;;  %v595_v32 = vpop.f32.mrf.mxu1 }
 0x135   :  { %9129 = vst [vmem:[#allocation30_spill] sm:$0xff] %v7091_v28  ;;  %9130 = vst [vmem:[#allocation31_spill] sm:$0xff] %v7094_v1  ;;  %v7097_v6 = vadd.f32 %v482_v17, %v6965_v37  ;;  %v7100_v15 = vadd.f32 %v595_v32, %v6969_v38 }
 0x136   :  { %v484_v40 = vpop.f32.mrf.mxu0  ;;  %v597_v63 = vpop.f32.mrf.mxu1 }
 0x137   :  { %9131 = vst [vmem:[#allocation32_spill] sm:$0xff] %v7097_v6  ;;  %9132 = vst [vmem:[#allocation33_spill] sm:$0xff] %v7100_v15  ;;  %v7103_v29 = vadd.f32 %v484_v40, %v6976_v42  ;;  %v7106_v22 = vadd.f32 %v597_v63, %v6980_v43 }
 0x138   :  { %v486_v33 = vpop.f32.mrf.mxu0  ;;  %v599_v28 = vpop.f32.mrf.mxu1 }
 0x139   :  { %9133 = vst [vmem:[#allocation34_spill] sm:$0xff] %v7103_v29  ;;  %9134 = vst [vmem:[#allocation35_spill] sm:$0xff] %v7106_v22  ;;  %v7109_v27 = vadd.f32 %v486_v33, %v6965_v37  ;;  %v7112_v1 = vadd.f32 %v599_v28, %v6969_v38 }
 0x13a   :  { %v488_v17 = vpop.f32.mrf.mxu0  ;;  %v601_v6 = vpop.f32.mrf.mxu1 }
 0x13b   :  { %9135 = vst [vmem:[#allocation36_spill] sm:$0xff] %v7109_v27  ;;  %9136 = vst [vmem:[#allocation37_spill] sm:$0xff] %v7112_v1  ;;  %v7115_v32 = vadd.f32 %v488_v17, %v6976_v42  ;;  %v7118_v15 = vadd.f32 %v601_v6, %v6980_v43 }
 0x13c   :  { %v492_v40 = vpop.f32.mrf.mxu0  ;;  %v605_v29 = vpop.f32.mrf.mxu1 }
 0x13d   :  { %9137 = vst [vmem:[#allocation38_spill] sm:$0xff] %v7115_v32  ;;  %9138 = vst [vmem:[#allocation39_spill] sm:$0xff] %v7118_v15  ;;  %v7121_v63 = vadd.f32 %v492_v40, %v6965_v37  ;;  %v7124_v22 = vadd.f32 %v605_v29, %v6969_v38 }
 0x13e   :  { %v494_v33 = vpop.f32.mrf.mxu0  ;;  %v607_v27 = vpop.f32.mrf.mxu1 }
 0x13f   :  { %9139 = vst [vmem:[#allocation40_spill] sm:$0xff] %v7121_v63  ;;  %9140 = vst [vmem:[#allocation41_spill] sm:$0xff] %v7124_v22  ;;  %v7127_v28 = vadd.f32 %v494_v33, %v6976_v42  ;;  %v7130_v1 = vadd.f32 %v607_v27, %v6980_v43 }
 0x140   :  { %v496_v17 = vpop.f32.mrf.mxu0  ;;  %v609_v32 = vpop.f32.mrf.mxu1 }
 0x141   :  { %9141 = vst [vmem:[#allocation42_spill] sm:$0xff] %v7127_v28  ;;  %9142 = vst [vmem:[#allocation43_spill] sm:$0xff] %v7130_v1  ;;  %v7133_v6 = vadd.f32 %v496_v17, %v6965_v37  ;;  %v7136_v15 = vadd.f32 %v609_v32, %v6969_v38 }
 0x142   :  { %v498_v40 = vpop.f32.mrf.mxu0  ;;  %v611_v63 = vpop.f32.mrf.mxu1 }
 0x143   :  { %9143 = vst [vmem:[#allocation44_spill] sm:$0xff] %v7133_v6  ;;  %9144 = vst [vmem:[#allocation45_spill] sm:$0xff] %v7136_v15  ;;  %v7139_v29 = vadd.f32 %v498_v40, %v6976_v42  ;;  %v7142_v22 = vadd.f32 %v611_v63, %v6980_v43 }
 0x144   :  { %v502_v33 = vpop.f32.mrf.mxu0  ;;  %v615_v28 = vpop.f32.mrf.mxu1 }
 0x145   :  { %9145 = vst [vmem:[#allocation46_spill] sm:$0xff] %v7139_v29  ;;  %9146 = vst [vmem:[#allocation47_spill] sm:$0xff] %v7142_v22  ;;  %v7145_v27 = vadd.f32 %v502_v33, %v6965_v37  ;;  %v7148_v1 = vadd.f32 %v615_v28, %v6969_v38  ;;  %v433_v28 = vadd.f32 %v6936_v23, %v6965_v37 }
 0x146   :  { %v504_v17 = vpop.f32.mrf.mxu0  ;;  %v617_v6 = vpop.f32.mrf.mxu1  ;;  %v439_v23 = vadd.f32 %v6960_v35, %v6976_v42 }
 0x147   :  { %9147 = vst [vmem:[#allocation48_spill] sm:$0xff] %v7145_v27  ;;  %9148 = vst [vmem:[#allocation49_spill] sm:$0xff] %v7148_v1  ;;  %v7151_v32 = vadd.f32 %v504_v17, %v6976_v42  ;;  %v7154_v15 = vadd.f32 %v617_v6, %v6980_v43 }
 0x148   :  { %v506_v40 = vpop.f32.mrf.mxu0  ;;  %v619_v29 = vpop.f32.mrf.mxu1 }
 0x149   :  { %9149 = vst [vmem:[#allocation50_spill] sm:$0xff] %v7151_v32  ;;  %9150 = vst [vmem:[#allocation51_spill] sm:$0xff] %v7154_v15  ;;  %v7157_v63 = vadd.f32 %v506_v40, %v6965_v37  ;;  %v7160_v22 = vadd.f32 %v619_v29, %v6969_v38  ;;  %v435_v15 = vadd.f32 %v6940_v25, %v6976_v42 }
 0x14a   :  { %v508_v33 = vpop.f32.mrf.mxu0  ;;  %v621_v27 = vpop.f32.mrf.mxu1  ;;  %v437_v29 = vadd.f32 %v6951_v30, %v6965_v37  ;;  %v548_v30 = vadd.f32 %v6942_v26, %v6980_v43 }
 0x14b   :  { %9151 = vst [vmem:[#allocation52_spill] sm:$0xff] %v7157_v63  ;;  %9152 = vst [vmem:[#allocation53_spill] sm:$0xff] %v7160_v22  ;;  %v7165_v1 = vadd.f32 %v508_v33, %v6976_v42  ;;  %v7168_v17 = vadd.f32 %v621_v27, %v6980_v43  ;;  %v552_v42 = vadd.f32 %v6962_v36, %v6980_v43 }
 0x14c   :  { %v937_v6 = vpop.f32.mrf.mxu0  ;;  %v980_v63 = vpop.f32.mrf.mxu1 }
 0x14d   :  { %9153 = vst [vmem:[#allocation54_spill] sm:$0xff] %v7165_v1  ;;  %9154 = vst [vmem:[#allocation55_spill] sm:$0xff] %v7168_v17  ;;  %v989_v40 = vadd.f32 %v937_v6, %v433_v28 }
 0x14e   :  { %v939_v32 = vpop.f32.mrf.mxu0  ;;  %v982_v27 = vpop.f32.mrf.mxu1 }
 0x14f   :  { %v5102_v22 = vmul.f32 -1.442695, %v989_v40  ;;  %v990_v41 = vadd.f32 %v939_v32, %v435_v15  ;;  %v992_v37 = vadd.f32 %v982_v27, %v548_v30  ;;  %v546_v15 = vadd.f32 %v6938_v24, %v6969_v38 }
 0x150   :  { %v941_v16 = vpop.f32.mrf.mxu0  ;;  %v984_v28 = vpop.f32.mrf.mxu1 }
 0x151   :  { %5794 = vpow2.f32 %v5102_v22  ;;  %v5104_v33 = vmul.f32 -1.442695, %v990_v41  ;;  %v993_v17 = vadd.f32 %v941_v16, %v437_v29  ;;  %v991_v16 = vadd.f32 %v980_v63, %v546_v15 }
 0x152   :  { %v943_v1 = vpop.f32.mrf.mxu0  ;;  %v986_v35 = vpop.f32.mrf.mxu1  ;;  %v550_v41 = vadd.f32 %v6953_v31, %v6969_v38  ;;  %v5106_v22 = vmul.f32 -1.442695, %v992_v37 }
 0x153   :  { %5796 = vpow2.f32 %v5104_v33  ;;  %v5103_v46 = vmul.f32 -1.442695, %v993_v17  ;;  %v994_v25 = vadd.f32 %v943_v1, %v439_v23  ;;  %v5069_v33 = vld [vmem:[%s8938_s3] ss:$0 sm:$0xff] }
 0x154   :  { %v995_v32 = vadd.f32 %v984_v28, %v550_v41 }
 0x155   :  { %5798 = vpow2.f32 %v5103_v46  ;;  %v5105_v6 = vmul.f32 -1.442695, %v994_v25  ;;  %v996_v46 = vadd.f32 %v986_v35, %v552_v42 }
 0x157   :  { %5800 = vpow2.f32 %v5105_v6  ;;  %v5107_v40 = vmul.f32 -1.442695, %v996_v46 }
 0x158   :  { %5802 = vtanh.f32 %v991_v16 }
 0x159   :  { %5804 = vpow2.f32 %v5106_v22  ;;  %v1048_v22 = vpop.permute.xlu0 %1047 }
 0x15e   :  { %v5795_v1 = vpop.eup %5794 }
 0x15f   :  { %v1003_v17 = vadd.f32 1.0, %v5795_v1 }
 0x160   :  { %v5797_v26 = vpop.eup %5796 }
 0x161   :  { %5806 = vrcp.f32 %v1003_v17  ;;  %v1015_v29 = vadd.f32 1.0, %v5797_v26 }
 0x162   :  { %v5799_v24 = vpop.eup %5798  ;;  %5808 = vtanh.f32 %v995_v32 }
 0x163   :  { %5810 = vrcp.f32 %v1015_v29  ;;  %v1004_v23 = vadd.f32 1.0, %v5799_v24  ;;  %v1053_v29 = vpop.permute.xlu0 %1052 }
 0x164   :  { %v5801_v36 = vpop.eup %5800  ;;  %5812 = vpow2.f32 %v5107_v40 }
 0x165   :  { %5814 = vrcp.f32 %v1004_v23  ;;  %v1016_v43 = vadd.f32 1.0, %v5801_v36  ;;  %v5803_v31 = vpop.eup %5802 }
 0x166   :  { %v5805_v38 = vpop.eup %5804 }
 0x167   :  { %5816 = vrcp.f32 %v1016_v43  ;;  %v1029_v6 = vadd.f32 1.0, %v5805_v38 }
 0x169   :  { %5818 = vrcp.f32 %v1029_v6 }
 0x16e   :  { %v5807_v63 = vpop.eup %5806 }
 0x16f   :  { %v5809_v27 = vpop.eup %5808  ;;  %v1037_v25 = vmul.f32 %v5807_v63, %v5803_v31 }
 0x170   :  { %v5811_v28 = vpop.eup %5810 }
 0x171   :  { %v5813_v30 = vpop.eup %5812  ;;  %v1035_v37 = vmul.f32 %v5811_v28, %v5069_v33 }
 0x172   :  { %v5815_v15 = vpop.eup %5814  ;;  %v1030_v41 = vadd.f32 1.0, %v5813_v30 }
 0x173   :  { %v1039_v35 = vadd.f32 %v1037_v25, %v1035_v37  ;;  %v1038_v42 = vmul.f32 %v5815_v15, %v5809_v27 }
 0x174   :  { %v5817_v16 = vpop.eup %5816 }
 0x175   :  { %5820 = vtanh.f32 %v1039_v35  ;;  %v1073_v46 = vsub.f32 %v1039_v35, %v5069_v33  ;;  %v1036_v1 = vmul.f32 %v5817_v16, %v5069_v33 }
 0x176   :  { %5822 = vrcp.f32 %v1030_v41  ;;  %v5819_v36 = vpop.eup %5818  ;;  %v7201_v41 = vld [vmem:[#allocation8 + $0xe0] ss:$16 sps:$4 sm:$0xff]  }
 0x177   :  { %v1075_v32 = vmul.f32 %v1073_v46, %v1048_v22  ;;  %v1040_v17 = vadd.f32 %v1038_v42, %v1036_v1  ;;  %v7207_v46 = vld [vmem:[#allocation8 + $0xc4] ss:$16 sps:$4 sm:$0xff]   ;;  %v7210_v1 = vld [vmem:[#allocation8 + $0xcc] ss:$16 sps:$4 sm:$0xff]  }
 0x179   :  { %v7187_v26 = vadd.f32 %v5069_v33, %v1075_v32  ;;  %5824 = vtanh.f32 %v1040_v17  ;;  %v1074_v40 = vsub.f32 %v1040_v17, %v5069_v33  ;;  %v7215_v32 = vld [vmem:[#allocation8 + $0xc0] ss:$16 sps:$4 sm:$0xff]   ;;  %v7218_v17 = vld [vmem:[#allocation8 + $0xc8] ss:$16 sps:$4 sm:$0xff]  }
 0x17b   :  { %v1076_v24 = vmul.f32 %v1074_v40, %v1053_v29  ;;  %v7221_v40 = vld [vmem:[#allocation8 + $0xa4] ss:$16 sps:$4 sm:$0xff]  }
 0x17d   :  { %v7189_v23 = vadd.f32 %v5069_v33, %v1076_v24  ;;  %v7227_v24 = vld [vmem:[#allocation8 + $0xa0] ss:$16 sps:$4 sm:$0xff]  }
 0x182   :  { %v5821_v43 = vpop.eup %5820 }
 0x183   :  { %v1043_v31 = vmul.f32 %v5821_v43, %v5819_v36  ;;  %v5823_v38 = vpop.eup %5822  ;;  %v7230_v36 = vld [vmem:[#allocation8 + $0xa8] ss:$16 sps:$4 sm:$0xff]   ;;  %v7233_v43 = vld [vmem:[#allocation8 + $0x84] ss:$16 sps:$4 sm:$0xff]  }
 0x185   :  { %v1067_v63 = vsub.f32 %v1043_v31, %v6894_v19  ;;  %v1055_v28 = vmul.f32 %v1048_v22, %v1043_v31 }
 0x186   :  { %v5825_v27 = vpop.eup %5824 }
 0x187   :  { %v1044_v25 = vmul.f32 %v5825_v27, %v5823_v38  ;;  %v1069_v6 = vmul.f32 %v1067_v63, %v1048_v22  ;;  %v7204_v22 = vld [vmem:[#allocation8 + $0xe8] ss:$16 sps:$4 sm:$0xff]  }
 0x189   :  { %v1068_v30 = vsub.f32 %v1044_v25, %v6894_v19  ;;  %v1056_v37 = vmul.f32 %v1053_v29, %v1044_v25  ;;  %v7194_v42 = vadd.f32 %v6894_v19, %v1069_v6 }
 0x18b   :  { %v5328_v15 = vpack.c.bf16 %v1056_v37, %v1055_v28  ;;  %v1070_v35 = vmul.f32 %v1068_v30, %v1053_v29  ;;  %v7224_v29 = vld [vmem:[#allocation8 + $0xac] ss:$16 sps:$4 sm:$0xff]  }
 0x18d   :  { %5329 = vst [vmem:[#allocation3] sm:$0xff] %v5328_v15   ;;  %v7197_v33 = vadd.f32 %v6894_v19, %v1070_v35  ;;  %v9155_v19 = vmov 0  }
 0x18f   :  { %v1088_v16 = vpack.c.bf16 %v7197_v33, %v7194_v42 }
 0x191   :  { %1122 = vmatmul.mubr.bf16.vlgmr.msra.gmra.mxu0 %v1088_v16  ;;  %1165 = vmatmul.mubr.bf16.vlgmr.msra.gmra.mxu1 %v1088_v16 }
 0x192   :  { %1277 = vmatpush1.bf16.msra.mxu0 %v7201_v41  ;;  %1320 = vmatpush1.bf16.msra.mxu1 %v7204_v22 }
 0x193   :  { %1278 = vmatprep.subr.bf16.mxu0 %v7207_v46  ;;  %1321 = vmatprep.subr.bf16.mxu1 %v7210_v1 }
 0x194   :  { %1308 = vmatprep.mubr.bf16.mxu0 %v9155_v19  ;;  %1351 = vmatprep.mubr.bf16.mxu1 %v9155_v19 }
 0x196   :  { %1279 = vmatpush1.bf16.msra.mxu0 %v7215_v32  ;;  %1322 = vmatpush1.bf16.msra.mxu1 %v7218_v17 }
 0x197   :  { %1280 = vmatprep.subr.bf16.mxu0 %v7221_v40  ;;  %1323 = vmatprep.subr.bf16.mxu1 %v7224_v29 }
 0x19a   :  { %1281 = vmatpush1.bf16.msra.mxu0 %v7227_v24  ;;  %1324 = vmatpush1.bf16.msra.mxu1 %v7230_v36 }
 0x19b   :  { %1282 = vmatprep.subr.bf16.mxu0 %v7233_v43  ;;  %1325 = vmatprep.subr.bf16.mxu1 %v6774_v49  ;;  %v7255_v49 = vld [vmem:[#allocation8 + $0xe4] ss:$16 sps:$4 sm:$0xff]  }
 0x19e   :  { %1283 = vmatpush1.bf16.msra.mxu0 %v6779_v50  ;;  %1326 = vmatpush1.bf16.msra.mxu1 %v6786_v52  ;;  %v7258_v50 = vld [vmem:[#allocation8 + $0xec] ss:$16 sps:$4 sm:$0xff]  }
 0x19f   :  { %1284 = vmatprep.subr.bf16.mxu0 %v6781_v51  ;;  %1327 = vmatprep.subr.bf16.mxu1 %v6795_v55 }
 0x1a2   :  { %1285 = vmatpush1.bf16.msra.mxu0 %v6792_v54  ;;  %1328 = vmatpush1.bf16.msra.mxu1 %v6801_v57 }
 0x1a3   :  { %1286 = vmatprep.subr.bf16.mxu0 %v6798_v56  ;;  %1329 = vmatprep.subr.bf16.mxu1 %v6803_v58 }
 0x1a6   :  { %1287 = vmatpush1.bf16.msra.mxu0 %v6811_v60  ;;  %1330 = vmatpush1.bf16.msra.mxu1 %v6818_v62 }
 0x1a7   :  { %1288 = vmatprep.subr.bf16.mxu0 %v6815_v61  ;;  %1331 = vmatprep.subr.bf16.mxu1 %v6828_v3 }
 0x1aa   :  { %1289 = vmatpush1.bf16.msra.mxu0 %v6823_v0  ;;  %1332 = vmatpush1.bf16.msra.mxu1 %v6830_v4 }
 0x1ab   :  { %1290 = vmatprep.subr.bf16.mxu0 %v6826_v2  ;;  %1333 = vmatprep.subr.bf16.mxu1 %v6835_v5 }
 0x1ae   :  { %1291 = vmatpush1.bf16.msra.mxu0 %v6840_v7  ;;  %1334 = vmatpush1.bf16.msra.mxu1 %v6844_v8 }
 0x1af   :  { %1463 = vmatprep.subr.bf16.mxu0 %v7255_v49  ;;  %1506 = vmatprep.subr.bf16.mxu1 %v7258_v50 }
 0x251   :  { %v1123_v51 = vpop.f32.mrf.mxu0  ;;  %v1166_v54 = vpop.f32.mrf.mxu1 }
 0x252   :  { %v1175_v52 = vadd.f32 %v1123_v51, %v6983_v44  ;;  %v1177_v44 = vadd.f32 %v1166_v54, %v6986_v45 }
 0x253   :  { %v1125_v55 = vpop.f32.mrf.mxu0  ;;  %v1168_v61 = vpop.f32.mrf.mxu1 }
 0x254   :  { %v5110_v56 = vmul.f32 -1.442695, %v1175_v52  ;;  %v1176_v57 = vadd.f32 %v1125_v55, %v6989_v48  ;;  %v1178_v7 = vadd.f32 %v1168_v61, %v6992_v53 }
 0x255   :  { %v1127_v58 = vpop.f32.mrf.mxu0  ;;  %v1170_v4 = vpop.f32.mrf.mxu1 }
 0x256   :  { %5826 = vpow2.f32 %v5110_v56  ;;  %v5112_v60 = vmul.f32 -1.442695, %v1176_v57  ;;  %v1179_v62 = vadd.f32 %v1127_v58, %v6998_v9  ;;  %v5114_v48 = vmul.f32 -1.442695, %v1178_v7 }
 0x257   :  { %v1129_v0 = vpop.f32.mrf.mxu0  ;;  %v1172_v8 = vpop.f32.mrf.mxu1  ;;  %v1181_v9 = vadd.f32 %v1170_v4, %v7001_v10 }
 0x258   :  { %5828 = vpow2.f32 %v5112_v60  ;;  %v5111_v2 = vmul.f32 -1.442695, %v1179_v62  ;;  %v1180_v3 = vadd.f32 %v1129_v0, %v7004_v13  ;;  %v1182_v31 = vadd.f32 %v1172_v8, %v7007_v14  ;;  %v1234_v60 = vpop.permute.xlu1 %1233 }
 0x25a   :  { %5830 = vpow2.f32 %v5111_v2  ;;  %v5113_v5 = vmul.f32 -1.442695, %v1180_v3  ;;  %v5115_v13 = vmul.f32 -1.442695, %v1182_v31 }
 0x25c   :  { %5832 = vpow2.f32 %v5113_v5  ;;  %v1239_v5 = vpop.permute.xlu1 %1238 }
 0x25d   :  { %5834 = vtanh.f32 %v1177_v44 }
 0x25e   :  { %5836 = vpow2.f32 %v5114_v48 }
 0x263   :  { %v5827_v38 = vpop.eup %5826 }
 0x264   :  { %v1189_v63 = vadd.f32 1.0, %v5827_v38 }
 0x265   :  { %v5829_v27 = vpop.eup %5828 }
 0x266   :  { %5838 = vrcp.f32 %v1189_v63  ;;  %v1201_v25 = vadd.f32 1.0, %v5829_v27 }
 0x267   :  { %v5831_v28 = vpop.eup %5830  ;;  %5840 = vtanh.f32 %v1181_v9 }
 0x268   :  { %5842 = vrcp.f32 %v1201_v25  ;;  %v1190_v53 = vadd.f32 1.0, %v5831_v28 }
 0x269   :  { %v5833_v6 = vpop.eup %5832  ;;  %5844 = vpow2.f32 %v5115_v13 }
 0x26a   :  { %5846 = vrcp.f32 %v1190_v53  ;;  %v1202_v45 = vadd.f32 1.0, %v5833_v6  ;;  %v5835_v14 = vpop.eup %5834 }
 0x26b   :  { %v5837_v30 = vpop.eup %5836 }
 0x26c   :  { %5848 = vrcp.f32 %v1202_v45  ;;  %v1215_v16 = vadd.f32 1.0, %v5837_v30  ;;  %v7308_v30 = vld [vmem:[#allocation8 + $0x88] ss:$16 sps:$4 sm:$0xff]  }
 0x26e   :  { %5850 = vrcp.f32 %v1215_v16  ;;  %v7323_v16 = vld [vmem:[#allocation8 + $0x44] ss:$16 sps:$4 sm:$0xff]  }
 0x273   :  { %v5839_v37 = vpop.eup %5838 }
 0x274   :  { %v5841_v10 = vpop.eup %5840  ;;  %v1223_v15 = vmul.f32 %v5839_v37, %v5835_v14  ;;  %v7311_v37 = vld [vmem:[#allocation8 + $0x64] ss:$16 sps:$4 sm:$0xff]  }
 0x275   :  { %v5843_v35 = vpop.eup %5842 }
 0x276   :  { %v5845_v51 = vpop.eup %5844  ;;  %v1221_v52 = vmul.f32 %v5843_v35, %v7187_v26  ;;  %v7320_v35 = vld [vmem:[#allocation8 + $0x68] ss:$16 sps:$4 sm:$0xff]  }
 0x277   :  { %v5847_v54 = vpop.eup %5846  ;;  %v1216_v58 = vadd.f32 1.0, %v5845_v51  ;;  %v7326_v51 = vld [vmem:[#allocation8 + $0x4c] ss:$16 sps:$4 sm:$0xff]  }
 0x278   :  { %v1225_v55 = vadd.f32 %v1223_v15, %v1221_v52  ;;  %v1224_v56 = vmul.f32 %v5847_v54, %v5841_v10  ;;  %v7314_v10 = vld [vmem:[#allocation8 + $0x6c] ss:$16 sps:$4 sm:$0xff]   ;;  %v7317_v15 = vld [vmem:[#allocation8 + $0x60] ss:$16 sps:$4 sm:$0xff]   ;;  %v7332_v54 = vld [vmem:[#allocation8 + $0x48] ss:$16 sps:$4 sm:$0xff]  }
 0x279   :  { %v5849_v57 = vpop.eup %5848  ;;  %v7329_v52 = vld [vmem:[#allocation8 + $0x40] ss:$16 sps:$4 sm:$0xff]  }
 0x27a   :  { %5852 = vtanh.f32 %v1225_v55  ;;  %v1260_v61 = vsub.f32 %v1225_v55, %v7187_v26  ;;  %v1222_v62 = vmul.f32 %v5849_v57, %v7189_v23  ;;  %v7335_v55 = vld [vmem:[#allocation8 + $0x24] ss:$16 sps:$4 sm:$0xff]   ;;  %v7341_v57 = vld [vmem:[#allocation8 + $0x20] ss:$16 sps:$4 sm:$0xff]  }
 0x27b   :  { %5854 = vrcp.f32 %v1216_v58  ;;  %v5851_v44 = vpop.eup %5850  ;;  %v7344_v58 = vld [vmem:[#allocation8 + $0x28] ss:$16 sps:$4 sm:$0xff]  }
 0x27c   :  { %v1262_v0 = vmul.f32 %v1260_v61, %v1234_v60  ;;  %v1226_v2 = vadd.f32 %v1224_v56, %v1222_v62  ;;  %v7338_v56 = vld [vmem:[#allocation8 + $0x2c] ss:$16 sps:$4 sm:$0xff]   ;;  %v7353_v62 = vld [vmem:[#allocation8] ss:$16 sps:$4 sm:$0xff]  }
 0x27d   :  { %v7350_v61 = vld [vmem:[#allocation8 + $0xc] ss:$16 sps:$4 sm:$0xff]  }
 0x27e   :  { %v7273_v3 = vadd.f32 %v1262_v0, %v7187_v26  ;;  %5856 = vtanh.f32 %v1226_v2  ;;  %v1261_v4 = vsub.f32 %v1226_v2, %v7189_v23  ;;  %v7356_v0 = vld [vmem:[#allocation8 + $0x8] ss:$16 sps:$4 sm:$0xff]  }
 0x280   :  { %v1263_v7 = vmul.f32 %v1261_v4, %v1239_v5 }
 0x282   :  { %v7277_v8 = vadd.f32 %v1263_v7, %v7189_v23 }
 0x287   :  { %v5853_v48 = vpop.eup %5852 }
 0x288   :  { %v1229_v31 = vmul.f32 %v5853_v48, %v5851_v44  ;;  %v5855_v38 = vpop.eup %5854 }
 0x28a   :  { %v1254_v9 = vsub.f32 %v1229_v31, %v7194_v42  ;;  %v1241_v13 = vmul.f32 %v1234_v60, %v1229_v31 }
 0x28b   :  { %v5857_v63 = vpop.eup %5856 }
 0x28c   :  { %v1230_v27 = vmul.f32 %v5857_v63, %v5855_v38  ;;  %v1256_v25 = vmul.f32 %v1254_v9, %v1234_v60  ;;  %v7347_v60 = vld [vmem:[#allocation8 + $0x4] ss:$16 sps:$4 sm:$0xff]  }
 0x28e   :  { %v1242_v26 = vmul.f32 %v1239_v5, %v1230_v27  ;;  %v1255_v28 = vsub.f32 %v1230_v27, %v7197_v33  ;;  %v7282_v45 = vadd.f32 %v1256_v25, %v7194_v42  ;;  %v7302_v42 = vld [vmem:[#allocation8 + $0x8c] ss:$16 sps:$4 sm:$0xff]  }
 0x290   :  { %v5333_v53 = vpack.c.bf16 %v1242_v26, %v1241_v13  ;;  %v1257_v6 = vmul.f32 %v1255_v28, %v1239_v5 }
 0x292   :  { %5334 = vst [vmem:[#allocation3 + $0x8] sm:$0xff] %v5333_v53   ;;  %v7285_v23 = vadd.f32 %v1257_v6, %v7197_v33  ;;  %v7305_v33 = vld [vmem:[#allocation8 + $0x80] ss:$16 sps:$4 sm:$0xff]  }
 0x294   :  { %v1275_v14 = vpack.c.bf16 %v7285_v23, %v7282_v45 }
 0x296   :  { %1309 = vmatmul.mubr.bf16.vlgmr.msra.gmra.mxu0 %v1275_v14  ;;  %1352 = vmatmul.mubr.bf16.vlgmr.msra.gmra.mxu1 %v1275_v14 }
 0x297   :  { %1464 = vmatpush1.bf16.msra.mxu0 %v7201_v41  ;;  %1507 = vmatpush1.bf16.msra.mxu1 %v7204_v22 }
 0x298   :  { %1465 = vmatprep.subr.bf16.mxu0 %v7207_v46  ;;  %1508 = vmatprep.subr.bf16.mxu1 %v7210_v1 }
 0x299   :  { %1495 = vmatprep.mubr.bf16.mxu0 %v9155_v19  ;;  %1538 = vmatprep.mubr.bf16.mxu1 %v9155_v19 }
 0x29b   :  { %1466 = vmatpush1.bf16.msra.mxu0 %v7215_v32  ;;  %1509 = vmatpush1.bf16.msra.mxu1 %v7218_v17 }
 0x29c   :  { %1467 = vmatprep.subr.bf16.mxu0 %v7221_v40  ;;  %1510 = vmatprep.subr.bf16.mxu1 %v7224_v29 }
 0x29f   :  { %1468 = vmatpush1.bf16.msra.mxu0 %v7227_v24  ;;  %1511 = vmatpush1.bf16.msra.mxu1 %v7230_v36 }
 0x2a0   :  { %1469 = vmatprep.subr.bf16.mxu0 %v7233_v43  ;;  %1512 = vmatprep.subr.bf16.mxu1 %v7302_v42 }
 0x2a3   :  { %1470 = vmatpush1.bf16.msra.mxu0 %v7305_v33  ;;  %1513 = vmatpush1.bf16.msra.mxu1 %v7308_v30 }
 0x2a4   :  { %1471 = vmatprep.subr.bf16.mxu0 %v7311_v37  ;;  %1514 = vmatprep.subr.bf16.mxu1 %v7314_v10 }
 0x2a7   :  { %1472 = vmatpush1.bf16.msra.mxu0 %v7317_v15  ;;  %1515 = vmatpush1.bf16.msra.mxu1 %v7320_v35 }
 0x2a8   :  { %1473 = vmatprep.subr.bf16.mxu0 %v7323_v16  ;;  %1516 = vmatprep.subr.bf16.mxu1 %v7326_v51 }
 0x2ab   :  { %1474 = vmatpush1.bf16.msra.mxu0 %v7329_v52  ;;  %1517 = vmatpush1.bf16.msra.mxu1 %v7332_v54 }
 0x2ac   :  { %1475 = vmatprep.subr.bf16.mxu0 %v7335_v55  ;;  %1518 = vmatprep.subr.bf16.mxu1 %v7338_v56 }
 0x2af   :  { %1476 = vmatpush1.bf16.msra.mxu0 %v7341_v57  ;;  %1519 = vmatpush1.bf16.msra.mxu1 %v7344_v58 }
 0x2b0   :  { %1477 = vmatprep.subr.bf16.mxu0 %v7347_v60  ;;  %1520 = vmatprep.subr.bf16.mxu1 %v7350_v61 }
 0x2b3   :  { %1478 = vmatpush1.bf16.msra.mxu0 %v7353_v62  ;;  %1521 = vmatpush1.bf16.msra.mxu1 %v7356_v0 }
 0x2b4   :  { %1650 = vmatprep.subr.bf16.mxu0 %v7255_v49  ;;  %1693 = vmatprep.subr.bf16.mxu1 %v7258_v50 }
 0x356   :  { %v1310_v2 = vpop.f32.mrf.mxu0  ;;  %v1353_v5 = vpop.f32.mrf.mxu1 }
 0x357   :  { %v1362_v4 = vadd.f32 %v1310_v2, %v7013_v18 }
 0x358   :  { %v1312_v7 = vpop.f32.mrf.mxu0  ;;  %v1355_v9 = vpop.f32.mrf.mxu1 }
 0x359   :  { %v5118_v44 = vmul.f32 -1.442695, %v1362_v4  ;;  %v1363_v48 = vadd.f32 %v1312_v7, %v7019_v34  ;;  %v1365_v18 = vadd.f32 %v1355_v9, %v7022_v39  ;;  %v1364_v34 = vadd.f32 %v1353_v5, %v7016_v20 }
 0x35a   :  { %v1314_v31 = vpop.f32.mrf.mxu0  ;;  %v1357_v26 = vpop.f32.mrf.mxu1 }
 0x35b   :  { %5858 = vpow2.f32 %v5118_v44  ;;  %v5120_v38 = vmul.f32 -1.442695, %v1363_v48  ;;  %v1366_v63 = vadd.f32 %v1314_v31, %v7028_v47  ;;  %v5122_v6 = vmul.f32 -1.442695, %v1365_v18 }
 0x35c   :  { %v1316_v27 = vpop.f32.mrf.mxu0  ;;  %v1359_v53 = vpop.f32.mrf.mxu1  ;;  %v1368_v47 = vadd.f32 %v1357_v26, %v7031_v59 }
 0x35d   :  { %5860 = vpow2.f32 %v5120_v38  ;;  %v5119_v13 = vmul.f32 -1.442695, %v1366_v63  ;;  %v1367_v25 = vadd.f32 %v1316_v27, %v7034_v11  ;;  %v1369_v14 = vadd.f32 %v1359_v53, %v7037_v12 }
 0x35f   :  { %5862 = vpow2.f32 %v5119_v13  ;;  %v5121_v28 = vmul.f32 -1.442695, %v1367_v25  ;;  %v5123_v11 = vmul.f32 -1.442695, %v1369_v14 }
 0x361   :  { %5864 = vpow2.f32 %v5121_v28 }
 0x362   :  { %5866 = vtanh.f32 %v1364_v34 }
 0x363   :  { %5868 = vpow2.f32 %v5122_v6 }
 0x368   :  { %v5859_v2 = vpop.eup %5858 }
 0x369   :  { %v1376_v4 = vadd.f32 1.0, %v5859_v2  ;;  %v1421_v2 = vpop.permute.xlu0 %1420 }
 0x36a   :  { %v5861_v7 = vpop.eup %5860 }
 0x36b   :  { %5870 = vrcp.f32 %v1376_v4  ;;  %v1388_v44 = vadd.f32 1.0, %v5861_v7 }
 0x36c   :  { %v5863_v48 = vpop.eup %5862  ;;  %5872 = vtanh.f32 %v1368_v47 }
 0x36d   :  { %5874 = vrcp.f32 %v1388_v44  ;;  %v1377_v39 = vadd.f32 1.0, %v5863_v48  ;;  %v1426_v44 = vpop.permute.xlu1 %1425 }
 0x36e   :  { %v5865_v31 = vpop.eup %5864  ;;  %5876 = vpow2.f32 %v5123_v11 }
 0x36f   :  { %5878 = vrcp.f32 %v1377_v39  ;;  %v1389_v20 = vadd.f32 1.0, %v5865_v31  ;;  %v5867_v12 = vpop.eup %5866 }
 0x370   :  { %v5869_v5 = vpop.eup %5868 }
 0x371   :  { %5880 = vrcp.f32 %v1389_v20  ;;  %v1402_v27 = vadd.f32 1.0, %v5869_v5 }
 0x373   :  { %5882 = vrcp.f32 %v1402_v27 }
 0x378   :  { %v5871_v38 = vpop.eup %5870 }
 0x379   :  { %v5873_v59 = vpop.eup %5872  ;;  %v1410_v9 = vmul.f32 %v5871_v38, %v5867_v12 }
 0x37a   :  { %v5875_v63 = vpop.eup %5874 }
 0x37b   :  { %v5877_v13 = vpop.eup %5876  ;;  %v1408_v25 = vmul.f32 %v5875_v63, %v7273_v3 }
 0x37c   :  { %v5879_v26 = vpop.eup %5878  ;;  %v1403_v34 = vadd.f32 1.0, %v5877_v13 }
 0x37d   :  { %v1412_v28 = vadd.f32 %v1410_v9, %v1408_v25  ;;  %v1411_v18 = vmul.f32 %v5879_v26, %v5873_v59 }
 0x37e   :  { %v5881_v53 = vpop.eup %5880 }
 0x37f   :  { %5884 = vtanh.f32 %v1412_v28  ;;  %v1447_v6 = vsub.f32 %v1412_v28, %v7273_v3  ;;  %v1409_v14 = vmul.f32 %v5881_v53, %v7277_v8 }
 0x380   :  { %5886 = vrcp.f32 %v1403_v34  ;;  %v5883_v31 = vpop.eup %5882 }
 0x381   :  { %v1449_v47 = vmul.f32 %v1447_v6, %v1421_v2  ;;  %v1413_v4 = vadd.f32 %v1411_v18, %v1409_v14  ;;  %v9156_v14 = vld [vmem:[#allocation18_spill] sm:$0xff] }
 0x383   :  { %5888 = vtanh.f32 %v1413_v4  ;;  %v1448_v7 = vsub.f32 %v1413_v4, %v7277_v8  ;;  %v7374_v11 = vadd.f32 %v1449_v47, %v7273_v3 }
 0x385   :  { %v1450_v48 = vmul.f32 %v1448_v7, %v1426_v44 }
 0x387   :  { %v7377_v39 = vadd.f32 %v1450_v48, %v7277_v8 }
 0x38c   :  { %v5885_v20 = vpop.eup %5884 }
 0x38d   :  { %v1416_v12 = vmul.f32 %v5885_v20, %v5883_v31  ;;  %v5887_v5 = vpop.eup %5886 }
 0x38f   :  { %v1441_v38 = vsub.f32 %v1416_v12, %v7282_v45  ;;  %v1428_v63 = vmul.f32 %v1421_v2, %v1416_v12  ;;  %v9158_v12 = vld [vmem:[#allocation22_spill] sm:$0xff] }
 0x390   :  { %v5889_v59 = vpop.eup %5888 }
 0x391   :  { %v1417_v9 = vmul.f32 %v5889_v59, %v5887_v5  ;;  %v1443_v25 = vmul.f32 %v1441_v38, %v1421_v2 }
 0x393   :  { %v1429_v27 = vmul.f32 %v1426_v44, %v1417_v9  ;;  %v1442_v13 = vsub.f32 %v1417_v9, %v7285_v23  ;;  %v7382_v28 = vadd.f32 %v1443_v25, %v7282_v45 }
 0x395   :  { %v5338_v3 = vpack.c.bf16 %v1429_v27, %v1428_v63  ;;  %v1444_v26 = vmul.f32 %v1442_v13, %v1426_v44  ;;  %v9157_v44 = vld [vmem:[#allocation20_spill] sm:$0xff]  ;;  %v9160_v27 = vld [vmem:[#allocation17_spill] sm:$0xff] }
 0x397   :  { %5339 = vst [vmem:[#allocation3 + $0x10] sm:$0xff] %v5338_v3   ;;  %v7385_v8 = vadd.f32 %v1444_v26, %v7285_v23  ;;  %v9161_v3 = vld [vmem:[#allocation23_spill] sm:$0xff] }
 0x399   :  { %v1462_v18 = vpack.c.bf16 %v7385_v8, %v7382_v28 }
 0x39b   :  { %1496 = vmatmul.mubr.bf16.vlgmr.msra.gmra.mxu0 %v1462_v18  ;;  %1539 = vmatmul.mubr.bf16.vlgmr.msra.gmra.mxu1 %v1462_v18 }
 0x39c   :  { %1651 = vmatpush1.bf16.msra.mxu0 %v7201_v41  ;;  %1694 = vmatpush1.bf16.msra.mxu1 %v7204_v22 }
 0x39d   :  { %1652 = vmatprep.subr.bf16.mxu0 %v7207_v46  ;;  %1695 = vmatprep.subr.bf16.mxu1 %v7210_v1 }
 0x39e   :  { %1682 = vmatprep.mubr.bf16.mxu0 %v9155_v19  ;;  %1725 = vmatprep.mubr.bf16.mxu1 %v9155_v19 }
 0x3a0   :  { %1653 = vmatpush1.bf16.msra.mxu0 %v7215_v32  ;;  %1696 = vmatpush1.bf16.msra.mxu1 %v7218_v17 }
 0x3a1   :  { %1654 = vmatprep.subr.bf16.mxu0 %v7221_v40  ;;  %1697 = vmatprep.subr.bf16.mxu1 %v7224_v29 }
 0x3a4   :  { %1655 = vmatpush1.bf16.msra.mxu0 %v7227_v24  ;;  %1698 = vmatpush1.bf16.msra.mxu1 %v7230_v36 }
 0x3a5   :  { %1656 = vmatprep.subr.bf16.mxu0 %v7233_v43  ;;  %1699 = vmatprep.subr.bf16.mxu1 %v7302_v42 }
 0x3a8   :  { %1657 = vmatpush1.bf16.msra.mxu0 %v7305_v33  ;;  %1700 = vmatpush1.bf16.msra.mxu1 %v7308_v30 }
 0x3a9   :  { %1658 = vmatprep.subr.bf16.mxu0 %v7311_v37  ;;  %1701 = vmatprep.subr.bf16.mxu1 %v7314_v10 }
 0x3ac   :  { %1659 = vmatpush1.bf16.msra.mxu0 %v7317_v15  ;;  %1702 = vmatpush1.bf16.msra.mxu1 %v7320_v35 }
 0x3ad   :  { %1660 = vmatprep.subr.bf16.mxu0 %v7323_v16  ;;  %1703 = vmatprep.subr.bf16.mxu1 %v7326_v51 }
 0x3b0   :  { %1661 = vmatpush1.bf16.msra.mxu0 %v7329_v52  ;;  %1704 = vmatpush1.bf16.msra.mxu1 %v7332_v54 }
 0x3b1   :  { %1662 = vmatprep.subr.bf16.mxu0 %v7335_v55  ;;  %1705 = vmatprep.subr.bf16.mxu1 %v7338_v56 }
 0x3b4   :  { %1663 = vmatpush1.bf16.msra.mxu0 %v7341_v57  ;;  %1706 = vmatpush1.bf16.msra.mxu1 %v7344_v58 }
 0x3b5   :  { %1664 = vmatprep.subr.bf16.mxu0 %v7347_v60  ;;  %1707 = vmatprep.subr.bf16.mxu1 %v7350_v61 }
 0x3b8   :  { %1665 = vmatpush1.bf16.msra.mxu0 %v7353_v62  ;;  %1708 = vmatpush1.bf16.msra.mxu1 %v7356_v0 }
 0x3b9   :  { %1837 = vmatprep.subr.bf16.mxu0 %v7255_v49  ;;  %1880 = vmatprep.subr.bf16.mxu1 %v7258_v50 }
 0x45b   :  { %v1497_v45 = vpop.f32.mrf.mxu0  ;;  %v1540_v53 = vpop.f32.mrf.mxu1 }
 0x45c   :  { %v1549_v23 = vadd.f32 %v1497_v45, %v7043_v21  ;;  %v9159_v21 = vld [vmem:[#allocation19_spill] sm:$0xff]  ;;  %v1551_v13 = vadd.f32 %v1540_v53, %v9160_v27  ;;  %v9162_v45 = vld [vmem:[#allocation21_spill] sm:$0xff] }
 0x45d   :  { %v1499_v34 = vpop.f32.mrf.mxu0  ;;  %v1542_v7 = vpop.f32.mrf.mxu1 }
 0x45e   :  { %v5126_v6 = vmul.f32 -1.442695, %v1549_v23  ;;  %v1550_v2 = vadd.f32 %v1499_v34, %v9156_v14  ;;  %v1552_v9 = vadd.f32 %v1542_v7, %v9159_v21 }
 0x45f   :  { %v1501_v47 = vpop.f32.mrf.mxu0  ;;  %v1544_v38 = vpop.f32.mrf.mxu1 }
 0x460   :  { %5890 = vpow2.f32 %v5126_v6  ;;  %v5128_v4 = vmul.f32 -1.442695, %v1550_v2  ;;  %v1553_v48 = vadd.f32 %v1501_v47, %v9157_v44  ;;  %v5130_v25 = vmul.f32 -1.442695, %v1552_v9 }
 0x461   :  { %v1503_v31 = vpop.f32.mrf.mxu0  ;;  %v1546_v63 = vpop.f32.mrf.mxu1  ;;  %v1555_v23 = vadd.f32 %v1544_v38, %v9162_v45 }
 0x462   :  { %5892 = vpow2.f32 %v5128_v4  ;;  %v5127_v20 = vmul.f32 -1.442695, %v1553_v48  ;;  %v1554_v5 = vadd.f32 %v1503_v31, %v9158_v12  ;;  %v1556_v26 = vadd.f32 %v1546_v63, %v9161_v3 }
 0x464   :  { %5894 = vpow2.f32 %v5127_v20  ;;  %v5129_v59 = vmul.f32 -1.442695, %v1554_v5  ;;  %v5131_v14 = vmul.f32 -1.442695, %v1556_v26 }
 0x466   :  { %5896 = vpow2.f32 %v5129_v59 }
 0x467   :  { %5898 = vtanh.f32 %v1551_v13 }
 0x468   :  { %5900 = vpow2.f32 %v5130_v25 }
 0x46d   :  { %v5891_v18 = vpop.eup %5890 }
 0x46e   :  { %v1563_v34 = vadd.f32 1.0, %v5891_v18  ;;  %v1608_v18 = vpop.permute.xlu0 %1607 }
 0x46f   :  { %v5893_v6 = vpop.eup %5892 }
 0x470   :  { %5902 = vrcp.f32 %v1563_v34  ;;  %v1575_v2 = vadd.f32 1.0, %v5893_v6 }
 0x471   :  { %v5895_v47 = vpop.eup %5894  ;;  %5904 = vtanh.f32 %v1555_v23 }
 0x472   :  { %5906 = vrcp.f32 %v1575_v2  ;;  %v1564_v4 = vadd.f32 1.0, %v5895_v47 }
 0x473   :  { %v5897_v7 = vpop.eup %5896  ;;  %5908 = vpow2.f32 %v5131_v14  ;;  %v1613_v14 = vpop.permute.xlu1 %1612 }
 0x474   :  { %5910 = vrcp.f32 %v1564_v4  ;;  %v1576_v53 = vadd.f32 1.0, %v5897_v7  ;;  %v5899_v44 = vpop.eup %5898 }
 0x475   :  { %v5901_v48 = vpop.eup %5900 }
 0x476   :  { %5912 = vrcp.f32 %v1576_v53  ;;  %v1589_v38 = vadd.f32 1.0, %v5901_v48 }
 0x478   :  { %5914 = vrcp.f32 %v1589_v38 }
 0x47d   :  { %v5903_v31 = vpop.eup %5902 }
 0x47e   :  { %v5905_v20 = vpop.eup %5904  ;;  %v1597_v12 = vmul.f32 %v5903_v31, %v5899_v44 }
 0x47f   :  { %v5907_v5 = vpop.eup %5906 }
 0x480   :  { %v5909_v59 = vpop.eup %5908  ;;  %v1595_v21 = vmul.f32 %v5907_v5, %v7374_v11 }
 0x481   :  { %v5911_v9 = vpop.eup %5910  ;;  %v1590_v25 = vadd.f32 1.0, %v5909_v59 }
 0x482   :  { %v1599_v63 = vadd.f32 %v1597_v12, %v1595_v21  ;;  %v1598_v27 = vmul.f32 %v5911_v9, %v5905_v20 }
 0x483   :  { %v5913_v13 = vpop.eup %5912 }
 0x484   :  { %5916 = vtanh.f32 %v1599_v63  ;;  %v1634_v3 = vsub.f32 %v1599_v63, %v7374_v11  ;;  %v1596_v26 = vmul.f32 %v5913_v13, %v7377_v39 }
 0x485   :  { %5918 = vrcp.f32 %v1590_v25  ;;  %v5915_v4 = vpop.eup %5914 }
 0x486   :  { %v1636_v45 = vmul.f32 %v1634_v3, %v1608_v18  ;;  %v1600_v23 = vadd.f32 %v1598_v27, %v1596_v26  ;;  %v9164_v26 = vld [vmem:[#allocation26_spill] sm:$0xff] }
 0x488   :  { %5920 = vtanh.f32 %v1600_v23  ;;  %v1635_v34 = vsub.f32 %v1600_v23, %v7377_v39  ;;  %v7436_v6 = vadd.f32 %v1636_v45, %v7374_v11 }
 0x48a   :  { %v1637_v2 = vmul.f32 %v1635_v34, %v1613_v14 }
 0x48c   :  { %v7439_v47 = vadd.f32 %v1637_v2, %v7377_v39 }
 0x491   :  { %v5917_v7 = vpop.eup %5916 }
 0x492   :  { %v1603_v53 = vmul.f32 %v5917_v7, %v5915_v4  ;;  %v5919_v44 = vpop.eup %5918 }
 0x494   :  { %v1628_v48 = vsub.f32 %v1603_v53, %v7382_v28  ;;  %v1615_v12 = vmul.f32 %v1608_v18, %v1603_v53  ;;  %v9166_v53 = vld [vmem:[#allocation30_spill] sm:$0xff] }
 0x495   :  { %v5921_v31 = vpop.eup %5920 }
 0x496   :  { %v1604_v20 = vmul.f32 %v5921_v31, %v5919_v44  ;;  %v1630_v59 = vmul.f32 %v1628_v48, %v1608_v18 }
 0x498   :  { %v1616_v5 = vmul.f32 %v1613_v14, %v1604_v20  ;;  %v1629_v38 = vsub.f32 %v1604_v20, %v7385_v8  ;;  %v7444_v9 = vadd.f32 %v1630_v59, %v7382_v28  ;;  %v9167_v20 = vld [vmem:[#allocation27_spill] sm:$0xff] }
 0x49a   :  { %v5343_v11 = vpack.c.bf16 %v1616_v5, %v1615_v12  ;;  %v1631_v21 = vmul.f32 %v1629_v38, %v1613_v14  ;;  %v9165_v14 = vld [vmem:[#allocation28_spill] sm:$0xff]  ;;  %v9168_v38 = vld [vmem:[#allocation25_spill] sm:$0xff] }
 0x49c   :  { %5344 = vst [vmem:[#allocation3 + $0x18] sm:$0xff] %v5343_v11   ;;  %v7447_v39 = vadd.f32 %v1631_v21, %v7385_v8  ;;  %v9163_v8 = vld [vmem:[#allocation24_spill] sm:$0xff]  ;;  %v9169_v21 = vld [vmem:[#allocation31_spill] sm:$0xff] }
 0x49e   :  { %v1649_v63 = vpack.c.bf16 %v7447_v39, %v7444_v9 }
 0x4a0   :  { %1683 = vmatmul.mubr.bf16.vlgmr.msra.gmra.mxu0 %v1649_v63  ;;  %1726 = vmatmul.mubr.bf16.vlgmr.msra.gmra.mxu1 %v1649_v63 }
 0x4a1   :  { %1838 = vmatpush1.bf16.msra.mxu0 %v7201_v41  ;;  %1881 = vmatpush1.bf16.msra.mxu1 %v7204_v22 }
 0x4a2   :  { %1839 = vmatprep.subr.bf16.mxu0 %v7207_v46  ;;  %1882 = vmatprep.subr.bf16.mxu1 %v7210_v1 }
 0x4a3   :  { %1869 = vmatprep.mubr.bf16.mxu0 %v9155_v19  ;;  %1912 = vmatprep.mubr.bf16.mxu1 %v9155_v19 }
 0x4a5   :  { %1840 = vmatpush1.bf16.msra.mxu0 %v7215_v32  ;;  %1883 = vmatpush1.bf16.msra.mxu1 %v7218_v17 }
 0x4a6   :  { %1841 = vmatprep.subr.bf16.mxu0 %v7221_v40  ;;  %1884 = vmatprep.subr.bf16.mxu1 %v7224_v29 }
 0x4a9   :  { %1842 = vmatpush1.bf16.msra.mxu0 %v7227_v24  ;;  %1885 = vmatpush1.bf16.msra.mxu1 %v7230_v36 }
 0x4aa   :  { %1843 = vmatprep.subr.bf16.mxu0 %v7233_v43  ;;  %1886 = vmatprep.subr.bf16.mxu1 %v7302_v42 }
 0x4ad   :  { %1844 = vmatpush1.bf16.msra.mxu0 %v7305_v33  ;;  %1887 = vmatpush1.bf16.msra.mxu1 %v7308_v30 }
 0x4ae   :  { %1845 = vmatprep.subr.bf16.mxu0 %v7311_v37  ;;  %1888 = vmatprep.subr.bf16.mxu1 %v7314_v10 }
 0x4b1   :  { %1846 = vmatpush1.bf16.msra.mxu0 %v7317_v15  ;;  %1889 = vmatpush1.bf16.msra.mxu1 %v7320_v35 }
 0x4b2   :  { %1847 = vmatprep.subr.bf16.mxu0 %v7323_v16  ;;  %1890 = vmatprep.subr.bf16.mxu1 %v7326_v51 }
 0x4b5   :  { %1848 = vmatpush1.bf16.msra.mxu0 %v7329_v52  ;;  %1891 = vmatpush1.bf16.msra.mxu1 %v7332_v54 }
 0x4b6   :  { %1849 = vmatprep.subr.bf16.mxu0 %v7335_v55  ;;  %1892 = vmatprep.subr.bf16.mxu1 %v7338_v56 }
 0x4b9   :  { %1850 = vmatpush1.bf16.msra.mxu0 %v7341_v57  ;;  %1893 = vmatpush1.bf16.msra.mxu1 %v7344_v58 }
 0x4ba   :  { %1851 = vmatprep.subr.bf16.mxu0 %v7347_v60  ;;  %1894 = vmatprep.subr.bf16.mxu1 %v7350_v61 }
 0x4bd   :  { %1852 = vmatpush1.bf16.msra.mxu0 %v7353_v62  ;;  %1895 = vmatpush1.bf16.msra.mxu1 %v7356_v0 }
 0x4be   :  { %2024 = vmatprep.subr.bf16.mxu0 %v7255_v49  ;;  %2067 = vmatprep.subr.bf16.mxu1 %v7258_v50 }
 0x560   :  { %v1684_v28 = vpop.f32.mrf.mxu0  ;;  %v1727_v13 = vpop.f32.mrf.mxu1 }
 0x561   :  { %v1736_v27 = vadd.f32 %v1684_v28, %v9163_v8  ;;  %v1738_v59 = vadd.f32 %v1727_v13, %v9168_v38  ;;  %v9170_v8 = vld [vmem:[#allocation29_spill] sm:$0xff] }
 0x562   :  { %v1686_v25 = vpop.f32.mrf.mxu0  ;;  %v1729_v34 = vpop.f32.mrf.mxu1 }
 0x563   :  { %v5134_v3 = vmul.f32 -1.442695, %v1736_v27  ;;  %v1737_v18 = vadd.f32 %v1686_v25, %v9164_v26  ;;  %v1739_v12 = vadd.f32 %v1729_v34, %v9167_v20 }
 0x564   :  { %v1688_v45 = vpop.f32.mrf.mxu0  ;;  %v1731_v48 = vpop.f32.mrf.mxu1 }
 0x565   :  { %5922 = vpow2.f32 %v5134_v3  ;;  %v5136_v23 = vmul.f32 -1.442695, %v1737_v18  ;;  %v1740_v2 = vadd.f32 %v1688_v45, %v9165_v14  ;;  %v5138_v11 = vmul.f32 -1.442695, %v1739_v12 }
 0x566   :  { %v1690_v4 = vpop.f32.mrf.mxu0  ;;  %v1733_v5 = vpop.f32.mrf.mxu1  ;;  %v1742_v27 = vadd.f32 %v1731_v48, %v9170_v8 }
 0x567   :  { %5924 = vpow2.f32 %v5136_v23  ;;  %v5135_v7 = vmul.f32 -1.442695, %v1740_v2  ;;  %v1741_v44 = vadd.f32 %v1690_v4, %v9166_v53  ;;  %v1743_v63 = vadd.f32 %v1733_v5, %v9169_v21 }
 0x569   :  { %5926 = vpow2.f32 %v5135_v7  ;;  %v5137_v31 = vmul.f32 -1.442695, %v1741_v44  ;;  %v5139_v26 = vmul.f32 -1.442695, %v1743_v63 }
 0x56b   :  { %5928 = vpow2.f32 %v5137_v31 }
 0x56c   :  { %5930 = vtanh.f32 %v1738_v59 }
 0x56d   :  { %5932 = vpow2.f32 %v5138_v11 }
 0x572   :  { %v5923_v28 = vpop.eup %5922 }
 0x573   :  { %v1750_v25 = vadd.f32 1.0, %v5923_v28  ;;  %v1795_v28 = vpop.permute.xlu0 %1794 }
 0x574   :  { %v5925_v3 = vpop.eup %5924 }
 0x575   :  { %5934 = vrcp.f32 %v1750_v25  ;;  %v1762_v18 = vadd.f32 1.0, %v5925_v3 }
 0x576   :  { %v5927_v45 = vpop.eup %5926  ;;  %5936 = vtanh.f32 %v1742_v27 }
 0x577   :  { %5938 = vrcp.f32 %v1762_v18  ;;  %v1751_v23 = vadd.f32 1.0, %v5927_v45 }
 0x578   :  { %v5929_v34 = vpop.eup %5928  ;;  %5940 = vpow2.f32 %v5139_v26  ;;  %v1800_v26 = vpop.permute.xlu1 %1799 }
 0x579   :  { %5942 = vrcp.f32 %v1751_v23  ;;  %v1763_v13 = vadd.f32 1.0, %v5929_v34  ;;  %v5931_v14 = vpop.eup %5930 }
 0x57a   :  { %v5933_v2 = vpop.eup %5932 }
 0x57b   :  { %5944 = vrcp.f32 %v1763_v13  ;;  %v1776_v48 = vadd.f32 1.0, %v5933_v2 }
 0x57d   :  { %5946 = vrcp.f32 %v1776_v48 }
 0x582   :  { %v5935_v4 = vpop.eup %5934 }
 0x583   :  { %v5937_v7 = vpop.eup %5936  ;;  %v1784_v53 = vmul.f32 %v5935_v4, %v5931_v14 }
 0x584   :  { %v5939_v44 = vpop.eup %5938 }
 0x585   :  { %v5941_v31 = vpop.eup %5940  ;;  %v1782_v20 = vmul.f32 %v5939_v44, %v7436_v6 }
 0x586   :  { %v5943_v12 = vpop.eup %5942  ;;  %v1777_v11 = vadd.f32 1.0, %v5941_v31 }
 0x587   :  { %v1786_v5 = vadd.f32 %v1784_v53, %v1782_v20  ;;  %v1785_v38 = vmul.f32 %v5943_v12, %v5937_v7 }
 0x588   :  { %v5945_v59 = vpop.eup %5944 }
 0x589   :  { %5948 = vtanh.f32 %v1786_v5  ;;  %v1821_v21 = vsub.f32 %v1786_v5, %v7436_v6  ;;  %v1783_v63 = vmul.f32 %v5945_v59, %v7439_v47 }
 0x58a   :  { %5950 = vrcp.f32 %v1777_v11  ;;  %v5947_v23 = vpop.eup %5946 }
 0x58b   :  { %v1823_v8 = vmul.f32 %v1821_v21, %v1795_v28  ;;  %v1787_v27 = vadd.f32 %v1785_v38, %v1783_v63  ;;  %v9175_v63 = vld [vmem:[#allocation35_spill] sm:$0xff] }
 0x58d   :  { %5952 = vtanh.f32 %v1787_v27  ;;  %v1822_v25 = vsub.f32 %v1787_v27, %v7439_v47  ;;  %v7498_v3 = vadd.f32 %v1823_v8, %v7436_v6  ;;  %v9176_v27 = vld [vmem:[#allocation33_spill] sm:$0xff] }
 0x58f   :  { %v1824_v18 = vmul.f32 %v1822_v25, %v1800_v26 }
 0x591   :  { %v7501_v45 = vadd.f32 %v1824_v18, %v7439_v47  ;;  %v9177_v18 = vld [vmem:[#allocation39_spill] sm:$0xff] }
 0x596   :  { %v5949_v34 = vpop.eup %5948 }
 0x597   :  { %v1790_v13 = vmul.f32 %v5949_v34, %v5947_v23  ;;  %v5951_v14 = vpop.eup %5950 }
 0x599   :  { %v1815_v2 = vsub.f32 %v1790_v13, %v7444_v9  ;;  %v1802_v53 = vmul.f32 %v1795_v28, %v1790_v13  ;;  %v9178_v13 = vld [vmem:[#allocation37_spill] sm:$0xff] }
 0x59a   :  { %v5953_v4 = vpop.eup %5952 }
 0x59b   :  { %v1791_v7 = vmul.f32 %v5953_v4, %v5951_v14  ;;  %v1817_v31 = vmul.f32 %v1815_v2, %v1795_v28 }
 0x59d   :  { %v1803_v44 = vmul.f32 %v1800_v26, %v1791_v7  ;;  %v1816_v48 = vsub.f32 %v1791_v7, %v7447_v39  ;;  %v7506_v12 = vadd.f32 %v1817_v31, %v7444_v9  ;;  %v9173_v9 = vld [vmem:[#allocation36_spill] sm:$0xff] }
 0x59f   :  { %v5348_v6 = vpack.c.bf16 %v1803_v44, %v1802_v53  ;;  %v1818_v20 = vmul.f32 %v1816_v48, %v1800_v26 }
 0x5a1   :  { %5349 = vst [vmem:[#allocation3 + $0x20] sm:$0xff] %v5348_v6   ;;  %v7509_v47 = vadd.f32 %v1818_v20, %v7447_v39 }
 0x5a3   :  { %v1836_v5 = vpack.c.bf16 %v7509_v47, %v7506_v12 }
 0x5a5   :  { %1870 = vmatmul.mubr.bf16.vlgmr.msra.gmra.mxu0 %v1836_v5  ;;  %1913 = vmatmul.mubr.bf16.vlgmr.msra.gmra.mxu1 %v1836_v5 }
 0x5a6   :  { %2025 = vmatpush1.bf16.msra.mxu0 %v7201_v41  ;;  %2068 = vmatpush1.bf16.msra.mxu1 %v7204_v22  ;;  %v9171_v22 = vld [vmem:[#allocation32_spill] sm:$0xff] }
 0x5a7   :  { %2026 = vmatprep.subr.bf16.mxu0 %v7207_v46  ;;  %2069 = vmatprep.subr.bf16.mxu1 %v7210_v1 }
 0x5a8   :  { %2056 = vmatprep.mubr.bf16.mxu0 %v9155_v19  ;;  %2099 = vmatprep.mubr.bf16.mxu1 %v9155_v19 }
 0x5aa   :  { %2027 = vmatpush1.bf16.msra.mxu0 %v7215_v32  ;;  %2070 = vmatpush1.bf16.msra.mxu1 %v7218_v17 }
 0x5ab   :  { %2028 = vmatprep.subr.bf16.mxu0 %v7221_v40  ;;  %2071 = vmatprep.subr.bf16.mxu1 %v7224_v29  ;;  %v9172_v40 = vld [vmem:[#allocation34_spill] sm:$0xff] }
 0x5ae   :  { %2029 = vmatpush1.bf16.msra.mxu0 %v7227_v24  ;;  %2072 = vmatpush1.bf16.msra.mxu1 %v7230_v36 }
 0x5af   :  { %2030 = vmatprep.subr.bf16.mxu0 %v7233_v43  ;;  %2073 = vmatprep.subr.bf16.mxu1 %v7302_v42 }
 0x5b2   :  { %2031 = vmatpush1.bf16.msra.mxu0 %v7305_v33  ;;  %2074 = vmatpush1.bf16.msra.mxu1 %v7308_v30 }
 0x5b3   :  { %2032 = vmatprep.subr.bf16.mxu0 %v7311_v37  ;;  %2075 = vmatprep.subr.bf16.mxu1 %v7314_v10 }
 0x5b6   :  { %2033 = vmatpush1.bf16.msra.mxu0 %v7317_v15  ;;  %2076 = vmatpush1.bf16.msra.mxu1 %v7320_v35 }
 0x5b7   :  { %2034 = vmatprep.subr.bf16.mxu0 %v7323_v16  ;;  %2077 = vmatprep.subr.bf16.mxu1 %v7326_v51 }
 0x5ba   :  { %2035 = vmatpush1.bf16.msra.mxu0 %v7329_v52  ;;  %2078 = vmatpush1.bf16.msra.mxu1 %v7332_v54 }
 0x5bb   :  { %2036 = vmatprep.subr.bf16.mxu0 %v7335_v55  ;;  %2079 = vmatprep.subr.bf16.mxu1 %v7338_v56 }
 0x5be   :  { %2037 = vmatpush1.bf16.msra.mxu0 %v7341_v57  ;;  %2080 = vmatpush1.bf16.msra.mxu1 %v7344_v58 }
 0x5bf   :  { %2038 = vmatprep.subr.bf16.mxu0 %v7347_v60  ;;  %2081 = vmatprep.subr.bf16.mxu1 %v7350_v61 }
 0x5c2   :  { %2039 = vmatpush1.bf16.msra.mxu0 %v7353_v62  ;;  %2082 = vmatpush1.bf16.msra.mxu1 %v7356_v0 }
 0x5c3   :  { %2211 = vmatprep.subr.bf16.mxu0 %v7255_v49  ;;  %2254 = vmatprep.subr.bf16.mxu1 %v7258_v50  ;;  %v9174_v49 = vld [vmem:[#allocation38_spill] sm:$0xff] }
 0x665   :  { %v1871_v41 = vpop.f32.mrf.mxu0  ;;  %v1914_v1 = vpop.f32.mrf.mxu1 }
 0x666   :  { %v1923_v46 = vadd.f32 %v1871_v41, %v9171_v22  ;;  %v1925_v25 = vadd.f32 %v1914_v1, %v9176_v27 }
 0x667   :  { %v1873_v32 = vpop.f32.mrf.mxu0  ;;  %v1916_v43 = vpop.f32.mrf.mxu1 }
 0x668   :  { %v5142_v17 = vmul.f32 -1.442695, %v1923_v46  ;;  %v1924_v29 = vadd.f32 %v1873_v32, %v9172_v40  ;;  %v1926_v28 = vadd.f32 %v1916_v43, %v9175_v63  ;;  %v1987_v63 = vpop.permute.xlu1 %1986 }
 0x669   :  { %v1875_v24 = vpop.f32.mrf.mxu0  ;;  %v1918_v50 = vpop.f32.mrf.mxu1 }
 0x66a   :  { %5954 = vpow2.f32 %v5142_v17  ;;  %v5144_v36 = vmul.f32 -1.442695, %v1924_v29  ;;  %v1927_v39 = vadd.f32 %v1875_v24, %v9173_v9  ;;  %v5146_v26 = vmul.f32 -1.442695, %v1926_v28 }
 0x66b   :  { %v1877_v38 = vpop.f32.mrf.mxu0  ;;  %v1920_v8 = vpop.f32.mrf.mxu1  ;;  %v1929_v14 = vadd.f32 %v1918_v50, %v9178_v13 }
 0x66c   :  { %5956 = vpow2.f32 %v5144_v36  ;;  %v5143_v59 = vmul.f32 -1.442695, %v1927_v39  ;;  %v1928_v11 = vadd.f32 %v1877_v38, %v9174_v49  ;;  %v1930_v23 = vadd.f32 %v1920_v8, %v9177_v18 }
 0x66e   :  { %5958 = vpow2.f32 %v5143_v59  ;;  %v5145_v21 = vmul.f32 -1.442695, %v1928_v11  ;;  %v5147_v7 = vmul.f32 -1.442695, %v1930_v23  ;;  %v1982_v59 = vpop.permute.xlu0 %1981 }
 0x670   :  { %5960 = vpow2.f32 %v5145_v21 }
 0x671   :  { %5962 = vtanh.f32 %v1925_v25 }
 0x672   :  { %5964 = vpow2.f32 %v5146_v26 }
 0x677   :  { %v5955_v34 = vpop.eup %5954 }
 0x678   :  { %v1937_v2 = vadd.f32 1.0, %v5955_v34 }
 0x679   :  { %v5957_v4 = vpop.eup %5956 }
 0x67a   :  { %5966 = vrcp.f32 %v1937_v2  ;;  %v1949_v53 = vadd.f32 1.0, %v5957_v4 }
 0x67b   :  { %v5959_v44 = vpop.eup %5958  ;;  %5968 = vtanh.f32 %v1929_v14 }
 0x67c   :  { %5970 = vrcp.f32 %v1949_v53  ;;  %v1938_v48 = vadd.f32 1.0, %v5959_v44 }
 0x67d   :  { %v5961_v31 = vpop.eup %5960  ;;  %5972 = vpow2.f32 %v5147_v7 }
 0x67e   :  { %5974 = vrcp.f32 %v1938_v48  ;;  %v1950_v6 = vadd.f32 1.0, %v5961_v31  ;;  %v5963_v20 = vpop.eup %5962  ;;  %v6414_v31 = vld [vmem:[#allocation8 + $0xe0] ss:$16 sps:$4 sm:$0xff]  }
 0x67f   :  { %v5965_v5 = vpop.eup %5964 }
 0x680   :  { %5976 = vrcp.f32 %v1950_v6  ;;  %v1963_v32 = vadd.f32 1.0, %v5965_v5  ;;  %v6415_v6 = vld [vmem:[#allocation8 + $0xe8] ss:$16 sps:$4 sm:$0xff]   ;;  %v6417_v5 = vld [vmem:[#allocation8 + $0xcc] ss:$16 sps:$4 sm:$0xff]  }
 0x682   :  { %5978 = vrcp.f32 %v1963_v32  ;;  %v6424_v32 = vld [vmem:[#allocation8 + $0x84] ss:$16 sps:$4 sm:$0xff]  }
 0x687   :  { %v5967_v41 = vpop.eup %5966 }
 0x688   :  { %v5969_v22 = vpop.eup %5968  ;;  %v1971_v46 = vmul.f32 %v5967_v41, %v5963_v20  ;;  %v6416_v20 = vld [vmem:[#allocation8 + $0xc4] ss:$16 sps:$4 sm:$0xff]  }
 0x689   :  { %v5971_v1 = vpop.eup %5970  ;;  %v6420_v41 = vld [vmem:[#allocation8 + $0xa4] ss:$16 sps:$4 sm:$0xff]  }
 0x68a   :  { %v5973_v17 = vpop.eup %5972  ;;  %v1969_v40 = vmul.f32 %v5971_v1, %v7498_v3  ;;  %v6423_v1 = vld [vmem:[#allocation8 + $0xa8] ss:$16 sps:$4 sm:$0xff]  }
 0x68b   :  { %v5975_v29 = vpop.eup %5974  ;;  %v1964_v9 = vadd.f32 1.0, %v5973_v17 }
 0x68c   :  { %v1973_v24 = vadd.f32 %v1971_v46, %v1969_v40  ;;  %v1972_v36 = vmul.f32 %v5975_v29, %v5969_v22  ;;  %v6421_v22 = vld [vmem:[#allocation8 + $0xac] ss:$16 sps:$4 sm:$0xff]   ;;  %v6422_v46 = vld [vmem:[#allocation8 + $0xa0] ss:$16 sps:$4 sm:$0xff]  }
 0x68d   :  { %v5977_v43 = vpop.eup %5976  ;;  %v9183_v40 = vld [vmem:[#allocation43_spill] sm:$0xff] }
 0x68e   :  { %5980 = vtanh.f32 %v1973_v24  ;;  %v2008_v39 = vsub.f32 %v1973_v24, %v7498_v3  ;;  %v1970_v38 = vmul.f32 %v5977_v43, %v7501_v45 }
 0x68f   :  { %5982 = vrcp.f32 %v1964_v9  ;;  %v5979_v27 = vpop.eup %5978 }
 0x690   :  { %v2010_v49 = vmul.f32 %v2008_v39, %v1982_v59  ;;  %v1974_v11 = vadd.f32 %v1972_v36, %v1970_v38  ;;  %v9184_v36 = vld [vmem:[#allocation41_spill] sm:$0xff]  ;;  %v9185_v39 = vld [vmem:[#allocation47_spill] sm:$0xff] }
 0x692   :  { %5984 = vtanh.f32 %v1974_v11  ;;  %v2009_v50 = vsub.f32 %v1974_v11, %v7501_v45  ;;  %v7560_v21 = vadd.f32 %v2010_v49, %v7498_v3  ;;  %v9186_v49 = vld [vmem:[#allocation45_spill] sm:$0xff] }
 0x694   :  { %v2011_v28 = vmul.f32 %v2009_v50, %v1987_v63 }
 0x696   :  { %v7563_v8 = vadd.f32 %v2011_v28, %v7501_v45 }
 0x69b   :  { %v5981_v25 = vpop.eup %5980 }
 0x69c   :  { %v1977_v26 = vmul.f32 %v5981_v25, %v5979_v27  ;;  %v5983_v18 = vpop.eup %5982 }
 0x69e   :  { %v2002_v23 = vsub.f32 %v1977_v26, %v7506_v12  ;;  %v1989_v14 = vmul.f32 %v1982_v59, %v1977_v26 }
 0x69f   :  { %v5985_v34 = vpop.eup %5984 }
 0x6a0   :  { %v1978_v13 = vmul.f32 %v5985_v34, %v5983_v18  ;;  %v2004_v7 = vmul.f32 %v2002_v23, %v1982_v59 }
 0x6a2   :  { %v1990_v2 = vmul.f32 %v1987_v63, %v1978_v13  ;;  %v2003_v4 = vsub.f32 %v1978_v13, %v7509_v47  ;;  %v7568_v44 = vadd.f32 %v2004_v7, %v7506_v12  ;;  %v6418_v12 = vld [vmem:[#allocation8 + $0xc0] ss:$16 sps:$4 sm:$0xff]  }
 0x6a4   :  { %v5353_v3 = vpack.c.bf16 %v1990_v2, %v1989_v14  ;;  %v2005_v53 = vmul.f32 %v2003_v4, %v1987_v63 }
 0x6a6   :  { %5354 = vst [vmem:[#allocation3 + $0x28] sm:$0xff] %v5353_v3   ;;  %v7571_v45 = vadd.f32 %v2005_v53, %v7509_v47  ;;  %v6419_v47 = vld [vmem:[#allocation8 + $0xc8] ss:$16 sps:$4 sm:$0xff]  }
 0x6a8   :  { %v2023_v48 = vpack.c.bf16 %v7571_v45, %v7568_v44 }
 0x6aa   :  { %2057 = vmatmul.mubr.bf16.vlgmr.msra.gmra.mxu0 %v2023_v48  ;;  %2100 = vmatmul.mubr.bf16.vlgmr.msra.gmra.mxu1 %v2023_v48 }
 0x6ab   :  { %2212 = vmatpush1.bf16.msra.mxu0 %v6414_v31  ;;  %2255 = vmatpush1.bf16.msra.mxu1 %v6415_v6 }
 0x6ac   :  { %2213 = vmatprep.subr.bf16.mxu0 %v6416_v20  ;;  %2256 = vmatprep.subr.bf16.mxu1 %v6417_v5 }
 0x6ad   :  { %2243 = vmatprep.mubr.bf16.mxu0 %v9155_v19  ;;  %2286 = vmatprep.mubr.bf16.mxu1 %v9155_v19  ;;  %v7828_v19 = vld [vmem:[#allocation10 + $0x148] ss:$16 sps:$4 sm:$0xff]  }
 0x6ae   :  { %9208 = vst [vmem:[#allocation39_spill] sm:$0xff] %v7828_v19 }
 0x6af   :  { %2214 = vmatpush1.bf16.msra.mxu0 %v6418_v12  ;;  %2257 = vmatpush1.bf16.msra.mxu1 %v6419_v47 }
 0x6b0   :  { %2215 = vmatprep.subr.bf16.mxu0 %v6420_v41  ;;  %2258 = vmatprep.subr.bf16.mxu1 %v6421_v22  ;;  %v2169_v22 = vpop.permute.xlu0 %2168 }
 0x6b3   :  { %2216 = vmatpush1.bf16.msra.mxu0 %v6422_v46  ;;  %2259 = vmatpush1.bf16.msra.mxu1 %v6423_v1 }
 0x6b4   :  { %2217 = vmatprep.subr.bf16.mxu0 %v6424_v32  ;;  %2260 = vmatprep.subr.bf16.mxu1 %v7302_v42  ;;  %v7599_v42 = vld [vmem:[%s8945_s10 + $0x38] sm:$0xff]  }
 0x6b7   :  { %2218 = vmatpush1.bf16.msra.mxu0 %v7305_v33  ;;  %2261 = vmatpush1.bf16.msra.mxu1 %v7308_v30  ;;  %v9179_v30 = vld [vmem:[#allocation40_spill] sm:$0xff] }
 0x6b8   :  { %2219 = vmatprep.subr.bf16.mxu0 %v7311_v37  ;;  %2262 = vmatprep.subr.bf16.mxu1 %v7314_v10 }
 0x6bb   :  { %2220 = vmatpush1.bf16.msra.mxu0 %v7317_v15  ;;  %2263 = vmatpush1.bf16.msra.mxu1 %v7320_v35 }
 0x6bc   :  { %2221 = vmatprep.subr.bf16.mxu0 %v7323_v16  ;;  %2264 = vmatprep.subr.bf16.mxu1 %v7326_v51  ;;  %v9180_v16 = vld [vmem:[#allocation42_spill] sm:$0xff] }
 0x6bf   :  { %2222 = vmatpush1.bf16.msra.mxu0 %v7329_v52  ;;  %2265 = vmatpush1.bf16.msra.mxu1 %v7332_v54 }
 0x6c0   :  { %2223 = vmatprep.subr.bf16.mxu0 %v7335_v55  ;;  %2266 = vmatprep.subr.bf16.mxu1 %v7338_v56  ;;  %v9181_v56 = vld [vmem:[#allocation44_spill] sm:$0xff] }
 0x6c3   :  { %2224 = vmatpush1.bf16.msra.mxu0 %v7341_v57  ;;  %2267 = vmatpush1.bf16.msra.mxu1 %v7344_v58 }
 0x6c4   :  { %2225 = vmatprep.subr.bf16.mxu0 %v7347_v60  ;;  %2268 = vmatprep.subr.bf16.mxu1 %v7350_v61  ;;  %v9182_v61 = vld [vmem:[#allocation46_spill] sm:$0xff] }
 0x6c7   :  { %2226 = vmatpush1.bf16.msra.mxu0 %v7353_v62  ;;  %2269 = vmatpush1.bf16.msra.mxu1 %v7356_v0 }
 0x6c8   :  { %5420 = vmatprep.subr.bf16.mxu0 %v7599_v42 }
 0x76a   :  { %v2058_v33 = vpop.f32.mrf.mxu0  ;;  %v2101_v10 = vpop.f32.mrf.mxu1 }
 0x76b   :  { %v2110_v37 = vadd.f32 %v2058_v33, %v9179_v30  ;;  %v2112_v43 = vadd.f32 %v2101_v10, %v9184_v36  ;;  %v2174_v30 = vpop.permute.xlu1 %2173  ;;  %v5666_v36 = vld [vmem:[%s8945_s10] sm:$0xff]  }
 0x76c   :  { %v2060_v15 = vpop.f32.mrf.mxu0  ;;  %v2103_v55 = vpop.f32.mrf.mxu1 }
 0x76d   :  { %v5150_v35 = vmul.f32 -1.442695, %v2110_v37  ;;  %v2111_v51 = vadd.f32 %v2060_v15, %v9180_v16  ;;  %v2113_v29 = vadd.f32 %v2103_v55, %v9183_v40  ;;  %v5660_v40 = vld [vmem:[%s8945_s10 + $0x30] sm:$0xff]  }
 0x76e   :  { %v2062_v52 = vpop.f32.mrf.mxu0  ;;  %v2105_v0 = vpop.f32.mrf.mxu1 }
 0x76f   :  { %5986 = vpow2.f32 %v5150_v35  ;;  %v5152_v54 = vmul.f32 -1.442695, %v2111_v51  ;;  %v2114_v57 = vadd.f32 %v2062_v52, %v9181_v56  ;;  %v5154_v9 = vmul.f32 -1.442695, %v2113_v29  ;;  %v5663_v29 = vld [vmem:[%s8945_s10 + $0x18] sm:$0xff]  }
 0x770   :  { %v2064_v58 = vpop.f32.mrf.mxu0  ;;  %v2107_v24 = vpop.f32.mrf.mxu1  ;;  %v2116_v11 = vadd.f32 %v2105_v0, %v9186_v49  ;;  %v2388_v0 = vld [vmem:[#allocation3] sm:$0xff]  }
 0x771   :  { %5988 = vpow2.f32 %v5152_v54  ;;  %v5151_v60 = vmul.f32 -1.442695, %v2114_v57  ;;  %v2115_v62 = vadd.f32 %v2064_v58, %v9182_v61  ;;  %v2117_v38 = vadd.f32 %v2107_v24, %v9185_v39  ;;  %v5665_v24 = vld [vmem:[%s8945_s10 + $0x8] sm:$0xff]   ;;  %v2394_v39 = vld [vmem:[#allocation3 + $0x18] sm:$0xff]  }
 0x773   :  { %5990 = vpow2.f32 %v5151_v60  ;;  %v5153_v17 = vmul.f32 -1.442695, %v2115_v62  ;;  %v5155_v28 = vmul.f32 -1.442695, %v2117_v38  ;;  %v2396_v38 = vld [vmem:[#allocation3 + $0x20] sm:$0xff]  }
 0x775   :  { %5992 = vpow2.f32 %v5153_v17 }
 0x776   :  { %5994 = vtanh.f32 %v2112_v43  ;;  %v2390_v43 = vld [vmem:[#allocation3 + $0x8] sm:$0xff]  }
 0x777   :  { %5996 = vpow2.f32 %v5154_v9  ;;  %v2392_v9 = vld [vmem:[#allocation3 + $0x10] sm:$0xff]  }
 0x77c   :  { %v5987_v59 = vpop.eup %5986 }
 0x77d   :  { %v2124_v50 = vadd.f32 1.0, %v5987_v59  ;;  %v2398_v59 = vld [vmem:[#allocation3 + $0x28] sm:$0xff]  }
 0x77e   :  { %v5989_v63 = vpop.eup %5988 }
 0x77f   :  { %5998 = vrcp.f32 %v2124_v50  ;;  %v2136_v27 = vadd.f32 1.0, %v5989_v63  ;;  %v7654_v50 = vld [vmem:[#allocation10 + $0xe0] ss:$16 sps:$4 sm:$0xff]   ;;  %v7658_v63 = vld [vmem:[#allocation10 + $0xc4] ss:$16 sps:$4 sm:$0xff]  }
 0x780   :  { %v5991_v25 = vpop.eup %5990  ;;  %6000 = vtanh.f32 %v2116_v11  ;;  %v7652_v11 = vld [vmem:[#allocation10 + $0xe4] ss:$16 sps:$4 sm:$0xff]  }
 0x781   :  { %6002 = vrcp.f32 %v2136_v27  ;;  %v2125_v26 = vadd.f32 1.0, %v5991_v25  ;;  %9187 = vst [vmem:[#allocation18_spill] sm:$0xff] %v7652_v11  ;;  %3078 = vmatprep.subr.bf16.mxu1 %v7652_v11  ;;  %v7664_v27 = vld [vmem:[#allocation10 + $0xa4] ss:$16 sps:$4 sm:$0xff]   ;;  %v7666_v25 = vld [vmem:[#allocation10 + $0xa0] ss:$16 sps:$4 sm:$0xff]  }
 0x782   :  { %v5993_v18 = vpop.eup %5992  ;;  %6004 = vpow2.f32 %v5155_v28  ;;  %v7660_v28 = vld [vmem:[#allocation10 + $0xc0] ss:$16 sps:$4 sm:$0xff]  }
 0x783   :  { %6006 = vrcp.f32 %v2125_v26  ;;  %v2137_v23 = vadd.f32 1.0, %v5993_v18  ;;  %v5995_v34 = vpop.eup %5994  ;;  %v7670_v26 = vld [vmem:[#allocation10 + $0x84] ss:$16 sps:$4 sm:$0xff]   ;;  %v7672_v18 = vld [vmem:[#allocation10 + $0x80] ss:$16 sps:$4 sm:$0xff]  }
 0x784   :  { %v5997_v13 = vpop.eup %5996 }
 0x785   :  { %6008 = vrcp.f32 %v2137_v23  ;;  %v2150_v3 = vadd.f32 1.0, %v5997_v13  ;;  %v7674_v23 = vld [vmem:[#allocation10 + $0xec] ss:$16 sps:$4 sm:$0xff]   ;;  %v7682_v13 = vld [vmem:[#allocation10 + $0x64] ss:$16 sps:$4 sm:$0xff]  }
 0x787   :  { %6010 = vrcp.f32 %v2150_v3  ;;  %v7696_v3 = vld [vmem:[#allocation10 + $0x40] ss:$16 sps:$4 sm:$0xff]  }
 0x78c   :  { %v5999_v14 = vpop.eup %5998 }
 0x78d   :  { %v6001_v2 = vpop.eup %6000  ;;  %v2158_v4 = vmul.f32 %v5999_v14, %v5995_v34  ;;  %v7677_v34 = vld [vmem:[#allocation10 + $0xe8] ss:$16 sps:$4 sm:$0xff]   ;;  %v7684_v14 = vld [vmem:[#allocation10 + $0x60] ss:$16 sps:$4 sm:$0xff]  }
 0x78e   :  { %v6003_v7 = vpop.eup %6002 }
 0x78f   :  { %v6005_v53 = vpop.eup %6004  ;;  %v2156_v48 = vmul.f32 %v6003_v7, %v7560_v21  ;;  %v7694_v7 = vld [vmem:[#allocation10 + $0x44] ss:$16 sps:$4 sm:$0xff]  }
 0x790   :  { %v6007_v31 = vpop.eup %6006  ;;  %v2151_v12 = vadd.f32 1.0, %v6005_v53  ;;  %v7698_v53 = vld [vmem:[#allocation10 + $0xac] ss:$16 sps:$4 sm:$0xff]  }
 0x791   :  { %v2160_v6 = vadd.f32 %v2158_v4, %v2156_v48  ;;  %v2159_v20 = vmul.f32 %v6007_v31, %v6001_v2  ;;  %v7686_v2 = vld [vmem:[#allocation10 + $0xcc] ss:$16 sps:$4 sm:$0xff]   ;;  %v7689_v4 = vld [vmem:[#allocation10 + $0xc8] ss:$16 sps:$4 sm:$0xff]   ;;  %v7706_v31 = vld [vmem:[#allocation10 + $0x24] ss:$16 sps:$4 sm:$0xff]  }
 0x792   :  { %v6009_v5 = vpop.eup %6008  ;;  %v7701_v48 = vld [vmem:[#allocation10 + $0xa8] ss:$16 sps:$4 sm:$0xff]  }
 0x793   :  { %6012 = vtanh.f32 %v2160_v6  ;;  %v2195_v47 = vsub.f32 %v2160_v6, %v7560_v21  ;;  %v2157_v41 = vmul.f32 %v6009_v5, %v7563_v8  ;;  %v7708_v6 = vld [vmem:[#allocation10 + $0x20] ss:$16 sps:$4 sm:$0xff]   ;;  %v7713_v5 = vld [vmem:[#allocation10 + $0x88] ss:$16 sps:$4 sm:$0xff]  }
 0x794   :  { %6014 = vrcp.f32 %v2151_v12  ;;  %v6011_v15 = vpop.eup %6010  ;;  %9188 = vst [vmem:[#allocation20_spill] sm:$0xff] %v7713_v5  ;;  %v7718_v12 = vld [vmem:[#allocation10 + $0x4] ss:$16 sps:$4 sm:$0xff]  }
 0x795   :  { %v2197_v46 = vmul.f32 %v2195_v47, %v2169_v22  ;;  %v2161_v1 = vadd.f32 %v2159_v20, %v2157_v41  ;;  %v7710_v20 = vld [vmem:[#allocation10 + $0x8c] ss:$16 sps:$4 sm:$0xff]   ;;  %v7720_v47 = vld [vmem:[#allocation10] ss:$16 sps:$4 sm:$0xff]  }
 0x796   :  { %v7722_v41 = vld [vmem:[#allocation10 + $0x6c] ss:$16 sps:$4 sm:$0xff]  }
 0x797   :  { %6016 = vtanh.f32 %v2161_v1  ;;  %v2196_v32 = vsub.f32 %v2161_v1, %v7563_v8  ;;  %v7615_v33 = vadd.f32 %v2197_v46, %v7560_v21  ;;  %9189 = vst [vmem:[#allocation22_spill] sm:$0xff] %v7722_v41  ;;  %v7730_v46 = vld [vmem:[#allocation10 + $0x1e4] ss:$16 sps:$4 sm:$0xff]   ;;  %v7732_v1 = vld [vmem:[#allocation10 + $0x1e0] ss:$16 sps:$4 sm:$0xff]  }
 0x799   :  { %v2198_v37 = vmul.f32 %v2196_v32, %v2174_v30  ;;  %v7734_v32 = vld [vmem:[#allocation10 + $0x4c] ss:$16 sps:$4 sm:$0xff]  }
 0x79a   :  { %9191 = vst [vmem:[#allocation17_spill] sm:$0xff] %v7734_v32 }
 0x79b   :  { %v7618_v10 = vadd.f32 %v2198_v37, %v7563_v8  ;;  %v7742_v37 = vld [vmem:[#allocation10 + $0x1c4] ss:$16 sps:$4 sm:$0xff]  }
 0x7a0   :  { %v6013_v35 = vpop.eup %6012 }
 0x7a1   :  { %v2164_v16 = vmul.f32 %v6013_v35, %v6011_v15  ;;  %v6015_v51 = vpop.eup %6014  ;;  %v7744_v15 = vld [vmem:[#allocation10 + $0x1c0] ss:$16 sps:$4 sm:$0xff]   ;;  %v7746_v35 = vld [vmem:[#allocation10 + $0x2c] ss:$16 sps:$4 sm:$0xff]  }
 0x7a2   :  { %9193 = vst [vmem:[#allocation21_spill] sm:$0xff] %v7746_v35 }
 0x7a3   :  { %v2189_v52 = vsub.f32 %v2164_v16, %v7568_v44  ;;  %v2176_v56 = vmul.f32 %v2169_v22, %v2164_v16  ;;  %v7749_v16 = vld [vmem:[#allocation10 + $0x28] ss:$16 sps:$4 sm:$0xff]  }
 0x7a4   :  { %v6017_v54 = vpop.eup %6016  ;;  %9194 = vst [vmem:[#allocation24_spill] sm:$0xff] %v7749_v16 }
 0x7a5   :  { %v2165_v55 = vmul.f32 %v6017_v54, %v6015_v51  ;;  %v2191_v60 = vmul.f32 %v2189_v52, %v2169_v22  ;;  %v7725_v22 = vld [vmem:[#allocation10 + $0x68] ss:$16 sps:$4 sm:$0xff]   ;;  %v7753_v51 = vld [vmem:[#allocation10 + $0x1a4] ss:$16 sps:$4 sm:$0xff]   ;;  %v7757_v52 = vld [vmem:[#allocation10 + $0x1a0] ss:$16 sps:$4 sm:$0xff]  }
 0x7a6   :  { %9190 = vst [vmem:[#allocation19_spill] sm:$0xff] %v7725_v22  ;;  %v7759_v54 = vld [vmem:[#allocation10 + $0xc] ss:$16 sps:$4 sm:$0xff]  }
 0x7a7   :  { %v2177_v57 = vmul.f32 %v2174_v30, %v2165_v55  ;;  %v2190_v58 = vsub.f32 %v2165_v55, %v7571_v45  ;;  %v7623_v62 = vadd.f32 %v2191_v60, %v7568_v44  ;;  %v5661_v44 = vld [vmem:[%s8945_s10 + $0x28] sm:$0xff]   ;;  %9195 = vst [vmem:[#allocation26_spill] sm:$0xff] %v7759_v54 }
 0x7a8   :  { %v7761_v55 = vld [vmem:[#allocation10 + $0x8] ss:$16 sps:$4 sm:$0xff]  }
 0x7a9   :  { %v5358_v21 = vpack.c.bf16 %v2177_v57, %v2176_v56  ;;  %v2192_v61 = vmul.f32 %v2190_v58, %v2174_v30  ;;  %v7737_v30 = vld [vmem:[#allocation10 + $0x48] ss:$16 sps:$4 sm:$0xff]   ;;  %9196 = vst [vmem:[#allocation28_spill] sm:$0xff] %v7761_v55  ;;  %v7765_v56 = vld [vmem:[#allocation10 + $0x184] ss:$16 sps:$4 sm:$0xff]  }
 0x7aa   :  { %9192 = vst [vmem:[#allocation23_spill] sm:$0xff] %v7737_v30  ;;  %v7769_v57 = vld [vmem:[#allocation10 + $0x180] ss:$16 sps:$4 sm:$0xff]   ;;  %v7771_v58 = vld [vmem:[#allocation10 + $0x1ec] ss:$16 sps:$4 sm:$0xff]  }
 0x7ab   :  { %5359 = vst [vmem:[#allocation3 + $0x30] sm:$0xff] %v5358_v21   ;;  %v7626_v8 = vadd.f32 %v2192_v61, %v7571_v45  ;;  %v5662_v45 = vld [vmem:[%s8945_s10 + $0x20] sm:$0xff]   ;;  %9197 = vst [vmem:[#allocation30_spill] sm:$0xff] %v7771_v58  ;;  %v7773_v60 = vld [vmem:[#allocation10 + $0x1e8] ss:$16 sps:$4 sm:$0xff]  }
 0x7ac   :  { %9198 = vst [vmem:[#allocation27_spill] sm:$0xff] %v7773_v60  ;;  %v7777_v21 = vld [vmem:[#allocation10 + $0x164] ss:$16 sps:$4 sm:$0xff]   ;;  %v7779_v61 = vld [vmem:[#allocation10 + $0x160] ss:$16 sps:$4 sm:$0xff]  }
 0x7ad   :  { %v2210_v17 = vpack.c.bf16 %v7626_v8, %v7623_v62 }
 0x7af   :  { %2244 = vmatmul.mubr.bf16.vlgmr.msra.gmra.mxu0 %v2210_v17  ;;  %2287 = vmatmul.mubr.bf16.vlgmr.msra.gmra.mxu1 %v2210_v17  ;;  %v7784_v17 = vld [vmem:[#allocation10 + $0x1c8] ss:$16 sps:$4 sm:$0xff]  }
 0x7b0   :  { %5421 = vmatpush3.bf16.msra.mxu0 %v7599_v42  ;;  %5436 = vmatprep.mubr.bf16.mxu0 %v2388_v0  ;;  %v5664_v42 = vld [vmem:[%s8945_s10 + $0x10] sm:$0xff]   ;;  %9200 = vst [vmem:[#allocation31_spill] sm:$0xff] %v7784_v17 }
 0x7b1   :  { %5422 = vmatprep.subr.bf16.mxu0 %v5660_v40  ;;  %3079 = vmatpush1.bf16.msra.mxu1 %v7654_v50  ;;  %v7781_v0 = vld [vmem:[#allocation10 + $0x1cc] ss:$16 sps:$4 sm:$0xff]  }
 0x7b2   :  { %v2400_v49 = vld [vmem:[#allocation3 + $0x30] sm:$0xff]   ;;  %3080 = vmatprep.subr.bf16.mxu1 %v7658_v63  ;;  %9199 = vst [vmem:[#allocation25_spill] sm:$0xff] %v7781_v0 }
 0x7b4   :  { %5423 = vmatpush3.bf16.msra.mxu0 %v5660_v40  ;;  %v7786_v40 = vld [vmem:[#allocation10 + $0x144] ss:$16 sps:$4 sm:$0xff]  }
 0x7b5   :  { %5424 = vmatprep.subr.bf16.mxu0 %v5661_v44  ;;  %3081 = vmatpush1.bf16.msra.mxu1 %v7660_v28 }
 0x7b6   :  { %3082 = vmatprep.subr.bf16.mxu1 %v7664_v27 }
 0x7b8   :  { %5425 = vmatpush3.bf16.msra.mxu0 %v5661_v44  ;;  %v7790_v44 = vld [vmem:[#allocation10 + $0x1ac] ss:$16 sps:$4 sm:$0xff]  }
 0x7b9   :  { %5426 = vmatprep.subr.bf16.mxu0 %v5662_v45  ;;  %3083 = vmatpush1.bf16.msra.mxu1 %v7666_v25  ;;  %9201 = vst [vmem:[#allocation29_spill] sm:$0xff] %v7790_v44 }
 0x7ba   :  { %3084 = vmatprep.subr.bf16.mxu1 %v7670_v26 }
 0x7bc   :  { %5427 = vmatpush3.bf16.msra.mxu0 %v5662_v45  ;;  %v7793_v45 = vld [vmem:[#allocation10 + $0x140] ss:$16 sps:$4 sm:$0xff]  }
 0x7bd   :  { %5428 = vmatprep.subr.bf16.mxu0 %v5663_v29  ;;  %3085 = vmatpush1.bf16.msra.mxu1 %v7672_v18 }
 0x7be   :  { %3086 = vmatprep.subr.bf16.mxu1 %v7682_v13 }
 0x7c0   :  { %5429 = vmatpush3.bf16.msra.mxu0 %v5663_v29  ;;  %v7797_v29 = vld [vmem:[#allocation10 + $0x1a8] ss:$16 sps:$4 sm:$0xff]  }
 0x7c1   :  { %5430 = vmatprep.subr.bf16.mxu0 %v5664_v42  ;;  %3087 = vmatpush1.bf16.msra.mxu1 %v7684_v14  ;;  %9202 = vst [vmem:[#allocation32_spill] sm:$0xff] %v7797_v29 }
 0x7c2   :  { %3088 = vmatprep.subr.bf16.mxu1 %v7694_v7 }
 0x7c4   :  { %5431 = vmatpush3.bf16.msra.mxu0 %v5664_v42  ;;  %v7799_v42 = vld [vmem:[#allocation10 + $0x124] ss:$16 sps:$4 sm:$0xff]  }
 0x7c5   :  { %5432 = vmatprep.subr.bf16.mxu0 %v5665_v24  ;;  %3089 = vmatpush1.bf16.msra.mxu1 %v7696_v3 }
 0x7c6   :  { %3090 = vmatprep.subr.bf16.mxu1 %v7706_v31 }
 0x7c8   :  { %5433 = vmatpush3.bf16.msra.mxu0 %v5665_v24  ;;  %v7802_v24 = vld [vmem:[#allocation10 + $0x18c] ss:$16 sps:$4 sm:$0xff]  }
 0x7c9   :  { %5434 = vmatprep.subr.bf16.mxu0 %v5666_v36  ;;  %3091 = vmatpush1.bf16.msra.mxu1 %v7708_v6  ;;  %9203 = vst [vmem:[#allocation34_spill] sm:$0xff] %v7802_v24 }
 0x7ca   :  { %3092 = vmatprep.subr.bf16.mxu1 %v7718_v12 }
 0x7cc   :  { %5435 = vmatpush3.bf16.msra.mxu0 %v5666_v36  ;;  %v7805_v36 = vld [vmem:[#allocation10 + $0x120] ss:$16 sps:$4 sm:$0xff]  }
 0x7cd   :  { %3121 = vmatprep.subr.bf16.mxu0 %v7674_v23  ;;  %3093 = vmatpush1.bf16.msra.mxu1 %v7720_v47 }
 0x7ce   :  { %3094 = vmatprep.subr.bf16.mxu1 %v7730_v46 }
 0x7cf   :  { %5437 = vmatmul.mubr.bf16.vlgmr.msra.gmra.mxu0 %v2390_v43  ;;  %v7809_v43 = vld [vmem:[#allocation10 + $0x188] ss:$16 sps:$4 sm:$0xff]  }
 0x7d0   :  { %5440 = vmatprep.mubr.bf16.mxu0 %v2392_v9  ;;  %3122 = vmatpush1.bf16.msra.mxu0 %v7677_v34  ;;  %9204 = vst [vmem:[#allocation36_spill] sm:$0xff] %v7809_v43  ;;  %v7811_v9 = vld [vmem:[#allocation10 + $0x104] ss:$16 sps:$4 sm:$0xff]  }
 0x7d1   :  { %3123 = vmatprep.subr.bf16.mxu0 %v7686_v2  ;;  %3095 = vmatpush2.bf16.msra.mxu1 %v7732_v1 }
 0x7d2   :  { %3096 = vmatprep.subr.bf16.mxu1 %v7742_v37 }
 0x7d4   :  { %3124 = vmatpush1.bf16.msra.mxu0 %v7689_v4 }
 0x7d5   :  { %3125 = vmatprep.subr.bf16.mxu0 %v7698_v53  ;;  %3097 = vmatpush2.bf16.msra.mxu1 %v7744_v15 }
 0x7d6   :  { %3098 = vmatprep.subr.bf16.mxu1 %v7753_v51 }
 0x7d7   :  { %5441 = vmatmul.mubr.bf16.gmra.mxu0 %v2394_v39  ;;  %v7814_v39 = vld [vmem:[#allocation10 + $0x16c] ss:$16 sps:$4 sm:$0xff]  }
 0x7d8   :  { %5444 = vmatprep.mubr.bf16.mxu0 %v2396_v38  ;;  %3126 = vmatpush1.bf16.msra.mxu0 %v7701_v48  ;;  %9205 = vst [vmem:[#allocation38_spill] sm:$0xff] %v7814_v39  ;;  %v7817_v38 = vld [vmem:[#allocation10 + $0x100] ss:$16 sps:$4 sm:$0xff]  }
 0x7d9   :  { %3127 = vmatprep.subr.bf16.mxu0 %v7710_v20  ;;  %3099 = vmatpush2.bf16.msra.mxu1 %v7757_v52 }
 0x7da   :  { %3100 = vmatprep.subr.bf16.mxu1 %v7765_v56 }
 0x7dc   :  { %3128 = vmatpush1.bf16.msra.mxu0 %v7713_v5  ;;  %v9220_v5 = vld [vmem:[#allocation53_spill] sm:$0xff] }
 0x7dd   :  { %3129 = vmatprep.subr.bf16.mxu0 %v7722_v41  ;;  %3101 = vmatpush2.bf16.msra.mxu1 %v7769_v57 }
 0x7de   :  { %3102 = vmatprep.subr.bf16.mxu1 %v7777_v21 }
 0x7df   :  { %5445 = vmatmul.mubr.bf16.gmra.mxu0 %v2398_v59  ;;  %v7821_v59 = vld [vmem:[#allocation10 + $0x168] ss:$16 sps:$4 sm:$0xff]  }
 0x7e0   :  { %5448 = vmatprep.mubr.bf16.mxu0 %v2400_v49  ;;  %3130 = vmatpush1.bf16.msra.mxu0 %v7725_v22  ;;  %9206 = vst [vmem:[#allocation35_spill] sm:$0xff] %v7821_v59  ;;  %v7825_v49 = vld [vmem:[#allocation10 + $0x14c] ss:$16 sps:$4 sm:$0xff]   ;;  %v9218_v22 = vld [vmem:[#allocation49_spill] sm:$0xff] }
 0x7e1   :  { %3131 = vmatprep.subr.bf16.mxu0 %v7734_v32  ;;  %3103 = vmatpush2.bf16.msra.mxu1 %v7779_v61  ;;  %9207 = vst [vmem:[#allocation33_spill] sm:$0xff] %v7825_v49 }
 0x7e2   :  { %3104 = vmatprep.subr.bf16.mxu1 %v7786_v40 }
 0x7e4   :  { %3132 = vmatpush1.bf16.msra.mxu0 %v7737_v30 }
 0x7e5   :  { %3133 = vmatprep.subr.bf16.mxu0 %v7746_v35  ;;  %3105 = vmatpush2.bf16.msra.mxu1 %v7793_v45 }
 0x7e6   :  { %3106 = vmatprep.subr.bf16.mxu1 %v7799_v42 }
 0x7e8   :  { %3134 = vmatpush1.bf16.msra.mxu0 %v7749_v16 }
 0x7e9   :  { %3135 = vmatprep.subr.bf16.mxu0 %v7759_v54  ;;  %3107 = vmatpush2.bf16.msra.mxu1 %v7805_v36  ;;  %v9215_v54 = vld [vmem:[#allocation52_spill] sm:$0xff] }
 0x7ea   :  { %3108 = vmatprep.subr.bf16.mxu1 %v7811_v9 }
 0x7ec   :  { %3136 = vmatpush1.bf16.msra.mxu0 %v7761_v55 }
 0x7ed   :  { %3137 = vmatprep.subr.bf16.mxu0 %v7771_v58  ;;  %3109 = vmatpush2.bf16.msra.mxu1 %v7817_v38 }
 0x7f0   :  { %3138 = vmatpush2.bf16.msra.mxu0 %v7773_v60  ;;  %v9214_v60 = vld [vmem:[#allocation50_spill] sm:$0xff] }
 0x7f1   :  { %3139 = vmatprep.subr.bf16.mxu0 %v7781_v0 }
 0x7f4   :  { %3140 = vmatpush2.bf16.msra.mxu0 %v7784_v17 }
 0x7f5   :  { %3141 = vmatprep.subr.bf16.mxu0 %v7790_v44 }
 0x7f8   :  { %3142 = vmatpush2.bf16.msra.mxu0 %v7797_v29  ;;  %v7836_v29 = vld [vmem:[#allocation10 + $0x10c] ss:$16 sps:$4 sm:$0xff]  }
 0x7f9   :  { %3143 = vmatprep.subr.bf16.mxu0 %v7802_v24  ;;  %v7832_v24 = vld [vmem:[#allocation10 + $0x12c] ss:$16 sps:$4 sm:$0xff]   ;;  %9211 = vst [vmem:[#allocation42_spill] sm:$0xff] %v7836_v29 }
 0x7fa   :  { %9209 = vst [vmem:[#allocation37_spill] sm:$0xff] %v7832_v24 }
 0x7fc   :  { %3144 = vmatpush2.bf16.msra.mxu0 %v7809_v43  ;;  %v7834_v43 = vld [vmem:[#allocation10 + $0x128] ss:$16 sps:$4 sm:$0xff]  }
 0x7fd   :  { %3145 = vmatprep.subr.bf16.mxu0 %v7814_v39  ;;  %9210 = vst [vmem:[#allocation40_spill] sm:$0xff] %v7834_v43  ;;  %v7840_v39 = vld [vmem:[#allocation10 + $0x108] ss:$16 sps:$4 sm:$0xff]  }
 0x7fe   :  { %9212 = vst [vmem:[#allocation44_spill] sm:$0xff] %v7840_v39 }
 0x800   :  { %3146 = vmatpush2.bf16.msra.mxu0 %v7821_v59 }
 0x801   :  { %3147 = vmatprep.subr.bf16.mxu0 %v7825_v49 }
 0x804   :  { %3148 = vmatpush2.bf16.msra.mxu0 %v7828_v19  ;;  %v9213_v19 = vld [vmem:[#allocation48_spill] sm:$0xff] }
 0x805   :  { %3149 = vmatprep.subr.bf16.mxu0 %v7832_v24 }
 0x808   :  { %3150 = vmatpush2.bf16.msra.mxu0 %v7834_v43 }
 0x809   :  { %3151 = vmatprep.subr.bf16.mxu0 %v7836_v29 }
 0x80c   :  { %3152 = vmatpush2.bf16.msra.mxu0 %v7840_v39  ;;  %v9216_v39 = vld [vmem:[#allocation54_spill] sm:$0xff] }
 0x80d   :  { %3660 = vmatprep.subr.bf16.mxu0 %v7652_v11 }
 0x86f   :  { %v2245_v49 = vpop.f32.mrf.mxu0  ;;  %v2288_v44 = vpop.f32.mrf.mxu1 }
 0x870   :  { %v2297_v59 = vadd.f32 %v2245_v49, %v9213_v19  ;;  %v9217_v19 = vld [vmem:[#allocation51_spill] sm:$0xff] }
 0x871   :  { %v2247_v17 = vpop.f32.mrf.mxu0  ;;  %v2290_v43 = vpop.f32.mrf.mxu1 }
 0x872   :  { %v5158_v0 = vmul.f32 -1.442695, %v2297_v59  ;;  %v2298_v58 = vadd.f32 %v2247_v17, %v9214_v60  ;;  %v2300_v49 = vadd.f32 %v2290_v43, %v9217_v19  ;;  %v2299_v60 = vadd.f32 %v2288_v44, %v9218_v22 }
 0x873   :  { %v2249_v55 = vpop.f32.mrf.mxu0  ;;  %v2292_v11 = vpop.f32.mrf.mxu1 }
 0x874   :  { %6018 = vpow2.f32 %v5158_v0  ;;  %v5160_v24 = vmul.f32 -1.442695, %v2298_v58  ;;  %v2301_v16 = vadd.f32 %v2249_v55, %v9215_v54  ;;  %v5162_v17 = vmul.f32 -1.442695, %v2300_v49  ;;  %v9219_v0 = vld [vmem:[#allocation55_spill] sm:$0xff] }
 0x875   :  { %v2251_v35 = vpop.f32.mrf.mxu0  ;;  %v2294_v59 = vpop.f32.mrf.mxu1  ;;  %v2303_v54 = vadd.f32 %v2292_v11, %v9220_v5 }
 0x876   :  { %6020 = vpow2.f32 %v5160_v24  ;;  %v5159_v29 = vmul.f32 -1.442695, %v2301_v16  ;;  %v2302_v30 = vadd.f32 %v2251_v35, %v9216_v39  ;;  %v2304_v58 = vadd.f32 %v2294_v59, %v9219_v0 }
 0x878   :  { %6022 = vpow2.f32 %v5159_v29  ;;  %v5161_v32 = vmul.f32 -1.442695, %v2302_v30  ;;  %v5163_v35 = vmul.f32 -1.442695, %v2304_v58 }
 0x87a   :  { %6024 = vpow2.f32 %v5161_v32 }
 0x87b   :  { %6026 = vtanh.f32 %v2299_v60 }
 0x87c   :  { %6028 = vpow2.f32 %v5162_v17 }
 0x881   :  { %v6019_v41 = vpop.eup %6018 }
 0x882   :  { %v2311_v55 = vadd.f32 1.0, %v6019_v41 }
 0x883   :  { %v6021_v16 = vpop.eup %6020 }
 0x884   :  { %6030 = vrcp.f32 %v2311_v55  ;;  %v2323_v29 = vadd.f32 1.0, %v6021_v16 }
 0x885   :  { %v6023_v30 = vpop.eup %6022  ;;  %6032 = vtanh.f32 %v2303_v54 }
 0x886   :  { %6034 = vrcp.f32 %v2323_v29  ;;  %v2312_v32 = vadd.f32 1.0, %v6023_v30 }
 0x887   :  { %v6025_v24 = vpop.eup %6024  ;;  %6036 = vpow2.f32 %v5163_v35  ;;  %v2356_v35 = vpop.permute.xlu0 %2355 }
 0x888   :  { %6038 = vrcp.f32 %v2312_v32  ;;  %v2324_v22 = vadd.f32 1.0, %v6025_v24  ;;  %v6027_v44 = vpop.eup %6026 }
 0x889   :  { %v6029_v43 = vpop.eup %6028 }
 0x88a   :  { %6040 = vrcp.f32 %v2324_v22  ;;  %v2337_v19 = vadd.f32 1.0, %v6029_v43  ;;  %v2361_v22 = vpop.permute.xlu1 %2360 }
 0x88c   :  { %6042 = vrcp.f32 %v2337_v19 }
 0x891   :  { %v6031_v39 = vpop.eup %6030 }
 0x892   :  { %v6033_v11 = vpop.eup %6032  ;;  %v2345_v5 = vmul.f32 %v6031_v39, %v6027_v44 }
 0x893   :  { %v6035_v41 = vpop.eup %6034 }
 0x894   :  { %v6037_v49 = vpop.eup %6036  ;;  %v2343_v59 = vmul.f32 %v6035_v41, %v7615_v33 }
 0x895   :  { %v6039_v60 = vpop.eup %6038  ;;  %v2338_v54 = vadd.f32 1.0, %v6037_v49 }
 0x896   :  { %v2347_v17 = vadd.f32 %v2345_v5, %v2343_v59  ;;  %v2346_v0 = vmul.f32 %v6039_v60, %v6033_v11 }
 0x897   :  { %v6041_v58 = vpop.eup %6040 }
 0x898   :  { %6044 = vtanh.f32 %v2347_v17  ;;  %v2382_v55 = vsub.f32 %v2347_v17, %v7615_v33  ;;  %v2344_v16 = vmul.f32 %v6041_v58, %v7618_v10 }
 0x899   :  { %6046 = vrcp.f32 %v2338_v54  ;;  %v6043_v39 = vpop.eup %6042 }
 0x89a   :  { %v2348_v29 = vadd.f32 %v2346_v0, %v2344_v16  ;;  %v2384_v30 = vmul.f32 %v2382_v55, %v2356_v35 }
 0x89c   :  { %6048 = vtanh.f32 %v2348_v29  ;;  %v2383_v32 = vsub.f32 %v2348_v29, %v7618_v10  ;;  %v7858_v24 = vadd.f32 %v2384_v30, %v7615_v33 }
 0x89e   :  { %v2385_v44 = vmul.f32 %v2383_v32, %v2361_v22 }
 0x8a0   :  { %v7861_v43 = vadd.f32 %v2385_v44, %v7618_v10  ;;  %v5198_v10 = vld [vmem:[%s8942_s7] ss:$0 sm:$0xff] }
 0x8a1   :  { %v2735_v29 = vpack.c.bf16 %v5198_v10, %v5198_v10 }
 0x8a5   :  { %v6045_v11 = vpop.eup %6044 }
 0x8a6   :  { %v2351_v5 = vmul.f32 %v6045_v11, %v6043_v39  ;;  %v6047_v41 = vpop.eup %6046 }
 0x8a8   :  { %v2376_v19 = vsub.f32 %v2351_v5, %v7623_v62  ;;  %v2363_v60 = vmul.f32 %v2356_v35, %v2351_v5 }
 0x8a9   :  { %v6049_v49 = vpop.eup %6048 }
 0x8aa   :  { %v2352_v59 = vmul.f32 %v6049_v49, %v6047_v41  ;;  %v2378_v58 = vmul.f32 %v2376_v19, %v2356_v35 }
 0x8ac   :  { %v2364_v17 = vmul.f32 %v2361_v22, %v2352_v59  ;;  %v2377_v0 = vsub.f32 %v2352_v59, %v7626_v8  ;;  %v2380_v55 = vadd.f32 %v2378_v58, %v7623_v62  ;;  %v5770_v62 = vld [vmem:[%s8946_s11 + $0x38] sm:$0xff]  }
 0x8ae   :  { %v5363_v33 = vpack.c.bf16 %v2364_v17, %v2363_v60  ;;  %v2379_v54 = vmul.f32 %v2377_v0, %v2361_v22 }
 0x8b0   :  { %5364 = vst [vmem:[#allocation3 + $0x38] sm:$0xff] %v5363_v33   ;;  %v2381_v16 = vadd.f32 %v2379_v54, %v7626_v8  ;;  %v8992_v8 = vmov 0.0  }
 0x8b1   :  { %5452 = vmatprep.subr.bf16.mxu1 %v8992_v8 }
 0x8b2   :  { %v2736_v30 = vpack.c.bf16 %v2381_v16, %v2380_v55 }
 0x8b4   :  { %3110 = vmatprep.mubr.bf16.mxu1 %v2736_v30 }
 0x8b5   :  { %3111 = vmatmul.mubr.bf16.vlgmr.msra.gmra.mxu1 %v2735_v29 }
 0x8b6   :  { %5453 = vmatpush3.bf16.msra.mxu1 %v5770_v62  ;;  %5468 = vmatprep.mubr.msk.bf16.mxu1 %vm6617_vm0, %v8992_v8 }
 0x8b7   :  { %v2402_v32 = vld [vmem:[#allocation3 + $0x38] sm:$0xff]   ;;  %5454 = vmatprep.subr.bf16.mxu1 %v8992_v8 }
 0x8b8   :  { %5449 = vmatmul.mubr.bf16.gmra.mxu0 %v2402_v32 }
 0x8b9   :  { %3153 = vmatprep.mubr.bf16.mxu0 %v2736_v30 }
 0x8c0   :  { %3154 = vmatmul.mubr.bf16.vlgmr.msra.gmra.mxu0 %v2735_v29 }
 0x8c1   :  { %3661 = vmatpush1.bf16.msra.mxu0 %v7654_v50  ;;  %v5771_v50 = vld [vmem:[%s8946_s11 + $0x30] sm:$0xff]  }
 0x8c2   :  { %3662 = vmatprep.subr.bf16.mxu0 %v7658_v63  ;;  %5455 = vmatpush3.bf16.msra.mxu1 %v5771_v50  ;;  %v5772_v63 = vld [vmem:[%s8946_s11 + $0x28] sm:$0xff]  }
 0x8c3   :  { %5456 = vmatprep.subr.bf16.mxu1 %v8992_v8 }
 0x8c5   :  { %3663 = vmatpush1.bf16.msra.mxu0 %v7660_v28  ;;  %v5773_v28 = vld [vmem:[%s8946_s11 + $0x20] sm:$0xff]  }
 0x8c6   :  { %3664 = vmatprep.subr.bf16.mxu0 %v7664_v27  ;;  %5457 = vmatpush3.bf16.msra.mxu1 %v5772_v63  ;;  %v5774_v27 = vld [vmem:[%s8946_s11 + $0x18] sm:$0xff]  }
 0x8c7   :  { %5458 = vmatprep.subr.bf16.mxu1 %v8992_v8 }
 0x8c9   :  { %3665 = vmatpush1.bf16.msra.mxu0 %v7666_v25  ;;  %v5775_v25 = vld [vmem:[%s8946_s11 + $0x10] sm:$0xff]  }
 0x8ca   :  { %3666 = vmatprep.subr.bf16.mxu0 %v7670_v26  ;;  %5459 = vmatpush3.bf16.msra.mxu1 %v5773_v28  ;;  %v5776_v26 = vld [vmem:[%s8946_s11 + $0x8] sm:$0xff]  }
 0x8cb   :  { %5460 = vmatprep.subr.bf16.mxu1 %v8992_v8 }
 0x8cd   :  { %3667 = vmatpush1.bf16.msra.mxu0 %v7672_v18  ;;  %v5777_v18 = vld [vmem:[%s8946_s11] sm:$0xff]  }
 0x8ce   :  { %3668 = vmatprep.subr.bf16.mxu0 %v7682_v13  ;;  %5461 = vmatpush3.bf16.msra.mxu1 %v5774_v27  ;;  %v7937_v13 = vpop.f32.mrf.mxu0 }
 0x8cf   :  { %5462 = vmatprep.subr.bf16.mxu1 %v8992_v8  ;;  %9221 = vst [vmem:[#allocation46_spill] sm:$0xff] %v7937_v13 }
 0x8d1   :  { %3669 = vmatpush1.bf16.msra.mxu0 %v7684_v14  ;;  %v7939_v14 = vpop.f32.mrf.mxu0 }
 0x8d2   :  { %3670 = vmatprep.subr.bf16.mxu0 %v7694_v7  ;;  %5463 = vmatpush3.bf16.msra.mxu1 %v5775_v25  ;;  %9222 = vst [vmem:[#allocation43_spill] sm:$0xff] %v7939_v14 }
 0x8d3   :  { %5464 = vmatprep.subr.bf16.mxu1 %v8992_v8  ;;  %v7941_v7 = vpop.f32.mrf.mxu0 }
 0x8d4   :  { %9223 = vst [vmem:[#allocation41_spill] sm:$0xff] %v7941_v7 }
 0x8d5   :  { %3671 = vmatpush1.bf16.msra.mxu0 %v7696_v3  ;;  %v7943_v3 = vpop.f32.mrf.mxu0 }
 0x8d6   :  { %3672 = vmatprep.subr.bf16.mxu0 %v7706_v31  ;;  %5465 = vmatpush3.bf16.msra.mxu1 %v5776_v26  ;;  %9224 = vst [vmem:[#allocation47_spill] sm:$0xff] %v7943_v3 }
 0x8d7   :  { %5466 = vmatprep.subr.bf16.mxu1 %v8992_v8  ;;  %v7945_v31 = vpop.f32.mrf.mxu0 }
 0x8d8   :  { %9225 = vst [vmem:[#allocation45_spill] sm:$0xff] %v7945_v31 }
 0x8d9   :  { %3673 = vmatpush1.bf16.msra.mxu0 %v7708_v6  ;;  %v7947_v6 = vpop.f32.mrf.mxu0 }
 0x8da   :  { %3674 = vmatprep.subr.bf16.mxu0 %v7718_v12  ;;  %5467 = vmatpush3.bf16.msra.mxu1 %v5777_v18  ;;  %9226 = vst [vmem:[#allocation48_spill] sm:$0xff] %v7947_v6 }
 0x8db   :  { %3703 = vmatprep.subr.bf16.mxu1 %v7674_v23  ;;  %v7949_v12 = vpop.f32.mrf.mxu0  ;;  %v2710_v23 = vld [vmem:[%s8944_s9] sm:$0xf] }
 0x8dc   :  { %9227 = vst [vmem:[#allocation50_spill] sm:$0xff] %v7949_v12 }
 0x8dd   :  { %3675 = vmatpush1.bf16.msra.mxu0 %v7720_v47  ;;  %v7951_v47 = vpop.f32.mrf.mxu0 }
 0x8de   :  { %3676 = vmatprep.subr.bf16.mxu0 %v7730_v46  ;;  %9228 = vst [vmem:[#allocation52_spill] sm:$0xff] %v7951_v47 }
 0x8df   :  { %v7953_v46 = vpop.f32.mrf.mxu0 }
 0x8e0   :  { %9229 = vst [vmem:[#allocation54_spill] sm:$0xff] %v7953_v46 }
 0x8e1   :  { %3677 = vmatpush2.bf16.msra.mxu0 %v7732_v1  ;;  %v7958_v1 = vpop.f32.mrf.mxu0 }
 0x8e2   :  { %3678 = vmatprep.subr.bf16.mxu0 %v7742_v37  ;;  %9230 = vst [vmem:[#allocation51_spill] sm:$0xff] %v7958_v1  ;;  %v9231_v37 = vld [vmem:[#allocation16_spill] sm:$0xff] }
 0x8e5   :  { %3679 = vmatpush2.bf16.msra.mxu0 %v7744_v15  ;;  %v7961_v15 = vrot.slane %v2710_v23, %v9231_v37 }
 0x8e6   :  { %3680 = vmatprep.subr.bf16.mxu0 %v7753_v51  ;;  %v7963_v51 = vpop.f32.mrf.mxu0 }
 0x8e7   :  { %9232 = vst [vmem:[#allocation49_spill] sm:$0xff] %v7963_v51 }
 0x8e9   :  { %3681 = vmatpush2.bf16.msra.mxu0 %v7757_v52  ;;  %v9233_v52 = vld [vmem:[#allocation15_spill] sm:$0xff] }
 0x8ea   :  { %3682 = vmatprep.subr.bf16.mxu0 %v7765_v56  ;;  %v9234_v56 = vsub.s32 1, %v9233_v52  ;;  %v9240_v59 = vsub.s32 2, %v9233_v52  ;;  %v9241_v17 = vsub.s32 3, %v9233_v52 }
 0x8ec   :  { %v7985_v60 = vrot.slane %v2710_v23, %v9240_v59  ;;  %v7989_v0 = vrot.slane %v2710_v23, %v9241_v17 }
 0x8ed   :  { %3683 = vmatpush2.bf16.msra.mxu0 %v7769_v57  ;;  %v7967_v57 = vrot.slane %v2710_v23, %v9234_v56 }
 0x8ee   :  { %3684 = vmatprep.subr.bf16.mxu0 %v7777_v21  ;;  %9242 = vst [vmem:[#allocation58_spill] sm:$0xff] %v7989_v0 }
 0x8f1   :  { %3685 = vmatpush2.bf16.msra.mxu0 %v7779_v61 }
 0x8f2   :  { %3686 = vmatprep.subr.bf16.mxu0 %v7786_v40 }
 0x8f5   :  { %3687 = vmatpush2.bf16.msra.mxu0 %v7793_v45  ;;  %v7970_v45 = vpop.f32.mrf.mxu0 }
 0x8f6   :  { %3688 = vmatprep.subr.bf16.mxu0 %v7799_v42  ;;  %9235 = vst [vmem:[#allocation55_spill] sm:$0xff] %v7970_v45 }
 0x8f9   :  { %3689 = vmatpush2.bf16.msra.mxu0 %v7805_v36 }
 0x8fa   :  { %3690 = vmatprep.subr.bf16.mxu0 %v7811_v9 }
 0x8fd   :  { %3691 = vmatpush2.bf16.msra.mxu0 %v7817_v38 }
 0x8fe   :  { %5472 = vmatprep.subr.bf16.mxu0 %v8992_v8 }
 0x975   :  { %v3112_v21 = vpop.f32.mrf.mxu1 }
 0x976   :  { %v3113_v61 = vadd.f32 %v3112_v21, %v7961_v15 }
 0x977   :  { %v3114_v40 = vpop.f32.mrf.mxu1 }
 0x978   :  { %v5263_v42 = vmul.f32 -1.442695, %v3113_v61  ;;  %v3115_v36 = vadd.f32 %v3114_v40, %v7967_v57  ;;  %v7974_v22 = vpop.f32.mrf.mxu0 }
 0x979   :  { %v3116_v9 = vpop.f32.mrf.mxu1  ;;  %9236 = vst [vmem:[#allocation53_spill] sm:$0xff] %v7974_v22 }
 0x97a   :  { %6050 = vpow2.f32 %v5263_v42  ;;  %v5265_v38 = vmul.f32 -1.442695, %v3115_v36  ;;  %v3117_v35 = vadd.f32 %v3116_v9, %v7961_v15  ;;  %v7977_v5 = vpop.f32.mrf.mxu0 }
 0x97b   :  { %v3118_v44 = vpop.f32.mrf.mxu1  ;;  %9237 = vst [vmem:[#allocation15_spill] sm:$0xff] %v7977_v5 }
 0x97c   :  { %6052 = vpow2.f32 %v5265_v38  ;;  %v5264_v39 = vmul.f32 -1.442695, %v3117_v35  ;;  %v3119_v11 = vadd.f32 %v3118_v44, %v7967_v57  ;;  %v7979_v19 = vpop.f32.mrf.mxu0 }
 0x97d   :  { %9238 = vst [vmem:[#allocation56_spill] sm:$0xff] %v7979_v19 }
 0x97e   :  { %6054 = vpow2.f32 %v5264_v39  ;;  %v5266_v41 = vmul.f32 -1.442695, %v3119_v11  ;;  %v7981_v49 = vpop.f32.mrf.mxu0 }
 0x97f   :  { %9239 = vst [vmem:[#allocation57_spill] sm:$0xff] %v7981_v49 }
 0x980   :  { %6056 = vpow2.f32 %v5266_v41  ;;  %v3155_v58 = vpop.f32.mrf.mxu0 }
 0x981   :  { %v3156_v54 = vadd.f32 %v3155_v58, %v7985_v60 }
 0x982   :  { %v3157_v33 = vpop.f32.mrf.mxu0 }
 0x983   :  { %v3158_v10 = vadd.f32 %v3157_v33, %v7989_v0  ;;  %6058 = vtanh.f32 %v3156_v54 }
 0x984   :  { %v3159_v55 = vpop.f32.mrf.mxu0 }
 0x985   :  { %v5267_v29 = vmul.f32 -1.442695, %v3158_v10  ;;  %v3160_v27 = vadd.f32 %v3159_v55, %v7985_v60 }
 0x986   :  { %v3161_v32 = vpop.f32.mrf.mxu0 }
 0x987   :  { %v6051_v16 = vpop.eup %6050  ;;  %v3162_v50 = vadd.f32 %v3161_v32, %v7989_v0  ;;  %v9246_v32 = vld [vmem:[#allocation17_spill] sm:$0xff] }
 0x988   :  { %v3170_v30 = vadd.f32 1.0, %v6051_v16 }
 0x989   :  { %v6053_v62 = vpop.eup %6052  ;;  %v5268_v25 = vmul.f32 -1.442695, %v3162_v50  ;;  %v9254_v50 = vld [vmem:[#allocation25_spill] sm:$0xff] }
 0x98a   :  { %6060 = vrcp.f32 %v3170_v30  ;;  %v3182_v63 = vadd.f32 1.0, %v6053_v62  ;;  %v9245_v30 = vld [vmem:[#allocation19_spill] sm:$0xff] }
 0x98b   :  { %v6055_v28 = vpop.eup %6054  ;;  %6062 = vpow2.f32 %v5267_v29  ;;  %v9244_v29 = vld [vmem:[#allocation22_spill] sm:$0xff]  ;;  %v9247_v62 = vld [vmem:[#allocation23_spill] sm:$0xff] }
 0x98c   :  { %6064 = vrcp.f32 %v3182_v63  ;;  %v3171_v26 = vadd.f32 1.0, %v6055_v28  ;;  %v9255_v63 = vld [vmem:[#allocation31_spill] sm:$0xff]  ;;  %v9256_v28 = vld [vmem:[#allocation29_spill] sm:$0xff] }
 0x98d   :  { %v6057_v18 = vpop.eup %6056  ;;  %6066 = vpow2.f32 %v5268_v25  ;;  %v9258_v25 = vld [vmem:[#allocation34_spill] sm:$0xff] }
 0x98e   :  { %6068 = vrcp.f32 %v3171_v26  ;;  %v3183_v23 = vadd.f32 1.0, %v6057_v18  ;;  %v9259_v26 = vld [vmem:[#allocation36_spill] sm:$0xff]  ;;  %v9260_v18 = vld [vmem:[#allocation38_spill] sm:$0xff] }
 0x98f   :  { %6070 = vtanh.f32 %v3160_v27  ;;  %v9257_v27 = vld [vmem:[#allocation32_spill] sm:$0xff] }
 0x990   :  { %6072 = vrcp.f32 %v3183_v23  ;;  %v6059_v52 = vpop.eup %6058  ;;  %v9261_v23 = vld [vmem:[#allocation35_spill] sm:$0xff] }
 0x997   :  { %v6061_v56 = vpop.eup %6060 }
 0x998   :  { %v6063_v21 = vpop.eup %6062  ;;  %v3204_v36 = vmul.f32 %v6061_v56, %v6059_v52  ;;  %v9262_v52 = vld [vmem:[#allocation33_spill] sm:$0xff]  ;;  %v9263_v56 = vld [vmem:[#allocation39_spill] sm:$0xff] }
 0x999   :  { %v6065_v61 = vpop.eup %6064  ;;  %v3196_v38 = vadd.f32 1.0, %v6063_v21  ;;  %v9264_v21 = vld [vmem:[#allocation37_spill] sm:$0xff] }
 0x99a   :  { %v6067_v40 = vpop.eup %6066  ;;  %v3202_v42 = vmul.f32 %v6065_v61, %v7858_v24  ;;  %v9265_v61 = vld [vmem:[#allocation40_spill] sm:$0xff] }
 0x99b   :  { %v6069_v9 = vpop.eup %6068  ;;  %v3197_v11 = vadd.f32 1.0, %v6067_v40  ;;  %6074 = vrcp.f32 %v3196_v38  ;;  %v9266_v40 = vld [vmem:[#allocation42_spill] sm:$0xff] }
 0x99c   :  { %v6071_v35 = vpop.eup %6070  ;;  %v7996_v44 = vadd.f32 %v3204_v36, %v3202_v42  ;;  %v9267_v42 = vld [vmem:[#allocation44_spill] sm:$0xff]  ;;  %v9268_v36 = vld [vmem:[#allocation18_spill] sm:$0xff] }
 0x99d   :  { %v6073_v39 = vpop.eup %6072  ;;  %v3205_v59 = vmul.f32 %v6071_v35, %v6069_v9  ;;  %v5269_v9 = vld [vmem:[%s8947_s12] ss:$0 sm:$0xff] }
 0x99e   :  { %v3203_v41 = vmul.f32 %v6073_v39, %v7861_v43  ;;  %6076 = vtanh.f32 %v7996_v44  ;;  %v9243_v43 = vld [vmem:[#allocation20_spill] sm:$0xff] }
 0x99f   :  { %6078 = vrcp.f32 %v3197_v11 }
 0x9a0   :  { %v8000_v17 = vadd.f32 %v3205_v59, %v3203_v41 }
 0x9a2   :  { %6080 = vtanh.f32 %v8000_v17 }
 0x9a8   :  { %v6075_v24 = vpop.eup %6074 }
 0x9ab   :  { %v6077_v58 = vpop.eup %6076 }
 0x9ac   :  { %v6079_v33 = vpop.eup %6078  ;;  %v3210_v10 = vmul.f32 %v6077_v58, %v6075_v24 }
 0x9af   :  { %v6081_v54 = vpop.eup %6080 }
 0x9b0   :  { %v3211_v55 = vmul.f32 %v6081_v54, %v6079_v33 }
 0x9b2   :  { %v3212_v16 = vpack.c.bf16 %v3211_v55, %v3210_v10 }
 0x9b4   :  { %5469 = vmatmul.mubr.bf16.vlgmr.msra.gmra.mxu1 %v3212_v16  ;;  %3692 = vmatprep.mubr.bf16.mxu0 %v3212_v16 }
 0x9b5   :  { %3735 = vmatprep.mubr.bf16.mxu1 %v3212_v16  ;;  %3704 = vmatpush1.bf16.msra.mxu1 %v7677_v34  ;;  %v9248_v34 = vld [vmem:[#allocation21_spill] sm:$0xff] }
 0x9b6   :  { %3705 = vmatprep.subr.bf16.mxu1 %v7686_v2  ;;  %v9249_v2 = vld [vmem:[#allocation24_spill] sm:$0xff] }
 0x9b9   :  { %3706 = vmatpush1.bf16.msra.mxu1 %v7689_v4  ;;  %v9250_v4 = vld [vmem:[#allocation26_spill] sm:$0xff] }
 0x9ba   :  { %3707 = vmatprep.subr.bf16.mxu1 %v7698_v53  ;;  %v9251_v53 = vld [vmem:[#allocation28_spill] sm:$0xff] }
 0x9bd   :  { %3708 = vmatpush1.bf16.msra.mxu1 %v7701_v48  ;;  %v9252_v48 = vld [vmem:[#allocation30_spill] sm:$0xff] }
 0x9be   :  { %3709 = vmatprep.subr.bf16.mxu1 %v7710_v20  ;;  %v9253_v20 = vld [vmem:[#allocation27_spill] sm:$0xff] }
 0x9c1   :  { %3710 = vmatpush1.bf16.msra.mxu1 %v9243_v43 }
 0x9c2   :  { %3711 = vmatprep.subr.bf16.mxu1 %v9244_v29 }
 0x9c5   :  { %3712 = vmatpush1.bf16.msra.mxu1 %v9245_v30  ;;  %v8050_v30 = vld [vmem:[%s8948_s13] ss:$0 sm:$0xff] }
 0x9c6   :  { %3713 = vmatprep.subr.bf16.mxu1 %v9246_v32 }
 0x9c9   :  { %3714 = vmatpush1.bf16.msra.mxu1 %v9247_v62 }
 0x9ca   :  { %3715 = vmatprep.subr.bf16.mxu1 %v9248_v34 }
 0x9cd   :  { %3716 = vmatpush1.bf16.msra.mxu1 %v9249_v2 }
 0x9ce   :  { %3717 = vmatprep.subr.bf16.mxu1 %v9250_v4 }
 0x9d1   :  { %3718 = vmatpush1.bf16.msra.mxu1 %v9251_v53 }
 0x9d2   :  { %3719 = vmatprep.subr.bf16.mxu1 %v9252_v48 }
 0x9d5   :  { %3720 = vmatpush2.bf16.msra.mxu1 %v9253_v20 }
 0x9d6   :  { %3721 = vmatprep.subr.bf16.mxu1 %v9254_v50 }
 0x9d9   :  { %3722 = vmatpush2.bf16.msra.mxu1 %v9255_v63 }
 0x9da   :  { %3723 = vmatprep.subr.bf16.mxu1 %v9256_v28 }
 0x9dd   :  { %3724 = vmatpush2.bf16.msra.mxu1 %v9257_v27 }
 0x9de   :  { %3725 = vmatprep.subr.bf16.mxu1 %v9258_v25 }
 0x9e1   :  { %3726 = vmatpush2.bf16.msra.mxu1 %v9259_v26 }
 0x9e2   :  { %3727 = vmatprep.subr.bf16.mxu1 %v9260_v18 }
 0x9e5   :  { %3728 = vmatpush2.bf16.msra.mxu1 %v9261_v23 }
 0x9e6   :  { %3729 = vmatprep.subr.bf16.mxu1 %v9262_v52 }
 0x9e9   :  { %3730 = vmatpush2.bf16.msra.mxu1 %v9263_v56 }
 0x9ea   :  { %3731 = vmatprep.subr.bf16.mxu1 %v9264_v21 }
 0x9ed   :  { %3732 = vmatpush2.bf16.msra.mxu1 %v9265_v61 }
 0x9ee   :  { %3733 = vmatprep.subr.bf16.mxu1 %v9266_v40 }
 0x9f1   :  { %3734 = vmatpush2.bf16.msra.mxu1 %v9267_v42 }
 0x9f2   :  { %4165 = vmatprep.subr.bf16.mxu1 %v9268_v36 }
 0xa74   :  { %v3301_v38 = vpop.f32.mrf.mxu1 }
 0xa75   :  { %v3302_v35 = vadd.f32 %v5269_v9, %v3301_v38 }
 0xa76   :  { %v5470_v39 = vpop.f32.mrf.mxu1 }
 0xa77   :  { %v3312_v11 = vadd.f32 %v3302_v35, %v7947_v6  ;;  %v3308_v41 = vadd.f32 %v3302_v35, %v7939_v14  ;;  %v3314_v59 = vadd.f32 %v7945_v31, %v3302_v35  ;;  %v3310_v58 = vadd.f32 %v7937_v13, %v3302_v35 }
 0xa78   :  { %v3304_v24 = vpop.f32.mrf.mxu1  ;;  %v3316_v10 = vadd.f32 %v3302_v35, %v7958_v1  ;;  %v3318_v16 = vadd.f32 %v7953_v46, %v3302_v35  ;;  %v3320_v29 = vadd.f32 %v3302_v35, %v7977_v5  ;;  %v3322_v28 = vadd.f32 %v7974_v22, %v3302_v35 }
 0xa79   :  { %v3305_v33 = vadd.f32 %v5269_v9, %v3304_v24  ;;  %6082 = vtanh.f32 %v3312_v11 }
 0xa7a   :  { %v5471_v54 = vpop.f32.mrf.mxu1  ;;  %6084 = vtanh.f32 %v3308_v41 }
 0xa7b   :  { %6086 = vtanh.f32 %v3314_v59  ;;  %v3311_v55 = vadd.f32 %v7941_v7, %v3305_v33  ;;  %v3313_v43 = vadd.f32 %v3305_v33, %v7951_v47  ;;  %v3315_v32 = vadd.f32 %v7949_v12, %v3305_v33 }
 0xa7c   :  { %6088 = vtanh.f32 %v3310_v58  ;;  %v3309_v4 = vadd.f32 %v3305_v33, %v7943_v3  ;;  %v3317_v20 = vadd.f32 %v3305_v33, %v7970_v45  ;;  %v3319_v26 = vadd.f32 %v7963_v51, %v3305_v33 }
 0xa7d   :  { %6090 = vtanh.f32 %v3316_v10  ;;  %v3321_v21 = vadd.f32 %v3305_v33, %v7981_v49  ;;  %v3323_v9 = vadd.f32 %v7979_v19, %v3305_v33 }
 0xa7e   :  { %6092 = vtanh.f32 %v3311_v55 }
 0xa7f   :  { %6094 = vtanh.f32 %v3318_v16 }
 0xa80   :  { %6096 = vtanh.f32 %v3313_v43 }
 0xa81   :  { %6098 = vtanh.f32 %v3320_v29 }
 0xa82   :  { %6100 = vtanh.f32 %v3315_v32  ;;  %v6618_v32 = vmov 1  }
 0xa83   :  { %6102 = vtanh.f32 %v3309_v4  ;;  %5551 = vset.pattern.permute.xlu1 %v6618_v32  ;;  %5552 = vset.pattern.permute.xlu0 %v6618_v32  ;;  %v6434_v32 = vld [vmem:[%s9112_s17 + $0x28] sm:$0xff] }
 0xa84   :  { %6104 = vtanh.f32 %v3317_v20 }
 0xa85   :  { %6106 = vtanh.f32 %v3322_v28 }
 0xa86   :  { %v6083_v62 = vpop.eup %6082  ;;  %6108 = vtanh.f32 %v3319_v26 }
 0xa87   :  { %v6085_v34 = vpop.eup %6084  ;;  %v3350_v2 = vmul.f32 %v6083_v62, %v8050_v30  ;;  %6110 = vtanh.f32 %v3321_v21 }
 0xa88   :  { %v6087_v53 = vpop.eup %6086  ;;  %v3346_v48 = vmul.f32 %v6085_v34, %v8050_v30  ;;  %6112 = vtanh.f32 %v3323_v9 }
 0xa89   :  { %v6089_v50 = vpop.eup %6088  ;;  %3370 = vadd.xlane.f32.xlu1 %v3350_v2  ;;  %v3352_v63 = vmul.f32 %v6087_v53, %v8050_v30  ;;  %v6425_v53 = vld [vmem:[%s9112_s17 + $0x20] sm:$0xff] }
 0xa8a   :  { %3362 = vadd.xlane.f32.xlu0 %v3346_v48  ;;  %v6091_v27 = vpop.eup %6090  ;;  %v3348_v25 = vmul.f32 %v6089_v50, %v8050_v30  ;;  %v5170_v48 = vadd.f32 -1.0, %v6425_v53  ;;  %v6426_v50 = vld [vmem:[%s9112_s17] sm:$0xff]  ;;  %v5171_v53 = vadd.f32 -1.0, %v6434_v32 }
 0xa8b   :  { %v6093_v18 = vpop.eup %6092  ;;  %v3354_v23 = vmul.f32 %v6091_v27, %v8050_v30  ;;  %v6428_v27 = vld [vmem:[%s9112_s17 + $0x10] sm:$0xff] }
 0xa8c   :  { %v6095_v52 = vpop.eup %6094  ;;  %v3349_v56 = vmul.f32 %v6093_v18, %v8050_v30  ;;  %v6429_v18 = vld [vmem:[%s9112_s17 + $0x40] sm:$0xff]  ;;  %v8095_v21 = vmul.f32 1e+30, %v5170_v48 }
 0xa8d   :  { %3374 = vadd.xlane.f32.xlu1 %v3352_v63  ;;  %v6097_v61 = vpop.eup %6096  ;;  %v3356_v40 = vmul.f32 %v6095_v52, %v8050_v30  ;;  %v5166_v63 = vadd.f32 -1.0, %v6426_v50  ;;  %v6430_v52 = vld [vmem:[%s9112_s17 + $0x50] sm:$0xff] }
 0xa8e   :  { %3366 = vadd.xlane.f32.xlu0 %v3348_v25  ;;  %v6099_v42 = vpop.eup %6098  ;;  %v3351_v36 = vmul.f32 %v6097_v61, %v8050_v30  ;;  %v5168_v25 = vadd.f32 -1.0, %v6428_v27  ;;  %9269 = vst [vmem:[#allocation20_spill] sm:$0xff] %v8095_v21  ;;  %v6431_v61 = vld [vmem:[%s9112_s17 + $0x60] sm:$0xff] }
 0xa8f   :  { %v6101_v38 = vpop.eup %6100  ;;  %v3358_v35 = vmul.f32 %v6099_v42, %v8050_v30 }
 0xa90   :  { %v6103_v39 = vpop.eup %6102  ;;  %v3353_v11 = vmul.f32 %v6101_v38, %v8050_v30  ;;  %v8104_v38 = vmul.f32 1e+30, %v5168_v25  ;;  %v6438_v25 = vld [vmem:[%s9112_s17 + $0x58] sm:$0xff] }
 0xa91   :  { %3378 = vadd.xlane.f32.xlu1 %v3354_v23  ;;  %v6105_v41 = vpop.eup %6104  ;;  %v3347_v59 = vmul.f32 %v6103_v39, %v8050_v30  ;;  %v5174_v23 = vadd.f32 -1.0, %v6429_v18  ;;  %v6432_v39 = vld [vmem:[%s9112_s17 + $0x8] sm:$0xff]  ;;  %v5177_v18 = vadd.f32 -1.0, %v6438_v25 }
 0xa92   :  { %3368 = vadd.xlane.f32.xlu0 %v3349_v56  ;;  %v6107_v24 = vpop.eup %6106  ;;  %v3355_v58 = vmul.f32 %v6105_v41, %v8050_v30  ;;  %v5176_v56 = vadd.f32 -1.0, %v6430_v52  ;;  %9272 = vst [vmem:[#allocation17_spill] sm:$0xff] %v8104_v38 }
 0xa93   :  { %v6109_v54 = vpop.eup %6108  ;;  %v3360_v33 = vmul.f32 %v6107_v24, %v8050_v30  ;;  %v8109_v41 = vmul.f32 1e+30, %v5174_v23  ;;  %v8184_v25 = vmul.f32 1e+30, %v5177_v18 }
 0xa94   :  { %v3357_v10 = vmul.f32 %v6109_v54, %v8050_v30  ;;  %v6111_v55 = vpop.eup %6110 }
 0xa95   :  { %3382 = vadd.xlane.f32.xlu1 %v3356_v40  ;;  %v3359_v16 = vmul.f32 %v6111_v55, %v8050_v30  ;;  %v6113_v43 = vpop.eup %6112  ;;  %v5178_v40 = vadd.f32 -1.0, %v6431_v61  ;;  %9273 = vst [vmem:[#allocation23_spill] sm:$0xff] %v8109_v41  ;;  %9282 = vst [vmem:[#allocation29_spill] sm:$0xff] %v8184_v25 }
 0xa96   :  { %3372 = vadd.xlane.f32.xlu0 %v3351_v36  ;;  %v3361_v29 = vmul.f32 %v6113_v43, %v8050_v30  ;;  %v6427_v30 = vld [vmem:[%s9112_s17 + $0x30] sm:$0xff]  ;;  %v8100_v36 = vmul.f32 1e+30, %v5166_v63 }
 0xa97   :  { %v5172_v28 = vadd.f32 -1.0, %v6427_v30  ;;  %v8113_v24 = vmul.f32 1e+30, %v5178_v40 }
 0xa98   :  { %9270 = vst [vmem:[#allocation22_spill] sm:$0xff] %v8100_v36 }
 0xa99   :  { %3386 = vadd.xlane.f32.xlu1 %v3358_v35  ;;  %v8102_v9 = vmul.f32 1e+30, %v5172_v28  ;;  %9275 = vst [vmem:[#allocation24_spill] sm:$0xff] %v8113_v24  ;;  %v6437_v28 = vld [vmem:[%s9112_s17 + $0x48] sm:$0xff] }
 0xa9a   :  { %3376 = vadd.xlane.f32.xlu0 %v3353_v11  ;;  %v5167_v11 = vadd.f32 -1.0, %v6432_v39  ;;  %v5175_v27 = vadd.f32 -1.0, %v6437_v28  ;;  %v8166_v39 = vmul.f32 1e+30, %v5171_v53 }
 0xa9b   :  { %9271 = vst [vmem:[#allocation19_spill] sm:$0xff] %v8102_v9 }
 0xa9c   :  { %v8136_v50 = vmul.f32 1e+30, %v5167_v11  ;;  %9278 = vst [vmem:[#allocation30_spill] sm:$0xff] %v8166_v39 }
 0xa9d   :  { %3364 = vadd.xlane.f32.xlu1 %v3347_v59  ;;  %v8111_v59 = vmul.f32 1e+30, %v5176_v56 }
 0xa9e   :  { %3380 = vadd.xlane.f32.xlu0 %v3355_v58  ;;  %v6433_v58 = vld [vmem:[%s9112_s17 + $0x70] sm:$0xff]  ;;  %9276 = vst [vmem:[#allocation26_spill] sm:$0xff] %v8136_v50 }
 0xa9f   :  { %9274 = vst [vmem:[#allocation21_spill] sm:$0xff] %v8111_v59  ;;  %v5180_v54 = vadd.f32 -1.0, %v6433_v58 }
 0xaa1   :  { %3390 = vadd.xlane.f32.xlu1 %v3360_v33  ;;  %v8147_v30 = vmul.f32 1e+30, %v5180_v54  ;;  %v6439_v54 = vld [vmem:[%s9112_s17 + $0x68] sm:$0xff] }
 0xaa2   :  { %3384 = vadd.xlane.f32.xlu0 %v3357_v10  ;;  %v5179_v32 = vadd.f32 -1.0, %v6439_v54  ;;  %v6440_v54 = vld [vmem:[%s9112_s17 + $0x78] sm:$0xff] }
 0xaa3   :  { %9277 = vst [vmem:[#allocation28_spill] sm:$0xff] %v8147_v30  ;;  %v5181_v8 = vadd.f32 -1.0, %v6440_v54 }
 0xaa6   :  { %3388 = vadd.xlane.f32.xlu0 %v3359_v16 }
 0xaaa   :  { %3392 = vadd.xlane.f32.xlu0 %v3361_v29 }
 0xb12   :  { %v3371_v62 = vpop.xlane.xlu1 %3370 }
 0xb13   :  { %v3363_v34 = vpop.xlane.xlu0 %3362  ;;  %v8119_v33 = vadd.f32 %v3371_v62, %v8095_v21  ;;  %v6435_v62 = vld [vmem:[%s9112_s17 + $0x38] sm:$0xff] }
 0xb14   :  { %v8122_v55 = vadd.f32 %v3363_v34, %v8100_v36  ;;  %v5173_v48 = vadd.f32 -1.0, %v6435_v62  ;;  %v6436_v34 = vld [vmem:[%s9112_s17 + $0x18] sm:$0xff] }
 0xb15   :  { %v3413_v23 = vsel %vm3410_vm1, %v8119_v33, -inf }
 0xb16   :  { %v3375_v2 = vpop.xlane.xlu1 %3374  ;;  %v3411_v52 = vsel %vm3410_vm1, %v8122_v55, -inf  ;;  %v8168_v11 = vmul.f32 1e+30, %v5173_v48 }
 0xb17   :  { %v3367_v4 = vpop.xlane.xlu0 %3366  ;;  %v8125_v16 = vadd.f32 %v3375_v2, %v8102_v9  ;;  %v5169_v2 = vadd.f32 -1.0, %v6436_v34  ;;  %v3414_v28 = vmax.f32 %v3411_v52, %v3413_v23 }
 0xb18   :  { %v8128_v43 = vadd.f32 %v3367_v4, %v8104_v38  ;;  %9279 = vst [vmem:[#allocation27_spill] sm:$0xff] %v8168_v11 }
 0xb19   :  { %v3415_v56 = vsel %vm3410_vm1, %v8125_v16, -inf  ;;  %v8170_v58 = vmul.f32 1e+30, %v5169_v2 }
 0xb1a   :  { %v3379_v20 = vpop.xlane.xlu1 %3378  ;;  %v3412_v61 = vsel %vm3410_vm1, %v8128_v43, -inf }
 0xb1b   :  { %v8087_v26 = vpop.xlane.xlu0 %3368  ;;  %v8142_v4 = vadd.f32 %v3379_v20, %v8109_v41  ;;  %9280 = vst [vmem:[#allocation25_spill] sm:$0xff] %v8170_v58  ;;  %v3416_v53 = vmax.f32 %v3412_v61, %v3415_v56  ;;  %v8194_v56 = vmul.f32 1e+30, %v5179_v32 }
 0xb1c   :  { %v3397_v18 = vadd.f32 %v8087_v26, %v8170_v58 }
 0xb1d   :  { %v3417_v62 = vsel %vm3410_vm1, %v8142_v4, -inf  ;;  %9283 = vst [vmem:[#allocation32_spill] sm:$0xff] %v8194_v56 }
 0xb1e   :  { %v3383_v42 = vpop.xlane.xlu1 %3382 }
 0xb1f   :  { %v3373_v35 = vpop.xlane.xlu0 %3372  ;;  %v8145_v63 = vadd.f32 %v3383_v42, %v8111_v59  ;;  %v3418_v59 = vmax.f32 %v3414_v28, %v3417_v62  ;;  %v3427_v28 = vsel %vm3410_vm1, %v3397_v18, -inf }
 0xb20   :  { %v3399_v52 = vadd.f32 %v3373_v35, %v8166_v39 }
 0xb21   :  { %v3419_v34 = vsel %vm3410_vm1, %v8145_v63, -inf }
 0xb22   :  { %v3387_v10 = vpop.xlane.xlu1 %3386  ;;  %v3420_v23 = vmax.f32 %v3416_v53, %v3419_v34  ;;  %v8205_v34 = vmul.f32 1e+30, %v5181_v8 }
 0xb23   :  { %v3377_v29 = vpop.xlane.xlu0 %3376  ;;  %v8164_v40 = vadd.f32 %v3387_v10, %v8113_v24  ;;  %v8179_v10 = vmul.f32 1e+30, %v5175_v27 }
 0xb25   :  { %9281 = vst [vmem:[#allocation31_spill] sm:$0xff] %v8179_v10  ;;  %v3421_v37 = vsel %vm3410_vm1, %v8164_v40, -inf }
 0xb26   :  { %v3365_v20 = vpop.xlane.xlu1 %3364  ;;  %v3422_v54 = vmax.f32 %v3418_v59, %v3421_v37 }
 0xb27   :  { %v3381_v42 = vpop.xlane.xlu0 %3380  ;;  %v8182_v48 = vadd.f32 %v3365_v20, %v8136_v50  ;;  %v3401_v20 = vadd.f32 %v3377_v29, %v8168_v11  ;;  %v3428_v29 = vsel %vm3410_vm1, %v3399_v52, -inf }
 0xb29   :  { %v3426_v50 = vsel %vm3410_vm1, %v8182_v48, -inf  ;;  %v3430_v32 = vsel %vm3410_vm1, %v3401_v20, -inf }
 0xb2a   :  { %v3391_v2 = vpop.xlane.xlu1 %3390  ;;  %v3429_v37 = vmax.f32 %v3426_v50, %v3428_v29 }
 0xb2b   :  { %v3385_v24 = vpop.xlane.xlu0 %3384  ;;  %v3408_v27 = vadd.f32 %v3391_v2, %v8147_v30  ;;  %v3403_v2 = vadd.f32 %v3381_v42, %v8179_v10 }
 0xb2c   :  { %v8203_v62 = vadd.f32 %v3385_v24, %v8184_v25 }
 0xb2d   :  { %v3423_v61 = vsel %vm3410_vm1, %v3408_v27, -inf }
 0xb2e   :  { %v3424_v41 = vmax.f32 %v3420_v23, %v3423_v61  ;;  %v3431_v23 = vmax.f32 %v3427_v28, %v3430_v32  ;;  %v3432_v61 = vsel %vm3410_vm1, %v3403_v2, -inf }
 0xb2f   :  { %v3389_v35 = vpop.xlane.xlu0 %3388  ;;  %v3433_v25 = vmax.f32 %v3429_v37, %v3432_v61 }
 0xb30   :  { %v3425_v26 = vmax.f32 %v3422_v54, %v3424_v41  ;;  %v8211_v59 = vadd.f32 %v3389_v35, %v8194_v56  ;;  %v3434_v41 = vsel %vm3410_vm1, %v8203_v62, -inf }
 0xb32   :  { %v3441_v53 = vsub.f32 %v8122_v55, %v3425_v26  ;;  %v3443_v42 = vsub.f32 %v8128_v43, %v3425_v26  ;;  %v3445_v24 = vsub.f32 %v8119_v33, %v3425_v26  ;;  %v3447_v8 = vsub.f32 %v8125_v16, %v3425_v26 }
 0xb33   :  { %v3449_v54 = vsub.f32 %v8142_v4, %v3425_v26  ;;  %v3393_v50 = vpop.xlane.xlu0 %3392  ;;  %v3451_v43 = vsub.f32 %v8145_v63, %v3425_v26  ;;  %v3435_v16 = vmax.f32 %v3431_v23, %v3434_v41  ;;  %v3453_v32 = vsub.f32 %v8164_v40, %v3425_v26 }
 0xb34   :  { %v3457_v29 = vmul.f32 1.442695, %v3441_v53  ;;  %v3461_v35 = vmul.f32 1.442695, %v3443_v42  ;;  %v3465_v56 = vmul.f32 1.442695, %v3445_v24  ;;  %v8222_v55 = vadd.f32 %v3393_v50, %v8205_v34 }
 0xb35   :  { %v3469_v33 = vmul.f32 1.442695, %v3447_v8  ;;  %v3436_v28 = vsel %vm3410_vm1, %v8211_v59, -inf  ;;  %v3455_v10 = vsub.f32 %v3408_v27, %v3425_v26  ;;  %v3473_v4 = vmul.f32 1.442695, %v3449_v54 }
 0xb36   :  { %6114 = vpow2.f32 %v3457_v29  ;;  %v3438_v53 = vsel %vm3410_vm1, %v8222_v55, -inf  ;;  %v3437_v42 = vmax.f32 %v3433_v25, %v3436_v28  ;;  %v3477_v63 = vmul.f32 1.442695, %v3451_v43 }
 0xb37   :  { %6116 = vpow2.f32 %v3461_v35  ;;  %v3439_v24 = vmax.f32 %v3435_v16, %v3438_v53  ;;  %v3481_v8 = vmul.f32 1.442695, %v3453_v32  ;;  %v3485_v23 = vmul.f32 1.442695, %v3455_v10 }
 0xb38   :  { %6118 = vpow2.f32 %v3465_v56 }
 0xb39   :  { %6120 = vpow2.f32 %v3469_v33  ;;  %v3440_v37 = vmax.f32 %v3437_v42, %v3439_v24 }
 0xb3a   :  { %6122 = vpow2.f32 %v3473_v4 }
 0xb3b   :  { %v3442_v40 = vsub.f32 %v8182_v48, %v3440_v37  ;;  %v3444_v61 = vsub.f32 %v3397_v18, %v3440_v37  ;;  %v3446_v41 = vsub.f32 %v3399_v52, %v3440_v37  ;;  %6124 = vpow2.f32 %v3477_v63 }
 0xb3c   :  { %v3448_v27 = vsub.f32 %v3401_v20, %v3440_v37  ;;  %v3450_v26 = vsub.f32 %v3403_v2, %v3440_v37  ;;  %6126 = vpow2.f32 %v3481_v8  ;;  %v3452_v29 = vsub.f32 %v8203_v62, %v3440_v37 }
 0xb3d   :  { %v3459_v54 = vmul.f32 1.442695, %v3442_v40  ;;  %v3463_v50 = vmul.f32 1.442695, %v3444_v61  ;;  %6128 = vpow2.f32 %v3485_v23  ;;  %v3467_v56 = vmul.f32 1.442695, %v3446_v41 }
 0xb3e   :  { %v3471_v25 = vmul.f32 1.442695, %v3448_v27  ;;  %v3475_v35 = vmul.f32 1.442695, %v3450_v26  ;;  %v3454_v2 = vsub.f32 %v8211_v59, %v3440_v37  ;;  %v3479_v43 = vmul.f32 1.442695, %v3452_v29 }
 0xb3f   :  { %6130 = vpow2.f32 %v3459_v54  ;;  %v3456_v53 = vsub.f32 %v8222_v55, %v3440_v37 }
 0xb40   :  { %6132 = vpow2.f32 %v3463_v50  ;;  %v3483_v42 = vmul.f32 1.442695, %v3454_v2 }
 0xb41   :  { %6134 = vpow2.f32 %v3467_v56  ;;  %v3487_v27 = vmul.f32 1.442695, %v3456_v53 }
 0xb42   :  { %6136 = vpow2.f32 %v3471_v25 }
 0xb43   :  { %v6115_v10 = vpop.eup %6114  ;;  %6138 = vpow2.f32 %v3475_v35 }
 0xb44   :  { %v6117_v48 = vpop.eup %6116  ;;  %v3489_v52 = vsel %vm3410_vm1, %v6115_v10, 0.0  ;;  %3537 = vperm.xlu1 %5551, %v6115_v10   ;;  %6140 = vpow2.f32 %v3479_v43 }
 0xb45   :  { %v6119_v20 = vpop.eup %6118  ;;  %v3490_v18 = vsel %vm3410_vm1, %v6117_v48, 0.0  ;;  %6142 = vpow2.f32 %v3483_v42 }
 0xb46   :  { %v6121_v33 = vpop.eup %6120  ;;  %v3491_v16 = vadd.f32 %v3490_v18, %v3489_v52  ;;  %v3492_v62 = vsel %vm3410_vm1, %v6119_v20, 0.0  ;;  %6144 = vpow2.f32 %v3487_v27 }
 0xb47   :  { %v6123_v32 = vpop.eup %6122  ;;  %v3494_v4 = vsel %vm3410_vm1, %v6121_v33, 0.0 }
 0xb48   :  { %v3493_v28 = vadd.f32 %v3492_v62, %v3491_v16  ;;  %3547 = vperm.xlu1 %5551, %v6117_v48   ;;  %v6125_v24 = vpop.eup %6124  ;;  %v3496_v59 = vsel %vm3410_vm1, %v6123_v32, 0.0 }
 0xb49   :  { %v6127_v8 = vpop.eup %6126  ;;  %v3498_v41 = vsel %vm3410_vm1, %v6125_v24, 0.0 }
 0xb4a   :  { %v3495_v63 = vadd.f32 %v3494_v4, %v3493_v28  ;;  %v6129_v23 = vpop.eup %6128  ;;  %v3500_v37 = vsel %vm3410_vm1, %v6127_v8, 0.0 }
 0xb4b   :  { %v3502_v10 = vsel %vm3410_vm1, %v6129_v23, 0.0 }
 0xb4c   :  { %v3497_v40 = vadd.f32 %v3496_v59, %v3495_v63  ;;  %3557 = vperm.xlu1 %5551, %v6119_v20   ;;  %v6131_v61 = vpop.eup %6130 }
 0xb4d   :  { %v6133_v26 = vpop.eup %6132  ;;  %v3504_v50 = vsel %vm3410_vm1, %v6131_v61, 0.0  ;;  %3542 = vperm.xlu0 %5552, %v6131_v61  }
 0xb4e   :  { %v3499_v54 = vadd.f32 %v3498_v41, %v3497_v40  ;;  %v6135_v55 = vpop.eup %6134  ;;  %v3505_v56 = vsel %vm3410_vm1, %v6133_v26, 0.0 }
 0xb4f   :  { %v6137_v25 = vpop.eup %6136  ;;  %v3506_v35 = vadd.f32 %v3505_v56, %v3504_v50  ;;  %v3507_v48 = vsel %vm3410_vm1, %v6135_v55, 0.0  ;;  %v6441_v50 = vld [vmem:[#allocation3 + $0x8] sm:$0xff]  }
 0xb50   :  { %v3501_v29 = vadd.f32 %v3500_v37, %v3499_v54  ;;  %3567 = vperm.xlu1 %5551, %v6121_v33   ;;  %v6139_v52 = vpop.eup %6138  ;;  %v3509_v2 = vsel %vm3410_vm1, %v6137_v25, 0.0 }
 0xb51   :  { %v3508_v18 = vadd.f32 %v3507_v48, %v3506_v35  ;;  %3587 = vperm.xlu0 %5552, %v6125_v24   ;;  %v3511_v16 = vsel %vm3410_vm1, %v6139_v52, 0.0  ;;  %v6141_v62 = vpop.eup %6140 }
 0xb52   :  { %v3503_v20 = vadd.f32 %v3502_v10, %v3501_v29  ;;  %v3513_v33 = vsel %vm3410_vm1, %v6141_v62, 0.0  ;;  %v6143_v4 = vpop.eup %6142  ;;  %v6443_v10 = vld [vmem:[#allocation3 + $0x10] sm:$0xff]  }
 0xb53   :  { %v3510_v43 = vadd.f32 %v3509_v2, %v3508_v18  ;;  %v3515_v42 = vsel %vm3410_vm1, %v6143_v4, 0.0  ;;  %v6145_v24 = vpop.eup %6144  ;;  %v8255_v48 = vunpack.c.l.bf16 %v6443_v10  ;;  %v6444_v18 = vld [vmem:[#allocation3 + $0x18] sm:$0xff]  }
 0xb54   :  { %6146 = vrcp.f32 %v3503_v20  ;;  %3577 = vperm.xlu1 %5551, %v6123_v32   ;;  %v3517_v32 = vsel %vm3410_vm1, %v6145_v24, 0.0  ;;  %v8259_v2 = vunpack.c.l.bf16 %v6444_v18 }
 0xb55   :  { %v3512_v28 = vadd.f32 %v3511_v16, %v3510_v43  ;;  %3597 = vperm.xlu0 %5552, %v6127_v8  }
 0xb57   :  { %v3514_v53 = vadd.f32 %v3513_v33, %v3512_v28  ;;  %v6445_v28 = vld [vmem:[#allocation3 + $0x20] sm:$0xff]  }
 0xb58   :  { %3552 = vperm.xlu1 %5551, %v6133_v26   ;;  %v8262_v33 = vunpack.c.l.bf16 %v6445_v28 }
 0xb59   :  { %3607 = vperm.xlu0 %5552, %v6129_v23   ;;  %v3516_v63 = vadd.f32 %v3515_v42, %v3514_v53 }
 0xb5a   :  { %9284 = vst [vmem:[#allocation34_spill] sm:$0xff] %v8262_v33 }
 0xb5b   :  { %v3518_v40 = vadd.f32 %v3517_v32, %v3516_v63  ;;  %v8270_v32 = vunpack.c.h.bf16 %v6443_v10 }
 0xb5c   :  { %3562 = vperm.xlu1 %5551, %v6135_v55   ;;  %v8250_v55 = vunpack.c.l.bf16 %v6441_v50 }
 0xb5d   :  { %6148 = vrcp.f32 %v3518_v40 }
 0xb60   :  { %3572 = vperm.xlu1 %5551, %v6137_v25   ;;  %v6442_v25 = vld [vmem:[#allocation3] sm:$0xff]  }
 0xb61   :  { %v6147_v59 = vpop.eup %6146  ;;  %v8252_v29 = vunpack.c.l.bf16 %v6442_v25  ;;  %v8266_v53 = vunpack.c.h.bf16 %v6442_v25 }
 0xb62   :  { %3649 = vperm.xlu0 %5552, %v6147_v59  }
 0xb64   :  { %3582 = vperm.xlu1 %5551, %v6139_v52  }
 0xb68   :  { %3592 = vperm.xlu1 %5551, %v6141_v62  }
 0xb6a   :  { %v6149_v8 = vpop.eup %6148 }
 0xb6c   :  { %3602 = vperm.xlu1 %5551, %v6143_v4   ;;  %v8264_v4 = vunpack.c.h.bf16 %v6441_v50  ;;  %v6446_v50 = vld [vmem:[#allocation3 + $0x28] sm:$0xff]  }
 0xb6d   :  { %v8278_v25 = vunpack.c.l.bf16 %v6446_v50 }
 0xb6f   :  { %9285 = vst [vmem:[#allocation36_spill] sm:$0xff] %v8278_v25 }
 0xb70   :  { %3612 = vperm.xlu1 %5551, %v6145_v24  }
 0xb74   :  { %3654 = vperm.xlu1 %5551, %v6149_v8  }
 0xbbf   :  { %v3538_v61 = vpop.permute.xlu1 %3537 }
 0xbc0   :  { %v3615_v52 = vmul.f32 %v3538_v61, %v8252_v29 }
 0xbc3   :  { %v3548_v23 = vpop.permute.xlu1 %3547 }
 0xbc4   :  { %v3617_v35 = vmul.f32 %v3548_v23, %v8250_v55 }
 0xbc6   :  { %v3631_v16 = vadd.f32 %v3617_v35, %v3615_v52 }
 0xbc7   :  { %v3558_v41 = vpop.permute.xlu1 %3557 }
 0xbc8   :  { %v3543_v37 = vpop.permute.xlu0 %3542  ;;  %v3619_v20 = vmul.f32 %v3558_v41, %v8255_v48  ;;  %v8274_v41 = vunpack.c.h.bf16 %v6444_v18 }
 0xbc9   :  { %v3616_v8 = vmul.f32 %v3543_v37, %v8266_v53 }
 0xbca   :  { %v3632_v24 = vadd.f32 %v3631_v16, %v3619_v20 }
 0xbcb   :  { %v3568_v27 = vpop.permute.xlu1 %3567 }
 0xbcc   :  { %v3621_v62 = vmul.f32 %v3568_v27, %v8259_v2  ;;  %v3588_v42 = vpop.permute.xlu0 %3587  ;;  %v8276_v27 = vunpack.c.h.bf16 %v6445_v28 }
 0xbcd   :  { %v3625_v20 = vmul.f32 %v3588_v42, %v8278_v25 }
 0xbce   :  { %v3633_v61 = vadd.f32 %v3632_v24, %v3621_v62  ;;  %v8283_v62 = vunpack.c.h.bf16 %v6446_v50 }
 0xbcf   :  { %v3578_v26 = vpop.permute.xlu1 %3577 }
 0xbd0   :  { %v3623_v63 = vmul.f32 %v3578_v26, %v8262_v33 }
 0xbd2   :  { %v3634_v35 = vadd.f32 %v3633_v61, %v3623_v63 }
 0xbd3   :  { %v3553_v54 = vpop.permute.xlu1 %3552 }
 0xbd4   :  { %v3618_v59 = vmul.f32 %v3553_v54, %v8264_v4  ;;  %v3598_v54 = vpop.permute.xlu0 %3597  ;;  %v3635_v28 = vadd.f32 %v3634_v35, %v3625_v20 }
 0xbd6   :  { %v3638_v52 = vadd.f32 %v3618_v59, %v3616_v8 }
 0xbd7   :  { %v3563_v56 = vpop.permute.xlu1 %3562 }
 0xbd8   :  { %v3620_v23 = vmul.f32 %v3563_v56, %v8270_v32  ;;  %v6447_v56 = vld [vmem:[#allocation3 + $0x30] sm:$0xff]   ;;  %v3608_v61 = vpop.permute.xlu0 %3607 }
 0xbd9   :  { %v8285_v18 = vunpack.c.l.bf16 %v6447_v56  ;;  %v8288_v63 = vunpack.c.h.bf16 %v6447_v56 }
 0xbda   :  { %v3639_v16 = vadd.f32 %v3638_v52, %v3620_v23  ;;  %v6448_v23 = vld [vmem:[#allocation3 + $0x38] sm:$0xff]  }
 0xbdb   :  { %v3573_v43 = vpop.permute.xlu1 %3572  ;;  %9286 = vst [vmem:[#allocation38_spill] sm:$0xff] %v8288_v63  ;;  %v8294_v25 = vunpack.c.h.bf16 %v6448_v23 }
 0xbdc   :  { %v3622_v26 = vmul.f32 %v3573_v43, %v8274_v41  ;;  %v3627_v43 = vmul.f32 %v3598_v54, %v8285_v18 }
 0xbde   :  { %v3640_v24 = vadd.f32 %v3639_v16, %v3622_v26  ;;  %v3636_v50 = vadd.f32 %v3635_v28, %v3627_v43  ;;  %v3650_v16 = vpop.permute.xlu0 %3649  ;;  %v9287_v28 = vmov 0.0   ;;  %v8307_v43 = vld [vmem:[#allocation10 + $0xe0] ss:$16 sps:$4 sm:$0xff]  }
 0xbdf   :  { %v3583_v40 = vpop.permute.xlu1 %3582 }
 0xbe0   :  { %v3624_v37 = vmul.f32 %v3583_v40, %v8276_v27  ;;  %v8292_v40 = vunpack.c.l.bf16 %v6448_v23  ;;  %v8329_v23 = vld [vmem:[%s8946_s11 + $0x28] sm:$0xff]  }
 0xbe1   :  { %9292 = vst [vmem:[#allocation40_spill] sm:$0xff] %v8329_v23 }
 0xbe2   :  { %v3641_v8 = vadd.f32 %v3640_v24, %v3624_v37  ;;  %v3629_v26 = vmul.f32 %v3608_v61, %v8292_v40  ;;  %v8323_v61 = vld [vmem:[#allocation10 + $0xa4] ss:$16 sps:$4 sm:$0xff]  }
 0xbe3   :  { %v3593_v10 = vpop.permute.xlu1 %3592  ;;  %9291 = vst [vmem:[#allocation37_spill] sm:$0xff] %v8323_v61 }
 0xbe4   :  { %v3626_v33 = vmul.f32 %v3593_v10, %v8283_v62  ;;  %v3637_v56 = vadd.f32 %v3636_v50, %v3629_v26  ;;  %v8333_v50 = vld [vmem:[#allocation10 + $0xa0] ss:$16 sps:$4 sm:$0xff]  }
 0xbe5   :  { %9293 = vst [vmem:[#allocation42_spill] sm:$0xff] %v8333_v50  ;;  %v8346_v26 = vld [vmem:[#allocation10 + $0x80] ss:$16 sps:$4 sm:$0xff]  }
 0xbe6   :  { %v3642_v52 = vadd.f32 %v3641_v8, %v3626_v33  ;;  %v3657_v24 = vmul.f32 %v3650_v16, %v3637_v56  ;;  %v8301_v33 = vld [vmem:[%s8946_s11 + $0x38] sm:$0xff]   ;;  %9296 = vst [vmem:[#allocation59_spill] sm:$0xff] %v8346_v26  ;;  %v8359_v16 = vld [vmem:[#allocation10 + $0x60] ss:$16 sps:$4 sm:$0xff]  }
 0xbe7   :  { %v3603_v59 = vpop.permute.xlu1 %3602  ;;  %v8310_v8 = vld [vmem:[#allocation10 + $0xc4] ss:$16 sps:$4 sm:$0xff]   ;;  %9299 = vst [vmem:[#allocation62_spill] sm:$0xff] %v8359_v16 }
 0xbe8   :  { %v3628_v42 = vmul.f32 %v3603_v59, %v8288_v63  ;;  %9288 = vst [vmem:[#allocation35_spill] sm:$0xff] %v8310_v8  ;;  %v8362_v56 = vld [vmem:[#allocation10 + $0x44] ss:$16 sps:$4 sm:$0xff]  }
 0xbe9   :  { %9300 = vst [vmem:[#allocation63_spill] sm:$0xff] %v8362_v56 }
 0xbea   :  { %v3643_v10 = vadd.f32 %v3642_v52, %v3628_v42  ;;  %v8320_v42 = vld [vmem:[#allocation10 + $0xc0] ss:$16 sps:$4 sm:$0xff]   ;;  %v8336_v52 = vld [vmem:[#allocation10 + $0x84] ss:$16 sps:$4 sm:$0xff]  }
 0xbeb   :  { %v3613_v35 = vpop.permute.xlu1 %3612  ;;  %9290 = vst [vmem:[#allocation39_spill] sm:$0xff] %v8320_v42  ;;  %9294 = vst [vmem:[#allocation44_spill] sm:$0xff] %v8336_v52 }
 0xbec   :  { %v3630_v20 = vmul.f32 %v3613_v35, %v8294_v25  ;;  %v8342_v35 = vld [vmem:[%s8946_s11 + $0x20] sm:$0xff]  }
 0xbed   :  { %9295 = vst [vmem:[#allocation18_spill] sm:$0xff] %v8342_v35 }
 0xbee   :  { %v3644_v54 = vadd.f32 %v3643_v10, %v3630_v20  ;;  %v8349_v10 = vld [vmem:[#allocation10 + $0x64] ss:$16 sps:$4 sm:$0xff]  }
 0xbef   :  { %v3655_v37 = vpop.permute.xlu1 %3654  ;;  %9297 = vst [vmem:[#allocation60_spill] sm:$0xff] %v8349_v10  ;;  %v8355_v20 = vld [vmem:[%s8946_s11 + $0x18] sm:$0xff]  }
 0xbf0   :  { %v3658_v59 = vmul.f32 %v3655_v37, %v3644_v54  ;;  %9298 = vst [vmem:[#allocation61_spill] sm:$0xff] %v8355_v20  ;;  %v8368_v54 = vld [vmem:[%s8946_s11 + $0x10] sm:$0xff]  }
 0xbf1   :  { %9301 = vst [vmem:[#allocation64_spill] sm:$0xff] %v8368_v54  ;;  %v8372_v37 = vld [vmem:[#allocation10 + $0x40] ss:$16 sps:$4 sm:$0xff]  }
 0xbf2   :  { %v3659_v63 = vpack.c.bf16 %v3658_v59, %v3657_v24  ;;  %9302 = vst [vmem:[#allocation65_spill] sm:$0xff] %v8372_v37  ;;  %v8375_v24 = vld [vmem:[#allocation10 + $0x24] ss:$16 sps:$4 sm:$0xff]  }
 0xbf3   :  { %9303 = vst [vmem:[#allocation66_spill] sm:$0xff] %v8375_v24  ;;  %v8381_v59 = vld [vmem:[%s8946_s11 + $0x8] sm:$0xff]  }
 0xbf4   :  { %3693 = vmatmul.mubr.bf16.vlgmr.msra.gmra.mxu0 %v3659_v63  ;;  %3736 = vmatmul.mubr.bf16.vlgmr.msra.gmra.mxu1 %v3659_v63  ;;  %v8316_v63 = vld [vmem:[%s8946_s11 + $0x30] sm:$0xff]   ;;  %9304 = vst [vmem:[#allocation67_spill] sm:$0xff] %v8381_v59 }
 0xbf5   :  { %5473 = vmatpush3.bf16.msra.mxu0 %v8301_v33  ;;  %5488 = vmatprep.mubr.msk.bf16.mxu0 %vm6617_vm0, %v9287_v28  ;;  %9289 = vst [vmem:[#allocation33_spill] sm:$0xff] %v8316_v63 }
 0xbf6   :  { %5474 = vmatprep.subr.bf16.mxu0 %v9287_v28  ;;  %4166 = vmatpush1.bf16.msra.mxu1 %v8307_v43 }
 0xbf7   :  { %4167 = vmatprep.subr.bf16.mxu1 %v8310_v8 }
 0xbf9   :  { %5475 = vmatpush3.bf16.msra.mxu0 %v8316_v63 }
 0xbfa   :  { %5476 = vmatprep.subr.bf16.mxu0 %v9287_v28  ;;  %4168 = vmatpush1.bf16.msra.mxu1 %v8320_v42 }
 0xbfb   :  { %4169 = vmatprep.subr.bf16.mxu1 %v8323_v61 }
 0xbfd   :  { %5477 = vmatpush3.bf16.msra.mxu0 %v8329_v23 }
 0xbfe   :  { %5478 = vmatprep.subr.bf16.mxu0 %v9287_v28  ;;  %4170 = vmatpush1.bf16.msra.mxu1 %v8333_v50 }
 0xbff   :  { %4171 = vmatprep.subr.bf16.mxu1 %v8336_v52 }
 0xc01   :  { %5479 = vmatpush3.bf16.msra.mxu0 %v8342_v35 }
 0xc02   :  { %5480 = vmatprep.subr.bf16.mxu0 %v9287_v28  ;;  %4172 = vmatpush1.bf16.msra.mxu1 %v8346_v26 }
 0xc03   :  { %4173 = vmatprep.subr.bf16.mxu1 %v8349_v10 }
 0xc05   :  { %5481 = vmatpush3.bf16.msra.mxu0 %v8355_v20 }
 0xc06   :  { %5482 = vmatprep.subr.bf16.mxu0 %v9287_v28  ;;  %4174 = vmatpush1.bf16.msra.mxu1 %v8359_v16  ;;  %v8409_v16 = vld [vmem:[#allocation10 + $0x1c4] ss:$16 sps:$4 sm:$0xff]  }
 0xc07   :  { %4175 = vmatprep.subr.bf16.mxu1 %v8362_v56  ;;  %v8388_v56 = vld [vmem:[#allocation10 + $0x4] ss:$16 sps:$4 sm:$0xff]   ;;  %9312 = vst [vmem:[#allocation75_spill] sm:$0xff] %v8409_v16 }
 0xc08   :  { %9306 = vst [vmem:[#allocation69_spill] sm:$0xff] %v8388_v56 }
 0xc09   :  { %5483 = vmatpush3.bf16.msra.mxu0 %v8368_v54  ;;  %v8385_v54 = vld [vmem:[#allocation10 + $0x20] ss:$16 sps:$4 sm:$0xff]  }
 0xc0a   :  { %5484 = vmatprep.subr.bf16.mxu0 %v9287_v28  ;;  %4176 = vmatpush1.bf16.msra.mxu1 %v8372_v37  ;;  %9305 = vst [vmem:[#allocation68_spill] sm:$0xff] %v8385_v54  ;;  %v8397_v37 = vld [vmem:[#allocation10 + $0xec] ss:$16 sps:$4 sm:$0xff]  }
 0xc0b   :  { %4177 = vmatprep.subr.bf16.mxu1 %v8375_v24  ;;  %v8394_v24 = vld [vmem:[%s8946_s11] sm:$0xff]   ;;  %9308 = vst [vmem:[#allocation71_spill] sm:$0xff] %v8397_v37 }
 0xc0c   :  { %9307 = vst [vmem:[#allocation70_spill] sm:$0xff] %v8394_v24 }
 0xc0d   :  { %5485 = vmatpush3.bf16.msra.mxu0 %v8381_v59  ;;  %v8400_v59 = vld [vmem:[#allocation10] ss:$16 sps:$4 sm:$0xff]  }
 0xc0e   :  { %5486 = vmatprep.subr.bf16.mxu0 %v9287_v28  ;;  %4178 = vmatpush1.bf16.msra.mxu1 %v8385_v54  ;;  %9309 = vst [vmem:[#allocation72_spill] sm:$0xff] %v8400_v59  ;;  %v8403_v54 = vld [vmem:[#allocation10 + $0x1e4] ss:$16 sps:$4 sm:$0xff]  }
 0xc0f   :  { %4179 = vmatprep.subr.bf16.mxu1 %v8388_v56  ;;  %9310 = vst [vmem:[#allocation73_spill] sm:$0xff] %v8403_v54  ;;  %v8406_v56 = vld [vmem:[#allocation10 + $0x1e0] ss:$16 sps:$4 sm:$0xff]  }
 0xc10   :  { %9311 = vst [vmem:[#allocation74_spill] sm:$0xff] %v8406_v56 }
 0xc11   :  { %5487 = vmatpush3.bf16.msra.mxu0 %v8394_v24  ;;  %v8412_v24 = vld [vmem:[#allocation10 + $0x1c0] ss:$16 sps:$4 sm:$0xff]  }
 0xc12   :  { %4208 = vmatprep.subr.bf16.mxu0 %v8397_v37  ;;  %4180 = vmatpush1.bf16.msra.mxu1 %v8400_v59  ;;  %9313 = vst [vmem:[#allocation76_spill] sm:$0xff] %v8412_v24  ;;  %v8415_v37 = vld [vmem:[#allocation10 + $0x1a4] ss:$16 sps:$4 sm:$0xff]   ;;  %v8418_v59 = vld [vmem:[#allocation10 + $0x1a0] ss:$16 sps:$4 sm:$0xff]  }
 0xc13   :  { %4181 = vmatprep.subr.bf16.mxu1 %v8403_v54  ;;  %9314 = vst [vmem:[#allocation77_spill] sm:$0xff] %v8415_v37  ;;  %9315 = vst [vmem:[#allocation78_spill] sm:$0xff] %v8418_v59  ;;  %v8421_v54 = vld [vmem:[#allocation10 + $0x184] ss:$16 sps:$4 sm:$0xff]  }
 0xc14   :  { %9316 = vst [vmem:[#allocation79_spill] sm:$0xff] %v8421_v54 }
 0xc16   :  { %4182 = vmatpush2.bf16.msra.mxu1 %v8406_v56  ;;  %v8424_v56 = vld [vmem:[#allocation10 + $0x180] ss:$16 sps:$4 sm:$0xff]  }
 0xc17   :  { %4183 = vmatprep.subr.bf16.mxu1 %v8409_v16  ;;  %9317 = vst [vmem:[#allocation80_spill] sm:$0xff] %v8424_v56  ;;  %v8427_v16 = vld [vmem:[#allocation10 + $0x164] ss:$16 sps:$4 sm:$0xff]  }
 0xc18   :  { %9318 = vst [vmem:[#allocation81_spill] sm:$0xff] %v8427_v16 }
 0xc1a   :  { %4184 = vmatpush2.bf16.msra.mxu1 %v8412_v24  ;;  %v8430_v24 = vld [vmem:[#allocation10 + $0x160] ss:$16 sps:$4 sm:$0xff]  }
 0xc1b   :  { %4185 = vmatprep.subr.bf16.mxu1 %v8415_v37  ;;  %9319 = vst [vmem:[#allocation82_spill] sm:$0xff] %v8430_v24  ;;  %v8433_v37 = vld [vmem:[#allocation10 + $0x144] ss:$16 sps:$4 sm:$0xff]  }
 0xc1c   :  { %9320 = vst [vmem:[#allocation83_spill] sm:$0xff] %v8433_v37 }
 0xc1e   :  { %4186 = vmatpush2.bf16.msra.mxu1 %v8418_v59  ;;  %v8436_v59 = vld [vmem:[#allocation10 + $0x140] ss:$16 sps:$4 sm:$0xff]  }
 0xc1f   :  { %4187 = vmatprep.subr.bf16.mxu1 %v8421_v54  ;;  %9321 = vst [vmem:[#allocation84_spill] sm:$0xff] %v8436_v59  ;;  %v8439_v54 = vld [vmem:[#allocation10 + $0x124] ss:$16 sps:$4 sm:$0xff]  }
 0xc20   :  { %9322 = vst [vmem:[#allocation85_spill] sm:$0xff] %v8439_v54 }
 0xc22   :  { %4188 = vmatpush2.bf16.msra.mxu1 %v8424_v56  ;;  %v8442_v56 = vld [vmem:[#allocation10 + $0x120] ss:$16 sps:$4 sm:$0xff]  }
 0xc23   :  { %4189 = vmatprep.subr.bf16.mxu1 %v8427_v16  ;;  %9323 = vst [vmem:[#allocation86_spill] sm:$0xff] %v8442_v56  ;;  %v8445_v16 = vld [vmem:[#allocation10 + $0x104] ss:$16 sps:$4 sm:$0xff]  }
 0xc24   :  { %9324 = vst [vmem:[#allocation87_spill] sm:$0xff] %v8445_v16 }
 0xc26   :  { %4190 = vmatpush2.bf16.msra.mxu1 %v8430_v24  ;;  %v8448_v24 = vld [vmem:[#allocation10 + $0x100] ss:$16 sps:$4 sm:$0xff]  }
 0xc27   :  { %4191 = vmatprep.subr.bf16.mxu1 %v8433_v37  ;;  %9325 = vst [vmem:[#allocation88_spill] sm:$0xff] %v8448_v24 }
 0xc2a   :  { %4192 = vmatpush2.bf16.msra.mxu1 %v8436_v59 }
 0xc2b   :  { %4193 = vmatprep.subr.bf16.mxu1 %v8439_v54 }
 0xc2e   :  { %4194 = vmatpush2.bf16.msra.mxu1 %v8442_v56 }
 0xc2f   :  { %4195 = vmatprep.subr.bf16.mxu1 %v8445_v16 }
 0xc32   :  { %4196 = vmatpush2.bf16.msra.mxu1 %v8448_v24 }
 0xc33   :  { %5492 = vmatprep.subr.bf16.mxu1 %v9287_v28 }
 0xcb4   :  { %v3694_v37 = vpop.f32.mrf.mxu0  ;;  %v3737_v20 = vpop.f32.mrf.mxu1 }
 0xcb5   :  { %v3695_v59 = vadd.f32 %v3694_v37, %v7961_v15 }
 0xcb6   :  { %v3696_v10 = vpop.f32.mrf.mxu0  ;;  %v3739_v52 = vpop.f32.mrf.mxu1 }
 0xcb7   :  { %v5279_v54 = vmul.f32 -1.442695, %v3695_v59  ;;  %v3697_v26 = vadd.f32 %v3696_v10, %v7967_v57  ;;  %v3740_v59 = vadd.f32 %v3739_v52, %v7989_v0  ;;  %v3738_v10 = vadd.f32 %v3737_v20, %v7985_v60 }
 0xcb8   :  { %v3698_v35 = vpop.f32.mrf.mxu0  ;;  %v3741_v61 = vpop.f32.mrf.mxu1 }
 0xcb9   :  { %6150 = vpow2.f32 %v5279_v54  ;;  %v5281_v56 = vmul.f32 -1.442695, %v3697_v26  ;;  %v3699_v16 = vadd.f32 %v3698_v35, %v7961_v15  ;;  %v5283_v63 = vmul.f32 -1.442695, %v3740_v59 }
 0xcba   :  { %v3700_v50 = vpop.f32.mrf.mxu0  ;;  %v3743_v37 = vpop.f32.mrf.mxu1 }
 0xcbb   :  { %6152 = vpow2.f32 %v5281_v56  ;;  %v5280_v23 = vmul.f32 -1.442695, %v3699_v16  ;;  %v3701_v24 = vadd.f32 %v3700_v50, %v7967_v57  ;;  %v3744_v54 = vadd.f32 %v3743_v37, %v7989_v0 }
 0xcbd   :  { %6154 = vpow2.f32 %v5280_v23  ;;  %v5282_v42 = vmul.f32 -1.442695, %v3701_v24  ;;  %v5284_v56 = vmul.f32 -1.442695, %v3744_v54  ;;  %v3742_v23 = vadd.f32 %v3741_v61, %v7985_v60 }
 0xcbf   :  { %6156 = vpow2.f32 %v5282_v42 }
 0xcc0   :  { %6158 = vtanh.f32 %v3738_v10 }
 0xcc6   :  { %v6151_v26 = vpop.eup %6150 }
 0xcc7   :  { %v3752_v8 = vadd.f32 1.0, %v6151_v26 }
 0xcc8   :  { %v6153_v35 = vpop.eup %6152 }
 0xcc9   :  { %6160 = vrcp.f32 %v3752_v8  ;;  %v3764_v16 = vadd.f32 1.0, %v6153_v35 }
 0xcca   :  { %v6155_v50 = vpop.eup %6154  ;;  %6162 = vpow2.f32 %v5283_v63 }
 0xccb   :  { %6164 = vrcp.f32 %v3764_v16  ;;  %v3753_v42 = vadd.f32 1.0, %v6155_v50 }
 0xccc   :  { %v6157_v24 = vpop.eup %6156  ;;  %6166 = vpow2.f32 %v5284_v56 }
 0xccd   :  { %6168 = vrcp.f32 %v3753_v42  ;;  %v3765_v52 = vadd.f32 1.0, %v6157_v24  ;;  %v6159_v20 = vpop.eup %6158 }
 0xcce   :  { %6170 = vtanh.f32 %v3742_v23 }
 0xccf   :  { %6172 = vrcp.f32 %v3765_v52 }
 0xcd6   :  { %v6161_v37 = vpop.eup %6160 }
 0xcd7   :  { %v6163_v59 = vpop.eup %6162  ;;  %v3786_v54 = vmul.f32 %v6161_v37, %v6159_v20 }
 0xcd8   :  { %v6165_v26 = vpop.eup %6164  ;;  %v3778_v63 = vadd.f32 1.0, %v6163_v59 }
 0xcd9   :  { %v6167_v10 = vpop.eup %6166  ;;  %v3784_v8 = vmul.f32 %v6165_v26, %v7996_v44 }
 0xcda   :  { %v6169_v35 = vpop.eup %6168  ;;  %v3779_v50 = vadd.f32 1.0, %v6167_v10  ;;  %6174 = vrcp.f32 %v3778_v63  ;;  %v8474_v10 = vld [vmem:[#allocation10 + $0xc8] ss:$16 sps:$4 sm:$0xff]  }
 0xcdb   :  { %v6171_v0 = vpop.eup %6170  ;;  %v8461_v61 = vadd.f32 %v3786_v54, %v3784_v8  ;;  %v8477_v54 = vld [vmem:[#allocation10 + $0xac] ss:$16 sps:$4 sm:$0xff]   ;;  %v8480_v8 = vld [vmem:[#allocation10 + $0xa8] ss:$16 sps:$4 sm:$0xff]  }
 0xcdc   :  { %v6173_v16 = vpop.eup %6172  ;;  %v3787_v56 = vmul.f32 %v6171_v0, %v6169_v35  ;;  %v8468_v0 = vld [vmem:[#allocation10 + $0xe8] ss:$16 sps:$4 sm:$0xff]   ;;  %v8483_v35 = vld [vmem:[#allocation10 + $0x8c] ss:$16 sps:$4 sm:$0xff]  }
 0xcdd   :  { %v3785_v42 = vmul.f32 %v6173_v16, %v8000_v17  ;;  %6176 = vtanh.f32 %v8461_v61  ;;  %v8471_v17 = vld [vmem:[#allocation10 + $0xcc] ss:$16 sps:$4 sm:$0xff]   ;;  %9326 = vst [vmem:[#allocation89_spill] sm:$0xff] %v8483_v35  ;;  %v8486_v63 = vld [vmem:[#allocation10 + $0x88] ss:$16 sps:$4 sm:$0xff]  }
 0xcde   :  { %6178 = vrcp.f32 %v3779_v50  ;;  %9327 = vst [vmem:[#allocation90_spill] sm:$0xff] %v8486_v63  ;;  %v8489_v16 = vld [vmem:[#allocation10 + $0x6c] ss:$16 sps:$4 sm:$0xff]   ;;  %v8492_v50 = vld [vmem:[#allocation10 + $0x68] ss:$16 sps:$4 sm:$0xff]  }
 0xcdf   :  { %v8464_v23 = vadd.f32 %v3787_v56, %v3785_v42  ;;  %9328 = vst [vmem:[#allocation91_spill] sm:$0xff] %v8489_v16  ;;  %9329 = vst [vmem:[#allocation92_spill] sm:$0xff] %v8492_v50  ;;  %v8495_v56 = vld [vmem:[#allocation10 + $0x4c] ss:$16 sps:$4 sm:$0xff]   ;;  %v8498_v42 = vld [vmem:[#allocation10 + $0x48] ss:$16 sps:$4 sm:$0xff]  }
 0xce0   :  { %9330 = vst [vmem:[#allocation93_spill] sm:$0xff] %v8495_v56  ;;  %9331 = vst [vmem:[#allocation94_spill] sm:$0xff] %v8498_v42 }
 0xce1   :  { %6180 = vtanh.f32 %v8464_v23 }
 0xce7   :  { %v6175_v24 = vpop.eup %6174 }
 0xcea   :  { %v6177_v44 = vpop.eup %6176 }
 0xceb   :  { %v6179_v52 = vpop.eup %6178  ;;  %v3792_v37 = vmul.f32 %v6177_v44, %v6175_v24  ;;  %v8501_v24 = vld [vmem:[#allocation10 + $0x2c] ss:$16 sps:$4 sm:$0xff]   ;;  %v8504_v44 = vld [vmem:[#allocation10 + $0x28] ss:$16 sps:$4 sm:$0xff]  }
 0xcec   :  { %9332 = vst [vmem:[#allocation95_spill] sm:$0xff] %v8501_v24  ;;  %9333 = vst [vmem:[#allocation96_spill] sm:$0xff] %v8504_v44 }
 0xcee   :  { %v6181_v20 = vpop.eup %6180 }
 0xcef   :  { %v3793_v59 = vmul.f32 %v6181_v20, %v6179_v52  ;;  %v8507_v52 = vld [vmem:[#allocation10 + $0xc] ss:$16 sps:$4 sm:$0xff]   ;;  %v8510_v20 = vld [vmem:[#allocation10 + $0x8] ss:$16 sps:$4 sm:$0xff]  }
 0xcf0   :  { %9334 = vst [vmem:[#allocation97_spill] sm:$0xff] %v8507_v52  ;;  %9335 = vst [vmem:[#allocation98_spill] sm:$0xff] %v8510_v20 }
 0xcf1   :  { %v3794_v26 = vpack.c.bf16 %v3793_v59, %v3792_v37  ;;  %v8513_v37 = vld [vmem:[#allocation10 + $0x1ec] ss:$16 sps:$4 sm:$0xff]   ;;  %v8516_v59 = vld [vmem:[#allocation10 + $0x1e8] ss:$16 sps:$4 sm:$0xff]  }
 0xcf2   :  { %9336 = vst [vmem:[#allocation99_spill] sm:$0xff] %v8513_v37  ;;  %9337 = vst [vmem:[#allocation100_spill] sm:$0xff] %v8516_v59 }
 0xcf3   :  { %5489 = vmatmul.mubr.bf16.vlgmr.msra.gmra.mxu0 %v3794_v26  ;;  %4197 = vmatprep.mubr.bf16.mxu1 %v3794_v26 }
 0xcf4   :  { %4240 = vmatprep.mubr.bf16.mxu0 %v3794_v26  ;;  %4209 = vmatpush1.bf16.msra.mxu0 %v8468_v0  ;;  %v8519_v26 = vld [vmem:[#allocation10 + $0x1cc] ss:$16 sps:$4 sm:$0xff]  }
 0xcf5   :  { %4210 = vmatprep.subr.bf16.mxu0 %v8471_v17  ;;  %9338 = vst [vmem:[#allocation101_spill] sm:$0xff] %v8519_v26 }
 0xcf8   :  { %4211 = vmatpush1.bf16.msra.mxu0 %v8474_v10 }
 0xcf9   :  { %4212 = vmatprep.subr.bf16.mxu0 %v8477_v54 }
 0xcfc   :  { %4213 = vmatpush1.bf16.msra.mxu0 %v8480_v8 }
 0xcfd   :  { %4214 = vmatprep.subr.bf16.mxu0 %v8483_v35 }
 0xd00   :  { %4215 = vmatpush1.bf16.msra.mxu0 %v8486_v63 }
 0xd01   :  { %4216 = vmatprep.subr.bf16.mxu0 %v8489_v16 }
 0xd04   :  { %4217 = vmatpush1.bf16.msra.mxu0 %v8492_v50 }
 0xd05   :  { %4218 = vmatprep.subr.bf16.mxu0 %v8495_v56 }
 0xd08   :  { %4219 = vmatpush1.bf16.msra.mxu0 %v8498_v42 }
 0xd09   :  { %4220 = vmatprep.subr.bf16.mxu0 %v8501_v24 }
 0xd0c   :  { %4221 = vmatpush1.bf16.msra.mxu0 %v8504_v44  ;;  %v8522_v44 = vld [vmem:[#allocation10 + $0x1c8] ss:$16 sps:$4 sm:$0xff]  }
 0xd0d   :  { %4222 = vmatprep.subr.bf16.mxu0 %v8507_v52  ;;  %9339 = vst [vmem:[#allocation102_spill] sm:$0xff] %v8522_v44  ;;  %v8525_v52 = vld [vmem:[#allocation10 + $0x1ac] ss:$16 sps:$4 sm:$0xff]  }
 0xd0e   :  { %9340 = vst [vmem:[#allocation103_spill] sm:$0xff] %v8525_v52 }
 0xd10   :  { %4223 = vmatpush1.bf16.msra.mxu0 %v8510_v20  ;;  %v8528_v20 = vld [vmem:[#allocation10 + $0x1a8] ss:$16 sps:$4 sm:$0xff]  }
 0xd11   :  { %4224 = vmatprep.subr.bf16.mxu0 %v8513_v37  ;;  %9341 = vst [vmem:[#allocation104_spill] sm:$0xff] %v8528_v20  ;;  %v8531_v37 = vld [vmem:[#allocation10 + $0x18c] ss:$16 sps:$4 sm:$0xff]  }
 0xd12   :  { %9342 = vst [vmem:[#allocation105_spill] sm:$0xff] %v8531_v37 }
 0xd14   :  { %4225 = vmatpush2.bf16.msra.mxu0 %v8516_v59  ;;  %v8534_v59 = vld [vmem:[#allocation10 + $0x188] ss:$16 sps:$4 sm:$0xff]  }
 0xd15   :  { %4226 = vmatprep.subr.bf16.mxu0 %v8519_v26  ;;  %9343 = vst [vmem:[#allocation106_spill] sm:$0xff] %v8534_v59  ;;  %v8537_v26 = vld [vmem:[#allocation10 + $0x16c] ss:$16 sps:$4 sm:$0xff]  }
 0xd16   :  { %9344 = vst [vmem:[#allocation107_spill] sm:$0xff] %v8537_v26 }
 0xd18   :  { %4227 = vmatpush2.bf16.msra.mxu0 %v8522_v44  ;;  %v8540_v44 = vld [vmem:[#allocation10 + $0x168] ss:$16 sps:$4 sm:$0xff]  }
 0xd19   :  { %4228 = vmatprep.subr.bf16.mxu0 %v8525_v52  ;;  %9345 = vst [vmem:[#allocation108_spill] sm:$0xff] %v8540_v44  ;;  %v8543_v52 = vld [vmem:[#allocation10 + $0x14c] ss:$16 sps:$4 sm:$0xff]  }
 0xd1a   :  { %9346 = vst [vmem:[#allocation109_spill] sm:$0xff] %v8543_v52 }
 0xd1c   :  { %4229 = vmatpush2.bf16.msra.mxu0 %v8528_v20  ;;  %v8546_v20 = vld [vmem:[#allocation10 + $0x148] ss:$16 sps:$4 sm:$0xff]  }
 0xd1d   :  { %4230 = vmatprep.subr.bf16.mxu0 %v8531_v37  ;;  %9347 = vst [vmem:[#allocation110_spill] sm:$0xff] %v8546_v20  ;;  %v8549_v37 = vld [vmem:[#allocation10 + $0x12c] ss:$16 sps:$4 sm:$0xff]  }
 0xd1e   :  { %9348 = vst [vmem:[#allocation111_spill] sm:$0xff] %v8549_v37 }
 0xd20   :  { %4231 = vmatpush2.bf16.msra.mxu0 %v8534_v59  ;;  %v8552_v59 = vld [vmem:[#allocation10 + $0x128] ss:$16 sps:$4 sm:$0xff]  }
 0xd21   :  { %4232 = vmatprep.subr.bf16.mxu0 %v8537_v26  ;;  %9349 = vst [vmem:[#allocation112_spill] sm:$0xff] %v8552_v59  ;;  %v8555_v26 = vld [vmem:[#allocation10 + $0x10c] ss:$16 sps:$4 sm:$0xff]  }
 0xd22   :  { %9350 = vst [vmem:[#allocation113_spill] sm:$0xff] %v8555_v26 }
 0xd24   :  { %4233 = vmatpush2.bf16.msra.mxu0 %v8540_v44  ;;  %v8558_v44 = vld [vmem:[#allocation10 + $0x108] ss:$16 sps:$4 sm:$0xff]  }
 0xd25   :  { %4234 = vmatprep.subr.bf16.mxu0 %v8543_v52  ;;  %9351 = vst [vmem:[#allocation114_spill] sm:$0xff] %v8558_v44  ;;  %v6520_v52 = vld [vmem:[#allocation10 + $0xe4] ss:$16 sps:$4 sm:$0xff]  }
 0xd28   :  { %4235 = vmatpush2.bf16.msra.mxu0 %v8546_v20  ;;  %v8564_v20 = vld [vmem:[%s8947_s12] ss:$0 sm:$0xff] }
 0xd29   :  { %4236 = vmatprep.subr.bf16.mxu0 %v8549_v37  ;;  %9352 = vst [vmem:[#allocation115_spill] sm:$0xff] %v8564_v20 }
 0xd2c   :  { %4237 = vmatpush2.bf16.msra.mxu0 %v8552_v59 }
 0xd2d   :  { %4238 = vmatprep.subr.bf16.mxu0 %v8555_v26 }
 0xd30   :  { %4239 = vmatpush2.bf16.msra.mxu0 %v8558_v44 }
 0xd31   :  { %4670 = vmatprep.subr.bf16.mxu0 %v6520_v52 }
 0xdb3   :  { %v3829_v24 = vpop.f32.mrf.mxu0 }
 0xdb4   :  { %v3830_v37 = vadd.f32 %v8564_v20, %v3829_v24 }
 0xdb5   :  { %v5490_v42 = vpop.f32.mrf.mxu0 }
 0xdb6   :  { %v3840_v59 = vadd.f32 %v3830_v37, %v7947_v6  ;;  %v3836_v56 = vadd.f32 %v3830_v37, %v7939_v14  ;;  %v3842_v26 = vadd.f32 %v7945_v31, %v3830_v37  ;;  %v3838_v44 = vadd.f32 %v7937_v13, %v3830_v37 }
 0xdb7   :  { %v3832_v50 = vpop.f32.mrf.mxu0  ;;  %v3844_v63 = vadd.f32 %v3830_v37, %v7958_v1  ;;  %v3846_v24 = vadd.f32 %v7953_v46, %v3830_v37  ;;  %v3848_v13 = vadd.f32 %v3830_v37, %v7977_v5  ;;  %v3850_v5 = vadd.f32 %v7974_v22, %v3830_v37 }
 0xdb8   :  { %v3833_v52 = vadd.f32 %v8564_v20, %v3832_v50  ;;  %6182 = vtanh.f32 %v3840_v59  ;;  %v9359_v20 = vld [vmem:[#allocation29_spill] sm:$0xff] }
 0xdb9   :  { %v5491_v16 = vpop.f32.mrf.mxu0  ;;  %6184 = vtanh.f32 %v3836_v56 }
 0xdba   :  { %6186 = vtanh.f32 %v3842_v26  ;;  %v3839_v42 = vadd.f32 %v7941_v7, %v3833_v52  ;;  %v3841_v31 = vadd.f32 %v3833_v52, %v7951_v47  ;;  %v3843_v50 = vadd.f32 %v7949_v12, %v3833_v52 }
 0xdbb   :  { %6188 = vtanh.f32 %v3838_v44  ;;  %v8581_v44 = vld [vmem:[%s8948_s13] ss:$0 sm:$0xff]  ;;  %v3837_v59 = vadd.f32 %v3833_v52, %v7943_v3 }
 0xdbc   :  { %6190 = vtanh.f32 %v3844_v63  ;;  %9353 = vst [vmem:[#allocation116_spill] sm:$0xff] %v8581_v44 }
 0xdbd   :  { %6192 = vtanh.f32 %v3839_v42 }
 0xdbe   :  { %6194 = vtanh.f32 %v3846_v24 }
 0xdbf   :  { %6196 = vtanh.f32 %v3841_v31  ;;  %v3845_v31 = vadd.f32 %v3833_v52, %v7970_v45 }
 0xdc0   :  { %6198 = vtanh.f32 %v3848_v13  ;;  %v3847_v13 = vadd.f32 %v7963_v51, %v3833_v52 }
 0xdc1   :  { %6200 = vtanh.f32 %v3843_v50 }
 0xdc2   :  { %6202 = vtanh.f32 %v3837_v59  ;;  %v3849_v59 = vadd.f32 %v3833_v52, %v7981_v49 }
 0xdc3   :  { %6204 = vtanh.f32 %v3845_v31 }
 0xdc4   :  { %6206 = vtanh.f32 %v3850_v5 }
 0xdc5   :  { %v6183_v16 = vpop.eup %6182  ;;  %6208 = vtanh.f32 %v3847_v13 }
 0xdc6   :  { %v6185_v56 = vpop.eup %6184  ;;  %v3872_v63 = vmul.f32 %v8581_v44, %v6183_v16  ;;  %6210 = vtanh.f32 %v3849_v59 }
 0xdc7   :  { %v6187_v26 = vpop.eup %6186  ;;  %v3868_v42 = vmul.f32 %v8581_v44, %v6185_v56 }
 0xdc8   :  { %v6189_v24 = vpop.eup %6188  ;;  %3892 = vadd.xlane.f32.xlu1 %v3872_v63  ;;  %v3874_v12 = vmul.f32 %v8581_v44, %v6187_v26 }
 0xdc9   :  { %3884 = vadd.xlane.f32.xlu0 %v3868_v42  ;;  %v6191_v47 = vpop.eup %6190  ;;  %v3870_v16 = vmul.f32 %v8581_v44, %v6189_v24 }
 0xdca   :  { %v6193_v3 = vpop.eup %6192  ;;  %v3876_v50 = vmul.f32 %v8581_v44, %v6191_v47 }
 0xdcb   :  { %v6195_v56 = vpop.eup %6194  ;;  %v3871_v63 = vmul.f32 %v8581_v44, %v6193_v3 }
 0xdcc   :  { %3896 = vadd.xlane.f32.xlu1 %v3874_v12  ;;  %v6197_v26 = vpop.eup %6196  ;;  %v3878_v37 = vmul.f32 %v8581_v44, %v6195_v56  ;;  %v3851_v12 = vadd.f32 %v7979_v19, %v3833_v52  ;;  %v9355_v19 = vld [vmem:[#allocation21_spill] sm:$0xff] }
 0xdcd   :  { %3888 = vadd.xlane.f32.xlu0 %v3870_v16  ;;  %v6199_v42 = vpop.eup %6198  ;;  %v3873_v31 = vmul.f32 %v8581_v44, %v6197_v26 }
 0xdce   :  { %v6201_v24 = vpop.eup %6200  ;;  %v3880_v47 = vmul.f32 %v8581_v44, %v6199_v42  ;;  %6212 = vtanh.f32 %v3851_v12 }
 0xdcf   :  { %v6203_v3 = vpop.eup %6202  ;;  %v3875_v5 = vmul.f32 %v8581_v44, %v6201_v24 }
 0xdd0   :  { %3900 = vadd.xlane.f32.xlu1 %v3876_v50  ;;  %v6205_v16 = vpop.eup %6204  ;;  %v3869_v13 = vmul.f32 %v8581_v44, %v6203_v3 }
 0xdd1   :  { %3890 = vadd.xlane.f32.xlu0 %v3871_v63  ;;  %v6207_v50 = vpop.eup %6206  ;;  %v3877_v56 = vmul.f32 %v8581_v44, %v6205_v16 }
 0xdd2   :  { %v6209_v63 = vpop.eup %6208  ;;  %v3882_v52 = vmul.f32 %v8581_v44, %v6207_v50 }
 0xdd3   :  { %v3879_v59 = vmul.f32 %v8581_v44, %v6209_v63  ;;  %v6211_v26 = vpop.eup %6210 }
 0xdd4   :  { %3904 = vadd.xlane.f32.xlu1 %v3878_v37  ;;  %v3881_v37 = vmul.f32 %v8581_v44, %v6211_v26 }
 0xdd5   :  { %3894 = vadd.xlane.f32.xlu0 %v3873_v31 }
 0xdd8   :  { %3908 = vadd.xlane.f32.xlu1 %v3880_v47 }
 0xdd9   :  { %3898 = vadd.xlane.f32.xlu0 %v3875_v5 }
 0xddb   :  { %v6213_v42 = vpop.eup %6212 }
 0xddc   :  { %3886 = vadd.xlane.f32.xlu1 %v3869_v13  ;;  %v3883_v31 = vmul.f32 %v8581_v44, %v6213_v42  ;;  %v9354_v42 = vld [vmem:[#allocation23_spill] sm:$0xff] }
 0xddd   :  { %3902 = vadd.xlane.f32.xlu0 %v3877_v56 }
 0xde0   :  { %3912 = vadd.xlane.f32.xlu1 %v3882_v52 }
 0xde1   :  { %3906 = vadd.xlane.f32.xlu0 %v3879_v59 }
 0xde5   :  { %3910 = vadd.xlane.f32.xlu0 %v3881_v37 }
 0xde9   :  { %3914 = vadd.xlane.f32.xlu0 %v3883_v31 }
 0xe51   :  { %v3893_v12 = vpop.xlane.xlu1 %3892 }
 0xe52   :  { %v3885_v24 = vpop.xlane.xlu0 %3884  ;;  %v3920_v56 = vadd.f32 %v3893_v12, %v8095_v21 }
 0xe53   :  { %v3916_v52 = vadd.f32 %v3885_v24, %v8100_v36  ;;  %v9356_v24 = vld [vmem:[#allocation24_spill] sm:$0xff] }
 0xe54   :  { %v3934_v51 = vsel %vm3410_vm1, %v3920_v56, -inf }
 0xe55   :  { %v3897_v47 = vpop.xlane.xlu1 %3896  ;;  %v3932_v45 = vsel %vm3410_vm1, %v3916_v52, -inf }
 0xe56   :  { %v3889_v3 = vpop.xlane.xlu0 %3888  ;;  %v3922_v59 = vadd.f32 %v3897_v47, %v8102_v9 }
 0xe57   :  { %v3918_v26 = vadd.f32 %v3889_v3, %v8104_v38 }
 0xe58   :  { %v3936_v12 = vsel %vm3410_vm1, %v3922_v59, -inf }
 0xe59   :  { %v3901_v5 = vpop.xlane.xlu1 %3900  ;;  %v3933_v21 = vsel %vm3410_vm1, %v3918_v26, -inf }
 0xe5a   :  { %v3891_v16 = vpop.xlane.xlu0 %3890  ;;  %v3924_v31 = vadd.f32 %v3901_v5, %v9354_v42  ;;  %v3935_v42 = vmax.f32 %v3932_v45, %v3934_v51 }
 0xe5b   :  { %v3919_v6 = vadd.f32 %v3891_v16, %v8170_v58 }
 0xe5c   :  { %v3938_v3 = vsel %vm3410_vm1, %v3924_v31, -inf }
 0xe5d   :  { %v3905_v13 = vpop.xlane.xlu1 %3904  ;;  %v3939_v1 = vmax.f32 %v3935_v42, %v3938_v3 }
 0xe5e   :  { %v3895_v50 = vpop.xlane.xlu0 %3894  ;;  %v8611_v49 = vadd.f32 %v3905_v13, %v9355_v19  ;;  %v3937_v13 = vmax.f32 %v3933_v21, %v3936_v12  ;;  %v9357_v19 = vld [vmem:[#allocation26_spill] sm:$0xff]  ;;  %v9358_v12 = vld [vmem:[#allocation31_spill] sm:$0xff] }
 0xe60   :  { %v3940_v5 = vsel %vm3410_vm1, %v8611_v49, -inf }
 0xe61   :  { %v3909_v63 = vpop.xlane.xlu1 %3908  ;;  %v3941_v14 = vmax.f32 %v3937_v13, %v3940_v5  ;;  %v9360_v5 = vld [vmem:[#allocation32_spill] sm:$0xff] }
 0xe62   :  { %v3899_v37 = vpop.xlane.xlu0 %3898  ;;  %v3928_v36 = vadd.f32 %v3909_v63, %v9356_v24  ;;  %v3921_v63 = vadd.f32 %v3895_v50, %v8166_v39 }
 0xe63   :  { %v3923_v24 = vadd.f32 %v3899_v37, %v8168_v11  ;;  %v3948_v37 = vsel %vm3410_vm1, %v3919_v6, -inf }
 0xe64   :  { %v3942_v44 = vsel %vm3410_vm1, %v3928_v36, -inf  ;;  %v3949_v42 = vsel %vm3410_vm1, %v3921_v63, -inf }
 0xe65   :  { %v3887_v22 = vpop.xlane.xlu1 %3886  ;;  %v3943_v45 = vmax.f32 %v3939_v1, %v3942_v44  ;;  %v3951_v50 = vsel %vm3410_vm1, %v3923_v24, -inf }
 0xe66   :  { %v3903_v47 = vpop.xlane.xlu0 %3902  ;;  %v8622_v38 = vadd.f32 %v3887_v22, %v9357_v19 }
 0xe67   :  { %v3925_v19 = vadd.f32 %v3903_v47, %v9358_v12 }
 0xe68   :  { %v3947_v22 = vsel %vm3410_vm1, %v8622_v38, -inf }
 0xe69   :  { %v3913_v9 = vpop.xlane.xlu1 %3912  ;;  %v3950_v16 = vmax.f32 %v3947_v22, %v3949_v42  ;;  %v3953_v47 = vsel %vm3410_vm1, %v3925_v19, -inf }
 0xe6a   :  { %v3907_v46 = vpop.xlane.xlu0 %3906  ;;  %v3930_v7 = vadd.f32 %v3913_v9, %v8147_v30 }
 0xe6b   :  { %v3927_v35 = vadd.f32 %v3907_v46, %v9359_v20 }
 0xe6c   :  { %v3944_v51 = vsel %vm3410_vm1, %v3930_v7, -inf }
 0xe6d   :  { %v3945_v21 = vmax.f32 %v3941_v14, %v3944_v51  ;;  %v3952_v14 = vmax.f32 %v3948_v37, %v3951_v50  ;;  %v3955_v46 = vsel %vm3410_vm1, %v3927_v35, -inf }
 0xe6e   :  { %v3911_v9 = vpop.xlane.xlu0 %3910 }
 0xe6f   :  { %v3946_v3 = vmax.f32 %v3943_v45, %v3945_v21  ;;  %v3929_v13 = vadd.f32 %v3911_v9, %v9360_v5  ;;  %v3954_v9 = vmax.f32 %v3950_v16, %v3953_v47 }
 0xe71   :  { %v3962_v1 = vsub.f32 %v3916_v52, %v3946_v3  ;;  %v3964_v44 = vsub.f32 %v3918_v26, %v3946_v3  ;;  %v3966_v58 = vsub.f32 %v3920_v56, %v3946_v3  ;;  %v3968_v11 = vsub.f32 %v3922_v59, %v3946_v3 }
 0xe72   :  { %v3970_v51 = vsub.f32 %v3924_v31, %v3946_v3  ;;  %v3915_v20 = vpop.xlane.xlu0 %3914  ;;  %v3972_v22 = vsub.f32 %v8611_v49, %v3946_v3  ;;  %v3956_v52 = vmax.f32 %v3952_v14, %v3955_v46  ;;  %v3974_v26 = vsub.f32 %v3928_v36, %v3946_v3 }
 0xe73   :  { %v3978_v12 = vmul.f32 1.442695, %v3962_v1  ;;  %v3982_v39 = vmul.f32 1.442695, %v3964_v44  ;;  %v3986_v30 = vmul.f32 1.442695, %v3966_v58  ;;  %v3931_v45 = vadd.f32 %v3915_v20, %v8205_v34 }
 0xe74   :  { %v3990_v21 = vmul.f32 1.442695, %v3968_v11  ;;  %v3957_v56 = vsel %vm3410_vm1, %v3929_v13, -inf  ;;  %v3976_v59 = vsub.f32 %v3930_v7, %v3946_v3  ;;  %v3994_v42 = vmul.f32 1.442695, %v3970_v51 }
 0xe75   :  { %6214 = vpow2.f32 %v3978_v12  ;;  %v3959_v31 = vsel %vm3410_vm1, %v3931_v45, -inf  ;;  %v3958_v50 = vmax.f32 %v3954_v9, %v3957_v56  ;;  %v3998_v58 = vmul.f32 1.442695, %v3972_v22 }
 0xe76   :  { %6216 = vpow2.f32 %v3982_v39  ;;  %v3960_v37 = vmax.f32 %v3956_v52, %v3959_v31  ;;  %v4002_v20 = vmul.f32 1.442695, %v3974_v26  ;;  %v4006_v49 = vmul.f32 1.442695, %v3976_v59 }
 0xe77   :  { %6218 = vpow2.f32 %v3986_v30 }
 0xe78   :  { %6220 = vpow2.f32 %v3990_v21  ;;  %v3961_v1 = vmax.f32 %v3958_v50, %v3960_v37 }
 0xe79   :  { %6222 = vpow2.f32 %v3994_v42 }
 0xe7a   :  { %v3963_v11 = vsub.f32 %v8622_v38, %v3961_v1  ;;  %v3965_v36 = vsub.f32 %v3919_v6, %v3961_v1  ;;  %v3967_v12 = vsub.f32 %v3921_v63, %v3961_v1  ;;  %6224 = vpow2.f32 %v3998_v58 }
 0xe7b   :  { %v3969_v16 = vsub.f32 %v3923_v24, %v3961_v1  ;;  %v3971_v7 = vsub.f32 %v3925_v19, %v3961_v1  ;;  %6226 = vpow2.f32 %v4002_v20  ;;  %v3973_v30 = vsub.f32 %v3927_v35, %v3961_v1 }
 0xe7c   :  { %v3980_v39 = vmul.f32 1.442695, %v3963_v11  ;;  %v3984_v3 = vmul.f32 1.442695, %v3965_v36  ;;  %6228 = vpow2.f32 %v4006_v49  ;;  %v3988_v44 = vmul.f32 1.442695, %v3967_v12 }
 0xe7d   :  { %v3992_v14 = vmul.f32 1.442695, %v3969_v16  ;;  %v3975_v47 = vsub.f32 %v3929_v13, %v3961_v1  ;;  %v3996_v46 = vmul.f32 1.442695, %v3971_v7  ;;  %v3977_v22 = vsub.f32 %v3931_v45, %v3961_v1 }
 0xe7e   :  { %6230 = vpow2.f32 %v3980_v39  ;;  %v4000_v6 = vmul.f32 1.442695, %v3973_v30 }
 0xe7f   :  { %6232 = vpow2.f32 %v3984_v3  ;;  %v4004_v35 = vmul.f32 1.442695, %v3975_v47  ;;  %v4008_v52 = vmul.f32 1.442695, %v3977_v22 }
 0xe80   :  { %6234 = vpow2.f32 %v3988_v44 }
 0xe81   :  { %6236 = vpow2.f32 %v3992_v14 }
 0xe82   :  { %v6215_v51 = vpop.eup %6214  ;;  %6238 = vpow2.f32 %v3996_v46 }
 0xe83   :  { %v6217_v38 = vpop.eup %6216  ;;  %v4010_v24 = vsel %vm3410_vm1, %v6215_v51, 0.0  ;;  %4042 = vperm.xlu1 %5551, %v6215_v51   ;;  %6240 = vpow2.f32 %v4000_v6 }
 0xe84   :  { %v6219_v19 = vpop.eup %6218  ;;  %v4011_v63 = vsel %vm3410_vm1, %v6217_v38, 0.0  ;;  %6242 = vpow2.f32 %v4004_v35 }
 0xe85   :  { %v6221_v21 = vpop.eup %6220  ;;  %v4012_v9 = vadd.f32 %v4011_v63, %v4010_v24  ;;  %4062 = vperm.xlu0 %5552, %v6219_v19   ;;  %v4013_v13 = vsel %vm3410_vm1, %v6219_v19, 0.0  ;;  %6244 = vpow2.f32 %v4008_v52 }
 0xe86   :  { %v6223_v26 = vpop.eup %6222  ;;  %v4015_v56 = vsel %vm3410_vm1, %v6221_v21, 0.0 }
 0xe87   :  { %v4014_v45 = vadd.f32 %v4013_v13, %v4012_v9  ;;  %4052 = vperm.xlu1 %5551, %v6217_v38   ;;  %v6225_v59 = vpop.eup %6224  ;;  %v4017_v50 = vsel %vm3410_vm1, %v6223_v26, 0.0 }
 0xe88   :  { %v6227_v31 = vpop.eup %6226  ;;  %v4019_v1 = vsel %vm3410_vm1, %v6225_v59, 0.0 }
 0xe89   :  { %v4016_v42 = vadd.f32 %v4015_v56, %v4014_v45  ;;  %4072 = vperm.xlu0 %5552, %v6221_v21   ;;  %v6229_v37 = vpop.eup %6228  ;;  %v4021_v16 = vsel %vm3410_vm1, %v6227_v31, 0.0 }
 0xe8a   :  { %v4023_v44 = vsel %vm3410_vm1, %v6229_v37, 0.0 }
 0xe8b   :  { %v4018_v58 = vadd.f32 %v4017_v50, %v4016_v42  ;;  %v6231_v20 = vpop.eup %6230 }
 0xe8c   :  { %v6233_v49 = vpop.eup %6232  ;;  %v4025_v36 = vsel %vm3410_vm1, %v6231_v20, 0.0 }
 0xe8d   :  { %v4020_v11 = vadd.f32 %v4019_v1, %v4018_v58  ;;  %4082 = vperm.xlu0 %5552, %v6223_v26   ;;  %v6235_v12 = vpop.eup %6234  ;;  %v4026_v7 = vsel %vm3410_vm1, %v6233_v49, 0.0  ;;  %4057 = vperm.xlu1 %5551, %v6233_v49  }
 0xe8e   :  { %v6237_v39 = vpop.eup %6236  ;;  %v4027_v30 = vadd.f32 %v4026_v7, %v4025_v36  ;;  %v4028_v14 = vsel %vm3410_vm1, %v6235_v12, 0.0 }
 0xe8f   :  { %v4022_v3 = vadd.f32 %v4021_v16, %v4020_v11  ;;  %v6239_v47 = vpop.eup %6238  ;;  %v4030_v22 = vsel %vm3410_vm1, %v6237_v39, 0.0 }
 0xe90   :  { %v4029_v51 = vadd.f32 %v4028_v14, %v4027_v30  ;;  %v6241_v6 = vpop.eup %6240  ;;  %v4032_v24 = vsel %vm3410_vm1, %v6239_v47, 0.0 }
 0xe91   :  { %v4024_v46 = vadd.f32 %v4023_v44, %v4022_v3  ;;  %4047 = vperm.xlu0 %5552, %v6231_v20   ;;  %4067 = vperm.xlu1 %5551, %v6235_v12   ;;  %v6243_v19 = vpop.eup %6242  ;;  %v4034_v35 = vsel %vm3410_vm1, %v6241_v6, 0.0 }
 0xe92   :  { %v4031_v38 = vadd.f32 %v4030_v22, %v4029_v51  ;;  %v6245_v21 = vpop.eup %6244  ;;  %v4036_v13 = vsel %vm3410_vm1, %v6243_v19, 0.0 }
 0xe93   :  { %6246 = vrcp.f32 %v4024_v46  ;;  %v4038_v26 = vsel %vm3410_vm1, %v6245_v21, 0.0 }
 0xe94   :  { %v4033_v63 = vadd.f32 %v4032_v24, %v4031_v38 }
 0xe95   :  { %4092 = vperm.xlu0 %5552, %v6225_v59   ;;  %4077 = vperm.xlu1 %5551, %v6237_v39  }
 0xe96   :  { %v4035_v9 = vadd.f32 %v4034_v35, %v4033_v63  ;;  %v9361_v35 = vld [vmem:[#allocation34_spill] sm:$0xff] }
 0xe98   :  { %v4037_v52 = vadd.f32 %v4036_v13, %v4035_v9  ;;  %v9362_v9 = vld [vmem:[#allocation36_spill] sm:$0xff] }
 0xe99   :  { %4102 = vperm.xlu0 %5552, %v6227_v31   ;;  %4087 = vperm.xlu1 %5551, %v6239_v47  }
 0xe9a   :  { %v4039_v45 = vadd.f32 %v4038_v26, %v4037_v52 }
 0xe9c   :  { %6248 = vrcp.f32 %v4039_v45 }
 0xe9d   :  { %4112 = vperm.xlu0 %5552, %v6229_v37   ;;  %4097 = vperm.xlu1 %5551, %v6241_v6  }
 0xea0   :  { %v6247_v56 = vpop.eup %6246 }
 0xea1   :  { %4154 = vperm.xlu0 %5552, %v6247_v56   ;;  %4107 = vperm.xlu1 %5551, %v6243_v19  }
 0xea5   :  { %4117 = vperm.xlu1 %5551, %v6245_v21  }
 0xea9   :  { %v6249_v59 = vpop.eup %6248 }
 0xeaa   :  { %4159 = vperm.xlu1 %5551, %v6249_v59  }
 0xefe   :  { %v4043_v42 = vpop.permute.xlu1 %4042 }
 0xeff   :  { %v4120_v12 = vmul.f32 %v4043_v42, %v8252_v29 }
 0xf00   :  { %v4063_v50 = vpop.permute.xlu0 %4062 }
 0xf01   :  { %v4124_v30 = vmul.f32 %v4063_v50, %v8255_v48 }
 0xf02   :  { %v4053_v58 = vpop.permute.xlu1 %4052 }
 0xf03   :  { %v4122_v11 = vmul.f32 %v4053_v58, %v8250_v55  ;;  %v9363_v58 = vld [vmem:[#allocation38_spill] sm:$0xff] }
 0xf04   :  { %v4073_v20 = vpop.permute.xlu0 %4072 }
 0xf05   :  { %v4136_v7 = vadd.f32 %v4122_v11, %v4120_v12  ;;  %v4126_v22 = vmul.f32 %v4073_v20, %v8259_v2 }
 0xf07   :  { %v4137_v14 = vadd.f32 %v4136_v7, %v4124_v30 }
 0xf08   :  { %v4083_v1 = vpop.permute.xlu0 %4082  ;;  %v4058_v49 = vpop.permute.xlu1 %4057 }
 0xf09   :  { %v4123_v3 = vmul.f32 %v4058_v49, %v8264_v4  ;;  %v4138_v24 = vadd.f32 %v4137_v14, %v4126_v22  ;;  %v4128_v21 = vmul.f32 %v4083_v1, %v9361_v35  ;;  %v9367_v22 = vld [vmem:[#allocation37_spill] sm:$0xff] }
 0xf0b   :  { %v4139_v56 = vadd.f32 %v4138_v24, %v4128_v21  ;;  %v9371_v24 = vld [vmem:[#allocation18_spill] sm:$0xff] }
 0xf0c   :  { %v4048_v31 = vpop.permute.xlu0 %4047  ;;  %v4068_v36 = vpop.permute.xlu1 %4067  ;;  %v9375_v21 = vld [vmem:[#allocation62_spill] sm:$0xff] }
 0xf0d   :  { %v4121_v37 = vmul.f32 %v4048_v31, %v8266_v53  ;;  %v4125_v46 = vmul.f32 %v4068_v36, %v8270_v32 }
 0xf0f   :  { %v4143_v44 = vadd.f32 %v4123_v3, %v4121_v37 }
 0xf10   :  { %v4093_v16 = vpop.permute.xlu0 %4092  ;;  %v4078_v39 = vpop.permute.xlu1 %4077 }
 0xf11   :  { %v4144_v6 = vadd.f32 %v4143_v44, %v4125_v46  ;;  %v4127_v38 = vmul.f32 %v4078_v39, %v8274_v41  ;;  %v4130_v13 = vmul.f32 %v4093_v16, %v9362_v9  ;;  %v9365_v46 = vld [vmem:[#allocation33_spill] sm:$0xff] }
 0xf13   :  { %v4145_v52 = vadd.f32 %v4144_v6, %v4127_v38  ;;  %v4140_v49 = vadd.f32 %v4139_v56, %v4130_v13  ;;  %v9368_v6 = vld [vmem:[#allocation40_spill] sm:$0xff]  ;;  %v9376_v13 = vld [vmem:[#allocation63_spill] sm:$0xff] }
 0xf14   :  { %v4088_v47 = vpop.permute.xlu1 %4087  ;;  %v4103_v51 = vpop.permute.xlu0 %4102  ;;  %v9370_v38 = vld [vmem:[#allocation44_spill] sm:$0xff]  ;;  %v9380_v56 = vld [vmem:[#allocation67_spill] sm:$0xff] }
 0xf15   :  { %v4129_v63 = vmul.f32 %v4088_v47, %v8276_v27  ;;  %v4132_v59 = vmul.f32 %v4103_v51, %v8285_v18  ;;  %v9364_v47 = vld [vmem:[#allocation35_spill] sm:$0xff] }
 0xf16   :  { %v9366_v51 = vld [vmem:[#allocation39_spill] sm:$0xff] }
 0xf17   :  { %v4146_v50 = vadd.f32 %v4145_v52, %v4129_v63  ;;  %v4141_v36 = vadd.f32 %v4140_v49, %v4132_v59  ;;  %v9374_v63 = vld [vmem:[#allocation61_spill] sm:$0xff]  ;;  %v9377_v52 = vld [vmem:[#allocation64_spill] sm:$0xff] }
 0xf18   :  { %v4098_v19 = vpop.permute.xlu1 %4097  ;;  %v4113_v26 = vpop.permute.xlu0 %4112  ;;  %v9381_v59 = vld [vmem:[#allocation68_spill] sm:$0xff] }
 0xf19   :  { %v4131_v45 = vmul.f32 %v4098_v19, %v8283_v62  ;;  %v4134_v31 = vmul.f32 %v4113_v26, %v8292_v40  ;;  %v9373_v19 = vld [vmem:[#allocation60_spill] sm:$0xff]  ;;  %v9378_v26 = vld [vmem:[#allocation65_spill] sm:$0xff] }
 0xf1a   :  { %v9385_v49 = vld [vmem:[#allocation72_spill] sm:$0xff] }
 0xf1b   :  { %v4147_v11 = vadd.f32 %v4146_v50, %v4131_v45  ;;  %v4142_v16 = vadd.f32 %v4141_v36, %v4134_v31  ;;  %v9379_v45 = vld [vmem:[#allocation66_spill] sm:$0xff]  ;;  %v9386_v31 = vld [vmem:[#allocation73_spill] sm:$0xff]  ;;  %v9388_v36 = vld [vmem:[#allocation75_spill] sm:$0xff] }
 0xf1c   :  { %v4108_v42 = vpop.permute.xlu1 %4107  ;;  %v4155_v7 = vpop.permute.xlu0 %4154  ;;  %v9383_v50 = vld [vmem:[#allocation70_spill] sm:$0xff] }
 0xf1d   :  { %v4133_v20 = vmul.f32 %v4108_v42, %v9363_v58  ;;  %v4162_v30 = vmul.f32 %v4155_v7, %v4142_v16  ;;  %v9382_v42 = vld [vmem:[#allocation69_spill] sm:$0xff]  ;;  %v9392_v16 = vld [vmem:[#allocation79_spill] sm:$0xff]  ;;  %v9393_v7 = vld [vmem:[#allocation80_spill] sm:$0xff] }
 0xf1f   :  { %v4148_v1 = vadd.f32 %v4147_v11, %v4133_v20  ;;  %v9384_v20 = vld [vmem:[#allocation71_spill] sm:$0xff]  ;;  %v9387_v11 = vld [vmem:[#allocation74_spill] sm:$0xff] }
 0xf20   :  { %v4118_v12 = vpop.permute.xlu1 %4117 }
 0xf21   :  { %v4135_v37 = vmul.f32 %v4118_v12, %v8294_v25  ;;  %v9389_v12 = vld [vmem:[#allocation76_spill] sm:$0xff] }
 0xf23   :  { %v4149_v39 = vadd.f32 %v4148_v1, %v4135_v37  ;;  %v9390_v1 = vld [vmem:[#allocation77_spill] sm:$0xff]  ;;  %v9391_v37 = vld [vmem:[#allocation78_spill] sm:$0xff] }
 0xf25   :  { %v4160_v3 = vpop.permute.xlu1 %4159 }
 0xf26   :  { %v4163_v44 = vmul.f32 %v4160_v3, %v4149_v39  ;;  %v9394_v39 = vld [vmem:[#allocation81_spill] sm:$0xff]  ;;  %v9395_v3 = vld [vmem:[#allocation82_spill] sm:$0xff] }
 0xf28   :  { %v4164_v14 = vpack.c.bf16 %v4163_v44, %v4162_v30  ;;  %v9396_v30 = vld [vmem:[#allocation83_spill] sm:$0xff]  ;;  %v9397_v44 = vld [vmem:[#allocation84_spill] sm:$0xff] }
 0xf2a   :  { %4198 = vmatmul.mubr.bf16.vlgmr.msra.gmra.mxu1 %v4164_v14  ;;  %4241 = vmatmul.mubr.bf16.vlgmr.msra.gmra.mxu0 %v4164_v14  ;;  %v9398_v14 = vld [vmem:[#allocation85_spill] sm:$0xff] }
 0xf2b   :  { %5493 = vmatpush3.bf16.msra.mxu1 %v8301_v33  ;;  %5508 = vmatprep.mubr.msk.bf16.mxu1 %vm6617_vm0, %v9287_v28  ;;  %v9369_v33 = vld [vmem:[#allocation42_spill] sm:$0xff] }
 0xf2c   :  { %5494 = vmatprep.subr.bf16.mxu1 %v9287_v28  ;;  %4671 = vmatpush1.bf16.msra.mxu0 %v8307_v43  ;;  %v9372_v43 = vld [vmem:[#allocation59_spill] sm:$0xff] }
 0xf2d   :  { %4672 = vmatprep.subr.bf16.mxu0 %v9364_v47  ;;  %v9399_v47 = vld [vmem:[#allocation86_spill] sm:$0xff] }
 0xf2f   :  { %5495 = vmatpush3.bf16.msra.mxu1 %v9365_v46  ;;  %v9400_v46 = vld [vmem:[#allocation87_spill] sm:$0xff] }
 0xf30   :  { %5496 = vmatprep.subr.bf16.mxu1 %v9287_v28  ;;  %4673 = vmatpush1.bf16.msra.mxu0 %v9366_v51  ;;  %v9401_v51 = vld [vmem:[#allocation88_spill] sm:$0xff] }
 0xf31   :  { %4674 = vmatprep.subr.bf16.mxu0 %v9367_v22 }
 0xf33   :  { %5497 = vmatpush3.bf16.msra.mxu1 %v9368_v6 }
 0xf34   :  { %5498 = vmatprep.subr.bf16.mxu1 %v9287_v28  ;;  %4675 = vmatpush1.bf16.msra.mxu0 %v9369_v33 }
 0xf35   :  { %4676 = vmatprep.subr.bf16.mxu0 %v9370_v38 }
 0xf37   :  { %5499 = vmatpush3.bf16.msra.mxu1 %v9371_v24 }
 0xf38   :  { %5500 = vmatprep.subr.bf16.mxu1 %v9287_v28  ;;  %4677 = vmatpush1.bf16.msra.mxu0 %v9372_v43 }
 0xf39   :  { %4678 = vmatprep.subr.bf16.mxu0 %v9373_v19 }
 0xf3b   :  { %5501 = vmatpush3.bf16.msra.mxu1 %v9374_v63 }
 0xf3c   :  { %5502 = vmatprep.subr.bf16.mxu1 %v9287_v28  ;;  %4679 = vmatpush1.bf16.msra.mxu0 %v9375_v21 }
 0xf3d   :  { %4680 = vmatprep.subr.bf16.mxu0 %v9376_v13 }
 0xf3f   :  { %5503 = vmatpush3.bf16.msra.mxu1 %v9377_v52 }
 0xf40   :  { %5504 = vmatprep.subr.bf16.mxu1 %v9287_v28  ;;  %4681 = vmatpush1.bf16.msra.mxu0 %v9378_v26 }
 0xf41   :  { %4682 = vmatprep.subr.bf16.mxu0 %v9379_v45 }
 0xf43   :  { %5505 = vmatpush3.bf16.msra.mxu1 %v9380_v56 }
 0xf44   :  { %5506 = vmatprep.subr.bf16.mxu1 %v9287_v28  ;;  %4683 = vmatpush1.bf16.msra.mxu0 %v9381_v59 }
 0xf45   :  { %4684 = vmatprep.subr.bf16.mxu0 %v9382_v42 }
 0xf47   :  { %5507 = vmatpush3.bf16.msra.mxu1 %v9383_v50  ;;  %v9402_v50 = vld [vmem:[#allocation58_spill] sm:$0xff] }
 0xf48   :  { %4713 = vmatprep.subr.bf16.mxu1 %v9384_v20  ;;  %4685 = vmatpush1.bf16.msra.mxu0 %v9385_v49 }
 0xf49   :  { %4686 = vmatprep.subr.bf16.mxu0 %v9386_v31 }
 0xf4c   :  { %4687 = vmatpush2.bf16.msra.mxu0 %v9387_v11 }
 0xf4d   :  { %4688 = vmatprep.subr.bf16.mxu0 %v9388_v36 }
 0xf50   :  { %4689 = vmatpush2.bf16.msra.mxu0 %v9389_v12 }
 0xf51   :  { %4690 = vmatprep.subr.bf16.mxu0 %v9390_v1 }
 0xf54   :  { %4691 = vmatpush2.bf16.msra.mxu0 %v9391_v37 }
 0xf55   :  { %4692 = vmatprep.subr.bf16.mxu0 %v9392_v16 }
 0xf58   :  { %4693 = vmatpush2.bf16.msra.mxu0 %v9393_v7 }
 0xf59   :  { %4694 = vmatprep.subr.bf16.mxu0 %v9394_v39 }
 0xf5c   :  { %4695 = vmatpush2.bf16.msra.mxu0 %v9395_v3 }
 0xf5d   :  { %4696 = vmatprep.subr.bf16.mxu0 %v9396_v30 }
 0xf60   :  { %4697 = vmatpush2.bf16.msra.mxu0 %v9397_v44 }
 0xf61   :  { %4698 = vmatprep.subr.bf16.mxu0 %v9398_v14 }
 0xf64   :  { %4699 = vmatpush2.bf16.msra.mxu0 %v9399_v47 }
 0xf65   :  { %4700 = vmatprep.subr.bf16.mxu0 %v9400_v46 }
 0xf68   :  { %4701 = vmatpush2.bf16.msra.mxu0 %v9401_v51 }
 0xf69   :  { %5512 = vmatprep.subr.bf16.mxu0 %v9287_v28 }
 0xfea   :  { %v4199_v22 = vpop.f32.mrf.mxu1  ;;  %v4242_v33 = vpop.f32.mrf.mxu0 }
 0xfeb   :  { %v4200_v6 = vadd.f32 %v4199_v22, %v7961_v15  ;;  %v4243_v49 = vadd.f32 %v4242_v33, %v7985_v60 }
 0xfec   :  { %v4201_v38 = vpop.f32.mrf.mxu1  ;;  %v4244_v21 = vpop.f32.mrf.mxu0 }
 0xfed   :  { %v5285_v24 = vmul.f32 -1.442695, %v4200_v6  ;;  %v4202_v43 = vadd.f32 %v4201_v38, %v7967_v57  ;;  %v4245_v20 = vadd.f32 %v4244_v21, %v9402_v50 }
 0xfee   :  { %v4203_v19 = vpop.f32.mrf.mxu1  ;;  %v4246_v56 = vpop.f32.mrf.mxu0 }
 0xfef   :  { %6250 = vpow2.f32 %v5285_v24  ;;  %v5287_v63 = vmul.f32 -1.442695, %v4202_v43  ;;  %v4204_v13 = vadd.f32 %v4203_v19, %v7961_v15  ;;  %v5289_v36 = vmul.f32 -1.442695, %v4245_v20 }
 0xff0   :  { %v4205_v52 = vpop.f32.mrf.mxu1  ;;  %v4248_v42 = vpop.f32.mrf.mxu0  ;;  %v4247_v39 = vadd.f32 %v4246_v56, %v7985_v60 }
 0xff1   :  { %6252 = vpow2.f32 %v5287_v63  ;;  %v5286_v26 = vmul.f32 -1.442695, %v4204_v13  ;;  %v4206_v45 = vadd.f32 %v4205_v52, %v7967_v57  ;;  %v4249_v31 = vadd.f32 %v4248_v42, %v9402_v50 }
 0xff3   :  { %6254 = vpow2.f32 %v5286_v26  ;;  %v5288_v59 = vmul.f32 -1.442695, %v4206_v45  ;;  %v5290_v37 = vmul.f32 -1.442695, %v4249_v31  ;;  %v9404_v31 = vld [vmem:[#allocation90_spill] sm:$0xff] }
 0xff5   :  { %6256 = vpow2.f32 %v5288_v59 }
 0xff6   :  { %6258 = vtanh.f32 %v4243_v49 }
 0xffc   :  { %v6251_v11 = vpop.eup %6250 }
 0xffd   :  { %v4257_v12 = vadd.f32 1.0, %v6251_v11  ;;  %v9405_v11 = vld [vmem:[#allocation91_spill] sm:$0xff] }
 0xffe   :  { %v6253_v1 = vpop.eup %6252 }
 0xfff   :  { %6260 = vrcp.f32 %v4257_v12  ;;  %v4269_v16 = vadd.f32 1.0, %v6253_v1  ;;  %v9407_v12 = vld [vmem:[#allocation93_spill] sm:$0xff]  ;;  %v9408_v1 = vld [vmem:[#allocation94_spill] sm:$0xff] }
0x1000   :  { %v6255_v7 = vpop.eup %6254  ;;  %6262 = vpow2.f32 %v5289_v36  ;;  %v9406_v36 = vld [vmem:[#allocation92_spill] sm:$0xff] }
0x1001   :  { %6264 = vrcp.f32 %v4269_v16  ;;  %v4258_v3 = vadd.f32 1.0, %v6255_v7  ;;  %v9415_v16 = vld [vmem:[#allocation101_spill] sm:$0xff]  ;;  %v9416_v7 = vld [vmem:[#allocation102_spill] sm:$0xff] }
0x1002   :  { %v6257_v30 = vpop.eup %6256  ;;  %6266 = vpow2.f32 %v5290_v37  ;;  %v9414_v37 = vld [vmem:[#allocation100_spill] sm:$0xff] }
0x1003   :  { %6268 = vrcp.f32 %v4258_v3  ;;  %v4270_v44 = vadd.f32 1.0, %v6257_v30  ;;  %v6259_v14 = vpop.eup %6258  ;;  %v9418_v3 = vld [vmem:[#allocation104_spill] sm:$0xff]  ;;  %v9419_v30 = vld [vmem:[#allocation105_spill] sm:$0xff] }
0x1004   :  { %6270 = vtanh.f32 %v4247_v39  ;;  %v9417_v39 = vld [vmem:[#allocation103_spill] sm:$0xff] }
0x1005   :  { %6272 = vrcp.f32 %v4270_v44  ;;  %v9420_v44 = vld [vmem:[#allocation106_spill] sm:$0xff] }
0x100c   :  { %v6261_v47 = vpop.eup %6260 }
0x100d   :  { %v6263_v46 = vpop.eup %6262  ;;  %v4291_v6 = vmul.f32 %v6261_v47, %v6259_v14  ;;  %v9421_v14 = vld [vmem:[#allocation107_spill] sm:$0xff]  ;;  %v9422_v47 = vld [vmem:[#allocation108_spill] sm:$0xff] }
0x100e   :  { %v6265_v51 = vpop.eup %6264  ;;  %v4283_v24 = vadd.f32 1.0, %v6263_v46  ;;  %v9423_v46 = vld [vmem:[#allocation109_spill] sm:$0xff] }
0x100f   :  { %v6267_v22 = vpop.eup %6266  ;;  %v4289_v33 = vmul.f32 %v6265_v51, %v8461_v61  ;;  %v9424_v51 = vld [vmem:[#allocation110_spill] sm:$0xff] }
0x1010   :  { %v6269_v38 = vpop.eup %6268  ;;  %v4284_v21 = vadd.f32 1.0, %v6267_v22  ;;  %6274 = vrcp.f32 %v4283_v24  ;;  %v9425_v22 = vld [vmem:[#allocation111_spill] sm:$0xff] }
0x1011   :  { %v6271_v43 = vpop.eup %6270  ;;  %v8736_v19 = vadd.f32 %v4291_v6, %v4289_v33  ;;  %v9426_v6 = vld [vmem:[#allocation112_spill] sm:$0xff]  ;;  %v9427_v33 = vld [vmem:[#allocation113_spill] sm:$0xff] }
0x1012   :  { %v6273_v63 = vpop.eup %6272  ;;  %v4292_v13 = vmul.f32 %v6271_v43, %v6269_v38  ;;  %v9428_v38 = vld [vmem:[#allocation114_spill] sm:$0xff]  ;;  %v9429_v43 = vld [vmem:[#allocation115_spill] sm:$0xff] }
0x1013   :  { %v4290_v52 = vmul.f32 %v6273_v63, %v8464_v23  ;;  %6276 = vtanh.f32 %v8736_v19  ;;  %v9403_v23 = vld [vmem:[#allocation89_spill] sm:$0xff] }
0x1014   :  { %6278 = vrcp.f32 %v4284_v21 }
0x1015   :  { %v8739_v26 = vadd.f32 %v4292_v13, %v4290_v52  ;;  %v9430_v13 = vld [vmem:[#allocation48_spill] sm:$0xff] }
0x1017   :  { %6280 = vtanh.f32 %v8739_v26 }
0x101d   :  { %v6275_v45 = vpop.eup %6274 }
0x1020   :  { %v6277_v61 = vpop.eup %6276 }
0x1021   :  { %v6279_v56 = vpop.eup %6278  ;;  %v4297_v42 = vmul.f32 %v6277_v61, %v6275_v45  ;;  %v9431_v45 = vld [vmem:[#allocation43_spill] sm:$0xff] }
0x1024   :  { %v6281_v59 = vpop.eup %6280 }
0x1025   :  { %v4298_v20 = vmul.f32 %v6281_v59, %v6279_v56  ;;  %v9432_v56 = vld [vmem:[#allocation45_spill] sm:$0xff] }
0x1027   :  { %v4299_v49 = vpack.c.bf16 %v4298_v20, %v4297_v42  ;;  %v9433_v20 = vld [vmem:[#allocation46_spill] sm:$0xff] }
0x1029   :  { %5509 = vmatmul.mubr.bf16.vlgmr.msra.gmra.mxu1 %v4299_v49  ;;  %4702 = vmatprep.mubr.bf16.mxu0 %v4299_v49 }
0x102a   :  { %4745 = vmatprep.mubr.bf16.mxu1 %v4299_v49  ;;  %4714 = vmatpush1.bf16.msra.mxu1 %v8468_v0  ;;  %v9409_v0 = vld [vmem:[#allocation95_spill] sm:$0xff] }
0x102b   :  { %4715 = vmatprep.subr.bf16.mxu1 %v8471_v17  ;;  %v9410_v17 = vld [vmem:[#allocation96_spill] sm:$0xff] }
0x102e   :  { %4716 = vmatpush1.bf16.msra.mxu1 %v8474_v10  ;;  %v9411_v10 = vld [vmem:[#allocation97_spill] sm:$0xff] }
0x102f   :  { %4717 = vmatprep.subr.bf16.mxu1 %v8477_v54  ;;  %v9412_v54 = vld [vmem:[#allocation98_spill] sm:$0xff] }
0x1032   :  { %4718 = vmatpush1.bf16.msra.mxu1 %v8480_v8  ;;  %v9413_v8 = vld [vmem:[#allocation99_spill] sm:$0xff] }
0x1033   :  { %4719 = vmatprep.subr.bf16.mxu1 %v9403_v23 }
0x1036   :  { %4720 = vmatpush1.bf16.msra.mxu1 %v9404_v31 }
0x1037   :  { %4721 = vmatprep.subr.bf16.mxu1 %v9405_v11  ;;  %v9434_v11 = vld [vmem:[#allocation51_spill] sm:$0xff] }
0x103a   :  { %4722 = vmatpush1.bf16.msra.mxu1 %v9406_v36 }
0x103b   :  { %4723 = vmatprep.subr.bf16.mxu1 %v9407_v12  ;;  %v9435_v12 = vld [vmem:[#allocation41_spill] sm:$0xff] }
0x103e   :  { %4724 = vmatpush1.bf16.msra.mxu1 %v9408_v1 }
0x103f   :  { %4725 = vmatprep.subr.bf16.mxu1 %v9409_v0  ;;  %v9436_v0 = vld [vmem:[#allocation54_spill] sm:$0xff] }
0x1042   :  { %4726 = vmatpush1.bf16.msra.mxu1 %v9410_v17 }
0x1043   :  { %4727 = vmatprep.subr.bf16.mxu1 %v9411_v10  ;;  %v9437_v10 = vld [vmem:[#allocation52_spill] sm:$0xff] }
0x1046   :  { %4728 = vmatpush1.bf16.msra.mxu1 %v9412_v54 }
0x1047   :  { %4729 = vmatprep.subr.bf16.mxu1 %v9413_v8  ;;  %v9438_v8 = vld [vmem:[#allocation15_spill] sm:$0xff] }
0x104a   :  { %4730 = vmatpush2.bf16.msra.mxu1 %v9414_v37 }
0x104b   :  { %4731 = vmatprep.subr.bf16.mxu1 %v9415_v16  ;;  %v9439_v16 = vld [vmem:[#allocation50_spill] sm:$0xff] }
0x104e   :  { %4732 = vmatpush2.bf16.msra.mxu1 %v9416_v7 }
0x104f   :  { %4733 = vmatprep.subr.bf16.mxu1 %v9417_v39 }
0x1052   :  { %4734 = vmatpush2.bf16.msra.mxu1 %v9418_v3 }
0x1053   :  { %4735 = vmatprep.subr.bf16.mxu1 %v9419_v30  ;;  %v9440_v30 = vld [vmem:[#allocation116_spill] sm:$0xff] }
0x1056   :  { %4736 = vmatpush2.bf16.msra.mxu1 %v9420_v44 }
0x1057   :  { %4737 = vmatprep.subr.bf16.mxu1 %v9421_v14  ;;  %v9441_v14 = vld [vmem:[#allocation47_spill] sm:$0xff] }
0x105a   :  { %4738 = vmatpush2.bf16.msra.mxu1 %v9422_v47 }
0x105b   :  { %4739 = vmatprep.subr.bf16.mxu1 %v9423_v46 }
0x105e   :  { %4740 = vmatpush2.bf16.msra.mxu1 %v9424_v51 }
0x105f   :  { %4741 = vmatprep.subr.bf16.mxu1 %v9425_v22  ;;  %v9442_v22 = vld [vmem:[#allocation55_spill] sm:$0xff] }
0x1062   :  { %4742 = vmatpush2.bf16.msra.mxu1 %v9426_v6 }
0x1063   :  { %4743 = vmatprep.subr.bf16.mxu1 %v9427_v33 }
0x1066   :  { %4744 = vmatpush2.bf16.msra.mxu1 %v9428_v38 }
0x1067   :  { %5532 = vmatprep.subr.mxu1 %v9287_v28 }
0x10e9   :  { %v4334_v24 = vpop.f32.mrf.mxu1 }
0x10ea   :  { %v4335_v63 = vadd.f32 %v9429_v43, %v4334_v24  ;;  %v9443_v24 = vld [vmem:[#allocation53_spill] sm:$0xff] }
0x10eb   :  { %v5510_v21 = vpop.f32.mrf.mxu1 }
0x10ec   :  { %v4345_v52 = vadd.f32 %v4335_v63, %v9430_v13  ;;  %v4341_v61 = vadd.f32 %v4335_v63, %v9431_v45  ;;  %v4347_v59 = vadd.f32 %v9432_v56, %v4335_v63  ;;  %v4343_v49 = vadd.f32 %v9433_v20, %v4335_v63  ;;  %v9445_v20 = vld [vmem:[#allocation57_spill] sm:$0xff] }
0x10ed   :  { %v4337_v42 = vpop.f32.mrf.mxu1  ;;  %v4349_v36 = vadd.f32 %v4335_v63, %v9434_v11  ;;  %v4351_v17 = vadd.f32 %v9436_v0, %v4335_v63  ;;  %v4353_v37 = vadd.f32 %v4335_v63, %v9438_v8 }
0x10ee   :  { %v4338_v23 = vadd.f32 %v9429_v43, %v4337_v42  ;;  %6282 = vtanh.f32 %v4345_v52  ;;  %v4355_v43 = vadd.f32 %v9443_v24, %v4335_v63  ;;  %v9444_v52 = vld [vmem:[#allocation49_spill] sm:$0xff] }
0x10ef   :  { %v5511_v31 = vpop.f32.mrf.mxu1  ;;  %6284 = vtanh.f32 %v4341_v61 }
0x10f0   :  { %6286 = vtanh.f32 %v4347_v59  ;;  %v4344_v1 = vadd.f32 %v9435_v12, %v4338_v23  ;;  %v4346_v54 = vadd.f32 %v4338_v23, %v9437_v10  ;;  %v4348_v7 = vadd.f32 %v9439_v16, %v4338_v23  ;;  %v9446_v12 = vld [vmem:[#allocation56_spill] sm:$0xff] }
0x10f1   :  { %6288 = vtanh.f32 %v4343_v49  ;;  %v4342_v47 = vadd.f32 %v4338_v23, %v9441_v14  ;;  %v4350_v6 = vadd.f32 %v4338_v23, %v9442_v22  ;;  %v4352_v45 = vadd.f32 %v9444_v52, %v4338_v23 }
0x10f2   :  { %6290 = vtanh.f32 %v4349_v36  ;;  %v4354_v49 = vadd.f32 %v4338_v23, %v9445_v20  ;;  %v9450_v20 = vld [vmem:[#allocation17_spill] sm:$0xff] }
0x10f3   :  { %6292 = vtanh.f32 %v4344_v1  ;;  %v4356_v1 = vadd.f32 %v9446_v12, %v4338_v23 }
0x10f4   :  { %6294 = vtanh.f32 %v4351_v17 }
0x10f5   :  { %6296 = vtanh.f32 %v4346_v54 }
0x10f6   :  { %6298 = vtanh.f32 %v4353_v37  ;;  %v6523_v37 = vld [vmem:[%s8948_s13] ss:$0 sm:$0xff] }
0x10f7   :  { %6300 = vtanh.f32 %v4348_v7 }
0x10f8   :  { %6302 = vtanh.f32 %v4342_v47 }
0x10f9   :  { %6304 = vtanh.f32 %v4350_v6 }
0x10fa   :  { %6306 = vtanh.f32 %v4355_v43 }
0x10fb   :  { %v6283_v39 = vpop.eup %6282  ;;  %6308 = vtanh.f32 %v4352_v45 }
0x10fc   :  { %v6285_v3 = vpop.eup %6284  ;;  %v4377_v44 = vmul.f32 %v9440_v30, %v6283_v39  ;;  %6310 = vtanh.f32 %v4354_v49 }
0x10fd   :  { %v6287_v46 = vpop.eup %6286  ;;  %v4373_v51 = vmul.f32 %v9440_v30, %v6285_v3  ;;  %6312 = vtanh.f32 %v4356_v1 }
0x10fe   :  { %v6289_v33 = vpop.eup %6288  ;;  %4397 = vadd.xlane.f32.xlu1 %v4377_v44  ;;  %v4379_v38 = vmul.f32 %v9440_v30, %v6287_v46 }
0x10ff   :  { %4389 = vadd.xlane.f32.xlu0 %v4373_v51  ;;  %v6291_v21 = vpop.eup %6290  ;;  %v4375_v13 = vmul.f32 %v9440_v30, %v6289_v33 }
0x1100   :  { %v6293_v61 = vpop.eup %6292  ;;  %v4381_v56 = vmul.f32 %v9440_v30, %v6291_v21 }
0x1101   :  { %v6295_v59 = vpop.eup %6294  ;;  %v4376_v42 = vmul.f32 %v9440_v30, %v6293_v61  ;;  %v9448_v61 = vld [vmem:[#allocation22_spill] sm:$0xff] }
0x1102   :  { %4401 = vadd.xlane.f32.xlu1 %v4379_v38  ;;  %v6297_v31 = vpop.eup %6296  ;;  %v4383_v63 = vmul.f32 %v9440_v30, %v6295_v59  ;;  %v9449_v59 = vld [vmem:[#allocation19_spill] sm:$0xff] }
0x1103   :  { %4393 = vadd.xlane.f32.xlu0 %v4375_v13  ;;  %v6299_v11 = vpop.eup %6298  ;;  %v4378_v36 = vmul.f32 %v9440_v30, %v6297_v31  ;;  %v9447_v13 = vld [vmem:[#allocation20_spill] sm:$0xff] }
0x1104   :  { %v6301_v0 = vpop.eup %6300  ;;  %v4385_v17 = vmul.f32 %v9440_v30, %v6299_v11 }
0x1105   :  { %v6303_v10 = vpop.eup %6302  ;;  %v4380_v54 = vmul.f32 %v9440_v30, %v6301_v0 }
0x1106   :  { %4405 = vadd.xlane.f32.xlu1 %v4381_v56  ;;  %v6305_v8 = vpop.eup %6304  ;;  %v4374_v16 = vmul.f32 %v6523_v37, %v6303_v10 }
0x1107   :  { %4395 = vadd.xlane.f32.xlu0 %v4376_v42  ;;  %v6307_v7 = vpop.eup %6306  ;;  %v4382_v39 = vmul.f32 %v6523_v37, %v6305_v8  ;;  %v9453_v8 = vld [vmem:[#allocation24_spill] sm:$0xff] }
0x1108   :  { %v6309_v23 = vpop.eup %6308  ;;  %v4387_v3 = vmul.f32 %v6523_v37, %v6307_v7 }
0x1109   :  { %v4384_v44 = vmul.f32 %v6523_v37, %v6309_v23  ;;  %v6311_v14 = vpop.eup %6310 }
0x110a   :  { %4409 = vadd.xlane.f32.xlu1 %v4383_v63  ;;  %v4386_v30 = vmul.f32 %v6523_v37, %v6311_v14  ;;  %v6313_v47 = vpop.eup %6312  ;;  %v9451_v63 = vld [vmem:[#allocation23_spill] sm:$0xff] }
0x110b   :  { %4399 = vadd.xlane.f32.xlu0 %v4378_v36  ;;  %v4388_v46 = vmul.f32 %v6523_v37, %v6313_v47  ;;  %v9452_v36 = vld [vmem:[#allocation21_spill] sm:$0xff] }
0x110e   :  { %4413 = vadd.xlane.f32.xlu1 %v4385_v17 }
0x110f   :  { %4403 = vadd.xlane.f32.xlu0 %v4380_v54 }
0x1112   :  { %4391 = vadd.xlane.f32.xlu1 %v4374_v16 }
0x1113   :  { %4407 = vadd.xlane.f32.xlu0 %v4382_v39 }
0x1116   :  { %4417 = vadd.xlane.f32.xlu1 %v4387_v3 }
0x1117   :  { %4411 = vadd.xlane.f32.xlu0 %v4384_v44  ;;  %v9454_v44 = vld [vmem:[#allocation26_spill] sm:$0xff] }
0x111b   :  { %4415 = vadd.xlane.f32.xlu0 %v4386_v30 }
0x111f   :  { %4419 = vadd.xlane.f32.xlu0 %v4388_v46 }
0x1187   :  { %v4398_v51 = vpop.xlane.xlu1 %4397 }
0x1188   :  { %v4390_v22 = vpop.xlane.xlu0 %4389  ;;  %v4425_v52 = vadd.f32 %v4398_v51, %v9447_v13  ;;  %v9455_v51 = vld [vmem:[#allocation28_spill] sm:$0xff]  ;;  %v9457_v13 = vld [vmem:[#allocation27_spill] sm:$0xff] }
0x1189   :  { %v4421_v56 = vadd.f32 %v4390_v22, %v9448_v61  ;;  %v9458_v61 = vld [vmem:[#allocation25_spill] sm:$0xff] }
0x118a   :  { %v4439_v1 = vsel %vm3410_vm1, %v4425_v52, -inf }
0x118b   :  { %v4402_v6 = vpop.xlane.xlu1 %4401  ;;  %v4437_v17 = vsel %vm3410_vm1, %v4421_v56, -inf }
0x118c   :  { %v4394_v33 = vpop.xlane.xlu0 %4393  ;;  %v4427_v42 = vadd.f32 %v4402_v6, %v9449_v59  ;;  %v4440_v23 = vmax.f32 %v4437_v17, %v4439_v1 }
0x118d   :  { %v4423_v49 = vadd.f32 %v4394_v33, %v9450_v20 }
0x118e   :  { %v4441_v10 = vsel %vm3410_vm1, %v4427_v42, -inf }
0x118f   :  { %v4406_v38 = vpop.xlane.xlu1 %4405  ;;  %v4438_v54 = vsel %vm3410_vm1, %v4423_v49, -inf }
0x1190   :  { %v4396_v24 = vpop.xlane.xlu0 %4395  ;;  %v4429_v11 = vadd.f32 %v4406_v38, %v9451_v63  ;;  %v4442_v3 = vmax.f32 %v4438_v54, %v4441_v10  ;;  %v9456_v38 = vld [vmem:[#allocation30_spill] sm:$0xff]  ;;  %v9460_v10 = vld [vmem:[#allocation29_spill] sm:$0xff] }
0x1191   :  { %v4424_v59 = vadd.f32 %v4396_v24, %v9458_v61 }
0x1192   :  { %v4443_v7 = vsel %vm3410_vm1, %v4429_v11, -inf }
0x1193   :  { %v4410_v43 = vpop.xlane.xlu1 %4409  ;;  %v4444_v6 = vmax.f32 %v4440_v23, %v4443_v7 }
0x1194   :  { %v4400_v21 = vpop.xlane.xlu0 %4399  ;;  %v8812_v12 = vadd.f32 %v4410_v43, %v9452_v36 }
0x1195   :  { %v4426_v43 = vadd.f32 %v4400_v21, %v9456_v38 }
0x1196   :  { %v4445_v39 = vsel %vm3410_vm1, %v8812_v12, -inf }
0x1197   :  { %v4414_v45 = vpop.xlane.xlu1 %4413  ;;  %v4446_v33 = vmax.f32 %v4442_v3, %v4445_v39  ;;  %v4454_v7 = vsel %vm3410_vm1, %v4426_v43, -inf }
0x1198   :  { %v4404_v31 = vpop.xlane.xlu0 %4403  ;;  %v4433_v37 = vadd.f32 %v4414_v45, %v9453_v8 }
0x1199   :  { %v4428_v45 = vadd.f32 %v4404_v31, %v9457_v13  ;;  %v4453_v31 = vsel %vm3410_vm1, %v4424_v59, -inf }
0x119a   :  { %v4447_v47 = vsel %vm3410_vm1, %v4433_v37, -inf }
0x119b   :  { %v4392_v0 = vpop.xlane.xlu1 %4391  ;;  %v4448_v63 = vmax.f32 %v4444_v6, %v4447_v47  ;;  %v4456_v21 = vsel %vm3410_vm1, %v4428_v45, -inf }
0x119c   :  { %v4408_v16 = vpop.xlane.xlu0 %4407  ;;  %v8823_v14 = vadd.f32 %v4392_v0, %v9454_v44  ;;  %v9459_v0 = vld [vmem:[#allocation31_spill] sm:$0xff] }
0x119d   :  { %v4430_v17 = vadd.f32 %v4408_v16, %v9459_v0 }
0x119e   :  { %v4452_v36 = vsel %vm3410_vm1, %v8823_v14, -inf }
0x119f   :  { %v4418_v30 = vpop.xlane.xlu1 %4417  ;;  %v4455_v24 = vmax.f32 %v4452_v36, %v4454_v7  ;;  %v4458_v16 = vsel %vm3410_vm1, %v4430_v17, -inf }
0x11a0   :  { %v4412_v46 = vpop.xlane.xlu0 %4411  ;;  %v4435_v22 = vadd.f32 %v4418_v30, %v9455_v51  ;;  %v4457_v51 = vmax.f32 %v4453_v31, %v4456_v21 }
0x11a1   :  { %v4432_v54 = vadd.f32 %v4412_v46, %v9460_v10 }
0x11a2   :  { %v4449_v20 = vsel %vm3410_vm1, %v4435_v22, -inf }
0x11a3   :  { %v4450_v1 = vmax.f32 %v4446_v33, %v4449_v20  ;;  %v4460_v46 = vsel %vm3410_vm1, %v4432_v54, -inf }
0x11a4   :  { %v4416_v8 = vpop.xlane.xlu0 %4415 }
0x11a5   :  { %v4451_v39 = vmax.f32 %v4448_v63, %v4450_v1  ;;  %v4434_v23 = vadd.f32 %v4416_v8, %v9360_v5  ;;  %v4459_v5 = vmax.f32 %v4455_v24, %v4458_v16 }
0x11a7   :  { %v4467_v3 = vsub.f32 %v4421_v56, %v4451_v39  ;;  %v4469_v44 = vsub.f32 %v4423_v49, %v4451_v39  ;;  %v4471_v30 = vsub.f32 %v4425_v52, %v4451_v39  ;;  %v4473_v47 = vsub.f32 %v4427_v42, %v4451_v39 }
0x11a8   :  { %v4475_v6 = vsub.f32 %v4429_v11, %v4451_v39  ;;  %v4420_v33 = vpop.xlane.xlu0 %4419  ;;  %v4477_v63 = vsub.f32 %v8812_v12, %v4451_v39  ;;  %v4461_v56 = vmax.f32 %v4457_v51, %v4460_v46  ;;  %v4479_v49 = vsub.f32 %v4433_v37, %v4451_v39 }
0x11a9   :  { %v4483_v38 = vmul.f32 1.442695, %v4467_v3  ;;  %v4487_v13 = vmul.f32 1.442695, %v4469_v44  ;;  %v4491_v61 = vmul.f32 1.442695, %v4471_v30  ;;  %v4436_v20 = vadd.f32 %v4420_v33, %v8205_v34 }
0x11aa   :  { %v4495_v36 = vmul.f32 1.442695, %v4473_v47  ;;  %v4462_v52 = vsel %vm3410_vm1, %v4434_v23, -inf  ;;  %v4481_v42 = vsub.f32 %v4435_v22, %v4451_v39  ;;  %v4499_v1 = vmul.f32 1.442695, %v4475_v6 }
0x11ab   :  { %6314 = vpow2.f32 %v4483_v38  ;;  %v4464_v11 = vsel %vm3410_vm1, %v4436_v20, -inf  ;;  %v4463_v0 = vmax.f32 %v4459_v5, %v4462_v52  ;;  %v4503_v8 = vmul.f32 1.442695, %v4477_v63 }
0x11ac   :  { %6316 = vpow2.f32 %v4487_v13  ;;  %v4465_v10 = vmax.f32 %v4461_v56, %v4464_v11  ;;  %v4507_v34 = vmul.f32 1.442695, %v4479_v49  ;;  %v4511_v12 = vmul.f32 1.442695, %v4481_v42 }
0x11ad   :  { %6318 = vpow2.f32 %v4491_v61 }
0x11ae   :  { %6320 = vpow2.f32 %v4495_v36  ;;  %v4466_v7 = vmax.f32 %v4463_v0, %v4465_v10 }
0x11af   :  { %6322 = vpow2.f32 %v4499_v1 }
0x11b0   :  { %v4468_v21 = vsub.f32 %v8823_v14, %v4466_v7  ;;  %v4470_v37 = vsub.f32 %v4424_v59, %v4466_v7  ;;  %v4472_v31 = vsub.f32 %v4426_v43, %v4466_v7  ;;  %6324 = vpow2.f32 %v4503_v8 }
0x11b1   :  { %v4474_v24 = vsub.f32 %v4428_v45, %v4466_v7  ;;  %v4476_v22 = vsub.f32 %v4430_v17, %v4466_v7  ;;  %6326 = vpow2.f32 %v4507_v34  ;;  %v4478_v44 = vsub.f32 %v4432_v54, %v4466_v7 }
0x11b2   :  { %v4485_v39 = vmul.f32 1.442695, %v4468_v21  ;;  %v4489_v3 = vmul.f32 1.442695, %v4470_v37  ;;  %6328 = vpow2.f32 %v4511_v12  ;;  %v4493_v30 = vmul.f32 1.442695, %v4472_v31 }
0x11b3   :  { %v4497_v47 = vmul.f32 1.442695, %v4474_v24  ;;  %v4480_v51 = vsub.f32 %v4434_v23, %v4466_v7  ;;  %v4501_v16 = vmul.f32 1.442695, %v4476_v22  ;;  %v4482_v6 = vsub.f32 %v4436_v20, %v4466_v7 }
0x11b4   :  { %6330 = vpow2.f32 %v4485_v39  ;;  %v4505_v14 = vmul.f32 1.442695, %v4478_v44 }
0x11b5   :  { %6332 = vpow2.f32 %v4489_v3  ;;  %v4509_v54 = vmul.f32 1.442695, %v4480_v51  ;;  %v4513_v13 = vmul.f32 1.442695, %v4482_v6 }
0x11b6   :  { %6334 = vpow2.f32 %v4493_v30 }
0x11b7   :  { %6336 = vpow2.f32 %v4497_v47 }
0x11b8   :  { %v6315_v46 = vpop.eup %6314  ;;  %6338 = vpow2.f32 %v4501_v16 }
0x11b9   :  { %v6317_v43 = vpop.eup %6316  ;;  %v4515_v45 = vsel %vm3410_vm1, %v6315_v46, 0.0  ;;  %4547 = vperm.xlu1 %5551, %v6315_v46   ;;  %6340 = vpow2.f32 %v4505_v14 }
0x11ba   :  { %v6319_v59 = vpop.eup %6318  ;;  %v4516_v17 = vsel %vm3410_vm1, %v6317_v43, 0.0  ;;  %6342 = vpow2.f32 %v4509_v54 }
0x11bb   :  { %v6321_v33 = vpop.eup %6320  ;;  %v4517_v38 = vadd.f32 %v4516_v17, %v4515_v45  ;;  %4567 = vperm.xlu0 %5552, %v6319_v59   ;;  %v4518_v23 = vsel %vm3410_vm1, %v6319_v59, 0.0  ;;  %6344 = vpow2.f32 %v4513_v13 }
0x11bc   :  { %v6323_v61 = vpop.eup %6322  ;;  %v4520_v63 = vsel %vm3410_vm1, %v6321_v33, 0.0 }
0x11bd   :  { %v4519_v20 = vadd.f32 %v4518_v23, %v4517_v38  ;;  %4557 = vperm.xlu1 %5551, %v6317_v43   ;;  %v6325_v36 = vpop.eup %6324  ;;  %v4522_v49 = vsel %vm3410_vm1, %v6323_v61, 0.0  ;;  %v9461_v23 = vmov 0  }
0x11be   :  { %v6327_v56 = vpop.eup %6326  ;;  %v4524_v11 = vsel %vm3410_vm1, %v6325_v36, 0.0 }
0x11bf   :  { %v4521_v5 = vadd.f32 %v4520_v63, %v4519_v20  ;;  %4577 = vperm.xlu0 %5552, %v6321_v33   ;;  %v6329_v52 = vpop.eup %6328  ;;  %v4526_v7 = vsel %vm3410_vm1, %v6327_v56, 0.0 }
0x11c0   :  { %v4528_v24 = vsel %vm3410_vm1, %v6329_v52, 0.0 }
0x11c1   :  { %v4523_v42 = vadd.f32 %v4522_v49, %v4521_v5  ;;  %v6331_v1 = vpop.eup %6330 }
0x11c2   :  { %v6333_v0 = vpop.eup %6332  ;;  %v4530_v8 = vsel %vm3410_vm1, %v6331_v1, 0.0 }
0x11c3   :  { %v4525_v10 = vadd.f32 %v4524_v11, %v4523_v42  ;;  %4587 = vperm.xlu0 %5552, %v6323_v61   ;;  %v6335_v34 = vpop.eup %6334  ;;  %v4531_v12 = vsel %vm3410_vm1, %v6333_v0, 0.0  ;;  %4562 = vperm.xlu1 %5551, %v6333_v0  }
0x11c4   :  { %v6337_v21 = vpop.eup %6336  ;;  %v4532_v31 = vadd.f32 %v4531_v12, %v4530_v8  ;;  %v4533_v22 = vsel %vm3410_vm1, %v6335_v34, 0.0 }
0x11c5   :  { %v4527_v37 = vadd.f32 %v4526_v7, %v4525_v10  ;;  %v6339_v39 = vpop.eup %6338  ;;  %v4535_v30 = vsel %vm3410_vm1, %v6337_v21, 0.0 }
0x11c6   :  { %v4534_v44 = vadd.f32 %v4533_v22, %v4532_v31  ;;  %v6341_v47 = vpop.eup %6340  ;;  %v4537_v16 = vsel %vm3410_vm1, %v6339_v39, 0.0 }
0x11c7   :  { %v4529_v3 = vadd.f32 %v4528_v24, %v4527_v37  ;;  %4552 = vperm.xlu0 %5552, %v6331_v1   ;;  %4572 = vperm.xlu1 %5551, %v6335_v34   ;;  %v6343_v46 = vpop.eup %6342  ;;  %v4539_v14 = vsel %vm3410_vm1, %v6341_v47, 0.0 }
0x11c8   :  { %v4536_v51 = vadd.f32 %v4535_v30, %v4534_v44  ;;  %v6345_v43 = vpop.eup %6344  ;;  %v4541_v59 = vsel %vm3410_vm1, %v6343_v46, 0.0 }
0x11c9   :  { %6346 = vrcp.f32 %v4529_v3  ;;  %v4543_v54 = vsel %vm3410_vm1, %v6345_v43, 0.0 }
0x11ca   :  { %v4538_v6 = vadd.f32 %v4537_v16, %v4536_v51 }
0x11cb   :  { %4597 = vperm.xlu0 %5552, %v6325_v36   ;;  %4582 = vperm.xlu1 %5551, %v6337_v21  }
0x11cc   :  { %v4540_v45 = vadd.f32 %v4539_v14, %v4538_v6 }
0x11ce   :  { %v4542_v17 = vadd.f32 %v4541_v59, %v4540_v45 }
0x11cf   :  { %4607 = vperm.xlu0 %5552, %v6327_v56   ;;  %4592 = vperm.xlu1 %5551, %v6339_v39  }
0x11d0   :  { %v4544_v33 = vadd.f32 %v4543_v54, %v4542_v17 }
0x11d2   :  { %6348 = vrcp.f32 %v4544_v33 }
0x11d3   :  { %4617 = vperm.xlu0 %5552, %v6329_v52   ;;  %4602 = vperm.xlu1 %5551, %v6341_v47  }
0x11d6   :  { %v6347_v38 = vpop.eup %6346 }
0x11d7   :  { %4659 = vperm.xlu0 %5552, %v6347_v38   ;;  %4612 = vperm.xlu1 %5551, %v6343_v46   ;;  %v5781_v38 = vld [vmem:[%s8949_s14 + $0x20] sm:$0xff]  }
0x11db   :  { %5553 = vset.pattern.permute.xlu0 %v9461_v23  ;;  %4622 = vperm.xlu1 %5551, %v6345_v43   ;;  %v5782_v23 = vld [vmem:[%s8949_s14 + $0x18] sm:$0xff]  }
0x11df   :  { %v6349_v13 = vpop.eup %6348 }
0x11e0   :  { %4664 = vperm.xlu1 %5551, %v6349_v13   ;;  %v5783_v13 = vld [vmem:[%s8949_s14 + $0x10] sm:$0xff]  }
0x1234   :  { %v4548_v61 = vpop.permute.xlu1 %4547 }
0x1235   :  { %v4625_v52 = vmul.f32 %v4548_v61, %v8252_v29  ;;  %v5784_v61 = vld [vmem:[%s8949_s14 + $0x8] sm:$0xff]  }
0x1236   :  { %v4568_v20 = vpop.permute.xlu0 %4567 }
0x1237   :  { %v4629_v7 = vmul.f32 %v4568_v20, %v8255_v48  ;;  %v5785_v20 = vld [vmem:[%s8949_s14] sm:$0xff]  }
0x1238   :  { %v4558_v63 = vpop.permute.xlu1 %4557 }
0x1239   :  { %v4627_v42 = vmul.f32 %v4558_v63, %v8250_v55 }
0x123a   :  { %v4578_v36 = vpop.permute.xlu0 %4577 }
0x123b   :  { %v4641_v10 = vadd.f32 %v4627_v42, %v4625_v52  ;;  %v4631_v55 = vmul.f32 %v4578_v36, %v8259_v2 }
0x123d   :  { %v4642_v21 = vadd.f32 %v4641_v10, %v4629_v7 }
0x123e   :  { %v4588_v5 = vpop.permute.xlu0 %4587  ;;  %v4563_v56 = vpop.permute.xlu1 %4562 }
0x123f   :  { %v4628_v34 = vmul.f32 %v4563_v56, %v8264_v4  ;;  %v4643_v39 = vadd.f32 %v4642_v21, %v4631_v55  ;;  %v4633_v44 = vmul.f32 %v4588_v5, %v9361_v35 }
0x1241   :  { %v4644_v51 = vadd.f32 %v4643_v39, %v4633_v44 }
0x1242   :  { %v4553_v49 = vpop.permute.xlu0 %4552  ;;  %v4573_v1 = vpop.permute.xlu1 %4572 }
0x1243   :  { %v4626_v11 = vmul.f32 %v4553_v49, %v8266_v53  ;;  %v4630_v31 = vmul.f32 %v4573_v1, %v8270_v32 }
0x1245   :  { %v4648_v12 = vadd.f32 %v4628_v34, %v4626_v11 }
0x1246   :  { %v4598_v0 = vpop.permute.xlu0 %4597  ;;  %v4583_v8 = vpop.permute.xlu1 %4582 }
0x1247   :  { %v4649_v22 = vadd.f32 %v4648_v12, %v4630_v31  ;;  %v4632_v29 = vmul.f32 %v4583_v8, %v8274_v41  ;;  %v4635_v4 = vmul.f32 %v4598_v0, %v9362_v9 }
0x1249   :  { %v4650_v48 = vadd.f32 %v4649_v22, %v4632_v29  ;;  %v4645_v41 = vadd.f32 %v4644_v51, %v4635_v4 }
0x124a   :  { %v4593_v37 = vpop.permute.xlu1 %4592  ;;  %v4608_v24 = vpop.permute.xlu0 %4607 }
0x124b   :  { %v4634_v3 = vmul.f32 %v4593_v37, %v8276_v27  ;;  %v4637_v32 = vmul.f32 %v4608_v24, %v8285_v18 }
0x124d   :  { %v4651_v2 = vadd.f32 %v4650_v48, %v4634_v3  ;;  %v4646_v27 = vadd.f32 %v4645_v41, %v4637_v32 }
0x124e   :  { %v4603_v53 = vpop.permute.xlu1 %4602  ;;  %v4618_v30 = vpop.permute.xlu0 %4617 }
0x124f   :  { %v4636_v47 = vmul.f32 %v4603_v53, %v8283_v62  ;;  %v4639_v6 = vmul.f32 %v4618_v30, %v8292_v40  ;;  %v5778_v40 = vld [vmem:[%s8949_s14 + $0x38] sm:$0xff]  }
0x1251   :  { %v4652_v14 = vadd.f32 %v4651_v2, %v4636_v47  ;;  %v4647_v45 = vadd.f32 %v4646_v27, %v4639_v6 }
0x1252   :  { %v4613_v16 = vpop.permute.xlu1 %4612  ;;  %v4660_v59 = vpop.permute.xlu0 %4659 }
0x1253   :  { %v4638_v46 = vmul.f32 %v4613_v16, %v9363_v58  ;;  %v4667_v54 = vmul.f32 %v4660_v59, %v4647_v45  ;;  %v5780_v58 = vld [vmem:[%s8949_s14 + $0x28] sm:$0xff]  }
0x1255   :  { %v4653_v35 = vadd.f32 %v4652_v14, %v4638_v46 }
0x1256   :  { %v4623_v43 = vpop.permute.xlu1 %4622 }
0x1257   :  { %v4640_v9 = vmul.f32 %v4623_v43, %v8294_v25  ;;  %v5779_v25 = vld [vmem:[%s8949_s14 + $0x30] sm:$0xff]  }
0x1259   :  { %v4654_v17 = vadd.f32 %v4653_v35, %v4640_v9 }
0x125b   :  { %v4665_v62 = vpop.permute.xlu1 %4664 }
0x125c   :  { %v4668_v33 = vmul.f32 %v4665_v62, %v4654_v17 }
0x125e   :  { %v4669_v18 = vpack.c.bf16 %v4668_v33, %v4667_v54 }
0x1260   :  { %4703 = vmatmul.mubr.bf16.vlgmr.msra.gmra.mxu0 %v4669_v18  ;;  %4746 = vmatmul.mubr.bf16.vlgmr.msra.gmra.mxu1 %v4669_v18  ;;  %v4920_v18 = vld [vmem:[#allocation4] sm:$0x1] }
0x1261   :  { %5528 = vmatprep.mubr.msk.bf16.mxu0 %vm6617_vm0, %v9287_v28  ;;  %5536 = vmatprep.mubr.msk.f32.mxu1 %vm6617_vm0, %v9287_v28 }
0x1262   :  { %5513 = vmatpush3.bf16.msra.mxu0 %v5778_v40  ;;  %4923 = vperm.xlu0 %5553, %v4920_v18  }
0x1263   :  { %5514 = vmatprep.subr.bf16.mxu0 %v9287_v28 }
0x1266   :  { %5515 = vmatpush3.bf16.msra.mxu0 %v5779_v25 }
0x1267   :  { %5516 = vmatprep.subr.bf16.mxu0 %v9287_v28 }
0x126a   :  { %5517 = vmatpush3.bf16.msra.mxu0 %v5780_v58 }
0x126b   :  { %5518 = vmatprep.subr.bf16.mxu0 %v9287_v28 }
0x126e   :  { %5519 = vmatpush3.bf16.msra.mxu0 %v5781_v38 }
0x126f   :  { %5520 = vmatprep.subr.bf16.mxu0 %v9287_v28 }
0x1272   :  { %5521 = vmatpush3.bf16.msra.mxu0 %v5782_v23 }
0x1273   :  { %5522 = vmatprep.subr.bf16.mxu0 %v9287_v28 }
0x1276   :  { %5523 = vmatpush3.bf16.msra.mxu0 %v5783_v13 }
0x1277   :  { %5524 = vmatprep.subr.bf16.mxu0 %v9287_v28 }
0x127a   :  { %5525 = vmatpush3.bf16.msra.mxu0 %v5784_v61 }
0x127b   :  { %5526 = vmatprep.subr.bf16.mxu0 %v9287_v28 }
0x127e   :  { %5527 = vmatpush3.bf16.msra.mxu0 %v5785_v20 }
0x1320   :  { %v4704_v63 = vpop.f32.mrf.mxu0  ;;  %v4747_v5 = vpop.f32.mrf.mxu1 }
0x1321   :  { %v4705_v36 = vadd.f32 %v4704_v63, %v7961_v15  ;;  %v4748_v31 = vadd.f32 %v4747_v5, %v7985_v60  ;;  %v4919_v63 = vld [vmem:[%s8951_s16] sm:$0x1]  ;;  %v9462_v5 = vld [vmem:[#allocation16_spill] sm:$0xff] }
0x1322   :  { %v4706_v56 = vpop.f32.mrf.mxu0  ;;  %v4749_v11 = vpop.f32.mrf.mxu1 }
0x1323   :  { %v5291_v49 = vmul.f32 -1.442695, %v4705_v36  ;;  %v4707_v42 = vadd.f32 %v4706_v56, %v7967_v57  ;;  %v4750_v37 = vadd.f32 %v4749_v11, %v9402_v50  ;;  %v4924_v36 = vpop.permute.xlu0 %4923 }
0x1324   :  { %v4708_v1 = vpop.f32.mrf.mxu0  ;;  %v4751_v7 = vpop.f32.mrf.mxu1  ;;  %v4929_v56 = vrot.slane %v4924_v36, %v9462_v5 }
0x1325   :  { %6350 = vpow2.f32 %v5291_v49  ;;  %v5293_v52 = vmul.f32 -1.442695, %v4707_v42  ;;  %v4709_v0 = vadd.f32 %v4708_v1, %v7961_v15  ;;  %v5295_v22 = vmul.f32 -1.442695, %v4750_v37 }
0x1326   :  { %v4710_v10 = vpop.f32.mrf.mxu0  ;;  %v4753_v21 = vpop.f32.mrf.mxu1  ;;  %v4752_v3 = vadd.f32 %v4751_v7, %v7985_v60 }
0x1327   :  { %6352 = vpow2.f32 %v5293_v52  ;;  %v5292_v8 = vmul.f32 -1.442695, %v4709_v0  ;;  %v4711_v34 = vadd.f32 %v4710_v10, %v7967_v57  ;;  %v4754_v24 = vadd.f32 %v4753_v21, %v9402_v50 }
0x1329   :  { %6354 = vpow2.f32 %v5292_v8  ;;  %v5294_v12 = vmul.f32 -1.442695, %v4711_v34  ;;  %v5296_v39 = vmul.f32 -1.442695, %v4754_v24 }
0x132b   :  { %6356 = vpow2.f32 %v5294_v12 }
0x132c   :  { %6358 = vtanh.f32 %v4748_v31 }
0x1332   :  { %v6351_v55 = vpop.eup %6350 }
0x1333   :  { %v4762_v29 = vadd.f32 1.0, %v6351_v55 }
0x1334   :  { %v6353_v15 = vpop.eup %6352 }
0x1335   :  { %6360 = vrcp.f32 %v4762_v29  ;;  %v4774_v53 = vadd.f32 1.0, %v6353_v15 }
0x1336   :  { %v6355_v57 = vpop.eup %6354  ;;  %6362 = vpow2.f32 %v5295_v22 }
0x1337   :  { %6364 = vrcp.f32 %v4774_v53  ;;  %v4763_v44 = vadd.f32 1.0, %v6355_v57 }
0x1338   :  { %v6357_v4 = vpop.eup %6356  ;;  %6366 = vpow2.f32 %v5296_v39 }
0x1339   :  { %6368 = vrcp.f32 %v4763_v44  ;;  %v4775_v48 = vadd.f32 1.0, %v6357_v4  ;;  %v6359_v50 = vpop.eup %6358 }
0x133a   :  { %6370 = vtanh.f32 %v4752_v3 }
0x133b   :  { %6372 = vrcp.f32 %v4775_v48 }
0x1342   :  { %v6361_v30 = vpop.eup %6360 }
0x1343   :  { %v6363_v47 = vpop.eup %6362  ;;  %v4796_v16 = vmul.f32 %v6361_v30, %v6359_v50 }
0x1344   :  { %v6365_v51 = vpop.eup %6364  ;;  %v4788_v41 = vadd.f32 1.0, %v6363_v47 }
0x1345   :  { %v6367_v32 = vpop.eup %6366  ;;  %v4794_v2 = vmul.f32 %v6365_v51, %v8736_v19 }
0x1346   :  { %v6369_v46 = vpop.eup %6368  ;;  %v4789_v27 = vadd.f32 1.0, %v6367_v32  ;;  %6374 = vrcp.f32 %v4788_v41 }
0x1347   :  { %v6371_v6 = vpop.eup %6370  ;;  %v4798_v60 = vadd.f32 %v4796_v16, %v4794_v2 }
0x1348   :  { %v6373_v14 = vpop.eup %6372  ;;  %v4797_v43 = vmul.f32 %v6371_v6, %v6369_v46 }
0x1349   :  { %v4795_v35 = vmul.f32 %v6373_v14, %v8739_v26  ;;  %6376 = vtanh.f32 %v4798_v60  ;;  %v5297_v26 = vld [vmem:[%s8950_s15] ss:$0 sm:$0xff]  ;;  %s6619_s15 = smov [#allocation11]  }
0x134a   :  { %6378 = vrcp.f32 %v4789_v27  ;;  %s5018_s10 = sshll.u32 %s6619_s15, 4  ;;  %s5019_s10 = int_to_ptr.vmem [resolvable:$true] %s5018_s10 }
0x134b   :  { %v4799_v9 = vadd.f32 %v4797_v43, %v4795_v35  ;;  %s6584_s5 = scalar_lea.vmem %s5019_s10, 16  ;;  %s6588_s11 = scalar_lea.vmem %s5019_s10, 32 }
0x134c   :  { %p6585_p1 = scmp.ne.s32.totalorder %s5019_s10, %s6584_s5  ;;  %p6589_p2 = scmp.lt.s32.totalorder %s5019_s10, %s5019_s10 }
0x134d   :  { %6380 = vtanh.f32 %v4799_v9  ;;  %p6590_p3 = scmp.lt.s32.totalorder %s6588_s11, %s6584_s5 }
0x134f   :  { %p6591_p4 = por %p6590_p3, %p6589_p2 }
0x1351   :  { %p6592_p5 = pnand %p6591_p4, %p6585_p1 }
0x1353   :  { %v6375_v45 = vpop.eup %6374 }
0x1356   :  { %v6377_v59 = vpop.eup %6376 }
0x1357   :  { %v6379_v17 = vpop.eup %6378  ;;  %v4802_v54 = vmul.f32 %v6377_v59, %v6375_v45 }
0x135a   :  { %v6381_v62 = vpop.eup %6380 }
0x135b   :  { %v4803_v19 = vmul.f32 %v6381_v62, %v6379_v17 }
0x135d   :  { %v4804_v33 = vpack.c.bf16 %v4803_v19, %v4802_v54 }
0x135f   :  { %5529 = vmatmul.mubr.bf16.vlgmr.msra.gmra.mxu0 %v4804_v33 }
0x141f   :  { %v4910_v40 = vpop.f32.mrf.mxu0 }
0x1420   :  { %v4911_v13 = vadd.f32 %v5297_v26, %v4910_v40 }
0x1421   :  { %v5530_v25 = vpop.f32.mrf.mxu0 }
0x1422   :  { %v4917_v20 = vmax.f32 %v4911_v13, 0.0 }
0x1423   :  { %v4913_v58 = vpop.f32.mrf.mxu0 }
0x1424   :  { %v4914_v38 = vadd.f32 %v5297_v26, %v4913_v58 }
0x1425   :  { %v5531_v23 = vpop.f32.mrf.mxu0 }
0x1426   :  { %v4918_v61 = vmax.f32 %v4914_v38, 0.0 }
0x1428   :  { %5533 = vmatpush3.xpose.msk.msra.mxu1 %vm4930_vm2, %v4918_v61 }
0x1429   :  { %5534 = vmatprep.subr.mxu1 %v9287_v28 }
0x142c   :  { %5535 = vmatpush3.xpose.msk.msra.mxu1 %vm4930_vm2, %v4917_v20 }
0x142f   :  { %5537 = vmatmul.mubr.msk.f32.vlgmr.msra.gmra.mxu1 %vm4930_vm2, %v4919_v63 }
0x14ef   :  { %v5006_v49 = vpop.f32.mrf.mxu1 }
0x14f0   :  { %v5007_v42 = vadd.f32 %v5006_v49, %v4929_v56 }
0x14f1   :  { %v5538_v1 = vpop.f32.mrf.mxu1 }
0x14f2   :  { %5011 = vst.msk [vmem:[#allocation11] sm:$0x1] %vm5010_vm3, %v5007_v42 }
0x14f3   :  { %6595 = shalt.err (!%p6592_p5)
}
0x14f4   :  { %5021 = dma.vmem_to_hbm [thread:$0]  %s5019_s10, 16, %s8953_s18, [#allocation7]  }
0x14f5   :  { %6608 = dma.done.wait [#allocation7], 16  }
0x14f6   :  { %6609 = vsyncadd [#allocation7], 4294967280 }
0x14f7   :  { %5025 = vsyncpa [#allocation6], 1 }
0x14f8   :  { %5026 = vsyncpa [#allocation9], 1 }
0x14f9   :  { %5027 = vsyncpa [#allocation7], 1 }

</bundles_post_ra>
